<compile_context>
chip_gen: v7x
topology: tpu7x:2x2x1
jax: 0.10.0
libtpu: 0.0.40
codegen_flags: <defaults>
</compile_context>

<pallas_src>
import functools

import jax
import jax.numpy as jnp
from jax.experimental import pallas as pl
from jax.experimental.pallas import tpu as pltpu


def _round_up(v, m):
    return (v + m - 1) // m * m


def _tpu_vmem_bytes():
    try:
        return int(pltpu.get_tpu_info().vmem_capacity_bytes)
    except Exception:  # noqa: BLE001 - fall back to the smallest (v7x) budget
        return 64 << 20


# ----------------------------------------------------------------------------
# Stage 1 (row-tiled): SAGE layer 1 (+ folded BN1 + ReLU) and the node-local
# projections of SAGE layer 2.
#   agg1 = inv_deg * (A_tile @ x_full)                       (MXU, K = N)
#   h1b  = relu(agg1 @ W1l + x_tile @ W1r + shift1) -> bf16  (only live copy)
#   t_l  = h1b @ W2l                 (bf16, consumed by stage-2 aggregation)
#   t_r  = h1b @ W2r + shift2        (f32, root path of layer 2)
# Dropout(p=0.8, training=False) -> identity.
# ----------------------------------------------------------------------------
def _stage1_kernel(a_ref, idg_ref, xt_ref, xf_ref,
                   w1l_ref, w1r_ref, t1_ref,
                   w2l_ref, w2r_ref, t2_ref,
                   tl_ref, tr_ref):
    agg1 = jnp.dot(a_ref[...], xf_ref[...],
                   preferred_element_type=jnp.float32) * idg_ref[...]
    h1 = (jnp.dot(agg1.astype(jnp.bfloat16), w1l_ref[...],
                  preferred_element_type=jnp.float32)
          + jnp.dot(xt_ref[...], w1r_ref[...],
                    preferred_element_type=jnp.float32)
          + t1_ref[...])
    h1b = jnp.maximum(h1, 0.0).astype(jnp.bfloat16)   # fused bias+ReLU+cast
    tl_ref[...] = jnp.dot(h1b, w2l_ref[...],
                          preferred_element_type=jnp.float32).astype(jnp.bfloat16)
    tr_ref[...] = jnp.dot(h1b, w2r_ref[...],
                          preferred_element_type=jnp.float32) + t2_ref[...]


# ----------------------------------------------------------------------------
# Stage 2 (row-tiled): layer-2 aggregation + folded BN2 + ReLU + per-tile
# pooling partials  P_tile @ h2_tile  (summed in stage 3).
# ----------------------------------------------------------------------------
def _stage2_kernel(a_ref, idg_ref, tr_ref, pool_ref, tl_ref, part_ref):
    agg2 = jnp.dot(a_ref[...], tl_ref[...],
                   preferred_element_type=jnp.float32) * idg_ref[...]
    h2 = jnp.maximum(agg2 + tr_ref[...], 0.0)          # f32 [TM, H2]
    part_ref[...] = jnp.dot(pool_ref[...], h2,
                            preferred_element_type=jnp.float32)


# ----------------------------------------------------------------------------
# Stage 3 (tiny, grid-less): sum pooling partials, fc, log_softmax.
# Padded fc bias columns are -1e30 (safe in f32: exp underflows to 0 after the
# max subtraction).  Do NOT switch logits to bf16 without changing sentinel.
# ----------------------------------------------------------------------------
def _tail_kernel(part_ref, wfc_ref, bfc_ref, out_ref):
    pooled = jnp.sum(part_ref[...], axis=0)             # f32 [G, H2]
    logits = jnp.dot(pooled, wfc_ref[...],
                     preferred_element_type=jnp.float32) + bfc_ref[...]
    m = jnp.max(logits, axis=1, keepdims=True)
    z = logits - m
    lse = jnp.log(jnp.sum(jnp.exp(z), axis=1, keepdims=True))
    out_ref[...] = z - lse


@functools.partial(jax.jit, static_argnames=("num_graphs",))
def classify_net_forward(x, edge_index, batch, params, num_graphs):
    """JAX/Pallas equivalent of classify_net.forward (eval mode)."""
    n, f = x.shape
    h1 = params["w1_l"].shape[1]
    h2 = params["w2_l"].shape[1]
    c = params["fc_w"].shape[1]

    f_pad = _round_up(f, 128)
    h1_pad = _round_up(h1, 128)
    h2_pad = _round_up(h2, 128)
    c_pad = _round_up(c, 128)
    g_pad = _round_up(max(num_graphs, 1), 8)

    # Generation-aware row tile / VMEM budget (v7x: 64 MiB, v5e/v6e: 128 MiB).
    vmem_cap = _tpu_vmem_bytes()
    tm_target = 256 if vmem_cap <= (64 << 20) else 512
    n_pad = _round_up(max(n, 1), 128)
    tm = min(tm_target, n_pad)
    n_pad = _round_up(n_pad, tm)
    n_tiles = n_pad // tm
    vmem_limit = min(int(vmem_cap * 3 // 4), 100 << 20)

    # --- unnormalized 0/1 adjacency (bf16) + 1/deg vector --------------------
    src, dst = edge_index[0], edge_index[1]
    adj = jnp.zeros((n_pad, n_pad), jnp.float32).at[dst, src].add(1.0)
    adj = adj.astype(jnp.bfloat16)                       # N^2 f32 is short-lived
    deg = jnp.zeros((n_pad,), jnp.float32).at[dst].add(1.0)
    inv_deg = (1.0 / jnp.maximum(deg, 1.0)).reshape(n_pad, 1)

    # --- mean-pool operator P[g, i] = 1/|graph g| if batch[i] == g -----------
    # Padded nodes get sentinel graph id g_pad -> match no row; padded node
    # rows of h2 may be nonzero (folded BN shift) and rely on this zeroing.
    batch_pad = jnp.pad(batch, (0, n_pad - n), constant_values=g_pad)
    onehot = (batch_pad[None, :]
              == jnp.arange(g_pad, dtype=batch.dtype)[:, None]).astype(jnp.float32)
    counts = jnp.sum(onehot, axis=1, keepdims=True)
    pool = onehot / jnp.maximum(counts, 1.0)             # f32 [G, N]

    # --- fold eval-mode BN scale into weight columns, bias into the shift ----
    eps = 1e-5
    s1 = params["bn1_gamma"] / jnp.sqrt(params["bn1_var"] + eps)
    shift1 = params["b1"] * s1 + params["bn1_beta"] - params["bn1_mean"] * s1
    s2 = params["bn2_gamma"] / jnp.sqrt(params["bn2_var"] + eps)
    shift2 = params["b2"] * s2 + params["bn2_beta"] - params["bn2_mean"] * s2

    def pad2(a, r, cdim):
        return jnp.pad(a, ((0, r - a.shape[0]), (0, cdim - a.shape[1])))

    w1l = pad2(params["w1_l"] * s1, f_pad, h1_pad).astype(jnp.bfloat16)
    w1r = pad2(params["w1_r"] * s1, f_pad, h1_pad).astype(jnp.bfloat16)
    w2l = pad2(params["w2_l"] * s2, h1_pad, h2_pad).astype(jnp.bfloat16)
    w2r = pad2(params["w2_r"] * s2, h1_pad, h2_pad).astype(jnp.bfloat16)
    shift1_p = jnp.pad(shift1, ((0, 0), (0, h1_pad - h1)))
    shift2_p = jnp.pad(shift2, ((0, 0), (0, h2_pad - h2)))
    fc_w = pad2(params["fc_w"], h2_pad, c_pad)            # f32
    fc_b = jnp.pad(params["fc_b"], ((0, 0), (0, c_pad - c)),
                   constant_values=-1e30)                 # f32-only sentinel

    x_bf = jnp.pad(x, ((0, n_pad - n), (0, f_pad - f))).astype(jnp.bfloat16)

    def row(bs):
        return pl.BlockSpec(bs, lambda i: (i, 0))

    def const(bs):
        return pl.BlockSpec(bs, lambda i: (0, 0))

    # ------------------------------- stage 1 ---------------------------------
    flops1 = int(2 * n_pad * n_pad * f_pad
                 + 4 * n_pad * f_pad * h1_pad
                 + 4 * n_pad * h1_pad * h2_pad)
    bytes1 = int(2 * n_pad * n_pad + 4 * n_pad * f_pad
                 + 4 * f_pad * h1_pad + 4 * h1_pad * h2_pad
                 + 6 * n_pad * h2_pad)
    t_l, t_r = pl.pallas_call(
        _stage1_kernel,
        out_shape=(jax.ShapeDtypeStruct((n_pad, h2_pad), jnp.bfloat16),
                   jax.ShapeDtypeStruct((n_pad, h2_pad), jnp.float32)),
        grid=(n_tiles,),
        in_specs=[row((tm, n_pad)),             # A row tile (streamed)
                  row((tm, 1)),                 # 1/deg row tile
                  row((tm, f_pad)),             # x row tile (root path)
                  const((n_pad, f_pad)),        # x full (neighbor path, resident)
                  const((f_pad, h1_pad)),       # W1l (resident)
                  const((f_pad, h1_pad)),       # W1r (resident)
                  const((1, h1_pad)),           # shift1
                  const((h1_pad, h2_pad)),      # W2l (resident)
                  const((h1_pad, h2_pad)),      # W2r (resident)
                  const((1, h2_pad))],          # shift2
        out_specs=(row((tm, h2_pad)), row((tm, h2_pad))),
        compiler_params=pltpu.CompilerParams(
            dimension_semantics=("parallel",), vmem_limit_bytes=vmem_limit),
        cost_estimate=pl.CostEstimate(flops=flops1, transcendentals=0,
                                      bytes_accessed=bytes1),
    )(adj, inv_deg, x_bf, x_bf, w1l, w1r, shift1_p, w2l, w2r, shift2_p)

    # ------------------------------- stage 2 ---------------------------------
    flops2 = int(2 * n_pad * n_pad * h2_pad + 2 * g_pad * n_pad * h2_pad)
    bytes2 = int(2 * n_pad * n_pad + 6 * n_pad * h2_pad
                 + 4 * g_pad * n_pad + 4 * n_tiles * g_pad * h2_pad)
    pooled_part = pl.pallas_call(
        _stage2_kernel,
        out_shape=jax.ShapeDtypeStruct((n_tiles, g_pad, h2_pad), jnp.float32),
        grid=(n_tiles,),
        in_specs=[row((tm, n_pad)),                              # A row tile
                  row((tm, 1)),                                  # 1/deg
                  row((tm, h2_pad)),                             # t_r row tile
                  pl.BlockSpec((g_pad, tm), lambda i: (0, i)),   # pool col tile
                  const((n_pad, h2_pad))],                       # t_l (resident)
        out_specs=pl.BlockSpec((None, g_pad, h2_pad), lambda i: (i, 0, 0)),
        compiler_params=pltpu.CompilerParams(
            dimension_semantics=("parallel",), vmem_limit_bytes=vmem_limit),
        cost_estimate=pl.CostEstimate(flops=flops2, transcendentals=0,
                                      bytes_accessed=bytes2),
    )(adj, inv_deg, t_r, pool, t_l)

    # ------------------------------- stage 3 (tail) --------------------------
    vmem = pl.BlockSpec(memory_space=pltpu.MemorySpace.VMEM)
    out = pl.pallas_call(
        _tail_kernel,
        out_shape=jax.ShapeDtypeStruct((g_pad, c_pad), jnp.float32),
        in_specs=[vmem, vmem, vmem],
        out_specs=vmem,
        compiler_params=pltpu.CompilerParams(vmem_limit_bytes=vmem_limit),
        cost_estimate=pl.CostEstimate(
            flops=int(2 * g_pad * h2_pad * c_pad + n_tiles * g_pad * h2_pad),
            transcendentals=int(g_pad * c_pad),
            bytes_accessed=int(4 * (n_tiles * g_pad * h2_pad
                                    + h2_pad * c_pad + 2 * g_pad * c_pad))),
    )(pooled_part, fc_w, fc_b)

    return out[:num_graphs, :c]


def init_params(key, input_dim, h1=1550, h2=512, num_classes=50):
    """Deterministic synthetic parameters; weights stored as [in, out]."""
    ks = jax.random.split(key, 8)

    def glorot(k, fan_in, fan_out):
        lim = (6.0 / (fan_in + fan_out)) ** 0.5
        return jax.random.uniform(k, (fan_in, fan_out), jnp.float32,
                                  minval=-lim, maxval=lim)

    return {
        # SAGEConv1: lin_l (aggregated neighbors, with bias), lin_r (root).
        "w1_l": glorot(ks[0], input_dim, h1),
        "w1_r": glorot(ks[1], input_dim, h1),
        "b1": jnp.zeros((1, h1), jnp.float32),
        # BatchNorm1d(1550) defaults.
        "bn1_gamma": jnp.ones((1, h1), jnp.float32),
        "bn1_beta": jnp.zeros((1, h1), jnp.float32),
        "bn1_mean": jnp.zeros((1, h1), jnp.float32),
        "bn1_var": jnp.ones((1, h1), jnp.float32),
        # SAGEConv2.
        "w2_l": glorot(ks[2], h1, h2),
        "w2_r": glorot(ks[3], h1, h2),
        "b2": jnp.zeros((1, h2), jnp.float32),
        # BatchNorm1d(512) defaults.
        "bn2_gamma": jnp.ones((1, h2), jnp.float32),
        "bn2_beta": jnp.zeros((1, h2), jnp.float32),
        "bn2_mean": jnp.zeros((1, h2), jnp.float32),
        "bn2_var": jnp.ones((1, h2), jnp.float32),
        # fc: Linear(512, 50).
        "fc_w": glorot(ks[4], h2, num_classes),
        "fc_b": jax.random.uniform(ks[5], (1, num_classes), jnp.float32,
                                   minval=-0.05, maxval=0.05),
    }


if __name__ == "__main__":
    key = jax.random.PRNGKey(0)
    k_x, k_e, k_p = jax.random.split(key, 3)

    input_dim = 32       # node feature dim (module's `input_dim`)
    num_graphs = 2
    nodes_per_graph = 4
    edges_per_graph = 8
    num_nodes = num_graphs * nodes_per_graph

    # Node features, intra-graph edge index (src; dst), graph assignment.
    x = jax.random.normal(k_x, (num_nodes, input_dim), jnp.float32)
    e_local = jax.random.randint(k_e, (2, num_graphs, edges_per_graph), 0,
                                 nodes_per_graph, dtype=jnp.int32)
    offsets = (jnp.arange(num_graphs, dtype=jnp.int32)
               * nodes_per_graph)[None, :, None]
    edge_index = (e_local + offsets).reshape(2, num_graphs * edges_per_graph)
    batch = jnp.repeat(jnp.arange(num_graphs, dtype=jnp.int32),
                       nodes_per_graph)

    params = init_params(k_p, input_dim)

    out = classify_net_forward(x, edge_index, batch, params,
                               num_graphs=num_graphs)
    jax.block_until_ready(out)

    assert out.shape == (num_graphs, 50)
    # log_softmax rows must exp-sum to 1.
    assert bool(jnp.all(jnp.abs(jnp.sum(jnp.exp(out), axis=1) - 1.0) < 1e-3))
    print("KERNEL_OK")
</pallas_src>

<mosaic_0001>
module attributes {stable_mosaic.version = 11 : i64} {
  func.func private @main(%arg0: i32) attributes {dimension_semantics = [#tpu.dimension_semantics<core_parallel>], iteration_bounds = array<i64: 2>, tpu.core_type = #tpu.core_type<sc_scalar_subcore>, window_params = []} {
    return
  }
}

module attributes {stable_mosaic.version = 11 : i64} {
  func.func private @main(%arg0: i32) attributes {dimension_semantics = [#tpu.dimension_semantics<core_parallel>], iteration_bounds = array<i64: 2>, tpu.core_type = #tpu.core_type<sc_scalar_subcore>, window_params = []} {
    return
  }
}

module attributes {stable_mosaic.version = 11 : i64} {
  func.func @_stage1_kernel(%arg0: i32, %arg1: memref<128x128xbf16, #tpu.memory_space<vmem>>, %arg2: memref<128x1xf32, #tpu.memory_space<vmem>>, %arg3: memref<128x128xbf16, #tpu.memory_space<vmem>>, %arg4: memref<128x128xbf16, #tpu.memory_space<vmem>>, %arg5: memref<128x1664xbf16, #tpu.memory_space<vmem>>, %arg6: memref<128x1664xbf16, #tpu.memory_space<vmem>>, %arg7: memref<1x1664xf32, #tpu.memory_space<vmem>>, %arg8: memref<1664x512xbf16, #tpu.memory_space<vmem>>, %arg9: memref<1664x512xbf16, #tpu.memory_space<vmem>>, %arg10: memref<1x512xf32, #tpu.memory_space<vmem>>, %arg11: memref<128x512xbf16, #tpu.memory_space<vmem>>, %arg12: memref<128x512xf32, #tpu.memory_space<vmem>>) attributes {dimension_semantics = [#tpu.dimension_semantics<parallel>], iteration_bounds = array<i64: 1>, scalar_prefetch = 0 : i64, scratch_operands = 0 : i64, tpu.core_type = #tpu.core_type<tc>, window_params = [{transform_indices = @transform_0, window_bounds = array<i64: 128, 128>}, {transform_indices = @transform_1, window_bounds = array<i64: 128, 1>}, {transform_indices = @transform_2, window_bounds = array<i64: 128, 128>}, {pipeline_mode = #tpu.pipeline_mode<synchronous>, transform_indices = @transform_3, window_bounds = array<i64: 128, 128>}, {pipeline_mode = #tpu.pipeline_mode<synchronous>, transform_indices = @transform_4, window_bounds = array<i64: 128, 1664>}, {pipeline_mode = #tpu.pipeline_mode<synchronous>, transform_indices = @transform_5, window_bounds = array<i64: 128, 1664>}, {pipeline_mode = #tpu.pipeline_mode<synchronous>, transform_indices = @transform_6, window_bounds = array<i64: 1, 1664>}, {pipeline_mode = #tpu.pipeline_mode<synchronous>, transform_indices = @transform_7, window_bounds = array<i64: 1664, 512>}, {pipeline_mode = #tpu.pipeline_mode<synchronous>, transform_indices = @transform_8, window_bounds = array<i64: 1664, 512>}, {pipeline_mode = #tpu.pipeline_mode<synchronous>, transform_indices = @transform_9, window_bounds = array<i64: 1, 512>}, {transform_indices = @transform_10, window_bounds = array<i64: 128, 512>}, {transform_indices = @transform_11, window_bounds = array<i64: 128, 512>}]} {
    %c0 = arith.constant 0 : index
    %c0_0 = arith.constant 0 : index
    %0 = vector.load %arg1[%c0, %c0_0] : memref<128x128xbf16, #tpu.memory_space<vmem>>, vector<128x128xbf16>
    %c0_1 = arith.constant 0 : index
    %c0_2 = arith.constant 0 : index
    %1 = vector.load %arg4[%c0_1, %c0_2] : memref<128x128xbf16, #tpu.memory_space<vmem>>, vector<128x128xbf16>
    %cst = arith.constant dense<0.000000e+00> : vector<128x128xf32>
    %2 = tpu.matmul %0, %1, %cst {dimension_numbers = #tpu.dot_dimension_numbers<[1], [0], [0], [1], [0, 0, 1, 1], [], []>} : vector<128x128xbf16>, vector<128x128xbf16>, vector<128x128xf32> -> vector<128x128xf32>
    %c0_3 = arith.constant 0 : index
    %c0_4 = arith.constant 0 : index
    %3 = vector.load %arg2[%c0_3, %c0_4] : memref<128x1xf32, #tpu.memory_space<vmem>>, vector<128x1xf32>
    %4 = vector.broadcast %3 : vector<128x1xf32> to vector<128x128xf32>
    %5 = arith.mulf %2, %4 : vector<128x128xf32>
    %6 = arith.truncf %5 : vector<128x128xf32> to vector<128x128xbf16>
    %c0_5 = arith.constant 0 : index
    %c0_6 = arith.constant 0 : index
    %7 = vector.load %arg5[%c0_5, %c0_6] : memref<128x1664xbf16, #tpu.memory_space<vmem>>, vector<128x1664xbf16>
    %cst_7 = arith.constant dense<0.000000e+00> : vector<128x1664xf32>
    %8 = tpu.matmul %6, %7, %cst_7 {dimension_numbers = #tpu.dot_dimension_numbers<[1], [0], [0], [1], [0, 0, 1, 1], [], []>} : vector<128x128xbf16>, vector<128x1664xbf16>, vector<128x1664xf32> -> vector<128x1664xf32>
    %c0_8 = arith.constant 0 : index
    %c0_9 = arith.constant 0 : index
    %9 = vector.load %arg3[%c0_8, %c0_9] : memref<128x128xbf16, #tpu.memory_space<vmem>>, vector<128x128xbf16>
    %c0_10 = arith.constant 0 : index
    %c0_11 = arith.constant 0 : index
    %10 = vector.load %arg6[%c0_10, %c0_11] : memref<128x1664xbf16, #tpu.memory_space<vmem>>, vector<128x1664xbf16>
    %cst_12 = arith.constant dense<0.000000e+00> : vector<128x1664xf32>
    %11 = tpu.matmul %9, %10, %cst_12 {dimension_numbers = #tpu.dot_dimension_numbers<[1], [0], [0], [1], [0, 0, 1, 1], [], []>} : vector<128x128xbf16>, vector<128x1664xbf16>, vector<128x1664xf32> -> vector<128x1664xf32>
    %12 = arith.addf %8, %11 : vector<128x1664xf32>
    %c0_13 = arith.constant 0 : index
    %c0_14 = arith.constant 0 : index
    %13 = vector.load %arg7[%c0_13, %c0_14] : memref<1x1664xf32, #tpu.memory_space<vmem>>, vector<1x1664xf32>
    %14 = vector.broadcast %13 : vector<1x1664xf32> to vector<128x1664xf32>
    %15 = arith.addf %12, %14 : vector<128x1664xf32>
    %cst_15 = arith.constant 0.000000e+00 : f32
    %16 = vector.broadcast %cst_15 : f32 to vector<128x1664xf32>
    %17 = arith.maximumf %15, %16 : vector<128x1664xf32>
    %18 = arith.truncf %17 : vector<128x1664xf32> to vector<128x1664xbf16>
    %c0_16 = arith.constant 0 : index
    %c0_17 = arith.constant 0 : index
    %19 = vector.load %arg8[%c0_16, %c0_17] : memref<1664x512xbf16, #tpu.memory_space<vmem>>, vector<1664x512xbf16>
    %cst_18 = arith.constant dense<0.000000e+00> : vector<128x512xf32>
    %20 = tpu.matmul %18, %19, %cst_18 {dimension_numbers = #tpu.dot_dimension_numbers<[1], [0], [0], [1], [0, 0, 1, 1], [], []>} : vector<128x1664xbf16>, vector<1664x512xbf16>, vector<128x512xf32> -> vector<128x512xf32>
    %21 = arith.truncf %20 : vector<128x512xf32> to vector<128x512xbf16>
    %c0_19 = arith.constant 0 : index
    %c0_20 = arith.constant 0 : index
    %22 = vector.load %arg11[%c0_19, %c0_20] : memref<128x512xbf16, #tpu.memory_space<vmem>>, vector<128x512xbf16>
    tpu.vector_store %arg11[%c0_19, %c0_20], %21 {strides = array<i32>} : memref<128x512xbf16, #tpu.memory_space<vmem>>, vector<128x512xbf16>,
    %c0_21 = arith.constant 0 : index
    %c0_22 = arith.constant 0 : index
    %23 = vector.load %arg9[%c0_21, %c0_22] : memref<1664x512xbf16, #tpu.memory_space<vmem>>, vector<1664x512xbf16>
    %cst_23 = arith.constant dense<0.000000e+00> : vector<128x512xf32>
    %24 = tpu.matmul %18, %23, %cst_23 {dimension_numbers = #tpu.dot_dimension_numbers<[1], [0], [0], [1], [0, 0, 1, 1], [], []>} : vector<128x1664xbf16>, vector<1664x512xbf16>, vector<128x512xf32> -> vector<128x512xf32>
    %c0_24 = arith.constant 0 : index
    %c0_25 = arith.constant 0 : index
    %25 = vector.load %arg10[%c0_24, %c0_25] : memref<1x512xf32, #tpu.memory_space<vmem>>, vector<1x512xf32>
    %26 = vector.broadcast %25 : vector<1x512xf32> to vector<128x512xf32>
    %27 = arith.addf %24, %26 : vector<128x512xf32>
    %c0_26 = arith.constant 0 : index
    %c0_27 = arith.constant 0 : index
    %28 = vector.load %arg12[%c0_26, %c0_27] : memref<128x512xf32, #tpu.memory_space<vmem>>, vector<128x512xf32>
    tpu.vector_store %arg12[%c0_26, %c0_27], %27 {strides = array<i32>} : memref<128x512xf32, #tpu.memory_space<vmem>>, vector<128x512xf32>,
    return
  }
  func.func @transform_0(%arg0: i32) -> (i32, i32) {
    %c0_i32 = arith.constant 0 : i32
    %c0_i32_0 = arith.constant 0 : i32
    return %arg0, %c0_i32 : i32, i32
  }
  func.func @transform_1(%arg0: i32) -> (i32, i32) {
    %c0_i32 = arith.constant 0 : i32
    %c0_i32_0 = arith.constant 0 : i32
    return %arg0, %c0_i32 : i32, i32
  }
  func.func @transform_2(%arg0: i32) -> (i32, i32) {
    %c0_i32 = arith.constant 0 : i32
    %c0_i32_0 = arith.constant 0 : i32
    return %arg0, %c0_i32 : i32, i32
  }
  func.func @transform_3(%arg0: i32) -> (i32, i32) {
    %c0_i32 = arith.constant 0 : i32
    %c0_i32_0 = arith.constant 0 : i32
    %c0_i32_1 = arith.constant 0 : i32
    return %c0_i32, %c0_i32_0 : i32, i32
  }
  func.func @transform_4(%arg0: i32) -> (i32, i32) {
    %c0_i32 = arith.constant 0 : i32
    %c0_i32_0 = arith.constant 0 : i32
    %c0_i32_1 = arith.constant 0 : i32
    return %c0_i32, %c0_i32_0 : i32, i32
  }
  func.func @transform_5(%arg0: i32) -> (i32, i32) {
    %c0_i32 = arith.constant 0 : i32
    %c0_i32_0 = arith.constant 0 : i32
    %c0_i32_1 = arith.constant 0 : i32
    return %c0_i32, %c0_i32_0 : i32, i32
  }
  func.func @transform_6(%arg0: i32) -> (i32, i32) {
    %c0_i32 = arith.constant 0 : i32
    %c0_i32_0 = arith.constant 0 : i32
    %c0_i32_1 = arith.constant 0 : i32
    return %c0_i32, %c0_i32_0 : i32, i32
  }
  func.func @transform_7(%arg0: i32) -> (i32, i32) {
    %c0_i32 = arith.constant 0 : i32
    %c0_i32_0 = arith.constant 0 : i32
    %c0_i32_1 = arith.constant 0 : i32
    return %c0_i32, %c0_i32_0 : i32, i32
  }
  func.func @transform_8(%arg0: i32) -> (i32, i32) {
    %c0_i32 = arith.constant 0 : i32
    %c0_i32_0 = arith.constant 0 : i32
    %c0_i32_1 = arith.constant 0 : i32
    return %c0_i32, %c0_i32_0 : i32, i32
  }
  func.func @transform_9(%arg0: i32) -> (i32, i32) {
    %c0_i32 = arith.constant 0 : i32
    %c0_i32_0 = arith.constant 0 : i32
    %c0_i32_1 = arith.constant 0 : i32
    return %c0_i32, %c0_i32_0 : i32, i32
  }
  func.func @transform_10(%arg0: i32) -> (i32, i32) {
    %c0_i32 = arith.constant 0 : i32
    %c0_i32_0 = arith.constant 0 : i32
    return %arg0, %c0_i32 : i32, i32
  }
  func.func @transform_11(%arg0: i32) -> (i32, i32) {
    %c0_i32 = arith.constant 0 : i32
    %c0_i32_0 = arith.constant 0 : i32
    return %arg0, %c0_i32 : i32, i32
  }
}

module attributes {stable_mosaic.version = 11 : i64} {
  func.func @_stage2_kernel(%arg0: i32, %arg1: memref<128x128xbf16, #tpu.memory_space<vmem>>, %arg2: memref<128x1xf32, #tpu.memory_space<vmem>>, %arg3: memref<128x512xf32, #tpu.memory_space<vmem>>, %arg4: memref<8x128xf32, #tpu.memory_space<vmem>>, %arg5: memref<128x512xbf16, #tpu.memory_space<vmem>>, %arg6: memref<1x8x512xf32, #tpu.memory_space<vmem>>) attributes {dimension_semantics = [#tpu.dimension_semantics<parallel>], iteration_bounds = array<i64: 1>, scalar_prefetch = 0 : i64, scratch_operands = 0 : i64, tpu.core_type = #tpu.core_type<tc>, window_params = [{transform_indices = @transform_0, window_bounds = array<i64: 128, 128>}, {transform_indices = @transform_1, window_bounds = array<i64: 128, 1>}, {transform_indices = @transform_2, window_bounds = array<i64: 128, 512>}, {transform_indices = @transform_3, window_bounds = array<i64: 8, 128>}, {pipeline_mode = #tpu.pipeline_mode<synchronous>, transform_indices = @transform_4, window_bounds = array<i64: 128, 512>}, {transform_indices = @transform_5, window_bounds = array<i64: 1, 8, 512>}]} {
    %c0 = arith.constant 0 : index
    %c0_0 = arith.constant 0 : index
    %0 = vector.load %arg1[%c0, %c0_0] : memref<128x128xbf16, #tpu.memory_space<vmem>>, vector<128x128xbf16>
    %c0_1 = arith.constant 0 : index
    %c0_2 = arith.constant 0 : index
    %1 = vector.load %arg5[%c0_1, %c0_2] : memref<128x512xbf16, #tpu.memory_space<vmem>>, vector<128x512xbf16>
    %cst = arith.constant dense<0.000000e+00> : vector<128x512xf32>
    %2 = tpu.matmul %0, %1, %cst {dimension_numbers = #tpu.dot_dimension_numbers<[1], [0], [0], [1], [0, 0, 1, 1], [], []>} : vector<128x128xbf16>, vector<128x512xbf16>, vector<128x512xf32> -> vector<128x512xf32>
    %c0_3 = arith.constant 0 : index
    %c0_4 = arith.constant 0 : index
    %3 = vector.load %arg2[%c0_3, %c0_4] : memref<128x1xf32, #tpu.memory_space<vmem>>, vector<128x1xf32>
    %4 = vector.broadcast %3 : vector<128x1xf32> to vector<128x512xf32>
    %5 = arith.mulf %2, %4 : vector<128x512xf32>
    %c0_5 = arith.constant 0 : index
    %c0_6 = arith.constant 0 : index
    %6 = vector.load %arg3[%c0_5, %c0_6] : memref<128x512xf32, #tpu.memory_space<vmem>>, vector<128x512xf32>
    %7 = arith.addf %5, %6 : vector<128x512xf32>
    %cst_7 = arith.constant 0.000000e+00 : f32
    %8 = vector.broadcast %cst_7 : f32 to vector<128x512xf32>
    %9 = arith.maximumf %7, %8 : vector<128x512xf32>
    %c0_8 = arith.constant 0 : index
    %c0_9 = arith.constant 0 : index
    %10 = vector.load %arg4[%c0_8, %c0_9] : memref<8x128xf32, #tpu.memory_space<vmem>>, vector<8x128xf32>
    %cst_10 = arith.constant dense<0.000000e+00> : vector<8x512xf32>
    %11 = tpu.matmul %10, %9, %cst_10 {dimension_numbers = #tpu.dot_dimension_numbers<[1], [0], [0], [1], [0, 0, 1, 1], [], []>} : vector<8x128xf32>, vector<128x512xf32>, vector<8x512xf32> -> vector<8x512xf32>
    %c0_11 = arith.constant 0 : index
    %c0_12 = arith.constant 0 : index
    %c0_13 = arith.constant 0 : index
    %12 = vector.load %arg6[%c0_11, %c0_12, %c0_13] : memref<1x8x512xf32, #tpu.memory_space<vmem>>, vector<1x8x512xf32>
    %13 = vector.shape_cast %12 : vector<1x8x512xf32> to vector<8x512xf32>
    %14 = vector.shape_cast %11 : vector<8x512xf32> to vector<1x8x512xf32>
    tpu.vector_store %arg6[%c0_11, %c0_12, %c0_13], %14 {strides = array<i32>} : memref<1x8x512xf32, #tpu.memory_space<vmem>>, vector<1x8x512xf32>,
    return
  }
  func.func @transform_0(%arg0: i32) -> (i32, i32) {
    %c0_i32 = arith.constant 0 : i32
    %c0_i32_0 = arith.constant 0 : i32
    return %arg0, %c0_i32 : i32, i32
  }
  func.func @transform_1(%arg0: i32) -> (i32, i32) {
    %c0_i32 = arith.constant 0 : i32
    %c0_i32_0 = arith.constant 0 : i32
    return %arg0, %c0_i32 : i32, i32
  }
  func.func @transform_2(%arg0: i32) -> (i32, i32) {
    %c0_i32 = arith.constant 0 : i32
    %c0_i32_0 = arith.constant 0 : i32
    return %arg0, %c0_i32 : i32, i32
  }
  func.func @transform_3(%arg0: i32) -> (i32, i32) {
    %c0_i32 = arith.constant 0 : i32
    %c0_i32_0 = arith.constant 0 : i32
    return %c0_i32, %arg0 : i32, i32
  }
  func.func @transform_4(%arg0: i32) -> (i32, i32) {
    %c0_i32 = arith.constant 0 : i32
    %c0_i32_0 = arith.constant 0 : i32
    %c0_i32_1 = arith.constant 0 : i32
    return %c0_i32, %c0_i32_0 : i32, i32
  }
  func.func @transform_5(%arg0: i32) -> (i32, i32, i32) {
    %c0_i32 = arith.constant 0 : i32
    %c0_i32_0 = arith.constant 0 : i32
    %c0_i32_1 = arith.constant 0 : i32
    return %arg0, %c0_i32, %c0_i32_0 : i32, i32, i32
  }
}

module attributes {stable_mosaic.version = 11 : i64} {
  func.func @_tail_kernel(%arg0: memref<1x8x512xf32, #tpu.memory_space<vmem>>, %arg1: memref<512x128xf32, #tpu.memory_space<vmem>>, %arg2: memref<1x128xf32, #tpu.memory_space<vmem>>, %arg3: memref<8x128xf32, #tpu.memory_space<vmem>>) attributes {dimension_semantics = [], scalar_prefetch = 0 : i64, scratch_operands = 0 : i64, tpu.core_type = #tpu.core_type<tc>} {
    %c0 = arith.constant 0 : index
    %c0_0 = arith.constant 0 : index
    %c0_1 = arith.constant 0 : index
    %0 = vector.load %arg0[%c0, %c0_0, %c0_1] : memref<1x8x512xf32, #tpu.memory_space<vmem>>, vector<1x8x512xf32>
    %cst = arith.constant dense<0.000000e+00> : vector<8x512xf32>
    %1 = vector.multi_reduction <add>, %0, %cst [0] : vector<1x8x512xf32> to vector<8x512xf32>
    %c0_2 = arith.constant 0 : index
    %c0_3 = arith.constant 0 : index
    %2 = vector.load %arg1[%c0_2, %c0_3] : memref<512x128xf32, #tpu.memory_space<vmem>>, vector<512x128xf32>
    %cst_4 = arith.constant dense<0.000000e+00> : vector<8x128xf32>
    %3 = tpu.matmul %1, %2, %cst_4 {dimension_numbers = #tpu.dot_dimension_numbers<[1], [0], [0], [1], [0, 0, 1, 1], [], []>} : vector<8x512xf32>, vector<512x128xf32>, vector<8x128xf32> -> vector<8x128xf32>
    %c0_5 = arith.constant 0 : index
    %c0_6 = arith.constant 0 : index
    %4 = vector.load %arg2[%c0_5, %c0_6] : memref<1x128xf32, #tpu.memory_space<vmem>>, vector<1x128xf32>
    %5 = vector.broadcast %4 : vector<1x128xf32> to vector<8x128xf32>
    %6 = arith.addf %3, %5 : vector<8x128xf32>
    %cst_7 = arith.constant dense<0xFF800000> : vector<8xf32>
    %7 = vector.multi_reduction <maximumf>, %6, %cst_7 [1] : vector<8x128xf32> to vector<8xf32>
    %8 = vector.shape_cast %7 : vector<8xf32> to vector<8x1xf32>
    %9 = vector.broadcast %8 : vector<8x1xf32> to vector<8x128xf32>
    %10 = arith.subf %6, %9 : vector<8x128xf32>
    %11 = math.exp %10 : vector<8x128xf32>
    %cst_8 = arith.constant dense<0.000000e+00> : vector<8xf32>
    %12 = vector.multi_reduction <add>, %11, %cst_8 [1] : vector<8x128xf32> to vector<8xf32>
    %13 = vector.shape_cast %12 : vector<8xf32> to vector<8x1xf32>
    %14 = math.log %13 : vector<8x1xf32>
    %15 = vector.broadcast %14 : vector<8x1xf32> to vector<8x128xf32>
    %16 = arith.subf %10, %15 : vector<8x128xf32>
    %c0_9 = arith.constant 0 : index
    %c0_10 = arith.constant 0 : index
    %17 = vector.load %arg3[%c0_9, %c0_10] : memref<8x128xf32, #tpu.memory_space<vmem>>, vector<8x128xf32>
    tpu.vector_store %arg3[%c0_9, %c0_10], %16 {strides = array<i32>} : memref<8x128xf32, #tpu.memory_space<vmem>>, vector<8x128xf32>,
    return
  }
}

</mosaic_0001>

<bundles_post_ra>
// kernel: classify_net_forward.4
= control target key start
LH: loop header
LB: loop body
LE: loop exit
PB: predicated region body
PF: predicated region fallthrough
CT: control target
= control target key end

     0   :  { %v1170_v1 = vmov 0   ;;  %v1171_v57 = vmov 0.0   ;;  %s1595_s4 = inlined_call_operand.vmem [shape: bf16[128,512], index: 4, kind: input, shape index: {}]   ;;  %s1596_s0 = inlined_call_operand.vmem [shape: bf16[128,128], index: 0, kind: input, shape index: {}]   ;;  %s1597_s1 = inlined_call_operand.vmem [shape: f32[128,1], index: 1, kind: input, shape index: {}]   ;;  %s1598_s2 = inlined_call_operand.vmem [shape: f32[128,512], index: 2, kind: input, shape index: {}]   ;;  %s1599_s3 = inlined_call_operand.vmem [shape: f32[8,128], index: 3, kind: input, shape index: {}]   ;;  %s1600_s5 = inlined_call_operand.vmem [shape: f32[1,8,512], index: 5, kind: output, shape index: {}]  }
   0x1   :  { %v1114_v0 = vld [vmem:[%s1595_s4 + $0x4] ss:$16 sps:$4 sm:$0xff]   ;;  %309 = vmatprep.mubr.bf16.mxu0 %v1170_v1  ;;  %422 = vmatprep.mubr.bf16.mxu1 %v1170_v1  ;;  %v1116_v2 = vld [vmem:[%s1595_s4 + $0xc] ss:$16 sps:$4 sm:$0xff]   ;;  %v1118_v3 = vld [vmem:[%s1595_s4] ss:$16 sps:$4 sm:$0xff]  }
   0x2   :  { %1112 = vset.pattern.permute.xlu0 %v1170_v1  ;;  %1113 = vset.pattern.permute.xlu1 %v1170_v1  ;;  %v1119_v4 = vld [vmem:[%s1595_s4 + $0x8] ss:$16 sps:$4 sm:$0xff]   ;;  %v1120_v5 = vld [vmem:[%s1595_s4 + $0x24] ss:$16 sps:$4 sm:$0xff]   ;;  %v1122_v6 = vld [vmem:[%s1595_s4 + $0x2c] ss:$16 sps:$4 sm:$0xff]  }
   0x3   :  { %277 = vmatprep.subr.bf16.mxu0 %v1114_v0  ;;  %390 = vmatprep.subr.bf16.mxu1 %v1116_v2  ;;  %v1124_v7 = vld [vmem:[%s1595_s4 + $0x20] ss:$16 sps:$4 sm:$0xff]   ;;  %v1125_v8 = vld [vmem:[%s1595_s4 + $0x28] ss:$16 sps:$4 sm:$0xff]   ;;  %v1126_v9 = vld [vmem:[%s1595_s4 + $0x44] ss:$16 sps:$4 sm:$0xff]  }
   0x4   :  { %278 = vmatpush1.bf16.msra.mxu0 %v1118_v3  ;;  %391 = vmatpush1.bf16.msra.mxu1 %v1119_v4  ;;  %v1128_v10 = vld [vmem:[%s1595_s4 + $0x4c] ss:$16 sps:$4 sm:$0xff]   ;;  %v1130_v11 = vld [vmem:[%s1595_s4 + $0x40] ss:$16 sps:$4 sm:$0xff]   ;;  %v1131_v12 = vld [vmem:[%s1595_s4 + $0x48] ss:$16 sps:$4 sm:$0xff]  }
   0x5   :  { %279 = vmatprep.subr.bf16.mxu0 %v1120_v5  ;;  %392 = vmatprep.subr.bf16.mxu1 %v1122_v6  ;;  %v1132_v13 = vld [vmem:[%s1595_s4 + $0x64] ss:$16 sps:$4 sm:$0xff]   ;;  %v1134_v14 = vld [vmem:[%s1595_s4 + $0x6c] ss:$16 sps:$4 sm:$0xff]   ;;  %v1136_v15 = vld [vmem:[%s1595_s4 + $0x60] ss:$16 sps:$4 sm:$0xff]  }
   0x6   :  { %v1137_v16 = vld [vmem:[%s1595_s4 + $0x68] ss:$16 sps:$4 sm:$0xff]   ;;  %v1138_v17 = vld [vmem:[%s1595_s4 + $0x84] ss:$16 sps:$4 sm:$0xff]   ;;  %v1140_v18 = vld [vmem:[%s1595_s4 + $0x8c] ss:$16 sps:$4 sm:$0xff]  }
   0x7   :  { %v1142_v19 = vld [vmem:[%s1595_s4 + $0x80] ss:$16 sps:$4 sm:$0xff]   ;;  %v1143_v20 = vld [vmem:[%s1595_s4 + $0x88] ss:$16 sps:$4 sm:$0xff]   ;;  %v1144_v21 = vld [vmem:[%s1595_s4 + $0xa4] ss:$16 sps:$4 sm:$0xff]  }
   0x8   :  { %280 = vmatpush1.bf16.msra.mxu0 %v1124_v7  ;;  %393 = vmatpush1.bf16.msra.mxu1 %v1125_v8  ;;  %v1146_v22 = vld [vmem:[%s1595_s4 + $0xac] ss:$16 sps:$4 sm:$0xff]   ;;  %v1148_v23 = vld [vmem:[%s1595_s4 + $0xa0] ss:$16 sps:$4 sm:$0xff]   ;;  %v1149_v24 = vld [vmem:[%s1595_s4 + $0xa8] ss:$16 sps:$4 sm:$0xff]  }
   0x9   :  { %281 = vmatprep.subr.bf16.mxu0 %v1126_v9  ;;  %394 = vmatprep.subr.bf16.mxu1 %v1128_v10  ;;  %v1150_v25 = vld [vmem:[%s1595_s4 + $0xc4] ss:$16 sps:$4 sm:$0xff]   ;;  %v1152_v26 = vld [vmem:[%s1595_s4 + $0xcc] ss:$16 sps:$4 sm:$0xff]   ;;  %v1154_v27 = vld [vmem:[%s1595_s4 + $0xc0] ss:$16 sps:$4 sm:$0xff]  }
   0xa   :  { %v1155_v28 = vld [vmem:[%s1595_s4 + $0xc8] ss:$16 sps:$4 sm:$0xff]   ;;  %v1156_v29 = vld [vmem:[%s1595_s4 + $0xe4] ss:$16 sps:$4 sm:$0xff]   ;;  %v1158_v30 = vld [vmem:[%s1595_s4 + $0xec] ss:$16 sps:$4 sm:$0xff]  }
   0xb   :  { %v1160_v31 = vld [vmem:[%s1595_s4 + $0xe0] ss:$16 sps:$4 sm:$0xff]   ;;  %v1161_v32 = vld [vmem:[%s1595_s4 + $0xe8] ss:$16 sps:$4 sm:$0xff]  }
   0xc   :  { %282 = vmatpush1.bf16.msra.mxu0 %v1130_v11  ;;  %395 = vmatpush1.bf16.msra.mxu1 %v1131_v12  ;;  %v503_v33 = vld [vmem:[%s1597_s1] sm:$0xff]  ;;  %v505_v34 = vld [vmem:[%s1597_s1 + $0x10] sm:$0xff]  ;;  %v504_v36 = vld [vmem:[%s1597_s1 + $0x8] sm:$0xff] }
   0xd   :  { %283 = vmatprep.subr.bf16.mxu0 %v1132_v13  ;;  %396 = vmatprep.subr.bf16.mxu1 %v1134_v14  ;;  %v1162_v35 = vld [vmem:[%s1596_s0] sm:$0xff]   ;;  %v506_v37 = vld [vmem:[%s1597_s1 + $0x18] sm:$0xff]  ;;  %v508_v39 = vld [vmem:[%s1597_s1 + $0x28] sm:$0xff] }
   0xe   :  { %521 = vperm.xlu0 %1112, %v503_v33   ;;  %531 = vperm.xlu1 %1113, %v505_v34   ;;  %v507_v38 = vld [vmem:[%s1597_s1 + $0x20] sm:$0xff]  ;;  %v1163_v40 = vld [vmem:[%s1596_s0 + $0x8] sm:$0xff]   ;;  %v509_v41 = vld [vmem:[%s1597_s1 + $0x30] sm:$0xff] }
   0xf   :  { %v510_v42 = vld [vmem:[%s1597_s1 + $0x38] sm:$0xff]  ;;  %v511_v43 = vld [vmem:[%s1597_s1 + $0x40] sm:$0xff]  ;;  %v512_v44 = vld [vmem:[%s1597_s1 + $0x48] sm:$0xff] }
  0x10   :  { %284 = vmatpush1.bf16.msra.mxu0 %v1136_v15  ;;  %397 = vmatpush1.bf16.msra.mxu1 %v1137_v16  ;;  %v1164_v45 = vld [vmem:[%s1596_s0 + $0x10] sm:$0xff]   ;;  %v514_v47 = vld [vmem:[%s1597_s1 + $0x58] sm:$0xff]  ;;  %v515_v48 = vld [vmem:[%s1597_s1 + $0x60] sm:$0xff] }
  0x11   :  { %285 = vmatprep.subr.bf16.mxu0 %v1138_v17  ;;  %398 = vmatprep.subr.bf16.mxu1 %v1140_v18  ;;  %v513_v46 = vld [vmem:[%s1597_s1 + $0x50] sm:$0xff]  ;;  %v516_v49 = vld [vmem:[%s1597_s1 + $0x68] sm:$0xff]  ;;  %v1165_v50 = vld [vmem:[%s1596_s0 + $0x18] sm:$0xff]  }
  0x12   :  { %526 = vperm.xlu0 %1112, %v504_v36   ;;  %536 = vperm.xlu1 %1113, %v506_v37   ;;  %v517_v51 = vld [vmem:[%s1597_s1 + $0x70] sm:$0xff]  ;;  %v518_v52 = vld [vmem:[%s1597_s1 + $0x78] sm:$0xff]  ;;  %v1166_v53 = vld [vmem:[%s1596_s0 + $0x20] sm:$0xff]  }
  0x13   :  { %v1167_v54 = vld [vmem:[%s1596_s0 + $0x28] sm:$0xff]   ;;  %v1168_v55 = vld [vmem:[%s1596_s0 + $0x30] sm:$0xff]   ;;  %v1169_v56 = vld [vmem:[%s1596_s0 + $0x38] sm:$0xff]  }
  0x14   :  { %286 = vmatpush1.bf16.msra.mxu0 %v1142_v19  ;;  %399 = vmatpush1.bf16.msra.mxu1 %v1143_v20  ;;  %v663_v62 = vld [vmem:[%s1598_s2] sm:$0xff]  ;;  %v665_v0 = vld [vmem:[%s1598_s2 + $0x10] sm:$0xff]  ;;  %v664_v4 = vld [vmem:[%s1598_s2 + $0x8] sm:$0xff] }
  0x15   :  { %287 = vmatprep.subr.bf16.mxu0 %v1144_v21  ;;  %400 = vmatprep.subr.bf16.mxu1 %v1146_v22  ;;  %v666_v6 = vld [vmem:[%s1598_s2 + $0x18] sm:$0xff]  ;;  %v667_v10 = vld [vmem:[%s1598_s2 + $0x20] sm:$0xff]  ;;  %v669_v12 = vld [vmem:[%s1598_s2 + $0x30] sm:$0xff] }
  0x16   :  { %541 = vperm.xlu0 %1112, %v507_v38   ;;  %546 = vperm.xlu1 %1113, %v508_v39   ;;  %v668_v18 = vld [vmem:[%s1598_s2 + $0x28] sm:$0xff]  ;;  %v670_v20 = vld [vmem:[%s1598_s2 + $0x38] sm:$0xff]  ;;  %v671_v34 = vld [vmem:[%s1598_s2 + $0x40] sm:$0xff] }
  0x18   :  { %288 = vmatpush1.bf16.msra.mxu0 %v1148_v23  ;;  %401 = vmatpush1.bf16.msra.mxu1 %v1149_v24 }
  0x19   :  { %289 = vmatprep.subr.bf16.mxu0 %v1150_v25  ;;  %402 = vmatprep.subr.bf16.mxu1 %v1152_v26 }
  0x1a   :  { %551 = vperm.xlu0 %1112, %v509_v41   ;;  %556 = vperm.xlu1 %1113, %v510_v42  }
  0x1c   :  { %290 = vmatpush1.bf16.msra.mxu0 %v1154_v27  ;;  %403 = vmatpush1.bf16.msra.mxu1 %v1155_v28 }
  0x1d   :  { %291 = vmatprep.subr.bf16.mxu0 %v1156_v29  ;;  %404 = vmatprep.subr.bf16.mxu1 %v1158_v30 }
  0x1e   :  { %561 = vperm.xlu0 %1112, %v511_v43   ;;  %566 = vperm.xlu1 %1113, %v512_v44  }
  0x20   :  { %292 = vmatpush1.bf16.msra.mxu0 %v1160_v31  ;;  %405 = vmatpush1.bf16.msra.mxu1 %v1161_v32 }
  0x22   :  { %571 = vperm.xlu0 %1112, %v513_v46   ;;  %576 = vperm.xlu1 %1113, %v514_v47   ;;  %v672_v47 = vld [vmem:[%s1598_s2 + $0x48] sm:$0xff] }
  0x23   :  { %310 = vmatmul.mubr.bf16.vlgmr.msra.gmra.mrb[0].mxu0 %v1162_v35  ;;  %423 = vmatmul.mubr.bf16.vlgmr.msra.gmra.mrb[0].mxu1 %v1162_v35  ;;  %v673_v35 = vld [vmem:[%s1598_s2 + $0x50] sm:$0xff] }
  0x24   :  { %319 = vmatprep.mubr.bf16.mxu0 %v1170_v1  ;;  %432 = vmatprep.mubr.bf16.mxu1 %v1170_v1 }
  0x26   :  { %581 = vperm.xlu0 %1112, %v515_v48   ;;  %586 = vperm.xlu1 %1113, %v516_v49   ;;  %v674_v49 = vld [vmem:[%s1598_s2 + $0x58] sm:$0xff] }
  0x2a   :  { %591 = vperm.xlu0 %1112, %v517_v51   ;;  %596 = vperm.xlu1 %1113, %v518_v52  }
  0x2b   :  { %320 = vmatmul.mubr.bf16.gmra.mrb[4].mxu0 %v1163_v40  ;;  %433 = vmatmul.mubr.bf16.gmra.mrb[4].mxu1 %v1163_v40 }
  0x2c   :  { %329 = vmatprep.mubr.bf16.mxu0 %v1170_v1  ;;  %442 = vmatprep.mubr.bf16.mxu1 %v1170_v1 }
  0x33   :  { %330 = vmatmul.mubr.bf16.gmra.mrb[8].mxu0 %v1164_v45  ;;  %443 = vmatmul.mubr.bf16.gmra.mrb[8].mxu1 %v1164_v45 }
  0x34   :  { %339 = vmatprep.mubr.bf16.mxu0 %v1170_v1  ;;  %452 = vmatprep.mubr.bf16.mxu1 %v1170_v1 }
  0x3b   :  { %340 = vmatmul.mubr.bf16.gmra.mrb[12].mxu0 %v1165_v50  ;;  %453 = vmatmul.mubr.bf16.gmra.mrb[12].mxu1 %v1165_v50 }
  0x3c   :  { %349 = vmatprep.mubr.bf16.mxu0 %v1170_v1  ;;  %462 = vmatprep.mubr.bf16.mxu1 %v1170_v1 }
  0x43   :  { %350 = vmatmul.mubr.bf16.gmra.mrb[16].mxu0 %v1166_v53  ;;  %463 = vmatmul.mubr.bf16.gmra.mrb[16].mxu1 %v1166_v53  ;;  %v675_v53 = vld [vmem:[%s1598_s2 + $0x60] sm:$0xff] }
  0x44   :  { %359 = vmatprep.mubr.bf16.mxu0 %v1170_v1  ;;  %472 = vmatprep.mubr.bf16.mxu1 %v1170_v1 }
  0x4b   :  { %360 = vmatmul.mubr.bf16.gmra.mrb[20].mxu0 %v1167_v54  ;;  %473 = vmatmul.mubr.bf16.gmra.mrb[20].mxu1 %v1167_v54 }
  0x4c   :  { %369 = vmatprep.mubr.bf16.mxu0 %v1170_v1  ;;  %482 = vmatprep.mubr.bf16.mxu1 %v1170_v1 }
  0x53   :  { %370 = vmatmul.mubr.bf16.gmra.mrb[24].mxu0 %v1168_v55  ;;  %483 = vmatmul.mubr.bf16.gmra.mrb[24].mxu1 %v1168_v55  ;;  %v677_v55 = vld [vmem:[%s1598_s2 + $0x70] sm:$0xff] }
  0x54   :  { %379 = vmatprep.mubr.bf16.mxu0 %v1170_v1  ;;  %492 = vmatprep.mubr.bf16.mxu1 %v1170_v1 }
  0x5b   :  { %380 = vmatmul.mubr.bf16.gmra.mrb[28].mxu0 %v1169_v56  ;;  %493 = vmatmul.mubr.bf16.gmra.mrb[28].mxu1 %v1169_v56 }
  0x5c   :  { %920 = vmatprep.mubr.f32.mxu0 %v1171_v57  ;;  %991 = vmatprep.mubr.f32.mxu1 %v1171_v57 }
  0x8d   :  { %v522_v58 = vpop.permute.xlu0 %521  ;;  %v532_v60 = vpop.permute.xlu1 %531 }
  0x91   :  { %v527_v59 = vpop.permute.xlu0 %526  ;;  %v537_v29 = vpop.permute.xlu1 %536 }
  0xf6   :  { %v311_v61 = vpop.f32.mrb[0].mxu0  ;;  %v424_v63 = vpop.f32.mrb[0].mxu1 }
  0xf7   :  { %v599_v1 = vmul.f32 %v522_v58, %v311_v61  ;;  %v601_v2 = vmul.f32 %v522_v58, %v424_v63  ;;  %v313_v3 = vpop.f32.mrb[1].mxu0  ;;  %v426_v5 = vpop.f32.mrb[1].mxu1 }
  0xf8   :  { %v600_v7 = vmul.f32 %v522_v58, %v313_v3  ;;  %v602_v8 = vmul.f32 %v522_v58, %v426_v5  ;;  %v315_v9 = vpop.f32.mrb[2].mxu0  ;;  %v428_v11 = vpop.f32.mrb[2].mxu1 }
  0xf9   :  { %v727_v13 = vadd.f32 %v663_v62, %v599_v1  ;;  %v729_v14 = vadd.f32 %v665_v0, %v601_v2  ;;  %v603_v15 = vmul.f32 %v527_v59, %v315_v9  ;;  %v605_v16 = vmul.f32 %v527_v59, %v428_v11  ;;  %v317_v17 = vpop.f32.mrb[3].mxu0  ;;  %v430_v19 = vpop.f32.mrb[3].mxu1  ;;  %v678_v1 = vld [vmem:[%s1598_s2 + $0x78] sm:$0xff] }
  0xfa   :  { %v728_v21 = vadd.f32 %v664_v4, %v600_v7  ;;  %v730_v22 = vadd.f32 %v666_v6, %v602_v8  ;;  %v604_v23 = vmul.f32 %v527_v59, %v317_v17  ;;  %v606_v24 = vmul.f32 %v527_v59, %v430_v19  ;;  %v547_v11 = vpop.permute.xlu1 %546  ;;  %v681_v17 = vld [vmem:[%s1598_s2 + $0x90] sm:$0xff] }
  0xfb   :  { %v731_v25 = vadd.f32 %v667_v10, %v603_v15  ;;  %v733_v26 = vadd.f32 %v669_v12, %v605_v16  ;;  %v791_v30 = vmax.f32 %v727_v13, 0.0  ;;  %v793_v31 = vmax.f32 %v729_v14, 0.0  ;;  %v542_v10 = vpop.permute.xlu0 %541  ;;  %v679_v16 = vld [vmem:[%s1598_s2 + $0x80] sm:$0xff] }
  0xfc   :  { %v732_v27 = vadd.f32 %v668_v18, %v604_v23  ;;  %v734_v28 = vadd.f32 %v670_v20, %v606_v24  ;;  %v792_v36 = vmax.f32 %v728_v21, 0.0  ;;  %v794_v37 = vmax.f32 %v730_v22, 0.0 }
  0xfd   :  { %v795_v32 = vmax.f32 %v731_v25, 0.0  ;;  %v797_v33 = vmax.f32 %v733_v26, 0.0 }
  0xfe   :  { %v796_v38 = vmax.f32 %v732_v27, 0.0  ;;  %v798_v39 = vmax.f32 %v734_v28, 0.0  ;;  %v321_v40 = vpop.f32.mrb[4].mxu0  ;;  %v434_v41 = vpop.f32.mrb[4].mxu1 }
  0xff   :  { %v1048_v42 = vpack.c.bf16 %v795_v32, %v791_v30  ;;  %v1080_v43 = vpack.c.bf16 %v797_v33, %v793_v31  ;;  %v607_v44 = vmul.f32 %v532_v60, %v321_v40  ;;  %v609_v45 = vmul.f32 %v532_v60, %v434_v41  ;;  %v323_v46 = vpop.f32.mrb[5].mxu0  ;;  %v436_v48 = vpop.f32.mrb[5].mxu1  ;;  %v682_v31 = vld [vmem:[%s1598_s2 + $0x98] sm:$0xff] }
 0x100   :  { %v608_v50 = vmul.f32 %v532_v60, %v323_v46  ;;  %v610_v51 = vmul.f32 %v532_v60, %v436_v48  ;;  %v325_v52 = vpop.f32.mrb[6].mxu0  ;;  %v438_v54 = vpop.f32.mrb[6].mxu1  ;;  %v1046_v56 = vpack.c.bf16 %v796_v38, %v792_v36  ;;  %v1078_v57 = vpack.c.bf16 %v798_v39, %v794_v37  ;;  %v676_v60 = vld [vmem:[%s1598_s2 + $0x68] sm:$0xff]  ;;  %v685_v37 = vld [vmem:[%s1598_s2 + $0xb0] sm:$0xff] }
 0x101   :  { %v735_v58 = vadd.f32 %v671_v34, %v607_v44  ;;  %v737_v59 = vadd.f32 %v673_v35, %v609_v45  ;;  %v611_v61 = vmul.f32 %v537_v29, %v325_v52  ;;  %v613_v62 = vmul.f32 %v537_v29, %v438_v54  ;;  %v327_v63 = vpop.f32.mrb[7].mxu0  ;;  %v440_v0 = vpop.f32.mrb[7].mxu1  ;;  %v683_v35 = vld [vmem:[%s1598_s2 + $0xa0] sm:$0xff]  ;;  %v684_v45 = vld [vmem:[%s1598_s2 + $0xa8] sm:$0xff] }
 0x102   :  { %v736_v2 = vadd.f32 %v672_v47, %v608_v50  ;;  %v738_v3 = vadd.f32 %v674_v49, %v610_v51  ;;  %v612_v4 = vmul.f32 %v537_v29, %v327_v63  ;;  %v614_v5 = vmul.f32 %v537_v29, %v440_v0  ;;  %1047 = vmatprep.subr.bf16.mxu0 %v1046_v56  ;;  %v680_v29 = vld [vmem:[%s1598_s2 + $0x88] sm:$0xff]  ;;  %v686_v47 = vld [vmem:[%s1598_s2 + $0xb8] sm:$0xff]  ;;  %v552_v56 = vpop.permute.xlu0 %551  ;;  %v687_v63 = vld [vmem:[%s1598_s2 + $0xc0] sm:$0xff] }
 0x103   :  { %v739_v6 = vadd.f32 %v675_v53, %v611_v61  ;;  %v741_v7 = vadd.f32 %v677_v55, %v613_v62  ;;  %1079 = vmatprep.subr.bf16.mxu1 %v1078_v57  ;;  %1049 = vmatpush1.bf16.msra.mxu0 %v1048_v42  ;;  %v799_v12 = vmax.f32 %v735_v58, 0.0  ;;  %v801_v13 = vmax.f32 %v737_v59, 0.0  ;;  %v557_v57 = vpop.permute.xlu1 %556 }
 0x104   :  { %v740_v8 = vadd.f32 %v676_v60, %v612_v4  ;;  %v742_v9 = vadd.f32 %v678_v1, %v614_v5  ;;  %1081 = vmatpush1.bf16.msra.mxu1 %v1080_v43  ;;  %v800_v18 = vmax.f32 %v736_v2, 0.0  ;;  %v802_v19 = vmax.f32 %v738_v3, 0.0  ;;  %v689_v60 = vld [vmem:[%s1598_s2 + $0xd0] sm:$0xff] }
 0x105   :  { %v803_v14 = vmax.f32 %v739_v6, 0.0  ;;  %v805_v15 = vmax.f32 %v741_v7, 0.0 }
 0x106   :  { %v804_v20 = vmax.f32 %v740_v8, 0.0  ;;  %v806_v21 = vmax.f32 %v742_v9, 0.0  ;;  %v331_v22 = vpop.f32.mrb[8].mxu0  ;;  %v444_v23 = vpop.f32.mrb[8].mxu1 }
 0x107   :  { %v1052_v24 = vpack.c.bf16 %v803_v14, %v799_v12  ;;  %v1084_v25 = vpack.c.bf16 %v805_v15, %v801_v13  ;;  %v615_v26 = vmul.f32 %v542_v10, %v331_v22  ;;  %v617_v27 = vmul.f32 %v542_v10, %v444_v23  ;;  %v333_v28 = vpop.f32.mrb[9].mxu0  ;;  %v446_v30 = vpop.f32.mrb[9].mxu1  ;;  %v690_v13 = vld [vmem:[%s1598_s2 + $0xd8] sm:$0xff] }
 0x108   :  { %v616_v32 = vmul.f32 %v542_v10, %v333_v28  ;;  %v618_v33 = vmul.f32 %v542_v10, %v446_v30  ;;  %v335_v34 = vpop.f32.mrb[10].mxu0  ;;  %v448_v36 = vpop.f32.mrb[10].mxu1  ;;  %v1050_v38 = vpack.c.bf16 %v804_v20, %v800_v18  ;;  %v1082_v39 = vpack.c.bf16 %v806_v21, %v802_v19  ;;  %v693_v19 = vld [vmem:[%s1598_s2 + $0xf0] sm:$0xff] }
 0x109   :  { %v743_v40 = vadd.f32 %v679_v16, %v615_v26  ;;  %v745_v41 = vadd.f32 %v681_v17, %v617_v27  ;;  %v619_v42 = vmul.f32 %v547_v11, %v335_v34  ;;  %v621_v43 = vmul.f32 %v547_v11, %v448_v36  ;;  %v337_v44 = vpop.f32.mrb[11].mxu0  ;;  %v450_v46 = vpop.f32.mrb[11].mxu1  ;;  %v691_v17 = vld [vmem:[%s1598_s2 + $0xe0] sm:$0xff]  ;;  %v692_v27 = vld [vmem:[%s1598_s2 + $0xe8] sm:$0xff] }
 0x10a   :  { %v744_v48 = vadd.f32 %v680_v29, %v616_v32  ;;  %v746_v49 = vadd.f32 %v682_v31, %v618_v33  ;;  %v620_v50 = vmul.f32 %v547_v11, %v337_v44  ;;  %v622_v51 = vmul.f32 %v547_v11, %v450_v46  ;;  %1051 = vmatprep.subr.bf16.mxu0 %v1050_v38  ;;  %v688_v11 = vld [vmem:[%s1598_s2 + $0xc8] sm:$0xff]  ;;  %v694_v29 = vld [vmem:[%s1598_s2 + $0xf8] sm:$0xff]  ;;  %v562_v38 = vpop.permute.xlu0 %561  ;;  %v695_v44 = vld [vmem:[%s1598_s2 + $0x100] sm:$0xff] }
 0x10b   :  { %v747_v52 = vadd.f32 %v683_v35, %v619_v42  ;;  %v749_v53 = vadd.f32 %v685_v37, %v621_v43  ;;  %1083 = vmatprep.subr.bf16.mxu1 %v1082_v39  ;;  %1053 = vmatpush1.bf16.msra.mxu0 %v1052_v24  ;;  %v807_v58 = vmax.f32 %v743_v40, 0.0  ;;  %v809_v59 = vmax.f32 %v745_v41, 0.0  ;;  %v567_v39 = vpop.permute.xlu1 %566 }
 0x10c   :  { %v748_v54 = vadd.f32 %v684_v45, %v620_v50  ;;  %v750_v55 = vadd.f32 %v686_v47, %v622_v51  ;;  %1085 = vmatpush1.bf16.msra.mxu1 %v1084_v25  ;;  %v808_v0 = vmax.f32 %v744_v48, 0.0  ;;  %v810_v1 = vmax.f32 %v746_v49, 0.0  ;;  %v697_v45 = vld [vmem:[%s1598_s2 + $0x110] sm:$0xff] }
 0x10d   :  { %v811_v61 = vmax.f32 %v747_v52, 0.0  ;;  %v813_v62 = vmax.f32 %v749_v53, 0.0 }
 0x10e   :  { %v812_v2 = vmax.f32 %v748_v54, 0.0  ;;  %v814_v3 = vmax.f32 %v750_v55, 0.0  ;;  %v341_v4 = vpop.f32.mrb[12].mxu0  ;;  %v454_v5 = vpop.f32.mrb[12].mxu1 }
 0x10f   :  { %v1056_v6 = vpack.c.bf16 %v811_v61, %v807_v58  ;;  %v1088_v7 = vpack.c.bf16 %v813_v62, %v809_v59  ;;  %v623_v8 = vmul.f32 %v552_v56, %v341_v4  ;;  %v625_v9 = vmul.f32 %v552_v56, %v454_v5  ;;  %v343_v10 = vpop.f32.mrb[13].mxu0  ;;  %v456_v12 = vpop.f32.mrb[13].mxu1  ;;  %v698_v59 = vld [vmem:[%s1598_s2 + $0x118] sm:$0xff] }
 0x110   :  { %v624_v14 = vmul.f32 %v552_v56, %v343_v10  ;;  %v626_v15 = vmul.f32 %v552_v56, %v456_v12  ;;  %v345_v16 = vpop.f32.mrb[14].mxu0  ;;  %v458_v18 = vpop.f32.mrb[14].mxu1  ;;  %v1054_v20 = vpack.c.bf16 %v812_v2, %v808_v0  ;;  %v1086_v21 = vpack.c.bf16 %v814_v3, %v810_v1  ;;  %v701_v1 = vld [vmem:[%s1598_s2 + $0x130] sm:$0xff] }
 0x111   :  { %v751_v22 = vadd.f32 %v687_v63, %v623_v8  ;;  %v753_v23 = vadd.f32 %v689_v60, %v625_v9  ;;  %v627_v24 = vmul.f32 %v557_v57, %v345_v16  ;;  %v629_v25 = vmul.f32 %v557_v57, %v458_v18  ;;  %v347_v26 = vpop.f32.mrb[15].mxu0  ;;  %v460_v28 = vpop.f32.mrb[15].mxu1  ;;  %v699_v60 = vld [vmem:[%s1598_s2 + $0x120] sm:$0xff]  ;;  %v700_v9 = vld [vmem:[%s1598_s2 + $0x128] sm:$0xff] }
 0x112   :  { %v752_v30 = vadd.f32 %v688_v11, %v624_v14  ;;  %v754_v31 = vadd.f32 %v690_v13, %v626_v15  ;;  %v628_v32 = vmul.f32 %v557_v57, %v347_v26  ;;  %v630_v33 = vmul.f32 %v557_v57, %v460_v28  ;;  %1055 = vmatprep.subr.bf16.mxu0 %v1054_v20  ;;  %v696_v57 = vld [vmem:[%s1598_s2 + $0x108] sm:$0xff]  ;;  %v702_v11 = vld [vmem:[%s1598_s2 + $0x138] sm:$0xff]  ;;  %v572_v20 = vpop.permute.xlu0 %571  ;;  %v703_v26 = vld [vmem:[%s1598_s2 + $0x140] sm:$0xff] }
 0x113   :  { %v755_v34 = vadd.f32 %v691_v17, %v627_v24  ;;  %v757_v35 = vadd.f32 %v693_v19, %v629_v25  ;;  %1087 = vmatprep.subr.bf16.mxu1 %v1086_v21  ;;  %1057 = vmatpush1.bf16.msra.mxu0 %v1056_v6  ;;  %v815_v40 = vmax.f32 %v751_v22, 0.0  ;;  %v817_v41 = vmax.f32 %v753_v23, 0.0  ;;  %v577_v21 = vpop.permute.xlu1 %576 }
 0x114   :  { %v756_v36 = vadd.f32 %v692_v27, %v628_v32  ;;  %v758_v37 = vadd.f32 %v694_v29, %v630_v33  ;;  %1089 = vmatpush1.bf16.msra.mxu1 %v1088_v7  ;;  %v816_v46 = vmax.f32 %v752_v30, 0.0  ;;  %v818_v47 = vmax.f32 %v754_v31, 0.0  ;;  %v705_v27 = vld [vmem:[%s1598_s2 + $0x150] sm:$0xff] }
 0x115   :  { %v819_v42 = vmax.f32 %v755_v34, 0.0  ;;  %v821_v43 = vmax.f32 %v757_v35, 0.0 }
 0x116   :  { %v820_v48 = vmax.f32 %v756_v36, 0.0  ;;  %v822_v49 = vmax.f32 %v758_v37, 0.0  ;;  %v351_v50 = vpop.f32.mrb[16].mxu0  ;;  %v464_v51 = vpop.f32.mrb[16].mxu1 }
 0x117   :  { %v1060_v52 = vpack.c.bf16 %v819_v42, %v815_v40  ;;  %v1092_v53 = vpack.c.bf16 %v821_v43, %v817_v41  ;;  %v631_v54 = vmul.f32 %v562_v38, %v351_v50  ;;  %v633_v55 = vmul.f32 %v562_v38, %v464_v51  ;;  %v353_v56 = vpop.f32.mrb[17].mxu0  ;;  %v466_v58 = vpop.f32.mrb[17].mxu1  ;;  %v706_v41 = vld [vmem:[%s1598_s2 + $0x158] sm:$0xff] }
 0x118   :  { %v632_v61 = vmul.f32 %v562_v38, %v353_v56  ;;  %v634_v62 = vmul.f32 %v562_v38, %v466_v58  ;;  %v355_v63 = vpop.f32.mrb[18].mxu0  ;;  %v468_v0 = vpop.f32.mrb[18].mxu1  ;;  %v1058_v2 = vpack.c.bf16 %v820_v48, %v816_v46  ;;  %v1090_v3 = vpack.c.bf16 %v822_v49, %v818_v47  ;;  %v709_v47 = vld [vmem:[%s1598_s2 + $0x170] sm:$0xff] }
 0x119   :  { %v759_v4 = vadd.f32 %v695_v44, %v631_v54  ;;  %v761_v5 = vadd.f32 %v697_v45, %v633_v55  ;;  %v635_v6 = vmul.f32 %v567_v39, %v355_v63  ;;  %v637_v7 = vmul.f32 %v567_v39, %v468_v0  ;;  %v357_v8 = vpop.f32.mrb[19].mxu0  ;;  %v470_v10 = vpop.f32.mrb[19].mxu1  ;;  %v707_v45 = vld [vmem:[%s1598_s2 + $0x160] sm:$0xff]  ;;  %v708_v55 = vld [vmem:[%s1598_s2 + $0x168] sm:$0xff] }
 0x11a   :  { %v760_v12 = vadd.f32 %v696_v57, %v632_v61  ;;  %v762_v13 = vadd.f32 %v698_v59, %v634_v62  ;;  %v636_v14 = vmul.f32 %v567_v39, %v357_v8  ;;  %v638_v15 = vmul.f32 %v567_v39, %v470_v10  ;;  %1059 = vmatprep.subr.bf16.mxu0 %v1058_v2  ;;  %v704_v39 = vld [vmem:[%s1598_s2 + $0x148] sm:$0xff]  ;;  %v710_v57 = vld [vmem:[%s1598_s2 + $0x178] sm:$0xff]  ;;  %v582_v2 = vpop.permute.xlu0 %581  ;;  %v711_v8 = vld [vmem:[%s1598_s2 + $0x180] sm:$0xff] }
 0x11b   :  { %v763_v16 = vadd.f32 %v699_v60, %v635_v6  ;;  %v765_v17 = vadd.f32 %v701_v1, %v637_v7  ;;  %1091 = vmatprep.subr.bf16.mxu1 %v1090_v3  ;;  %1061 = vmatpush1.bf16.msra.mxu0 %v1060_v52  ;;  %v823_v22 = vmax.f32 %v759_v4, 0.0  ;;  %v825_v23 = vmax.f32 %v761_v5, 0.0  ;;  %v587_v3 = vpop.permute.xlu1 %586 }
 0x11c   :  { %v764_v18 = vadd.f32 %v700_v9, %v636_v14  ;;  %v766_v19 = vadd.f32 %v702_v11, %v638_v15  ;;  %1093 = vmatpush1.bf16.msra.mxu1 %v1092_v53  ;;  %v824_v28 = vmax.f32 %v760_v12, 0.0  ;;  %v826_v29 = vmax.f32 %v762_v13, 0.0  ;;  %v713_v9 = vld [vmem:[%s1598_s2 + $0x190] sm:$0xff] }
 0x11d   :  { %v827_v24 = vmax.f32 %v763_v16, 0.0  ;;  %v829_v25 = vmax.f32 %v765_v17, 0.0 }
 0x11e   :  { %v828_v30 = vmax.f32 %v764_v18, 0.0  ;;  %v830_v31 = vmax.f32 %v766_v19, 0.0  ;;  %v361_v32 = vpop.f32.mrb[20].mxu0  ;;  %v474_v33 = vpop.f32.mrb[20].mxu1 }
 0x11f   :  { %v1064_v34 = vpack.c.bf16 %v827_v24, %v823_v22  ;;  %v1096_v35 = vpack.c.bf16 %v829_v25, %v825_v23  ;;  %v639_v36 = vmul.f32 %v572_v20, %v361_v32  ;;  %v641_v37 = vmul.f32 %v572_v20, %v474_v33  ;;  %v363_v38 = vpop.f32.mrb[21].mxu0  ;;  %v476_v40 = vpop.f32.mrb[21].mxu1  ;;  %v714_v23 = vld [vmem:[%s1598_s2 + $0x198] sm:$0xff] }
 0x120   :  { %v640_v42 = vmul.f32 %v572_v20, %v363_v38  ;;  %v642_v43 = vmul.f32 %v572_v20, %v476_v40  ;;  %v365_v44 = vpop.f32.mrb[22].mxu0  ;;  %v478_v46 = vpop.f32.mrb[22].mxu1  ;;  %v1062_v48 = vpack.c.bf16 %v828_v30, %v824_v28  ;;  %v1094_v49 = vpack.c.bf16 %v830_v31, %v826_v29  ;;  %v717_v29 = vld [vmem:[%s1598_s2 + $0x1b0] sm:$0xff] }
 0x121   :  { %v767_v50 = vadd.f32 %v703_v26, %v639_v36  ;;  %v769_v51 = vadd.f32 %v705_v27, %v641_v37  ;;  %v643_v52 = vmul.f32 %v577_v21, %v365_v44  ;;  %v645_v53 = vmul.f32 %v577_v21, %v478_v46  ;;  %v367_v54 = vpop.f32.mrb[23].mxu0  ;;  %v480_v56 = vpop.f32.mrb[23].mxu1  ;;  %v715_v27 = vld [vmem:[%s1598_s2 + $0x1a0] sm:$0xff]  ;;  %v716_v37 = vld [vmem:[%s1598_s2 + $0x1a8] sm:$0xff] }
 0x122   :  { %v768_v58 = vadd.f32 %v704_v39, %v640_v42  ;;  %v770_v59 = vadd.f32 %v706_v41, %v642_v43  ;;  %v644_v61 = vmul.f32 %v577_v21, %v367_v54  ;;  %v646_v62 = vmul.f32 %v577_v21, %v480_v56  ;;  %1063 = vmatprep.subr.bf16.mxu0 %v1062_v48  ;;  %v712_v21 = vld [vmem:[%s1598_s2 + $0x188] sm:$0xff]  ;;  %v718_v39 = vld [vmem:[%s1598_s2 + $0x1b8] sm:$0xff]  ;;  %v592_v48 = vpop.permute.xlu0 %591  ;;  %v719_v54 = vld [vmem:[%s1598_s2 + $0x1c0] sm:$0xff] }
 0x123   :  { %v771_v63 = vadd.f32 %v707_v45, %v643_v52  ;;  %v773_v60 = vadd.f32 %v709_v47, %v645_v53  ;;  %1095 = vmatprep.subr.bf16.mxu1 %v1094_v49  ;;  %1065 = vmatpush1.bf16.msra.mxu0 %v1064_v34  ;;  %v831_v4 = vmax.f32 %v767_v50, 0.0  ;;  %v833_v5 = vmax.f32 %v769_v51, 0.0  ;;  %v597_v49 = vpop.permute.xlu1 %596 }
 0x124   :  { %v772_v0 = vadd.f32 %v708_v55, %v644_v61  ;;  %v774_v1 = vadd.f32 %v710_v57, %v646_v62  ;;  %1097 = vmatpush1.bf16.msra.mxu1 %v1096_v35  ;;  %v832_v10 = vmax.f32 %v768_v58, 0.0  ;;  %v834_v11 = vmax.f32 %v770_v59, 0.0  ;;  %v721_v55 = vld [vmem:[%s1598_s2 + $0x1d0] sm:$0xff] }
 0x125   :  { %v835_v6 = vmax.f32 %v771_v63, 0.0  ;;  %v837_v7 = vmax.f32 %v773_v60, 0.0 }
 0x126   :  { %v836_v12 = vmax.f32 %v772_v0, 0.0  ;;  %v838_v13 = vmax.f32 %v774_v1, 0.0  ;;  %v371_v14 = vpop.f32.mrb[24].mxu0  ;;  %v484_v15 = vpop.f32.mrb[24].mxu1 }
 0x127   :  { %v1068_v16 = vpack.c.bf16 %v835_v6, %v831_v4  ;;  %v1100_v17 = vpack.c.bf16 %v837_v7, %v833_v5  ;;  %v647_v18 = vmul.f32 %v582_v2, %v371_v14  ;;  %v649_v19 = vmul.f32 %v582_v2, %v484_v15  ;;  %v373_v20 = vpop.f32.mrb[25].mxu0  ;;  %v486_v22 = vpop.f32.mrb[25].mxu1  ;;  %v722_v5 = vld [vmem:[%s1598_s2 + $0x1d8] sm:$0xff] }
 0x128   :  { %v648_v24 = vmul.f32 %v582_v2, %v373_v20  ;;  %v650_v25 = vmul.f32 %v582_v2, %v486_v22  ;;  %v375_v26 = vpop.f32.mrb[26].mxu0  ;;  %v488_v28 = vpop.f32.mrb[26].mxu1  ;;  %v1066_v30 = vpack.c.bf16 %v836_v12, %v832_v10  ;;  %v1098_v31 = vpack.c.bf16 %v838_v13, %v834_v11  ;;  %v725_v11 = vld [vmem:[%s1598_s2 + $0x1f0] sm:$0xff] }
 0x129   :  { %v775_v32 = vadd.f32 %v711_v8, %v647_v18  ;;  %v777_v33 = vadd.f32 %v713_v9, %v649_v19  ;;  %v651_v34 = vmul.f32 %v587_v3, %v375_v26  ;;  %v653_v35 = vmul.f32 %v587_v3, %v488_v28  ;;  %v377_v36 = vpop.f32.mrb[27].mxu0  ;;  %v490_v38 = vpop.f32.mrb[27].mxu1  ;;  %v723_v9 = vld [vmem:[%s1598_s2 + $0x1e0] sm:$0xff]  ;;  %v724_v19 = vld [vmem:[%s1598_s2 + $0x1e8] sm:$0xff] }
 0x12a   :  { %v776_v40 = vadd.f32 %v712_v21, %v648_v24  ;;  %v778_v41 = vadd.f32 %v714_v23, %v650_v25  ;;  %v652_v42 = vmul.f32 %v587_v3, %v377_v36  ;;  %v654_v43 = vmul.f32 %v587_v3, %v490_v38  ;;  %1067 = vmatprep.subr.bf16.mxu0 %v1066_v30  ;;  %v720_v3 = vld [vmem:[%s1598_s2 + $0x1c8] sm:$0xff]  ;;  %v726_v21 = vld [vmem:[%s1598_s2 + $0x1f8] sm:$0xff] }
 0x12b   :  { %v779_v44 = vadd.f32 %v715_v27, %v651_v34  ;;  %v781_v45 = vadd.f32 %v717_v29, %v653_v35  ;;  %1099 = vmatprep.subr.bf16.mxu1 %v1098_v31  ;;  %1069 = vmatpush1.bf16.msra.mxu0 %v1068_v16  ;;  %v839_v50 = vmax.f32 %v775_v32, 0.0  ;;  %v841_v51 = vmax.f32 %v777_v33, 0.0 }
 0x12c   :  { %v780_v46 = vadd.f32 %v716_v37, %v652_v42  ;;  %v782_v47 = vadd.f32 %v718_v39, %v654_v43  ;;  %1101 = vmatpush1.bf16.msra.mxu1 %v1100_v17  ;;  %v840_v56 = vmax.f32 %v776_v40, 0.0  ;;  %v842_v57 = vmax.f32 %v778_v41, 0.0  ;;  %v855_v42 = vld [vmem:[%s1599_s3] sm:$0xff] }
 0x12d   :  { %v843_v52 = vmax.f32 %v779_v44, 0.0  ;;  %v845_v53 = vmax.f32 %v781_v45, 0.0 }
 0x12e   :  { %v844_v58 = vmax.f32 %v780_v46, 0.0  ;;  %v846_v59 = vmax.f32 %v782_v47, 0.0  ;;  %v381_v61 = vpop.f32.mrb[28].mxu0  ;;  %v494_v62 = vpop.f32.mrb[28].mxu1 }
 0x12f   :  { %v1072_v63 = vpack.c.bf16 %v843_v52, %v839_v50  ;;  %v1104_v60 = vpack.c.bf16 %v845_v53, %v841_v51  ;;  %v655_v0 = vmul.f32 %v592_v48, %v381_v61  ;;  %v657_v1 = vmul.f32 %v592_v48, %v494_v62  ;;  %v383_v2 = vpop.f32.mrb[29].mxu0  ;;  %v496_v4 = vpop.f32.mrb[29].mxu1 }
 0x130   :  { %v656_v6 = vmul.f32 %v592_v48, %v383_v2  ;;  %v658_v7 = vmul.f32 %v592_v48, %v496_v4  ;;  %v385_v8 = vpop.f32.mrb[30].mxu0  ;;  %v498_v10 = vpop.f32.mrb[30].mxu1  ;;  %v1070_v12 = vpack.c.bf16 %v844_v58, %v840_v56  ;;  %v1102_v13 = vpack.c.bf16 %v846_v59, %v842_v57 }
 0x131   :  { %v783_v14 = vadd.f32 %v719_v54, %v655_v0  ;;  %v785_v15 = vadd.f32 %v721_v55, %v657_v1  ;;  %v659_v16 = vmul.f32 %v597_v49, %v385_v8  ;;  %v661_v17 = vmul.f32 %v597_v49, %v498_v10  ;;  %v387_v18 = vpop.f32.mrb[31].mxu0  ;;  %v500_v20 = vpop.f32.mrb[31].mxu1 }
 0x132   :  { %v784_v22 = vadd.f32 %v720_v3, %v656_v6  ;;  %v786_v23 = vadd.f32 %v722_v5, %v658_v7  ;;  %v660_v24 = vmul.f32 %v597_v49, %v387_v18  ;;  %v662_v25 = vmul.f32 %v597_v49, %v500_v20  ;;  %1071 = vmatprep.subr.bf16.mxu0 %v1070_v12 }
 0x133   :  { %v787_v26 = vadd.f32 %v723_v9, %v659_v16  ;;  %v789_v27 = vadd.f32 %v725_v11, %v661_v17  ;;  %1103 = vmatprep.subr.bf16.mxu1 %v1102_v13  ;;  %1073 = vmatpush1.bf16.msra.mxu0 %v1072_v63  ;;  %v847_v30 = vmax.f32 %v783_v14, 0.0  ;;  %v849_v31 = vmax.f32 %v785_v15, 0.0 }
 0x134   :  { %v788_v28 = vadd.f32 %v724_v19, %v660_v24  ;;  %v790_v29 = vadd.f32 %v726_v21, %v662_v25  ;;  %1105 = vmatpush1.bf16.msra.mxu1 %v1104_v60  ;;  %v848_v34 = vmax.f32 %v784_v22, 0.0  ;;  %v850_v35 = vmax.f32 %v786_v23, 0.0 }
 0x135   :  { %v851_v32 = vmax.f32 %v787_v26, 0.0  ;;  %v853_v33 = vmax.f32 %v789_v27, 0.0 }
 0x136   :  { %v852_v36 = vmax.f32 %v788_v28, 0.0  ;;  %v854_v37 = vmax.f32 %v790_v29, 0.0 }
 0x137   :  { %v1076_v38 = vpack.c.bf16 %v851_v32, %v847_v30  ;;  %v1108_v39 = vpack.c.bf16 %v853_v33, %v849_v31 }
 0x138   :  { %v1074_v40 = vpack.c.bf16 %v852_v36, %v848_v34  ;;  %v1106_v41 = vpack.c.bf16 %v854_v37, %v850_v35 }
 0x13a   :  { %1075 = vmatprep.subr.bf16.mxu0 %v1074_v40  ;;  %1107 = vmatprep.subr.bf16.mxu1 %v1106_v41 }
 0x13b   :  { %1077 = vmatpush1.bf16.msra.mxu0 %v1076_v38  ;;  %1109 = vmatpush1.bf16.msra.mxu1 %v1108_v39 }
 0x13e   :  { %921 = vmatmul.mubr.f32.vlgmr.msra.gmra.mrb[32].mxu0 %v855_v42  ;;  %992 = vmatmul.mubr.f32.vlgmr.msra.gmra.mrb[32].mxu1 %v855_v42 }
 0x211   :  { %v922_v43 = vpop.f32.mrb[32].mxu0  ;;  %v993_v44 = vpop.f32.mrb[32].mxu1 }
 0x212   :  { %998 = vst [vmem:[%s1600_s5] sm:$0xff] %v922_v43  ;;  %1000 = vst [vmem:[%s1600_s5 + $0x10] sm:$0xff] %v993_v44  ;;  %v924_v45 = vpop.f32.mrb[33].mxu0  ;;  %v995_v46 = vpop.f32.mrb[33].mxu1 }
 0x213   :  { %999 = vst [vmem:[%s1600_s5 + $0x8] sm:$0xff] %v924_v45  ;;  %1001 = vst [vmem:[%s1600_s5 + $0x18] sm:$0xff] %v995_v46 }

// kernel: classify_net_forward.5
= control target key start
LH: loop header
LB: loop body
LE: loop exit
PB: predicated region body
PF: predicated region fallthrough
CT: control target
= control target key end

     0   :  { %s617_s1 = inlined_call_operand.vmem [shape: f32[512,128], index: 1, kind: input, shape index: {}]   ;;  %s618_s0 = inlined_call_operand.vmem [shape: f32[1,8,512], index: 0, kind: input, shape index: {}]   ;;  %s619_s2 = inlined_call_operand.vmem [shape: f32[1,128], index: 2, kind: input, shape index: {}]   ;;  %s620_s3 = inlined_call_operand.vmem [shape: f32[8,128], index: 3, kind: output, shape index: {}]  }
   0x1   :  { %v38_v0 = vld [vmem:[%s617_s1 + $0x80] sm:$0xff]  ;;  %v39_v1 = vld [vmem:[%s617_s1 + $0x88] sm:$0xff]  ;;  %v40_v11 = vld [vmem:[%s617_s1 + $0x90] sm:$0xff] }
   0x2   :  { %v22_v2 = vld [vmem:[%s617_s1] sm:$0xff]  ;;  %v319_v3 = vpack.c.bf16 %v39_v1, %v38_v0  ;;  %v23_v4 = vld [vmem:[%s617_s1 + $0x8] sm:$0xff]  ;;  %v41_v13 = vld [vmem:[%s617_s1 + $0x98] sm:$0xff] }
   0x3   :  { %v70_v5 = vld [vmem:[%s617_s1 + $0x180] sm:$0xff]  ;;  %v71_v6 = vld [vmem:[%s617_s1 + $0x188] sm:$0xff]  ;;  %v321_v7 = vpack.c.bf16 %v23_v4, %v22_v2  ;;  %v24_v14 = vld [vmem:[%s617_s1 + $0x10] sm:$0xff]  ;;  %v323_v16 = vpack.c.bf16 %v41_v13, %v40_v11 }
   0x4   :  { %v351_v8 = vpack.c.bf16 %v71_v6, %v70_v5  ;;  %v54_v9 = vld [vmem:[%s617_s1 + $0x100] sm:$0xff]  ;;  %v55_v10 = vld [vmem:[%s617_s1 + $0x108] sm:$0xff]  ;;  %320 = vmatprep.subr.bf16.mxu0 %v319_v3  ;;  %v25_v15 = vld [vmem:[%s617_s1 + $0x18] sm:$0xff] }
   0x5   :  { %v353_v12 = vpack.c.bf16 %v55_v10, %v54_v9  ;;  %322 = vmatpush3.bf16.msra.mxu0 %v321_v7  ;;  %v325_v17 = vpack.c.bf16 %v25_v15, %v24_v14  ;;  %v72_v18 = vld [vmem:[%s617_s1 + $0x190] sm:$0xff]  ;;  %v73_v19 = vld [vmem:[%s617_s1 + $0x198] sm:$0xff]  ;;  %v42_v23 = vld [vmem:[%s617_s1 + $0xa0] sm:$0xff] }
   0x6   :  { %352 = vmatprep.subr.bf16.mxu1 %v351_v8  ;;  %v56_v20 = vld [vmem:[%s617_s1 + $0x110] sm:$0xff]  ;;  %v355_v21 = vpack.c.bf16 %v73_v19, %v72_v18  ;;  %v57_v22 = vld [vmem:[%s617_s1 + $0x118] sm:$0xff]  ;;  %v43_v24 = vld [vmem:[%s617_s1 + $0xa8] sm:$0xff]  ;;  %324 = vmatprep.subr.bf16.mxu0 %v323_v16 }
   0x7   :  { %354 = vmatpush3.bf16.msra.mxu1 %v353_v12  ;;  %v357_v25 = vpack.c.bf16 %v57_v22, %v56_v20  ;;  %v327_v26 = vpack.c.bf16 %v43_v24, %v42_v23  ;;  %v26_v27 = vld [vmem:[%s617_s1 + $0x20] sm:$0xff]  ;;  %v27_v28 = vld [vmem:[%s617_s1 + $0x28] sm:$0xff]  ;;  %v44_v35 = vld [vmem:[%s617_s1 + $0xb0] sm:$0xff] }
   0x8   :  { %v74_v29 = vld [vmem:[%s617_s1 + $0x1a0] sm:$0xff]  ;;  %356 = vmatprep.subr.bf16.mxu1 %v355_v21  ;;  %v75_v30 = vld [vmem:[%s617_s1 + $0x1a8] sm:$0xff]  ;;  %v329_v33 = vpack.c.bf16 %v27_v28, %v26_v27  ;;  %v45_v36 = vld [vmem:[%s617_s1 + $0xb8] sm:$0xff] }
   0x9   :  { %v58_v31 = vld [vmem:[%s617_s1 + $0x120] sm:$0xff]  ;;  %v59_v32 = vld [vmem:[%s617_s1 + $0x128] sm:$0xff]  ;;  %326 = vmatpush3.bf16.msra.mxu0 %v325_v17  ;;  %v359_v34 = vpack.c.bf16 %v75_v30, %v74_v29  ;;  %v28_v37 = vld [vmem:[%s617_s1 + $0x30] sm:$0xff]  ;;  %v331_v39 = vpack.c.bf16 %v45_v36, %v44_v35 }
   0xa   :  { %328 = vmatprep.subr.bf16.mxu0 %v327_v26  ;;  %v361_v38 = vpack.c.bf16 %v59_v32, %v58_v31  ;;  %v29_v40 = vld [vmem:[%s617_s1 + $0x38] sm:$0xff]  ;;  %v76_v41 = vld [vmem:[%s617_s1 + $0x1b0] sm:$0xff]  ;;  %v46_v46 = vld [vmem:[%s617_s1 + $0xc0] sm:$0xff] }
   0xb   :  { %358 = vmatpush3.bf16.msra.mxu1 %v357_v25  ;;  %v77_v42 = vld [vmem:[%s617_s1 + $0x1b8] sm:$0xff]  ;;  %v60_v44 = vld [vmem:[%s617_s1 + $0x130] sm:$0xff]  ;;  %v47_v47 = vld [vmem:[%s617_s1 + $0xc8] sm:$0xff]  ;;  %v333_v48 = vpack.c.bf16 %v29_v40, %v28_v37 }
   0xc   :  { %360 = vmatprep.subr.bf16.mxu1 %v359_v34  ;;  %v363_v43 = vpack.c.bf16 %v77_v42, %v76_v41  ;;  %v61_v45 = vld [vmem:[%s617_s1 + $0x138] sm:$0xff]  ;;  %v78_v49 = vld [vmem:[%s617_s1 + $0x1c0] sm:$0xff]  ;;  %v79_v50 = vld [vmem:[%s617_s1 + $0x1c8] sm:$0xff]  ;;  %v335_v52 = vpack.c.bf16 %v47_v47, %v46_v46 }
   0xd   :  { %330 = vmatpush3.bf16.msra.mxu0 %v329_v33  ;;  %v365_v51 = vpack.c.bf16 %v61_v45, %v60_v44  ;;  %v30_v53 = vld [vmem:[%s617_s1 + $0x40] sm:$0xff]  ;;  %v31_v54 = vld [vmem:[%s617_s1 + $0x48] sm:$0xff]  ;;  %v367_v56 = vpack.c.bf16 %v79_v50, %v78_v49  ;;  %v48_v58 = vld [vmem:[%s617_s1 + $0xd0] sm:$0xff] }
   0xe   :  { %332 = vmatprep.subr.bf16.mxu0 %v331_v39  ;;  %v62_v55 = vld [vmem:[%s617_s1 + $0x140] sm:$0xff]  ;;  %v63_v57 = vld [vmem:[%s617_s1 + $0x148] sm:$0xff]  ;;  %v49_v59 = vld [vmem:[%s617_s1 + $0xd8] sm:$0xff]  ;;  %v337_v62 = vpack.c.bf16 %v31_v54, %v30_v53 }
   0xf   :  { %362 = vmatpush3.bf16.msra.mxu1 %v361_v38  ;;  %v80_v60 = vld [vmem:[%s617_s1 + $0x1d0] sm:$0xff]  ;;  %v81_v61 = vld [vmem:[%s617_s1 + $0x1d8] sm:$0xff]  ;;  %v369_v63 = vpack.c.bf16 %v63_v57, %v62_v55  ;;  %v339_v0 = vpack.c.bf16 %v49_v59, %v48_v58  ;;  %v50_v6 = vld [vmem:[%s617_s1 + $0xe0] sm:$0xff] }
  0x10   :  { %364 = vmatprep.subr.bf16.mxu1 %v363_v43  ;;  %v32_v1 = vld [vmem:[%s617_s1 + $0x50] sm:$0xff]  ;;  %v33_v2 = vld [vmem:[%s617_s1 + $0x58] sm:$0xff]  ;;  %v371_v4 = vpack.c.bf16 %v81_v61, %v80_v60  ;;  %v51_v7 = vld [vmem:[%s617_s1 + $0xe8] sm:$0xff] }
  0x11   :  { %334 = vmatpush3.bf16.msra.mxu0 %v333_v48  ;;  %v64_v3 = vld [vmem:[%s617_s1 + $0x150] sm:$0xff]  ;;  %v65_v5 = vld [vmem:[%s617_s1 + $0x158] sm:$0xff]  ;;  %v82_v8 = vld [vmem:[%s617_s1 + $0x1e0] sm:$0xff]  ;;  %v341_v10 = vpack.c.bf16 %v33_v2, %v32_v1  ;;  %v343_v14 = vpack.c.bf16 %v51_v7, %v50_v6 }
  0x12   :  { %336 = vmatprep.subr.bf16.mxu0 %v335_v52  ;;  %v83_v9 = vld [vmem:[%s617_s1 + $0x1e8] sm:$0xff]  ;;  %v34_v11 = vld [vmem:[%s617_s1 + $0x60] sm:$0xff]  ;;  %v373_v13 = vpack.c.bf16 %v65_v5, %v64_v3  ;;  %v52_v19 = vld [vmem:[%s617_s1 + $0xf0] sm:$0xff] }
  0x13   :  { %366 = vmatpush3.bf16.msra.mxu1 %v365_v51  ;;  %v35_v12 = vld [vmem:[%s617_s1 + $0x68] sm:$0xff]  ;;  %v66_v15 = vld [vmem:[%s617_s1 + $0x160] sm:$0xff]  ;;  %v375_v18 = vpack.c.bf16 %v83_v9, %v82_v8  ;;  %v53_v20 = vld [vmem:[%s617_s1 + $0xf8] sm:$0xff] }
  0x14   :  { %368 = vmatprep.subr.bf16.mxu1 %v367_v56  ;;  %v67_v16 = vld [vmem:[%s617_s1 + $0x168] sm:$0xff]  ;;  %v17_v21 = vld [vmem:[%s618_s0 + $0x18] sm:$0xff]  ;;  %v84_v22 = vld [vmem:[%s617_s1 + $0x1f0] sm:$0xff]  ;;  %v345_v24 = vpack.c.bf16 %v35_v12, %v34_v11  ;;  %v347_v26 = vpack.c.bf16 %v53_v20, %v52_v19 }
  0x15   :  { %338 = vmatpush3.bf16.msra.mxu0 %v337_v62  ;;  %v15_v17 = vld [vmem:[%s618_s0 + $0x8] sm:$0xff]  ;;  %v85_v23 = vld [vmem:[%s617_s1 + $0x1f8] sm:$0xff]  ;;  %227 = vmatprep.mubr.f32.mxu1 %v17_v21  ;;  %v377_v25 = vpack.c.bf16 %v67_v16, %v66_v15  ;;  %v36_v27 = vld [vmem:[%s617_s1 + $0x70] sm:$0xff] }
  0x16   :  { %340 = vmatprep.subr.bf16.mxu0 %v339_v0  ;;  %157 = vmatprep.mubr.f32.mxu0 %v15_v17  ;;  %v37_v28 = vld [vmem:[%s617_s1 + $0x78] sm:$0xff]  ;;  %v379_v29 = vpack.c.bf16 %v85_v23, %v84_v22  ;;  %v68_v30 = vld [vmem:[%s617_s1 + $0x170] sm:$0xff]  ;;  %v14_v34 = vld [vmem:[%s618_s0] sm:$0xff] }
  0x17   :  { %370 = vmatpush3.bf16.msra.mxu1 %v369_v63  ;;  %v69_v31 = vld [vmem:[%s617_s1 + $0x178] sm:$0xff]  ;;  %v349_v32 = vpack.c.bf16 %v37_v28, %v36_v27  ;;  %v16_v35 = vld [vmem:[%s618_s0 + $0x10] sm:$0xff]  ;;  %v248_v37 = vld [vmem:[%s619_s2] ss:$0 sm:$0xff] }
  0x18   :  { %372 = vmatprep.subr.bf16.mxu1 %v371_v4  ;;  %v381_v33 = vpack.c.bf16 %v69_v31, %v68_v30 }
  0x19   :  { %342 = vmatpush3.bf16.msra.mxu0 %v341_v10 }
  0x1a   :  { %344 = vmatprep.subr.bf16.mxu0 %v343_v14 }
  0x1b   :  { %374 = vmatpush3.bf16.msra.mxu1 %v373_v13 }
  0x1c   :  { %376 = vmatprep.subr.bf16.mxu1 %v375_v18 }
  0x1d   :  { %346 = vmatpush3.bf16.msra.mxu0 %v345_v24 }
  0x1e   :  { %348 = vmatprep.subr.bf16.mxu0 %v347_v26 }
  0x1f   :  { %378 = vmatpush3.bf16.msra.mxu1 %v377_v25 }
  0x20   :  { %380 = vmatprep.subr.bf16.mxu1 %v379_v29 }
  0x21   :  { %350 = vmatpush3.bf16.msra.mxu0 %v349_v32 }
  0x23   :  { %382 = vmatpush3.bf16.msra.mxu1 %v381_v33 }
  0x24   :  { %158 = vmatmul.mubr.f32.vlgmr.msra.gmra.mrb[0].mxu0 %v14_v34 }
  0x26   :  { %228 = vmatmul.mubr.f32.vlgmr.msra.gmra.mrb[0].mxu1 %v16_v35 }
  0xf7   :  { %v281_v36 = vpop.f32.mrb[0].mxu0 }
  0xf8   :  { %v282_v38 = vpop.f32.mrb[1].mxu0 }
  0xf9   :  { %v316_v39 = vpop.f32.mrb[0].mxu1  ;;  %v283_v40 = vadd.f32 %v282_v38, %v281_v36 }
  0xfa   :  { %v317_v41 = vpop.f32.mrb[1].mxu1 }
  0xfb   :  { %v318_v42 = vadd.f32 %v317_v41, %v316_v39  ;;  %v160_v43 = vadd.f32 %v283_v40, %v248_v37 }
  0xfd   :  { %v230_v44 = vadd.f32 %v318_v42, %v160_v43 }
  0xff   :  { %233 = vmax.xlane.f32.xlu0 %v230_v44 }
 0x18c   :  { %v234_v45 = vpop.xlane.xlu0 %233 }
 0x18d   :  { %v235_v46 = vsub.f32 %v230_v44, %v234_v45 }
 0x18f   :  { %v236_v47 = vmul.f32 1.442695, %v235_v46 }
 0x191   :  { %383 = vpow2.f32 %v236_v47 }
 0x19b   :  { %v384_v48 = vpop.eup %383 }
 0x19c   :  { %238 = vadd.xlane.f32.xlu0 %v384_v48 }
 0x229   :  { %v239_v49 = vpop.xlane.xlu0 %238 }
 0x22a   :  { %385 = vlog2.f32 %v239_v49 }
 0x234   :  { %v386_v50 = vpop.eup %385 }
 0x235   :  { %v241_v51 = vmul.f32 0.6931472, %v386_v50 }
 0x237   :  { %v242_v52 = vsub.f32 %v235_v46, %v241_v51 }
 0x239   :  { %243 = vst [vmem:[%s620_s3] sm:$0xff] %v242_v52 }

// kernel: classify_net_forward.3
= control target key start
LH: loop header
LB: loop body
LE: loop exit
PB: predicated region body
PF: predicated region fallthrough
CT: control target
= control target key end

     0   :  { %v21184_v1 = vmov 0   ;;  %s21172_s3 = inlined_call_operand.vmem [shape: bf16[128,128], index: 3, kind: input, shape index: {}, may-alias: {2,3}]   ;;  %s21173_s5 = inlined_call_operand.vmem [shape: bf16[128,1664], index: 5, kind: input, shape index: {}]   ;;  %s21174_s0 = inlined_call_operand.vmem [shape: bf16[128,128], index: 0, kind: input, shape index: {}]   ;;  %s21175_s2 = inlined_call_operand.vmem [shape: bf16[128,128], index: 2, kind: input, shape index: {}, may-alias: {2,3}]   ;;  %s21176_s1 = inlined_call_operand.vmem [shape: f32[128,1], index: 1, kind: input, shape index: {}]   ;;  %s21177_s4 = inlined_call_operand.vmem [shape: bf16[128,1664], index: 4, kind: input, shape index: {}]   ;;  %s21178_s7 = inlined_call_operand.vmem [shape: bf16[1664,512], index: 7, kind: input, shape index: {}]   ;;  %s21179_s6 = inlined_call_operand.vmem [shape: f32[1,1664], index: 6, kind: input, shape index: {}]   ;;  %s21180_s8 = inlined_call_operand.vmem [shape: bf16[1664,512], index: 8, kind: input, shape index: {}]   ;;  %s21181_s10 = inlined_call_operand.vmem [shape: bf16[128,512], index: 10, kind: output, shape index: {0}]   ;;  %s21182_s9 = inlined_call_operand.vmem [shape: f32[1,512], index: 9, kind: input, shape index: {}]   ;;  %s21183_s11 = inlined_call_operand.vmem [shape: f32[128,512], index: 11, kind: output, shape index: {1}]  }
   0x1   :  { %v14671_v0 = vld [vmem:[%s21172_s3] sm:$0xff]   ;;  %1271 = vmatprep.mubr.bf16.mxu1 %v21184_v1  ;;  %14669 = vset.pattern.permute.xlu0 %v21184_v1  ;;  %v14672_v2 = vld [vmem:[%s21172_s3 + $0x8] sm:$0xff]   ;;  %v14673_v3 = vld [vmem:[%s21172_s3 + $0x10] sm:$0xff]  }
   0x2   :  { %14670 = vset.pattern.permute.xlu1 %v21184_v1  ;;  %13516 = vmatprep.subr.bf16.mxu0 %v14671_v0  ;;  %v14678_v4 = vld [vmem:[%s21173_s5 + $0x4] ss:$52 sps:$4 sm:$0xff]   ;;  %v14681_v6 = vld [vmem:[%s21173_s5] ss:$52 sps:$4 sm:$0xff]   ;;  %v14686_v10 = vld [vmem:[%s21173_s5 + $0x68] ss:$52 sps:$4 sm:$0xff]  }
   0x3   :  { %13517 = vmatpush3.bf16.msra.mxu0 %v14671_v0  ;;  %v14674_v5 = vld [vmem:[%s21172_s3 + $0x18] sm:$0xff]   ;;  %13612 = vmatprep.subr.bf16.mxu1 %v14678_v4  ;;  %v14682_v7 = vld [vmem:[%s21174_s0] sm:$0xff]   ;;  %v14687_v11 = vld [vmem:[%s21173_s5 + $0xd4] ss:$52 sps:$4 sm:$0xff]  }
   0x4   :  { %13518 = vmatprep.subr.bf16.mxu0 %v14672_v2  ;;  %13620 = vmatpush1.bf16.msra.mxu1 %v14681_v6  ;;  %v14683_v8 = vld [vmem:[%s21173_s5 + $0x6c] ss:$52 sps:$4 sm:$0xff]   ;;  %v14689_v13 = vld [vmem:[%s21173_s5 + $0xd0] ss:$52 sps:$4 sm:$0xff]   ;;  %v14680_v18 = vld [vmem:[%s21172_s3 + $0x38] sm:$0xff]  }
   0x5   :  { %v14675_v9 = vld [vmem:[%s21172_s3 + $0x20] sm:$0xff]   ;;  %13532 = vmatprep.mubr.bf16.mxu0 %v14682_v7  ;;  %13613 = vmatprep.subr.bf16.mxu1 %v14683_v8  ;;  %v14676_v12 = vld [vmem:[%s21172_s3 + $0x28] sm:$0xff]   ;;  %v14691_v14 = vld [vmem:[%s21173_s5 + $0x13c] ss:$52 sps:$4 sm:$0xff]  }
   0x6   :  { %v14677_v15 = vld [vmem:[%s21172_s3 + $0x30] sm:$0xff]   ;;  %v14694_v16 = vld [vmem:[%s21173_s5 + $0x138] ss:$52 sps:$4 sm:$0xff]   ;;  %v14702_v21 = vld [vmem:[%s21173_s5 + $0x208] ss:$52 sps:$4 sm:$0xff]  }
   0x7   :  { %13519 = vmatpush3.bf16.msra.mxu0 %v14672_v2  ;;  %v14695_v17 = vld [vmem:[%s21173_s5 + $0x1a4] ss:$52 sps:$4 sm:$0xff]   ;;  %v14697_v19 = vld [vmem:[%s21173_s5 + $0x1a0] ss:$52 sps:$4 sm:$0xff]   ;;  %v14685_v23 = vld [vmem:[%s21174_s0 + $0x8] sm:$0xff]  }
   0x8   :  { %13520 = vmatprep.subr.bf16.mxu0 %v14673_v3  ;;  %13621 = vmatpush1.bf16.msra.mxu1 %v14686_v10  ;;  %v14699_v20 = vld [vmem:[%s21173_s5 + $0x20c] ss:$52 sps:$4 sm:$0xff]   ;;  %v14703_v22 = vld [vmem:[%s21173_s5 + $0x274] ss:$52 sps:$4 sm:$0xff]   ;;  %v14705_v25 = vld [vmem:[%s21173_s5 + $0x270] ss:$52 sps:$4 sm:$0xff]  }
   0x9   :  { %13614 = vmatprep.subr.bf16.mxu1 %v14687_v11  ;;  %v14690_v24 = vld [vmem:[%s21174_s0 + $0x10] sm:$0xff]   ;;  %v16397_v27 = vld [vmem:[%s21173_s5 + $0x2d8] ss:$52 sps:$4 sm:$0xff]   ;;  %v14698_v30 = vld [vmem:[%s21174_s0 + $0x20] sm:$0xff]  }
   0xa   :  { %v14707_v26 = vld [vmem:[%s21173_s5 + $0x2dc] ss:$52 sps:$4 sm:$0xff]   ;;  %v14714_v28 = vld [vmem:[%s21173_s5 + $0x14] ss:$52 sps:$4 sm:$0xff]   ;;  %v16412_v31 = vld [vmem:[%s21175_s2 + $0x20] sm:$0xff]  }
   0xb   :  { %13521 = vmatpush3.bf16.msra.mxu0 %v14673_v3  ;;  %v14693_v29 = vld [vmem:[%s21174_s0 + $0x18] sm:$0xff]   ;;  %v14712_v32 = vld [vmem:[%s21173_s5 + $0x10] ss:$52 sps:$4 sm:$0xff]   ;;  %v14701_v34 = vld [vmem:[%s21174_s0 + $0x28] sm:$0xff]  }
   0xc   :  { %13522 = vmatprep.subr.bf16.mxu0 %v14674_v5  ;;  %13622 = vmatpush1.bf16.msra.mxu1 %v14689_v13  ;;  %v14717_v33 = vld [vmem:[%s21173_s5 + $0x7c] ss:$52 sps:$4 sm:$0xff]   ;;  %v14715_v35 = vld [vmem:[%s21173_s5 + $0x78] ss:$52 sps:$4 sm:$0xff]   ;;  %v14723_v39 = vld [vmem:[%s21173_s5 + $0xe0] ss:$52 sps:$4 sm:$0xff]  }
   0xd   :  { %13615 = vmatprep.subr.bf16.mxu1 %v14691_v14  ;;  %v14725_v36 = vld [vmem:[%s21173_s5 + $0xe4] ss:$52 sps:$4 sm:$0xff]   ;;  %v14706_v37 = vld [vmem:[%s21174_s0 + $0x30] sm:$0xff]   ;;  %v16437_v38 = vld [vmem:[%s21175_s2 + $0x28] sm:$0xff]  }
   0xe   :  { %v14731_v40 = vld [vmem:[%s21173_s5 + $0x14c] ss:$52 sps:$4 sm:$0xff]   ;;  %v14729_v42 = vld [vmem:[%s21173_s5 + $0x148] ss:$52 sps:$4 sm:$0xff]   ;;  %v16462_v45 = vld [vmem:[%s21175_s2 + $0x30] sm:$0xff]  }
   0xf   :  { %13523 = vmatpush3.bf16.msra.mxu0 %v14674_v5  ;;  %v263_v41 = vld [vmem:[%s21176_s1] sm:$0xff]  ;;  %v14709_v43 = vld [vmem:[%s21174_s0 + $0x38] sm:$0xff]   ;;  %v14739_v44 = vld [vmem:[%s21173_s5 + $0x1b4] ss:$52 sps:$4 sm:$0xff]  }
  0x10   :  { %13524 = vmatprep.subr.bf16.mxu0 %v14675_v9  ;;  %13623 = vmatpush1.bf16.msra.mxu1 %v14694_v16  ;;  %v14737_v46 = vld [vmem:[%s21173_s5 + $0x1b0] ss:$52 sps:$4 sm:$0xff]   ;;  %v264_v48 = vld [vmem:[%s21176_s1 + $0x8] sm:$0xff]  ;;  %v16503_v56 = vld [vmem:[%s21175_s2 + $0x38] sm:$0xff]  }
  0x11   :  { %13616 = vmatprep.subr.bf16.mxu1 %v14695_v17  ;;  %281 = vperm.xlu0 %14669, %v263_v41   ;;  %v14745_v47 = vld [vmem:[%s21173_s5 + $0x21c] ss:$52 sps:$4 sm:$0xff]   ;;  %v14721_v49 = vld [vmem:[%s21173_s5 + $0xc] ss:$52 sps:$4 sm:$0xff]   ;;  %v14753_v53 = vld [vmem:[%s21173_s5 + $0x284] ss:$52 sps:$4 sm:$0xff]  }
  0x12   :  { %v265_v50 = vld [vmem:[%s21176_s1 + $0x10] sm:$0xff]  ;;  %v14743_v51 = vld [vmem:[%s21173_s5 + $0x218] ss:$52 sps:$4 sm:$0xff]   ;;  %v16488_v52 = vld [vmem:[%s21175_s2] sm:$0xff]  }
  0x13   :  { %13525 = vmatpush3.bf16.msra.mxu0 %v14675_v9  ;;  %v14719_v54 = vld [vmem:[%s21173_s5 + $0x8] ss:$52 sps:$4 sm:$0xff]   ;;  %291 = vperm.xlu1 %14670, %v265_v50   ;;  %v14751_v57 = vld [vmem:[%s21173_s5 + $0x280] ss:$52 sps:$4 sm:$0xff]   ;;  %v14726_v59 = vld [vmem:[%s21173_s5 + $0x70] ss:$52 sps:$4 sm:$0xff]  }
  0x14   :  { %13526 = vmatprep.subr.bf16.mxu0 %v14676_v12  ;;  %13624 = vmatpush1.bf16.msra.mxu1 %v14697_v19  ;;  %v14728_v55 = vld [vmem:[%s21173_s5 + $0x74] ss:$52 sps:$4 sm:$0xff]   ;;  %v14759_v58 = vld [vmem:[%s21173_s5 + $0x2ec] ss:$52 sps:$4 sm:$0xff]   ;;  %v14735_v61 = vld [vmem:[%s21173_s5 + $0xdc] ss:$52 sps:$4 sm:$0xff]  }
  0x15   :  { %13617 = vmatprep.subr.bf16.mxu1 %v14699_v20  ;;  %286 = vperm.xlu0 %14669, %v264_v48   ;;  %v267_v60 = vld [vmem:[%s21176_s1 + $0x20] sm:$0xff]  ;;  %v266_v62 = vld [vmem:[%s21176_s1 + $0x18] sm:$0xff]  ;;  %v16533_v0 = vld [vmem:[%s21175_s2 + $0x8] sm:$0xff]  }
  0x16   :  { %v14757_v63 = vld [vmem:[%s21173_s5 + $0x2e8] ss:$52 sps:$4 sm:$0xff]   ;;  %v14766_v2 = vld [vmem:[%s21173_s5 + $0x24] ss:$52 sps:$4 sm:$0xff]   ;;  %v14764_v5 = vld [vmem:[%s21173_s5 + $0x20] ss:$52 sps:$4 sm:$0xff]  }
  0x17   :  { %13527 = vmatpush3.bf16.msra.mxu0 %v14676_v12  ;;  %v14733_v3 = vld [vmem:[%s21173_s5 + $0xd8] ss:$52 sps:$4 sm:$0xff]   ;;  %296 = vperm.xlu1 %14670, %v266_v62   ;;  %v269_v9 = vld [vmem:[%s21176_s1 + $0x30] sm:$0xff] }
  0x18   :  { %13528 = vmatprep.subr.bf16.mxu0 %v14677_v15  ;;  %13625 = vmatpush1.bf16.msra.mxu1 %v14702_v21  ;;  %v14772_v7 = vld [vmem:[%s21173_s5 + $0x8c] ss:$52 sps:$4 sm:$0xff]   ;;  %v16572_v12 = vld [vmem:[%s21175_s2 + $0x10] sm:$0xff]   ;;  %v278_v41 = vld [vmem:[%s21176_s1 + $0x78] sm:$0xff] }
  0x19   :  { %13618 = vmatprep.subr.bf16.mxu1 %v14703_v22  ;;  %301 = vperm.xlu0 %14669, %v267_v60   ;;  %v14799_v48 = vld [vmem:[%s21173_s5 + $0x154] ss:$52 sps:$4 sm:$0xff]   ;;  %v14805_v50 = vld [vmem:[%s21173_s5 + $0x2fc] ss:$52 sps:$4 sm:$0xff]   ;;  %v14811_v60 = vld [vmem:[%s21173_s5 + $0x28c] ss:$52 sps:$4 sm:$0xff]  }
  0x1a   :  { %v14815_v62 = vld [vmem:[%s21173_s5 + $0x2f4] ss:$52 sps:$4 sm:$0xff]  }
  0x1b   :  { %13529 = vmatpush3.bf16.msra.mxu0 %v14677_v15  ;;  %v14756_v15 = vld [vmem:[%s21173_s5 + $0x214] ss:$52 sps:$4 sm:$0xff]  }
  0x1c   :  { %13530 = vmatprep.subr.bf16.mxu0 %v14680_v18  ;;  %13626 = vmatpush1.bf16.msra.mxu1 %v14705_v25 }
  0x1d   :  { %13619 = vmatprep.subr.bf16.mxu1 %v14707_v26  ;;  %311 = vperm.xlu0 %14669, %v269_v9   ;;  %v14819_v9 = vld [vmem:[%s21173_s5 + $0x28] ss:$52 sps:$4 sm:$0xff]  }
  0x1f   :  { %13531 = vmatpush3.bf16.msra.mxu0 %v14680_v18  ;;  %v14763_v18 = vld [vmem:[%s21173_s5 + $0x27c] ss:$52 sps:$4 sm:$0xff]  }
  0x20   :  { %1199 = vmatprep.subr.bf16.mxu0 %v14678_v4  ;;  %13627 = vmatpush1.bf16.msra.mxu1 %v16397_v27  ;;  %v14742_v4 = vld [vmem:[%s21173_s5 + $0x144] ss:$52 sps:$4 sm:$0xff]  }
  0x21   :  { %1425 = vmatprep.subr.bf16.mxu1 %v14714_v28  ;;  %v14767_v28 = vld [vmem:[%s21173_s5 + $0x2e0] ss:$52 sps:$4 sm:$0xff]  }
  0x22   :  { %13533 = vmatmul.mubr.bf16.vlgmr.msra.gmra.mrb[0].mxu0 %v14685_v23  ;;  %v16610_v23 = vld [vmem:[%s21175_s2 + $0x18] sm:$0xff]  }
  0x23   :  { %1200 = vmatpush1.bf16.msra.mxu0 %v14681_v6  ;;  %13536 = vmatprep.mubr.bf16.mxu0 %v14690_v24  ;;  %v14740_v6 = vld [vmem:[%s21173_s5 + $0x140] ss:$52 sps:$4 sm:$0xff]   ;;  %v14761_v24 = vld [vmem:[%s21173_s5 + $0x278] ss:$52 sps:$4 sm:$0xff]  }
  0x24   :  { %1201 = vmatprep.subr.bf16.mxu0 %v14683_v8  ;;  %1272 = vmatmul.mubr.bf16.vlgmr.msra.gmra.mrb[0].mxu1 %v16412_v31  ;;  %v14749_v8 = vld [vmem:[%s21173_s5 + $0x1ac] ss:$52 sps:$4 sm:$0xff]  }
  0x25   :  { %1426 = vmatpush1.bf16.msra.mxu1 %v14712_v32  ;;  %1281 = vmatprep.mubr.bf16.mxu1 %v21184_v1  ;;  %v14784_v32 = vld [vmem:[%s21173_s5 + $0x1c4] ss:$52 sps:$4 sm:$0xff]  }
  0x26   :  { %1427 = vmatprep.subr.bf16.mxu1 %v14717_v33  ;;  %v14781_v33 = vld [vmem:[%s21173_s5 + $0x1c] ss:$52 sps:$4 sm:$0xff]  }
  0x27   :  { %1202 = vmatpush1.bf16.msra.mxu0 %v14686_v10  ;;  %v268_v10 = vld [vmem:[%s21176_s1 + $0x28] sm:$0xff] }
  0x28   :  { %1203 = vmatprep.subr.bf16.mxu0 %v14687_v11  ;;  %v14770_v11 = vld [vmem:[%s21173_s5 + $0x88] ss:$52 sps:$4 sm:$0xff]   ;;  %306 = vperm.xlu1 %14670, %v268_v10  }
  0x29   :  { %1428 = vmatpush1.bf16.msra.mxu1 %v14715_v35  ;;  %v276_v35 = vld [vmem:[%s21176_s1 + $0x68] sm:$0xff] }
  0x2a   :  { %13537 = vmatmul.mubr.bf16.gmra.mrb[4].mxu0 %v14693_v29  ;;  %1429 = vmatprep.subr.bf16.mxu1 %v14725_v36  ;;  %v14776_v29 = vld [vmem:[%s21173_s5 + $0x158] ss:$52 sps:$4 sm:$0xff]   ;;  %v14825_v10 = vld [vmem:[%s21173_s5 + $0x94] ss:$52 sps:$4 sm:$0xff]  }
  0x2b   :  { %1204 = vmatpush1.bf16.msra.mxu0 %v14689_v13  ;;  %13540 = vmatprep.mubr.bf16.mxu0 %v14698_v30  ;;  %v14747_v13 = vld [vmem:[%s21173_s5 + $0x1a8] ss:$52 sps:$4 sm:$0xff]   ;;  %v14779_v36 = vld [vmem:[%s21173_s5 + $0x18] ss:$52 sps:$4 sm:$0xff]  }
  0x2c   :  { %1205 = vmatprep.subr.bf16.mxu0 %v14691_v14  ;;  %1282 = vmatmul.mubr.bf16.gmra.mrb[4].mxu1 %v16437_v38  ;;  %v271_v14 = vld [vmem:[%s21176_s1 + $0x40] sm:$0xff]  ;;  %v274_v30 = vld [vmem:[%s21176_s1 + $0x58] sm:$0xff] }
  0x2d   :  { %1430 = vmatpush1.bf16.msra.mxu1 %v14723_v39  ;;  %1291 = vmatprep.mubr.bf16.mxu1 %v21184_v1  ;;  %v14782_v39 = vld [vmem:[%s21173_s5 + $0x1c0] ss:$52 sps:$4 sm:$0xff]  }
  0x2e   :  { %1431 = vmatprep.subr.bf16.mxu1 %v14731_v40  ;;  %321 = vperm.xlu0 %14669, %v271_v14   ;;  %v14790_v40 = vld [vmem:[%s21173_s5 + $0x22c] ss:$52 sps:$4 sm:$0xff]   ;;  %v14829_v14 = vld [vmem:[%s21173_s5 + $0xfc] ss:$52 sps:$4 sm:$0xff]  }
  0x2f   :  { %1206 = vmatpush1.bf16.msra.mxu0 %v14694_v16  ;;  %v14754_v16 = vld [vmem:[%s21173_s5 + $0x210] ss:$52 sps:$4 sm:$0xff]  }
  0x30   :  { %1207 = vmatprep.subr.bf16.mxu0 %v14695_v17  ;;  %v14775_v17 = vld [vmem:[%s21173_s5 + $0xf4] ss:$52 sps:$4 sm:$0xff]  }
  0x31   :  { %1432 = vmatpush1.bf16.msra.mxu1 %v14729_v42  ;;  %v14785_v42 = vld [vmem:[%s21173_s5 + $0x80] ss:$52 sps:$4 sm:$0xff]  }
  0x32   :  { %13541 = vmatmul.mubr.bf16.gmra.mrb[8].mxu0 %v14701_v34  ;;  %1433 = vmatprep.subr.bf16.mxu1 %v14739_v44  ;;  %v277_v34 = vld [vmem:[%s21176_s1 + $0x70] sm:$0xff]  ;;  %v14788_v44 = vld [vmem:[%s21173_s5 + $0x228] ss:$52 sps:$4 sm:$0xff]  }
  0x33   :  { %1208 = vmatpush1.bf16.msra.mxu0 %v14697_v19  ;;  %13544 = vmatprep.mubr.bf16.mxu0 %v14706_v37  ;;  %v14773_v19 = vld [vmem:[%s21173_s5 + $0xf0] ss:$52 sps:$4 sm:$0xff]  }
  0x34   :  { %1209 = vmatprep.subr.bf16.mxu0 %v14699_v20  ;;  %1292 = vmatmul.mubr.bf16.gmra.mrb[8].mxu1 %v16462_v45  ;;  %v270_v20 = vld [vmem:[%s21176_s1 + $0x38] sm:$0xff] }
  0x35   :  { %1434 = vmatpush1.bf16.msra.mxu1 %v14737_v46  ;;  %1301 = vmatprep.mubr.bf16.mxu1 %v21184_v1  ;;  %v14787_v37 = vld [vmem:[%s21173_s5 + $0x84] ss:$52 sps:$4 sm:$0xff]   ;;  %v14796_v46 = vld [vmem:[%s21173_s5 + $0x294] ss:$52 sps:$4 sm:$0xff]  }
  0x36   :  { %1435 = vmatprep.subr.bf16.mxu1 %v14745_v47  ;;  %316 = vperm.xlu1 %14670, %v270_v20   ;;  %v14791_v47 = vld [vmem:[%s21173_s5 + $0xe8] ss:$52 sps:$4 sm:$0xff]  }
  0x37   :  { %1210 = vmatpush1.bf16.msra.mxu0 %v14702_v21  ;;  %v273_v21 = vld [vmem:[%s21176_s1 + $0x50] sm:$0xff]  ;;  %v14834_v20 = vld [vmem:[%s21173_s5 + $0x1c8] ss:$52 sps:$4 sm:$0xff]  }
  0x38   :  { %1211 = vmatprep.subr.bf16.mxu0 %v14703_v22  ;;  %v14778_v22 = vld [vmem:[%s21173_s5 + $0x15c] ss:$52 sps:$4 sm:$0xff]   ;;  %331 = vperm.xlu0 %14669, %v273_v21   ;;  %v14840_v21 = vld [vmem:[%s21173_s5 + $0x234] ss:$52 sps:$4 sm:$0xff]  }
  0x39   :  { %1436 = vmatpush1.bf16.msra.mxu1 %v14743_v51  ;;  %v14797_v51 = vld [vmem:[%s21173_s5 + $0x150] ss:$52 sps:$4 sm:$0xff]  }
  0x3a   :  { %13545 = vmatmul.mubr.bf16.gmra.mrb[12].mxu0 %v14709_v43  ;;  %1437 = vmatprep.subr.bf16.mxu1 %v14753_v53  ;;  %v14793_v43 = vld [vmem:[%s21173_s5 + $0xec] ss:$52 sps:$4 sm:$0xff]   ;;  %v14802_v53 = vld [vmem:[%s21173_s5 + $0x1bc] ss:$52 sps:$4 sm:$0xff]  }
  0x3b   :  { %1212 = vmatpush1.bf16.msra.mxu0 %v14705_v25  ;;  %1231 = vmatprep.mubr.bf16.mxu0 %v21184_v1  ;;  %v14769_v25 = vld [vmem:[%s21173_s5 + $0x2e4] ss:$52 sps:$4 sm:$0xff]  }
  0x3c   :  { %1213 = vmatprep.subr.bf16.mxu0 %v14707_v26  ;;  %1302 = vmatmul.mubr.bf16.gmra.mrb[12].mxu1 %v16503_v56  ;;  %v272_v26 = vld [vmem:[%s21176_s1 + $0x48] sm:$0xff] }
  0x3d   :  { %1438 = vmatpush1.bf16.msra.mxu1 %v14751_v57  ;;  %1457 = vmatprep.mubr.bf16.mxu1 %v21184_v1  ;;  %v14812_v57 = vld [vmem:[%s21173_s5 + $0x30] ss:$52 sps:$4 sm:$0xff]  }
  0x3e   :  { %1439 = vmatprep.subr.bf16.mxu1 %v14759_v58  ;;  %326 = vperm.xlu1 %14670, %v272_v26   ;;  %v14808_v58 = vld [vmem:[%s21173_s5 + $0x224] ss:$52 sps:$4 sm:$0xff]   ;;  %v14847_v26 = vld [vmem:[%s21173_s5 + $0x300] ss:$52 sps:$4 sm:$0xff]  }
  0x3f   :  { %1214 = vmatpush1.bf16.msra.mxu0 %v16397_v27  ;;  %v275_v27 = vld [vmem:[%s21176_s1 + $0x60] sm:$0xff] }
  0x40   :  { %1312 = vmatprep.subr.bf16.mxu0 %v14721_v49  ;;  %341 = vperm.xlu0 %14669, %v275_v27   ;;  %v14794_v49 = vld [vmem:[%s21173_s5 + $0x290] ss:$52 sps:$4 sm:$0xff]   ;;  %v14873_v27 = vld [vmem:[%s21177_s4 + $0xc] ss:$52 sps:$4 sm:$0xff]  }
  0x41   :  { %1440 = vmatpush1.bf16.msra.mxu1 %v14757_v63  ;;  %v14813_v63 = vld [vmem:[%s21173_s5 + $0x2f0] ss:$52 sps:$4 sm:$0xff]  }
  0x42   :  { %1232 = vmatmul.mubr.bf16.vlgmr.msra.gmra.mrb[16].mxu0 %v16488_v52  ;;  %1651 = vmatprep.subr.bf16.mxu1 %v14766_v2  ;;  %v14821_v2 = vld [vmem:[%s21173_s5 + $0x2c] ss:$52 sps:$4 sm:$0xff]  }
  0x43   :  { %1313 = vmatpush1.bf16.msra.mxu0 %v14719_v54  ;;  %1241 = vmatprep.mubr.bf16.mxu0 %v21184_v1  ;;  %v14803_v54 = vld [vmem:[%s21173_s5 + $0x2f8] ss:$52 sps:$4 sm:$0xff]  }
  0x44   :  { %1314 = vmatprep.subr.bf16.mxu0 %v14728_v55  ;;  %1458 = vmatmul.mubr.bf16.vlgmr.msra.gmra.mrb[16].mxu1 %v16488_v52  ;;  %v14800_v55 = vld [vmem:[%s21173_s5 + $0x1b8] ss:$52 sps:$4 sm:$0xff]  }
  0x45   :  { %1652 = vmatpush1.bf16.msra.mxu1 %v14764_v5  ;;  %1467 = vmatprep.mubr.bf16.mxu1 %v21184_v1  ;;  %v14818_v5 = vld [vmem:[%s21173_s5 + $0x168] ss:$52 sps:$4 sm:$0xff]  }
  0x46   :  { %1653 = vmatprep.subr.bf16.mxu1 %v14772_v7  ;;  %336 = vperm.xlu1 %14670, %v274_v30   ;;  %v14826_v7 = vld [vmem:[%s21173_s5 + $0x238] ss:$52 sps:$4 sm:$0xff]  }
  0x47   :  { %1315 = vmatpush1.bf16.msra.mxu0 %v14726_v59  ;;  %351 = vperm.xlu0 %14669, %v277_v34   ;;  %v14806_v59 = vld [vmem:[%s21173_s5 + $0x220] ss:$52 sps:$4 sm:$0xff]   ;;  %v14858_v34 = vld [vmem:[%s21177_s4 + $0x13c] ss:$52 sps:$4 sm:$0xff]  }
  0x48   :  { %1316 = vmatprep.subr.bf16.mxu0 %v14735_v61  ;;  %v14809_v61 = vld [vmem:[%s21173_s5 + $0x288] ss:$52 sps:$4 sm:$0xff]   ;;  %v14852_v30 = vld [vmem:[%s21177_s4 + $0x6c] ss:$52 sps:$4 sm:$0xff]  }
  0x49   :  { %1654 = vmatpush1.bf16.msra.mxu1 %v14770_v11  ;;  %v14837_v11 = vld [vmem:[%s21173_s5 + $0x308] ss:$52 sps:$4 sm:$0xff]  }
  0x4a   :  { %1242 = vmatmul.mubr.bf16.gmra.mrb[20].mxu0 %v16533_v0  ;;  %1655 = vmatprep.subr.bf16.mxu1 %v14775_v17  ;;  %v14833_v17 = vld [vmem:[%s21173_s5 + $0x164] ss:$52 sps:$4 sm:$0xff]  }
  0x4b   :  { %1317 = vmatpush1.bf16.msra.mxu0 %v14733_v3  ;;  %1251 = vmatprep.mubr.bf16.mxu0 %v21184_v1  ;;  %v14816_v3 = vld [vmem:[%s21173_s5 + $0x98] ss:$52 sps:$4 sm:$0xff]  }
  0x4c   :  { %1318 = vmatprep.subr.bf16.mxu0 %v14742_v4  ;;  %1468 = vmatmul.mubr.bf16.gmra.mrb[20].mxu1 %v16533_v0  ;;  %v14817_v4 = vld [vmem:[%s21173_s5 + $0x100] ss:$52 sps:$4 sm:$0xff]  }
  0x4d   :  { %1477 = vmatprep.mubr.bf16.mxu1 %v21184_v1  ;;  %1656 = vmatpush1.bf16.msra.mxu1 %v14773_v19  ;;  %v14836_v19 = vld [vmem:[%s21173_s5 + $0x1cc] ss:$52 sps:$4 sm:$0xff]  }
  0x4e   :  { %1657 = vmatprep.subr.bf16.mxu1 %v14778_v22  ;;  %346 = vperm.xlu1 %14670, %v276_v35   ;;  %v14843_v22 = vld [vmem:[%s21173_s5 + $0x29c] ss:$52 sps:$4 sm:$0xff]   ;;  %v14856_v35 = vld [vmem:[%s21177_s4 + $0x138] ss:$52 sps:$4 sm:$0xff]  }
  0x4f   :  { %1319 = vmatpush1.bf16.msra.mxu0 %v14740_v6  ;;  %v14822_v6 = vld [vmem:[%s21173_s5 + $0x1d0] ss:$52 sps:$4 sm:$0xff]  }
  0x50   :  { %1320 = vmatprep.subr.bf16.mxu0 %v14749_v8  ;;  %v14830_v8 = vld [vmem:[%s21173_s5 + $0x2a0] ss:$52 sps:$4 sm:$0xff]  }
  0x51   :  { %1658 = vmatpush1.bf16.msra.mxu1 %v14776_v29  ;;  %v14844_v29 = vld [vmem:[%s21177_s4] ss:$52 sps:$4 sm:$0xff]  }
  0x52   :  { %1252 = vmatmul.mubr.bf16.gmra.mrb[24].mxu0 %v16572_v12  ;;  %1659 = vmatprep.subr.bf16.mxu1 %v14784_v32  ;;  %v14850_v32 = vld [vmem:[%s21177_s4 + $0x68] ss:$52 sps:$4 sm:$0xff]  }
  0x53   :  { %1321 = vmatpush1.bf16.msra.mxu0 %v14747_v13  ;;  %1261 = vmatprep.mubr.bf16.mxu0 %v21184_v1  ;;  %v14823_v13 = vld [vmem:[%s21173_s5 + $0x90] ss:$52 sps:$4 sm:$0xff]  }
  0x54   :  { %1322 = vmatprep.subr.bf16.mxu0 %v14756_v15  ;;  %1478 = vmatmul.mubr.bf16.gmra.mrb[24].mxu1 %v16572_v12  ;;  %v14846_v15 = vld [vmem:[%s21177_s4 + $0x4] ss:$52 sps:$4 sm:$0xff]  }
  0x55   :  { %1487 = vmatprep.mubr.bf16.mxu1 %v21184_v1  ;;  %1660 = vmatpush1.bf16.msra.mxu1 %v14782_v39  ;;  %v14864_v39 = vld [vmem:[%s21177_s4 + $0x20c] ss:$52 sps:$4 sm:$0xff]  }
  0x56   :  { %356 = vperm.xlu1 %14670, %v278_v41   ;;  %1661 = vmatprep.subr.bf16.mxu1 %v14790_v40  ;;  %v16897_v40 = vld [vmem:[%s21175_s2 + $0x28] sm:$0xff]  }
  0x57   :  { %1323 = vmatpush1.bf16.msra.mxu0 %v14754_v16  ;;  %v14827_v16 = vld [vmem:[%s21173_s5 + $0xf8] ss:$52 sps:$4 sm:$0xff]   ;;  %v14862_v41 = vld [vmem:[%s21177_s4 + $0x208] ss:$52 sps:$4 sm:$0xff]  }
  0x58   :  { %1324 = vmatprep.subr.bf16.mxu0 %v14763_v18  ;;  %v14831_v18 = vld [vmem:[%s21173_s5 + $0x160] ss:$52 sps:$4 sm:$0xff]  }
  0x59   :  { %1662 = vmatpush1.bf16.msra.mxu1 %v14788_v44  ;;  %v14879_v44 = vld [vmem:[%s21177_s4 + $0x74] ss:$52 sps:$4 sm:$0xff]  }
  0x5a   :  { %1262 = vmatmul.mubr.bf16.gmra.mrb[28].mxu0 %v16610_v23  ;;  %1663 = vmatprep.subr.bf16.mxu1 %v14796_v46  ;;  %v14865_v46 = vld [vmem:[%s21177_s4 + $0x270] ss:$52 sps:$4 sm:$0xff]  }
  0x5b   :  { %1325 = vmatpush1.bf16.msra.mxu0 %v14761_v24  ;;  %1344 = vmatprep.mubr.bf16.mxu0 %v21184_v1  ;;  %v14841_v24 = vld [vmem:[%s21173_s5 + $0x298] ss:$52 sps:$4 sm:$0xff]  }
  0x5c   :  { %1326 = vmatprep.subr.bf16.mxu0 %v14769_v25  ;;  %1488 = vmatmul.mubr.bf16.gmra.mrb[28].mxu1 %v16610_v23  ;;  %v14849_v25 = vld [vmem:[%s21173_s5 + $0x304] ss:$52 sps:$4 sm:$0xff]  }
  0x5d   :  { %1497 = vmatprep.mubr.bf16.mxu1 %v21184_v1  ;;  %1664 = vmatpush1.bf16.msra.mxu1 %v14794_v49 }
  0x5e   :  { %1665 = vmatprep.subr.bf16.mxu1 %v14805_v50  ;;  %v14868_v50 = vld [vmem:[%s21177_s4 + $0x2d8] ss:$52 sps:$4 sm:$0xff]  }
  0x5f   :  { %1327 = vmatpush1.bf16.msra.mxu0 %v14767_v28  ;;  %v16848_v28 = vld [vmem:[%s21175_s2 + $0x20] sm:$0xff]  }
  0x60   :  { %1538 = vmatprep.subr.bf16.mxu0 %v14781_v33  ;;  %v14853_v33 = vld [vmem:[%s21177_s4 + $0xd0] ss:$52 sps:$4 sm:$0xff]  }
  0x61   :  { %1666 = vmatpush1.bf16.msra.mxu1 %v14803_v54 }
  0x62   :  { %1345 = vmatmul.mubr.bf16.vlgmr.msra.gmra.mrb[32].mxu0 %v16488_v52  ;;  %13548 = vmatprep.subr.bf16.mxu1 %v14812_v57 }
  0x63   :  { %1354 = vmatprep.mubr.bf16.mxu0 %v21184_v1  ;;  %1539 = vmatpush1.bf16.msra.mxu0 %v14779_v36  ;;  %v14861_v36 = vld [vmem:[%s21177_s4 + $0x1a4] ss:$52 sps:$4 sm:$0xff]  }
  0x64   :  { %1540 = vmatprep.subr.bf16.mxu0 %v14787_v37  ;;  %1498 = vmatmul.mubr.bf16.gmra.mrb[32].mxu1 %v16412_v31  ;;  %v14859_v37 = vld [vmem:[%s21177_s4 + $0x1a0] ss:$52 sps:$4 sm:$0xff]  }
  0x65   :  { %1507 = vmatprep.mubr.bf16.mxu1 %v21184_v1 }
  0x67   :  { %1541 = vmatpush1.bf16.msra.mxu0 %v14785_v42  ;;  %v14867_v42 = vld [vmem:[%s21177_s4 + $0x274] ss:$52 sps:$4 sm:$0xff]  }
  0x68   :  { %1542 = vmatprep.subr.bf16.mxu0 %v14793_v43  ;;  %v14871_v43 = vld [vmem:[%s21177_s4 + $0x8] ss:$52 sps:$4 sm:$0xff]  }
  0x6a   :  { %1355 = vmatmul.mubr.bf16.gmra.mrb[36].mxu0 %v16533_v0 }
  0x6b   :  { %1364 = vmatprep.mubr.bf16.mxu0 %v21184_v1  ;;  %1543 = vmatpush1.bf16.msra.mxu0 %v14791_v47  ;;  %v14877_v47 = vld [vmem:[%s21177_s4 + $0x70] ss:$52 sps:$4 sm:$0xff]  }
  0x6c   :  { %1544 = vmatprep.subr.bf16.mxu0 %v14799_v48  ;;  %1508 = vmatmul.mubr.bf16.gmra.mrb[36].mxu1 %v16437_v38 }
  0x6d   :  { %1517 = vmatprep.mubr.bf16.mxu1 %v21184_v1 }
  0x6f   :  { %1545 = vmatpush1.bf16.msra.mxu0 %v14797_v51  ;;  %v14876_v51 = vld [vmem:[%s21177_s4 + $0x14] ss:$52 sps:$4 sm:$0xff]  }
  0x70   :  { %1546 = vmatprep.subr.bf16.mxu0 %v14802_v53  ;;  %v14891_v53 = vld [vmem:[%s21177_s4 + $0x144] ss:$52 sps:$4 sm:$0xff]  }
  0x72   :  { %1365 = vmatmul.mubr.bf16.gmra.mrb[40].mxu0 %v16572_v12 }
  0x73   :  { %1374 = vmatprep.mubr.bf16.mxu0 %v21184_v1  ;;  %1547 = vmatpush1.bf16.msra.mxu0 %v14800_v55 }
  0x74   :  { %1548 = vmatprep.subr.bf16.mxu0 %v14808_v58  ;;  %1518 = vmatmul.mubr.bf16.gmra.mrb[40].mxu1 %v16462_v45  ;;  %v14894_v58 = vld [vmem:[%s21177_s4 + $0x1ac] ss:$52 sps:$4 sm:$0xff]  }
  0x75   :  { %1527 = vmatprep.mubr.bf16.mxu1 %v21184_v1 }
  0x77   :  { %1549 = vmatpush1.bf16.msra.mxu0 %v14806_v59  ;;  %v14892_v59 = vld [vmem:[%s21177_s4 + $0x1a8] ss:$52 sps:$4 sm:$0xff]  }
  0x78   :  { %1550 = vmatprep.subr.bf16.mxu0 %v14811_v60  ;;  %v14900_v60 = vld [vmem:[%s21177_s4 + $0x214] ss:$52 sps:$4 sm:$0xff]  }
  0x7a   :  { %1375 = vmatmul.mubr.bf16.gmra.mrb[44].mxu0 %v16610_v23 }
  0x7b   :  { %1384 = vmatprep.mubr.bf16.mxu0 %v21184_v1  ;;  %1551 = vmatpush1.bf16.msra.mxu0 %v14809_v61 }
  0x7c   :  { %1552 = vmatprep.subr.bf16.mxu0 %v14815_v62  ;;  %1528 = vmatmul.mubr.bf16.gmra.mrb[44].mxu1 %v16503_v56  ;;  %v14898_v62 = vld [vmem:[%s21177_s4 + $0x210] ss:$52 sps:$4 sm:$0xff]  }
  0x7d   :  { %1683 = vmatprep.mubr.bf16.mxu1 %v21184_v1 }
  0x7f   :  { %1553 = vmatpush1.bf16.msra.mxu0 %v14813_v63  ;;  %v14903_v63 = vld [vmem:[%s21177_s4 + $0x27c] ss:$52 sps:$4 sm:$0xff]  }
  0x80   :  { %1764 = vmatprep.subr.bf16.mxu0 %v14821_v2 }
  0x82   :  { %1385 = vmatmul.mubr.bf16.gmra.mrb[48].mxu0 %v16412_v31 }
  0x83   :  { %1394 = vmatprep.mubr.bf16.mxu0 %v21184_v1 }
  0x84   :  { %1684 = vmatmul.mubr.bf16.vlgmr.msra.gmra.mrb[48].mxu1 %v16488_v52 }
  0x85   :  { %13549 = vmatpush3.bf16.msra.mxu1 %v14812_v57  ;;  %1693 = vmatprep.mubr.bf16.mxu1 %v21184_v1  ;;  %v14889_v57 = vld [vmem:[%s21177_s4 + $0x140] ss:$52 sps:$4 sm:$0xff]  }
  0x86   :  { %13550 = vmatprep.subr.bf16.mxu1 %v14816_v3 }
  0x89   :  { %13551 = vmatpush3.bf16.msra.mxu1 %v14816_v3 }
  0x8a   :  { %1395 = vmatmul.mubr.bf16.gmra.mrb[52].mxu0 %v16437_v38  ;;  %13552 = vmatprep.subr.bf16.mxu1 %v14817_v4 }
  0x8b   :  { %1404 = vmatprep.mubr.bf16.mxu0 %v21184_v1 }
  0x8c   :  { %1694 = vmatmul.mubr.bf16.gmra.mrb[52].mxu1 %v16533_v0 }
  0x8d   :  { %1703 = vmatprep.mubr.bf16.mxu1 %v21184_v1  ;;  %13553 = vmatpush3.bf16.msra.mxu1 %v14817_v4 }
  0x8e   :  { %13554 = vmatprep.subr.bf16.mxu1 %v14818_v5 }
  0x90   :  { %v282_v48 = vpop.permute.xlu0 %281 }
  0x91   :  { %13555 = vmatpush3.bf16.msra.mxu1 %v14818_v5 }
  0x92   :  { %1405 = vmatmul.mubr.bf16.gmra.mrb[56].mxu0 %v16462_v45  ;;  %13556 = vmatprep.subr.bf16.mxu1 %v14822_v6  ;;  %v292_v49 = vpop.permute.xlu1 %291 }
  0x93   :  { %1414 = vmatprep.mubr.bf16.mxu0 %v21184_v1 }
  0x94   :  { %1704 = vmatmul.mubr.bf16.gmra.mrb[56].mxu1 %v16572_v12  ;;  %v287_v54 = vpop.permute.xlu0 %286 }
  0x95   :  { %1713 = vmatprep.mubr.bf16.mxu1 %v21184_v1  ;;  %13557 = vmatpush3.bf16.msra.mxu1 %v14822_v6 }
  0x96   :  { %13558 = vmatprep.subr.bf16.mxu1 %v14826_v7  ;;  %v297_v55 = vpop.permute.xlu1 %296 }
  0x99   :  { %13559 = vmatpush3.bf16.msra.mxu1 %v14826_v7 }
  0x9a   :  { %1415 = vmatmul.mubr.bf16.gmra.mrb[60].mxu0 %v16503_v56  ;;  %13560 = vmatprep.subr.bf16.mxu1 %v14830_v8 }
  0x9b   :  { %1570 = vmatprep.mubr.bf16.mxu0 %v21184_v1 }
  0x9c   :  { %1714 = vmatmul.mubr.bf16.gmra.mrb[60].mxu1 %v16610_v23 }
  0x9d   :  { %1723 = vmatprep.mubr.bf16.mxu1 %v21184_v1  ;;  %13561 = vmatpush3.bf16.msra.mxu1 %v14830_v8 }
  0x9e   :  { %13562 = vmatprep.subr.bf16.mxu1 %v14837_v11 }
  0xa1   :  { %13563 = vmatpush3.bf16.msra.mxu1 %v14837_v11 }
  0xa2   :  { %1571 = vmatmul.mubr.bf16.vlgmr.msra.gmra.mrb[64].mxu0 %v16488_v52  ;;  %2502 = vmatprep.subr.bf16.mxu1 %v14846_v15  ;;  %v14874_v15 = vld [vmem:[%s21177_s4 + $0x10] ss:$52 sps:$4 sm:$0xff]  }
  0xa3   :  { %1580 = vmatprep.mubr.bf16.mxu0 %v21184_v1  ;;  %1765 = vmatpush1.bf16.msra.mxu0 %v14819_v9 }
  0xa4   :  { %1766 = vmatprep.subr.bf16.mxu0 %v14825_v10  ;;  %1724 = vmatmul.mubr.bf16.gmra.mrb[64].mxu1 %v16412_v31  ;;  %v14838_v31 = vld [vmem:[%s21173_s5 + $0x230] ss:$52 sps:$4 sm:$0xff]  }
  0xa5   :  { %1733 = vmatprep.mubr.bf16.mxu1 %v21184_v1  ;;  %v14909_v10 = vld [vmem:[%s21177_s4 + $0x2e4] ss:$52 sps:$4 sm:$0xff]  }
  0xa7   :  { %1767 = vmatpush1.bf16.msra.mxu0 %v14823_v13  ;;  %v307_v61 = vpop.permute.xlu1 %306 }
  0xa8   :  { %1768 = vmatprep.subr.bf16.mxu0 %v14829_v14 }
  0xaa   :  { %1581 = vmatmul.mubr.bf16.gmra.mrb[68].mxu0 %v16533_v0 }
  0xab   :  { %1590 = vmatprep.mubr.bf16.mxu0 %v21184_v1  ;;  %1769 = vmatpush1.bf16.msra.mxu0 %v14827_v16 }
  0xac   :  { %1770 = vmatprep.subr.bf16.mxu0 %v14833_v17  ;;  %1734 = vmatmul.mubr.bf16.gmra.mrb[68].mxu1 %v16437_v38  ;;  %v14882_v17 = vld [vmem:[%s21177_s4 + $0x7c] ss:$52 sps:$4 sm:$0xff]  }
  0xad   :  { %1743 = vmatprep.mubr.bf16.mxu1 %v21184_v1 }
  0xaf   :  { %1771 = vmatpush1.bf16.msra.mxu0 %v14831_v18  ;;  %v14907_v18 = vld [vmem:[%s21177_s4 + $0x2e0] ss:$52 sps:$4 sm:$0xff]  }
  0xb0   :  { %1772 = vmatprep.subr.bf16.mxu0 %v14836_v19 }
  0xb2   :  { %1591 = vmatmul.mubr.bf16.gmra.mrb[72].mxu0 %v16572_v12 }
  0xb3   :  { %1600 = vmatprep.mubr.bf16.mxu0 %v21184_v1  ;;  %1773 = vmatpush1.bf16.msra.mxu0 %v14834_v20 }
  0xb4   :  { %1774 = vmatprep.subr.bf16.mxu0 %v14840_v21  ;;  %1744 = vmatmul.mubr.bf16.gmra.mrb[72].mxu1 %v16462_v45 }
  0xb5   :  { %1753 = vmatprep.mubr.bf16.mxu1 %v21184_v1  ;;  %v317_v5 = vpop.permute.xlu1 %316 }
  0xb7   :  { %1775 = vmatpush1.bf16.msra.mxu0 %v14838_v31 }
  0xb8   :  { %1776 = vmatprep.subr.bf16.mxu0 %v14843_v22  ;;  %v14880_v22 = vld [vmem:[%s21177_s4 + $0x78] ss:$52 sps:$4 sm:$0xff]  }
  0xba   :  { %1601 = vmatmul.mubr.bf16.gmra.mrb[76].mxu0 %v16610_v23 }
  0xbb   :  { %1610 = vmatprep.mubr.bf16.mxu0 %v21184_v1  ;;  %1777 = vmatpush1.bf16.msra.mxu0 %v14841_v24 }
  0xbc   :  { %1778 = vmatprep.subr.bf16.mxu0 %v14849_v25  ;;  %1754 = vmatmul.mubr.bf16.gmra.mrb[76].mxu1 %v16503_v56  ;;  %v14888_v25 = vld [vmem:[%s21177_s4 + $0xe4] ss:$52 sps:$4 sm:$0xff]  }
  0xbd   :  { %13564 = vmatprep.mubr.bf16.mxu1 %v16488_v52  ;;  %v327_v20 = vpop.permute.xlu1 %326 }
  0xbf   :  { %1779 = vmatpush1.bf16.msra.mxu0 %v14847_v26 }
  0xc0   :  { %2615 = vmatprep.subr.bf16.mxu0 %v14873_v27 }
  0xc2   :  { %1611 = vmatmul.mubr.bf16.gmra.mrb[80].mxu0 %v16848_v28 }
  0xc3   :  { %1620 = vmatprep.mubr.bf16.mxu0 %v21184_v1 }
  0xc4   :  { %13565 = vmatmul.mubr.bf16.vlgmr.msra.gmra.mrb[80].mxu1 %v16533_v0 }
  0xc5   :  { %2503 = vmatpush1.bf16.msra.mxu1 %v14844_v29  ;;  %13568 = vmatprep.mubr.bf16.mxu1 %v16572_v12 }
  0xc6   :  { %2504 = vmatprep.subr.bf16.mxu1 %v14852_v30 }
  0xc9   :  { %2505 = vmatpush1.bf16.msra.mxu1 %v14850_v32 }
  0xca   :  { %1621 = vmatmul.mubr.bf16.gmra.mrb[84].mxu0 %v16437_v38  ;;  %v14855_v38 = vld [vmem:[%s21177_s4 + $0xd4] ss:$52 sps:$4 sm:$0xff]  }
  0xcb   :  { %1630 = vmatprep.mubr.bf16.mxu0 %v21184_v1  ;;  %2506 = vmatprep.subr.bf16.mxu1 %v14855_v38 }
  0xcc   :  { %13569 = vmatmul.mubr.bf16.gmra.mrb[84].mxu1 %v16610_v23 }
  0xcd   :  { %2507 = vmatpush1.bf16.msra.mxu1 %v14853_v33  ;;  %13572 = vmatprep.mubr.bf16.mxu1 %v16848_v28 }
  0xce   :  { %2508 = vmatprep.subr.bf16.mxu1 %v14858_v34  ;;  %v14886_v34 = vld [vmem:[%s21177_s4 + $0xe0] ss:$52 sps:$4 sm:$0xff]  }
  0xd1   :  { %2509 = vmatpush1.bf16.msra.mxu1 %v14856_v35  ;;  %v337_v35 = vpop.permute.xlu1 %336 }
  0xd2   :  { %1631 = vmatmul.mubr.bf16.gmra.mrb[88].mxu0 %v16462_v45  ;;  %2510 = vmatprep.subr.bf16.mxu1 %v14861_v36 }
  0xd3   :  { %1640 = vmatprep.mubr.bf16.mxu0 %v21184_v1 }
  0xd4   :  { %13573 = vmatmul.mubr.bf16.gmra.mrb[88].mxu1 %v16897_v40 }
  0xd5   :  { %2511 = vmatpush1.bf16.msra.mxu1 %v14859_v37  ;;  %13576 = vmatprep.mubr.bf16.mxu1 %v16462_v45  ;;  %v14870_v45 = vld [vmem:[%s21177_s4 + $0x2dc] ss:$52 sps:$4 sm:$0xff]   ;;  %v14897_v37 = vld [vmem:[%s21177_s4 + $0x14c] ss:$52 sps:$4 sm:$0xff]  }
  0xd6   :  { %2512 = vmatprep.subr.bf16.mxu1 %v14864_v39 }
  0xd9   :  { %2513 = vmatpush1.bf16.msra.mxu1 %v14862_v41 }
  0xda   :  { %1641 = vmatmul.mubr.bf16.gmra.mrb[92].mxu0 %v16503_v56  ;;  %2514 = vmatprep.subr.bf16.mxu1 %v14867_v42 }
  0xdb   :  { %1796 = vmatprep.mubr.bf16.mxu0 %v21184_v1 }
  0xdc   :  { %13577 = vmatmul.mubr.bf16.gmra.mrb[92].mxu1 %v16503_v56  ;;  %v14883_v56 = vld [vmem:[%s21177_s4 + $0xd8] ss:$52 sps:$4 sm:$0xff]  }
  0xdd   :  { %2515 = vmatpush1.bf16.msra.mxu1 %v14865_v46  ;;  %2534 = vmatprep.mubr.bf16.mxu1 %v21184_v1 }
  0xde   :  { %2516 = vmatprep.subr.bf16.mxu1 %v14870_v45 }
  0xe1   :  { %2517 = vmatpush1.bf16.msra.mxu1 %v14868_v50 }
  0xe2   :  { %1797 = vmatmul.mubr.bf16.vlgmr.msra.gmra.mrb[96].mxu0 %v16488_v52  ;;  %v14885_v52 = vld [vmem:[%s21177_s4 + $0xdc] ss:$52 sps:$4 sm:$0xff]   ;;  %2728 = vmatprep.subr.bf16.mxu1 %v14876_v51 }
  0xe3   :  { %1806 = vmatprep.mubr.bf16.mxu0 %v21184_v1  ;;  %2616 = vmatpush1.bf16.msra.mxu0 %v14871_v43  ;;  %v14906_v43 = vld [vmem:[%s21177_s4 + $0x1b4] ss:$52 sps:$4 sm:$0xff]   ;;  %v14904_v51 = vld [vmem:[%s21177_s4 + $0x1b0] ss:$52 sps:$4 sm:$0xff]  }
  0xe4   :  { %2617 = vmatprep.subr.bf16.mxu0 %v14879_v44 }
  0xe7   :  { %2618 = vmatpush1.bf16.msra.mxu0 %v14877_v47 }
  0xe8   :  { %2619 = vmatprep.subr.bf16.mxu0 %v14885_v52 }
  0xea   :  { %1807 = vmatmul.mubr.bf16.gmra.mrb[100].mxu0 %v16533_v0  ;;  %v302_v0 = vpop.permute.xlu0 %301 }
  0xeb   :  { %1816 = vmatprep.mubr.bf16.mxu0 %v21184_v1  ;;  %2620 = vmatpush1.bf16.msra.mxu0 %v14883_v56 }
  0xec   :  { %2621 = vmatprep.subr.bf16.mxu0 %v14891_v53  ;;  %v14912_v53 = vld [vmem:[%s21177_s4 + $0x21c] ss:$52 sps:$4 sm:$0xff]  }
  0xee   :  { %v312_v3 = vpop.permute.xlu0 %311 }
  0xef   :  { %2622 = vmatpush1.bf16.msra.mxu0 %v14889_v57 }
  0xf0   :  { %2623 = vmatprep.subr.bf16.mxu0 %v14894_v58 }
  0xf2   :  { %1817 = vmatmul.mubr.bf16.gmra.mrb[104].mxu0 %v16572_v12  ;;  %v14901_v12 = vld [vmem:[%s21177_s4 + $0x278] ss:$52 sps:$4 sm:$0xff]   ;;  %v322_v19 = vpop.permute.xlu0 %321 }
  0xf3   :  { %1826 = vmatprep.mubr.bf16.mxu0 %v21184_v1  ;;  %2624 = vmatpush1.bf16.msra.mxu0 %v14892_v59 }
  0xf4   :  { %2625 = vmatprep.subr.bf16.mxu0 %v14900_v60 }
  0xf5   :  { %v13534_v2 = vpop.f32.mrb[0].mxu0 }
  0xf6   :  { %v200_v4 = vpop.f32.mrb[1].mxu0  ;;  %v361_v7 = vmul.f32 %v13534_v2, %v292_v49  ;;  %v332_v38 = vpop.permute.xlu0 %331 }
  0xf7   :  { %v13535_v6 = vpop.f32.mrb[2].mxu0  ;;  %2626 = vmatpush1.bf16.msra.mxu0 %v14898_v62  ;;  %v359_v11 = vmul.f32 %v282_v48, %v200_v4  ;;  %v347_v48 = vpop.permute.xlu1 %346  ;;  %v16249_v4 = vld [vmem:[%s21175_s2 + $0x30] sm:$0xff]  }
  0xf8   :  { %v362_v8 = vmul.f32 %v13535_v6, %v297_v55  ;;  %v203_v9 = vpop.f32.mrb[3].mxu0  ;;  %2627 = vmatprep.subr.bf16.mxu0 %v14903_v63 }
  0xf9   :  { %v360_v13 = vmul.f32 %v287_v54, %v203_v9  ;;  %v14916_v9 = vld [vmem:[%s21177_s4 + $0x2e8] ss:$52 sps:$4 sm:$0xff]  }
  0xfa   :  { %v16969_v14 = vpack.c.bf16 %v362_v8, %v361_v7  ;;  %1827 = vmatmul.mubr.bf16.gmra.mrb[108].mxu0 %v16610_v23  ;;  %v14921_v23 = vld [vmem:[%s21177_s4 + $0x1c] ss:$52 sps:$4 sm:$0xff]   ;;  %v342_v44 = vpop.permute.xlu0 %341 }
  0xfb   :  { %v16975_v16 = vpack.c.bf16 %v360_v13, %v359_v11  ;;  %1836 = vmatprep.mubr.bf16.mxu0 %v21184_v1  ;;  %2628 = vmatpush1.bf16.msra.mxu0 %v14901_v12  ;;  %v357_v58 = vpop.permute.xlu1 %356  ;;  %v14918_v12 = vld [vmem:[%s21177_s4 + $0x2ec] ss:$52 sps:$4 sm:$0xff]   ;;  %v14924_v11 = vld [vmem:[%s21177_s4 + $0x24] ss:$52 sps:$4 sm:$0xff]  }
  0xfc   :  { %2629 = vmatprep.subr.bf16.mxu0 %v14909_v10 }
  0xfd   :  { %v13538_v21 = vpop.f32.mrb[4].mxu0  ;;  %2535 = vmatmul.mubr.bf16.vlgmr.msra.gmra.mrb[96].mxu1 %v16975_v16 }
  0xfe   :  { %v216_v31 = vpop.f32.mrb[5].mxu0  ;;  %2729 = vmatpush1.bf16.msra.mxu1 %v14874_v15  ;;  %2544 = vmatprep.mubr.bf16.mxu1 %v21184_v1  ;;  %v365_v26 = vmul.f32 %v13538_v21, %v312_v3  ;;  %v352_v55 = vpop.permute.xlu0 %351  ;;  %v16250_v15 = vld [vmem:[%s21175_s2 + $0x38] sm:$0xff]  }
  0xff   :  { %v13539_v24 = vpop.f32.mrb[6].mxu0  ;;  %2730 = vmatprep.subr.bf16.mxu1 %v14882_v17  ;;  %2630 = vmatpush1.bf16.msra.mxu0 %v14907_v18  ;;  %v363_v30 = vmul.f32 %v302_v0, %v216_v31  ;;  %v14915_v0 = vld [vmem:[%s21177_s4 + $0x284] ss:$52 sps:$4 sm:$0xff]   ;;  %v14925_v31 = vld [vmem:[%s21177_s4 + $0x80] ss:$52 sps:$4 sm:$0xff]  }
 0x100   :  { %v366_v27 = vmul.f32 %v13539_v24, %v317_v5  ;;  %v219_v29 = vpop.f32.mrb[7].mxu0  ;;  %2841 = vmatprep.subr.bf16.mxu0 %v14921_v23  ;;  %v14913_v5 = vld [vmem:[%s21177_s4 + $0x280] ss:$52 sps:$4 sm:$0xff]   ;;  %v14919_v23 = vld [vmem:[%s21177_s4 + $0x18] ss:$52 sps:$4 sm:$0xff]  }
 0x101   :  { %v364_v32 = vmul.f32 %v307_v61, %v219_v29  ;;  %v14927_v21 = vld [vmem:[%s21177_s4 + $0x84] ss:$52 sps:$4 sm:$0xff]  }
 0x102   :  { %v16995_v33 = vpack.c.bf16 %v366_v27, %v365_v26  ;;  %1837 = vmatmul.mubr.bf16.gmra.mrb[112].mxu0 %v16848_v28  ;;  %2731 = vmatpush1.bf16.msra.mxu1 %v14880_v22  ;;  %v14895_v28 = vld [vmem:[%s21177_s4 + $0x148] ss:$52 sps:$4 sm:$0xff]   ;;  %v14933_v22 = vld [vmem:[%s21177_s4 + $0xec] ss:$52 sps:$4 sm:$0xff]  }
 0x103   :  { %v17001_v36 = vpack.c.bf16 %v364_v32, %v363_v30  ;;  %1846 = vmatprep.mubr.bf16.mxu0 %v21184_v1  ;;  %2732 = vmatprep.subr.bf16.mxu1 %v14888_v25  ;;  %v14931_v25 = vld [vmem:[%s21177_s4 + $0xe8] ss:$52 sps:$4 sm:$0xff]   ;;  %v14937_v32 = vld [vmem:[%s21177_s4 + $0x150] ss:$52 sps:$4 sm:$0xff]  }
 0x104   :  { %v14939_v30 = vld [vmem:[%s21177_s4 + $0x154] ss:$52 sps:$4 sm:$0xff]  }
 0x105   :  { %v13542_v39 = vpop.f32.mrb[8].mxu0  ;;  %2545 = vmatmul.mubr.bf16.gmra.mrb[100].mxu1 %v16969_v14 }
 0x106   :  { %v232_v41 = vpop.f32.mrb[9].mxu0  ;;  %2554 = vmatprep.mubr.bf16.mxu1 %v21184_v1  ;;  %2733 = vmatpush1.bf16.msra.mxu1 %v14886_v34  ;;  %v369_v46 = vmul.f32 %v13542_v39, %v332_v38  ;;  %v14942_v38 = vld [vmem:[%s21177_s4 + $0x1bc] ss:$52 sps:$4 sm:$0xff]  }
 0x107   :  { %v13543_v42 = vpop.f32.mrb[10].mxu0  ;;  %2734 = vmatprep.subr.bf16.mxu1 %v14897_v37  ;;  %v367_v52 = vmul.f32 %v322_v19, %v232_v41 }
 0x108   :  { %v370_v45 = vmul.f32 %v13543_v42, %v337_v35  ;;  %v235_v47 = vpop.f32.mrb[11].mxu0  ;;  %v14940_v35 = vld [vmem:[%s21177_s4 + $0x1b8] ss:$52 sps:$4 sm:$0xff]   ;;  %v14946_v42 = vld [vmem:[%s21177_s4 + $0x220] ss:$52 sps:$4 sm:$0xff]  }
 0x109   :  { %v368_v49 = vmul.f32 %v327_v20, %v235_v47  ;;  %v14930_v47 = vld [vmem:[%s21177_s4 + $0x8c] ss:$52 sps:$4 sm:$0xff]  }
 0x10a   :  { %v17015_v50 = vpack.c.bf16 %v370_v45, %v369_v46  ;;  %1847 = vmatmul.mubr.bf16.gmra.mrb[116].mxu0 %v16897_v40  ;;  %2735 = vmatpush1.bf16.msra.mxu1 %v14895_v28  ;;  %v14910_v40 = vld [vmem:[%s21177_s4 + $0x218] ss:$52 sps:$4 sm:$0xff]   ;;  %v14922_v46 = vld [vmem:[%s21177_s4 + $0x20] ss:$52 sps:$4 sm:$0xff]  }
 0x10b   :  { %v17021_v56 = vpack.c.bf16 %v368_v49, %v367_v52  ;;  %1856 = vmatprep.mubr.bf16.mxu0 %v21184_v1  ;;  %2736 = vmatprep.subr.bf16.mxu1 %v14906_v43  ;;  %v14948_v28 = vld [vmem:[%s21177_s4 + $0x224] ss:$52 sps:$4 sm:$0xff]   ;;  %v14951_v43 = vld [vmem:[%s21177_s4 + $0x28c] ss:$52 sps:$4 sm:$0xff]   ;;  %v14957_v45 = vld [vmem:[%s21177_s4 + $0x2f4] ss:$52 sps:$4 sm:$0xff]  }
 0x10c   :  { %v14969_v52 = vld [vmem:[%s21177_s4 + $0x2c] ss:$52 sps:$4 sm:$0xff]   ;;  %v14928_v49 = vld [vmem:[%s21177_s4 + $0x88] ss:$52 sps:$4 sm:$0xff]  }
 0x10d   :  { %v13546_v54 = vpop.f32.mrb[12].mxu0  ;;  %2555 = vmatmul.mubr.bf16.gmra.mrb[104].mxu1 %v17001_v36 }
 0x10e   :  { %v248_v57 = vpop.f32.mrb[13].mxu0  ;;  %2564 = vmatprep.mubr.bf16.mxu1 %v21184_v1  ;;  %2737 = vmatpush1.bf16.msra.mxu1 %v14904_v51  ;;  %v373_v60 = vmul.f32 %v13546_v54, %v352_v55  ;;  %v14936_v51 = vld [vmem:[%s21177_s4 + $0xf4] ss:$52 sps:$4 sm:$0xff]   ;;  %v14945_v54 = vld [vmem:[%s21177_s4 + $0x15c] ss:$52 sps:$4 sm:$0xff]  }
 0x10f   :  { %v13547_v59 = vpop.f32.mrb[14].mxu0  ;;  %2738 = vmatprep.subr.bf16.mxu1 %v14912_v53  ;;  %v371_v63 = vmul.f32 %v342_v44, %v248_v57  ;;  %v14949_v44 = vld [vmem:[%s21177_s4 + $0x288] ss:$52 sps:$4 sm:$0xff]   ;;  %v14934_v53 = vld [vmem:[%s21177_s4 + $0xf0] ss:$52 sps:$4 sm:$0xff]  }
 0x110   :  { %v374_v61 = vmul.f32 %v13547_v59, %v357_v58  ;;  %v251_v62 = vpop.f32.mrb[15].mxu0  ;;  %v14943_v55 = vld [vmem:[%s21177_s4 + $0x158] ss:$52 sps:$4 sm:$0xff]   ;;  %v14958_v59 = vld [vmem:[%s21177_s4 + $0x228] ss:$52 sps:$4 sm:$0xff]  }
 0x111   :  { %v372_v2 = vmul.f32 %v347_v48, %v251_v62  ;;  %v14955_v48 = vld [vmem:[%s21177_s4 + $0x2f0] ss:$52 sps:$4 sm:$0xff]   ;;  %v14960_v58 = vld [vmem:[%s21177_s4 + $0x22c] ss:$52 sps:$4 sm:$0xff]  }
 0x112   :  { %v17035_v3 = vpack.c.bf16 %v374_v61, %v373_v60  ;;  %1857 = vmatmul.mubr.bf16.gmra.mrb[120].mxu0 %v16249_v4  ;;  %2739 = vmatpush1.bf16.msra.mxu1 %v14910_v40  ;;  %v14954_v57 = vld [vmem:[%s21177_s4 + $0x1c4] ss:$52 sps:$4 sm:$0xff]   ;;  %v14952_v40 = vld [vmem:[%s21177_s4 + $0x1c0] ss:$52 sps:$4 sm:$0xff]   ;;  %v14966_v61 = vld [vmem:[%s21177_s4 + $0x2fc] ss:$52 sps:$4 sm:$0xff]  }
 0x113   :  { %v17043_v6 = vpack.c.bf16 %v372_v2, %v371_v63  ;;  %1866 = vmatprep.mubr.bf16.mxu0 %v21184_v1  ;;  %2740 = vmatprep.subr.bf16.mxu1 %v14915_v0  ;;  %v14963_v0 = vld [vmem:[%s21177_s4 + $0x294] ss:$52 sps:$4 sm:$0xff]   ;;  %v14961_v60 = vld [vmem:[%s21177_s4 + $0x290] ss:$52 sps:$4 sm:$0xff]   ;;  %v14964_v62 = vld [vmem:[%s21177_s4 + $0x2f8] ss:$52 sps:$4 sm:$0xff]  }
 0x114   :  { %v14970_v63 = vld [vmem:[%s21177_s4 + $0x30] ss:$52 sps:$4 sm:$0xff]   ;;  %v14967_v2 = vld [vmem:[%s21177_s4 + $0x28] ss:$52 sps:$4 sm:$0xff]  }
 0x115   :  { %2565 = vmatmul.mubr.bf16.gmra.mrb[108].mxu1 %v16995_v33  ;;  %v17050_v7 = vpop.f32.mrb[16].mxu0  ;;  %v14973_v4 = vld [vmem:[%s21177_s4 + $0x94] ss:$52 sps:$4 sm:$0xff]  }
 0x116   :  { %2574 = vmatprep.mubr.bf16.mxu1 %v21184_v1  ;;  %v17053_v8 = vpop.f32.mrb[17].mxu0  ;;  %2741 = vmatpush1.bf16.msra.mxu1 %v14913_v5  ;;  %v14971_v5 = vld [vmem:[%s21177_s4 + $0x90] ss:$52 sps:$4 sm:$0xff]  }
 0x117   :  { %v17058_v10 = vpop.f32.mrb[18].mxu0  ;;  %2742 = vmatprep.subr.bf16.mxu1 %v14918_v12  ;;  %v14977_v12 = vld [vmem:[%s21177_s4 + $0xfc] ss:$52 sps:$4 sm:$0xff]  }
 0x118   :  { %v17063_v13 = vpop.f32.mrb[19].mxu0 }
 0x11a   :  { %1867 = vmatmul.mubr.bf16.gmra.mrb[124].mxu0 %v16250_v15  ;;  %2743 = vmatpush1.bf16.msra.mxu1 %v14916_v9  ;;  %v14975_v9 = vld [vmem:[%s21177_s4 + $0xf8] ss:$52 sps:$4 sm:$0xff]   ;;  %v14979_v15 = vld [vmem:[%s21177_s4 + $0x160] ss:$52 sps:$4 sm:$0xff]  }
 0x11b   :  { %2647 = vmatprep.mubr.bf16.mxu0 %v21184_v1  ;;  %2954 = vmatprep.subr.bf16.mxu1 %v14924_v11  ;;  %v14981_v11 = vld [vmem:[%s21177_s4 + $0x164] ss:$52 sps:$4 sm:$0xff]  }
 0x11d   :  { %2575 = vmatmul.mubr.bf16.gmra.mrb[0].mxu1 %v17021_v56  ;;  %v17070_v17 = vpop.f32.mrb[20].mxu0 }
 0x11e   :  { %2584 = vmatprep.mubr.bf16.mxu1 %v21184_v1  ;;  %v17073_v18 = vpop.f32.mrb[21].mxu0 }
 0x11f   :  { %v17075_v19 = vpop.f32.mrb[22].mxu0 }
 0x120   :  { %v17080_v20 = vpop.f32.mrb[23].mxu0 }
 0x122   :  { %2648 = vmatmul.mubr.bf16.vlgmr.msra.gmra.mrb[32].mxu0 %v16975_v16 }
 0x123   :  { %2657 = vmatprep.mubr.bf16.mxu0 %v21184_v1  ;;  %2842 = vmatpush1.bf16.msra.mxu0 %v14919_v23  ;;  %v14984_v23 = vld [vmem:[%s21177_s4 + $0x1cc] ss:$52 sps:$4 sm:$0xff]  }
 0x124   :  { %2843 = vmatprep.subr.bf16.mxu0 %v14927_v21  ;;  %v14982_v21 = vld [vmem:[%s21177_s4 + $0x1c8] ss:$52 sps:$4 sm:$0xff]  }
 0x125   :  { %2585 = vmatmul.mubr.bf16.gmra.mrb[4].mxu1 %v17015_v50  ;;  %v17094_v24 = vpop.f32.mrb[24].mxu0 }
 0x126   :  { %2594 = vmatprep.mubr.bf16.mxu1 %v21184_v1  ;;  %v17100_v26 = vpop.f32.mrb[25].mxu0 }
 0x127   :  { %v17102_v27 = vpop.f32.mrb[26].mxu0  ;;  %2844 = vmatpush1.bf16.msra.mxu0 %v14925_v31  ;;  %v14988_v31 = vld [vmem:[%s21177_s4 + $0x234] ss:$52 sps:$4 sm:$0xff]  }
 0x128   :  { %v17104_v29 = vpop.f32.mrb[27].mxu0  ;;  %2845 = vmatprep.subr.bf16.mxu0 %v14933_v22  ;;  %v14986_v22 = vld [vmem:[%s21177_s4 + $0x230] ss:$52 sps:$4 sm:$0xff]  }
 0x12a   :  { %2658 = vmatmul.mubr.bf16.gmra.mrb[36].mxu0 %v16969_v14 }
 0x12b   :  { %2667 = vmatprep.mubr.bf16.mxu0 %v21184_v1  ;;  %2846 = vmatpush1.bf16.msra.mxu0 %v14931_v25  ;;  %v14991_v25 = vld [vmem:[%s21177_s4 + $0x29c] ss:$52 sps:$4 sm:$0xff]  }
 0x12c   :  { %2847 = vmatprep.subr.bf16.mxu0 %v14939_v30  ;;  %v14989_v30 = vld [vmem:[%s21177_s4 + $0x298] ss:$52 sps:$4 sm:$0xff]  }
 0x12d   :  { %2595 = vmatmul.mubr.bf16.gmra.mrb[8].mxu1 %v17043_v6  ;;  %v17118_v34 = vpop.f32.mrb[28].mxu0 }
 0x12e   :  { %2604 = vmatprep.mubr.bf16.mxu1 %v21184_v1  ;;  %v17124_v37 = vpop.f32.mrb[29].mxu0 }
 0x12f   :  { %v17126_v39 = vpop.f32.mrb[30].mxu0  ;;  %2848 = vmatpush1.bf16.msra.mxu0 %v14937_v32  ;;  %v14995_v32 = vld [vmem:[%s21177_s4 + $0x304] ss:$52 sps:$4 sm:$0xff]  }
 0x130   :  { %v17128_v41 = vpop.f32.mrb[31].mxu0  ;;  %2849 = vmatprep.subr.bf16.mxu0 %v14942_v38  ;;  %v14974_v38 = vld [vmem:[%s21177_s4 + $0x98] ss:$52 sps:$4 sm:$0xff]  }
 0x132   :  { %2668 = vmatmul.mubr.bf16.gmra.mrb[40].mxu0 %v17001_v36 }
 0x133   :  { %2677 = vmatprep.mubr.bf16.mxu0 %v21184_v1  ;;  %2850 = vmatpush1.bf16.msra.mxu0 %v14940_v35  ;;  %v14993_v35 = vld [vmem:[%s21177_s4 + $0x300] ss:$52 sps:$4 sm:$0xff]  }
 0x134   :  { %2851 = vmatprep.subr.bf16.mxu0 %v14948_v28  ;;  %v14998_v28 = vld [vmem:[%s21178_s7 + $0x4] ss:$16 sps:$4 sm:$0xff]  }
 0x135   :  { %2605 = vmatmul.mubr.bf16.gmra.mrb[12].mxu1 %v17035_v3 }
 0x136   :  { %2760 = vmatprep.mubr.bf16.mxu1 %v21184_v1 }
 0x137   :  { %2852 = vmatpush1.bf16.msra.mxu0 %v14946_v42  ;;  %v14978_v42 = vld [vmem:[%s21177_s4 + $0x100] ss:$52 sps:$4 sm:$0xff]  }
 0x138   :  { %2853 = vmatprep.subr.bf16.mxu0 %v14951_v43  ;;  %v14985_v43 = vld [vmem:[%s21177_s4 + $0x168] ss:$52 sps:$4 sm:$0xff]  }
 0x13a   :  { %2678 = vmatmul.mubr.bf16.gmra.mrb[44].mxu0 %v16995_v33 }
 0x13b   :  { %2687 = vmatprep.mubr.bf16.mxu0 %v21184_v1  ;;  %2854 = vmatpush1.bf16.msra.mxu0 %v14949_v44  ;;  %v14992_v44 = vld [vmem:[%s21177_s4 + $0x1d0] ss:$52 sps:$4 sm:$0xff]  }
 0x13c   :  { %2855 = vmatprep.subr.bf16.mxu0 %v14957_v45  ;;  %v15006_v45 = vld [vmem:[%s21177_s4 + $0x2a0] ss:$52 sps:$4 sm:$0xff]  }
 0x13d   :  { %2761 = vmatmul.mubr.bf16.vlgmr.msra.gmra.mrb[16].mxu1 %v16975_v16 }
 0x13e   :  { %2955 = vmatpush1.bf16.msra.mxu1 %v14922_v46  ;;  %2770 = vmatprep.mubr.bf16.mxu1 %v21184_v1  ;;  %v14999_v46 = vld [vmem:[%s21177_s4 + $0x238] ss:$52 sps:$4 sm:$0xff]  }
 0x13f   :  { %2956 = vmatprep.subr.bf16.mxu1 %v14930_v47  ;;  %2856 = vmatpush1.bf16.msra.mxu0 %v14955_v48  ;;  %v15013_v47 = vld [vmem:[%s21177_s4 + $0x308] ss:$52 sps:$4 sm:$0xff]  }
 0x140   :  { %3067 = vmatprep.subr.bf16.mxu0 %v14969_v52  ;;  %v15022_v48 = vld [vmem:[%s21178_s7 + $0xc] ss:$16 sps:$4 sm:$0xff]   ;;  %v14996_v52 = vld [vmem:[%s21178_s7] ss:$16 sps:$4 sm:$0xff]  }
 0x142   :  { %2688 = vmatmul.mubr.bf16.gmra.mrb[48].mxu0 %v17021_v56  ;;  %2957 = vmatpush1.bf16.msra.mxu1 %v14928_v49  ;;  %v15002_v49 = vld [vmem:[%s21178_s7 + $0x24] ss:$16 sps:$4 sm:$0xff]  }
 0x143   :  { %2697 = vmatprep.mubr.bf16.mxu0 %v21184_v1  ;;  %2958 = vmatprep.subr.bf16.mxu1 %v14936_v51  ;;  %v15000_v51 = vld [vmem:[%s21178_s7 + $0x20] ss:$16 sps:$4 sm:$0xff]  }
 0x145   :  { %2771 = vmatmul.mubr.bf16.gmra.mrb[20].mxu1 %v16969_v14 }
 0x146   :  { %2780 = vmatprep.mubr.bf16.mxu1 %v21184_v1  ;;  %2959 = vmatpush1.bf16.msra.mxu1 %v14934_v53  ;;  %v15005_v53 = vld [vmem:[%s21178_s7 + $0x44] ss:$16 sps:$4 sm:$0xff]  }
 0x147   :  { %2960 = vmatprep.subr.bf16.mxu1 %v14945_v54  ;;  %v15003_v54 = vld [vmem:[%s21178_s7 + $0x40] ss:$16 sps:$4 sm:$0xff]  }
 0x14a   :  { %2698 = vmatmul.mubr.bf16.gmra.mrb[52].mxu0 %v17015_v50  ;;  %2961 = vmatpush1.bf16.msra.mxu1 %v14943_v55  ;;  %v15009_v55 = vld [vmem:[%s21178_s7 + $0x64] ss:$16 sps:$4 sm:$0xff]  }
 0x14b   :  { %2707 = vmatprep.mubr.bf16.mxu0 %v21184_v1  ;;  %2962 = vmatprep.subr.bf16.mxu1 %v14954_v57  ;;  %v15007_v57 = vld [vmem:[%s21178_s7 + $0x60] ss:$16 sps:$4 sm:$0xff]  }
 0x14d   :  { %2781 = vmatmul.mubr.bf16.gmra.mrb[24].mxu1 %v17001_v36 }
 0x14e   :  { %2790 = vmatprep.mubr.bf16.mxu1 %v21184_v1  ;;  %2963 = vmatpush1.bf16.msra.mxu1 %v14952_v40  ;;  %v15012_v40 = vld [vmem:[%s21178_s7 + $0x84] ss:$16 sps:$4 sm:$0xff]  }
 0x14f   :  { %2964 = vmatprep.subr.bf16.mxu1 %v14960_v58  ;;  %v15010_v58 = vld [vmem:[%s21178_s7 + $0x80] ss:$16 sps:$4 sm:$0xff]  }
 0x152   :  { %2708 = vmatmul.mubr.bf16.gmra.mrb[56].mxu0 %v17043_v6  ;;  %2965 = vmatpush1.bf16.msra.mxu1 %v14958_v59  ;;  %v15016_v59 = vld [vmem:[%s21178_s7 + $0xa4] ss:$16 sps:$4 sm:$0xff]  }
 0x153   :  { %2717 = vmatprep.mubr.bf16.mxu0 %v21184_v1  ;;  %2966 = vmatprep.subr.bf16.mxu1 %v14963_v0  ;;  %v15014_v0 = vld [vmem:[%s21178_s7 + $0xa0] ss:$16 sps:$4 sm:$0xff]  }
 0x155   :  { %2791 = vmatmul.mubr.bf16.gmra.mrb[28].mxu1 %v16995_v33 }
 0x156   :  { %2800 = vmatprep.mubr.bf16.mxu1 %v21184_v1  ;;  %2967 = vmatpush1.bf16.msra.mxu1 %v14961_v60  ;;  %v15019_v60 = vld [vmem:[%s21178_s7 + $0xc4] ss:$16 sps:$4 sm:$0xff]  }
 0x157   :  { %2968 = vmatprep.subr.bf16.mxu1 %v14966_v61  ;;  %v15017_v61 = vld [vmem:[%s21178_s7 + $0xc0] ss:$16 sps:$4 sm:$0xff]  }
 0x15a   :  { %2718 = vmatmul.mubr.bf16.gmra.mrb[60].mxu0 %v17035_v3  ;;  %2969 = vmatpush1.bf16.msra.mxu1 %v14964_v62  ;;  %v15025_v62 = vld [vmem:[%s21178_s7 + $0xe4] ss:$16 sps:$4 sm:$0xff]  }
 0x15b   :  { %2873 = vmatprep.mubr.bf16.mxu0 %v21184_v1  ;;  %13580 = vmatprep.subr.bf16.mxu1 %v14970_v63 }
 0x15d   :  { %2801 = vmatmul.mubr.bf16.gmra.mrb[32].mxu1 %v17021_v56 }
 0x15e   :  { %2810 = vmatprep.mubr.bf16.mxu1 %v21184_v1 }
 0x162   :  { %2874 = vmatmul.mubr.bf16.vlgmr.msra.gmra.mrb[64].mxu0 %v16975_v16 }
 0x163   :  { %2883 = vmatprep.mubr.bf16.mxu0 %v21184_v1  ;;  %3068 = vmatpush1.bf16.msra.mxu0 %v14967_v2  ;;  %v15028_v2 = vld [vmem:[%s21178_s7 + $0x2c] ss:$16 sps:$4 sm:$0xff]  }
 0x164   :  { %3069 = vmatprep.subr.bf16.mxu0 %v14973_v4  ;;  %v15031_v4 = vld [vmem:[%s21178_s7 + $0x104] ss:$16 sps:$4 sm:$0xff]  }
 0x165   :  { %2811 = vmatmul.mubr.bf16.gmra.mrb[36].mxu1 %v17015_v50 }
 0x166   :  { %2820 = vmatprep.mubr.bf16.mxu1 %v21184_v1 }
 0x167   :  { %3070 = vmatpush1.bf16.msra.mxu0 %v14971_v5  ;;  %v15026_v5 = vld [vmem:[%s21178_s7 + $0x28] ss:$16 sps:$4 sm:$0xff]  }
 0x168   :  { %3071 = vmatprep.subr.bf16.mxu0 %v14977_v12  ;;  %v15029_v12 = vld [vmem:[%s21178_s7 + $0x100] ss:$16 sps:$4 sm:$0xff]  }
 0x16a   :  { %2884 = vmatmul.mubr.bf16.gmra.mrb[68].mxu0 %v16969_v14 }
 0x16b   :  { %2893 = vmatprep.mubr.bf16.mxu0 %v21184_v1  ;;  %3072 = vmatpush1.bf16.msra.mxu0 %v14975_v9  ;;  %v15034_v9 = vld [vmem:[%s21178_s7 + $0x4c] ss:$16 sps:$4 sm:$0xff]  }
 0x16c   :  { %3073 = vmatprep.subr.bf16.mxu0 %v14981_v11  ;;  %v15032_v11 = vld [vmem:[%s21178_s7 + $0x48] ss:$16 sps:$4 sm:$0xff]  }
 0x16d   :  { %2821 = vmatmul.mubr.bf16.gmra.mrb[40].mxu1 %v17043_v6 }
 0x16e   :  { %2830 = vmatprep.mubr.bf16.mxu1 %v21184_v1 }
 0x16f   :  { %3074 = vmatpush1.bf16.msra.mxu0 %v14979_v15  ;;  %v15040_v15 = vld [vmem:[%s21178_s7 + $0x6c] ss:$16 sps:$4 sm:$0xff]  }
 0x170   :  { %3075 = vmatprep.subr.bf16.mxu0 %v14984_v23  ;;  %v3281_v23 = vlaneseq }
 0x172   :  { %2894 = vmatmul.mubr.bf16.gmra.mrb[72].mxu0 %v17001_v36 }
 0x173   :  { %2903 = vmatprep.mubr.bf16.mxu0 %v21184_v1  ;;  %3076 = vmatpush1.bf16.msra.mxu0 %v14982_v21  ;;  %v15043_v21 = vld [vmem:[%s21178_s7 + $0x144] ss:$16 sps:$4 sm:$0xff]  }
 0x174   :  { %3077 = vmatprep.subr.bf16.mxu0 %v14988_v31  ;;  %v15038_v31 = vld [vmem:[%s21178_s7 + $0x68] ss:$16 sps:$4 sm:$0xff]  }
 0x175   :  { %2831 = vmatmul.mubr.bf16.gmra.mrb[44].mxu1 %v17035_v3 }
 0x176   :  { %2986 = vmatprep.mubr.bf16.mxu1 %v21184_v1 }
 0x177   :  { %3078 = vmatpush1.bf16.msra.mxu0 %v14986_v22  ;;  %v15041_v22 = vld [vmem:[%s21178_s7 + $0x140] ss:$16 sps:$4 sm:$0xff]  }
 0x178   :  { %3079 = vmatprep.subr.bf16.mxu0 %v14991_v25  ;;  %v15046_v25 = vld [vmem:[%s21178_s7 + $0x8c] ss:$16 sps:$4 sm:$0xff]  }
 0x17a   :  { %2904 = vmatmul.mubr.bf16.gmra.mrb[76].mxu0 %v16995_v33 }
 0x17b   :  { %2913 = vmatprep.mubr.bf16.mxu0 %v21184_v1  ;;  %3080 = vmatpush1.bf16.msra.mxu0 %v14989_v30  ;;  %v17434_v30 = vshrl.u32 %v3281_v23, 7 }
 0x17c   :  { %3081 = vmatprep.subr.bf16.mxu0 %v14995_v32  ;;  %v15047_v32 = vld [vmem:[%s21178_s7 + $0x160] ss:$16 sps:$4 sm:$0xff]  }
 0x17d   :  { %2987 = vmatmul.mubr.bf16.vlgmr.msra.gmra.mrb[48].mxu1 %v16975_v16 }
 0x17e   :  { %13581 = vmatpush3.bf16.msra.mxu1 %v14970_v63  ;;  %2996 = vmatprep.mubr.bf16.mxu1 %v21184_v1  ;;  %v15020_v63 = vld [vmem:[%s21178_s7 + $0x8] ss:$16 sps:$4 sm:$0xff]  }
 0x17f   :  { %13582 = vmatprep.subr.bf16.mxu1 %v14974_v38  ;;  %3082 = vmatpush1.bf16.msra.mxu0 %v14993_v35  ;;  %v17452_v35 = vld [vmem:[%s21179_s6] sm:$0xff] }
 0x180   :  { %6362 = vmatprep.subr.bf16.mxu0 %v14998_v28  ;;  %v17455_v28 = vsub.s32 0, %v17434_v30 }
 0x182   :  { %2914 = vmatmul.mubr.bf16.gmra.mrb[80].mxu0 %v17021_v56  ;;  %13583 = vmatpush3.bf16.msra.mxu1 %v14974_v38  ;;  %v15052_v38 = vld [vmem:[%s21178_s7 + $0xac] ss:$16 sps:$4 sm:$0xff]   ;;  %21320 = vst [vmem:[#allocation2_spill] sm:$0xff] %v17455_v28 }
 0x183   :  { %2923 = vmatprep.mubr.bf16.mxu0 %v21184_v1  ;;  %13584 = vmatprep.subr.bf16.mxu1 %v14978_v42 }
 0x185   :  { %2997 = vmatmul.mubr.bf16.gmra.mrb[52].mxu1 %v16969_v14 }
 0x186   :  { %3006 = vmatprep.mubr.bf16.mxu1 %v21184_v1  ;;  %13585 = vmatpush3.bf16.msra.mxu1 %v14978_v42  ;;  %v17458_v42 = vsub.s32 1, %v17434_v30 }
 0x187   :  { %13586 = vmatprep.subr.bf16.mxu1 %v14985_v43 }
 0x188   :  { %21321 = vst [vmem:[#allocation3_spill] sm:$0xff] %v17458_v42 }
 0x18a   :  { %2924 = vmatmul.mubr.bf16.gmra.mrb[84].mxu0 %v17015_v50  ;;  %13587 = vmatpush3.bf16.msra.mxu1 %v14985_v43  ;;  %v15055_v43 = vld [vmem:[%s21178_s7 + $0x184] ss:$16 sps:$4 sm:$0xff]  }
 0x18b   :  { %2933 = vmatprep.mubr.bf16.mxu0 %v21184_v1  ;;  %13588 = vmatprep.subr.bf16.mxu1 %v14992_v44 }
 0x18d   :  { %3007 = vmatmul.mubr.bf16.gmra.mrb[56].mxu1 %v17001_v36 }
 0x18e   :  { %3016 = vmatprep.mubr.bf16.mxu1 %v21184_v1  ;;  %13589 = vmatpush3.bf16.msra.mxu1 %v14992_v44  ;;  %v15050_v44 = vld [vmem:[%s21178_s7 + $0xa8] ss:$16 sps:$4 sm:$0xff]  }
 0x18f   :  { %13590 = vmatprep.subr.bf16.mxu1 %v14999_v46 }
 0x192   :  { %2934 = vmatmul.mubr.bf16.gmra.mrb[88].mxu0 %v17043_v6  ;;  %13591 = vmatpush3.bf16.msra.mxu1 %v14999_v46  ;;  %v17471_v46 = vrot.slane %v17452_v35, %v17455_v28 }
 0x193   :  { %2943 = vmatprep.mubr.bf16.mxu0 %v21184_v1  ;;  %13592 = vmatprep.subr.bf16.mxu1 %v15006_v45 }
 0x195   :  { %3017 = vmatmul.mubr.bf16.gmra.mrb[60].mxu1 %v16995_v33 }
 0x196   :  { %3026 = vmatprep.mubr.bf16.mxu1 %v21184_v1  ;;  %13593 = vmatpush3.bf16.msra.mxu1 %v15006_v45  ;;  %v15053_v45 = vld [vmem:[%s21178_s7 + $0x180] ss:$16 sps:$4 sm:$0xff]  }
 0x197   :  { %13594 = vmatprep.subr.bf16.mxu1 %v15013_v47 }
 0x19a   :  { %2944 = vmatmul.mubr.bf16.gmra.mrb[92].mxu0 %v17035_v3  ;;  %13595 = vmatpush3.bf16.msra.mxu1 %v15013_v47 }
 0x19b   :  { %3099 = vmatprep.mubr.bf16.mxu0 %v21184_v1  ;;  %7153 = vmatprep.subr.bf16.mxu1 %v15022_v48  ;;  %v17481_v48 = vrot.slane %v17452_v35, %v17458_v42 }
 0x19d   :  { %3027 = vmatmul.mubr.bf16.gmra.mrb[64].mxu1 %v17021_v56 }
 0x19e   :  { %3036 = vmatprep.mubr.bf16.mxu1 %v21184_v1 }
 0x1a2   :  { %3100 = vmatmul.mubr.bf16.vlgmr.msra.gmra.mrb[96].mxu0 %v16975_v16 }
 0x1a3   :  { %6363 = vmatpush1.bf16.msra.mxu0 %v14996_v52  ;;  %3109 = vmatprep.mubr.bf16.mxu0 %v21184_v1  ;;  %v15061_v52 = vld [vmem:[%s21178_s7 + $0x1a4] ss:$16 sps:$4 sm:$0xff]  }
 0x1a4   :  { %6364 = vmatprep.subr.bf16.mxu0 %v15002_v49 }
 0x1a5   :  { %3037 = vmatmul.mubr.bf16.gmra.mrb[68].mxu1 %v17015_v50 }
 0x1a6   :  { %3046 = vmatprep.mubr.bf16.mxu1 %v21184_v1 }
 0x1a7   :  { %6365 = vmatpush1.bf16.msra.mxu0 %v15000_v51 }
 0x1a8   :  { %6366 = vmatprep.subr.bf16.mxu0 %v15005_v53  ;;  %v15056_v53 = vld [vmem:[%s21178_s7 + $0xc8] ss:$16 sps:$4 sm:$0xff]  }
 0x1aa   :  { %3110 = vmatmul.mubr.bf16.gmra.mrb[100].mxu0 %v16969_v14 }
 0x1ab   :  { %6367 = vmatpush1.bf16.msra.mxu0 %v15003_v54  ;;  %3119 = vmatprep.mubr.bf16.mxu0 %v21184_v1 }
 0x1ac   :  { %6368 = vmatprep.subr.bf16.mxu0 %v15009_v55 }
 0x1ad   :  { %3047 = vmatmul.mubr.bf16.gmra.mrb[72].mxu1 %v17043_v6 }
 0x1ae   :  { %3056 = vmatprep.mubr.bf16.mxu1 %v21184_v1 }
 0x1af   :  { %6369 = vmatpush1.bf16.msra.mxu0 %v15007_v57  ;;  %v15059_v57 = vld [vmem:[%s21178_s7 + $0x1a0] ss:$16 sps:$4 sm:$0xff]  }
 0x1b0   :  { %6370 = vmatprep.subr.bf16.mxu0 %v15012_v40 }
 0x1b2   :  { %3120 = vmatmul.mubr.bf16.gmra.mrb[104].mxu0 %v17001_v36 }
 0x1b3   :  { %6371 = vmatpush1.bf16.msra.mxu0 %v15010_v58  ;;  %3129 = vmatprep.mubr.bf16.mxu0 %v21184_v1 }
 0x1b4   :  { %6372 = vmatprep.subr.bf16.mxu0 %v15016_v59  ;;  %v15064_v59 = vld [vmem:[%s21178_s7 + $0xec] ss:$16 sps:$4 sm:$0xff]  }
 0x1b5   :  { %3057 = vmatmul.mubr.bf16.gmra.mrb[76].mxu1 %v17035_v3 }
 0x1b6   :  { %13596 = vmatprep.mubr.bf16.mxu1 %v16975_v16  ;;  %v15023_v16 = vld [vmem:[%s21178_s7 + $0xe0] ss:$16 sps:$4 sm:$0xff]  }
 0x1b7   :  { %6373 = vmatpush1.bf16.msra.mxu0 %v15014_v0 }
 0x1b8   :  { %6374 = vmatprep.subr.bf16.mxu0 %v15019_v60  ;;  %v15062_v60 = vld [vmem:[%s21178_s7 + $0xe8] ss:$16 sps:$4 sm:$0xff]  }
 0x1ba   :  { %3130 = vmatmul.mubr.bf16.gmra.mrb[108].mxu0 %v16995_v33 }
 0x1bb   :  { %6375 = vmatpush1.bf16.msra.mxu0 %v15017_v61  ;;  %3139 = vmatprep.mubr.bf16.mxu0 %v21184_v1 }
 0x1bc   :  { %6376 = vmatprep.subr.bf16.mxu0 %v15025_v62 }
 0x1bd   :  { %13597 = vmatmul.mubr.bf16.vlgmr.msra.gmra.mrb[80].mxu1 %v16969_v14  ;;  %v15037_v14 = vld [vmem:[%s21178_s7 + $0x124] ss:$16 sps:$4 sm:$0xff]  }
 0x1be   :  { %7154 = vmatpush1.bf16.msra.mxu1 %v15020_v63  ;;  %13600 = vmatprep.mubr.bf16.mxu1 %v17001_v36  ;;  %v15035_v36 = vld [vmem:[%s21178_s7 + $0x120] ss:$16 sps:$4 sm:$0xff]  }
 0x1bf   :  { %6377 = vmatpush1.bf16.msra.mxu0 %v15023_v16  ;;  %7155 = vmatprep.subr.bf16.mxu1 %v15028_v2  ;;  %v15070_v16 = vld [vmem:[%s21178_s7 + $0x10c] ss:$16 sps:$4 sm:$0xff]  }
 0x1c0   :  { %6378 = vmatprep.subr.bf16.mxu0 %v15031_v4 }
 0x1c2   :  { %7156 = vmatpush1.bf16.msra.mxu1 %v15026_v5  ;;  %3140 = vmatmul.mubr.bf16.gmra.mrb[112].mxu0 %v17021_v56 }
 0x1c3   :  { %6379 = vmatpush1.bf16.msra.mxu0 %v15029_v12  ;;  %7157 = vmatprep.subr.bf16.mxu1 %v15034_v9  ;;  %v15068_v12 = vld [vmem:[%s21178_s7 + $0x108] ss:$16 sps:$4 sm:$0xff]  }
 0x1c4   :  { %6380 = vmatprep.subr.bf16.mxu0 %v15037_v14  ;;  %3149 = vmatprep.mubr.bf16.mxu0 %v21184_v1 }
 0x1c5   :  { %13601 = vmatmul.mubr.bf16.gmra.mrb[84].mxu1 %v16995_v33  ;;  %v15044_v33 = vld [vmem:[%s21178_s7 + $0x88] ss:$16 sps:$4 sm:$0xff]  }
 0x1c6   :  { %7158 = vmatpush1.bf16.msra.mxu1 %v15032_v11  ;;  %13604 = vmatprep.mubr.bf16.mxu1 %v17021_v56  ;;  %v15049_v56 = vld [vmem:[%s21178_s7 + $0x164] ss:$16 sps:$4 sm:$0xff]  }
 0x1c7   :  { %6381 = vmatpush1.bf16.msra.mxu0 %v15035_v36  ;;  %7159 = vmatprep.subr.bf16.mxu1 %v15040_v15  ;;  %v15073_v36 = vld [vmem:[%s21178_s7 + $0x1e4] ss:$16 sps:$4 sm:$0xff]  }
 0x1c8   :  { %6382 = vmatprep.subr.bf16.mxu0 %v15043_v21 }
 0x1ca   :  { %7160 = vmatpush1.bf16.msra.mxu1 %v15038_v31  ;;  %3150 = vmatmul.mubr.bf16.gmra.mrb[116].mxu0 %v17015_v50  ;;  %v15071_v31 = vld [vmem:[%s21178_s7 + $0x1e0] ss:$16 sps:$4 sm:$0xff]  }
 0x1cb   :  { %6383 = vmatpush1.bf16.msra.mxu0 %v15041_v22  ;;  %7161 = vmatprep.subr.bf16.mxu1 %v15046_v25 }
 0x1cc   :  { %6384 = vmatprep.subr.bf16.mxu0 %v15049_v56  ;;  %3159 = vmatprep.mubr.bf16.mxu0 %v21184_v1 }
 0x1cd   :  { %13605 = vmatmul.mubr.bf16.gmra.mrb[88].mxu1 %v17015_v50  ;;  %v15058_v50 = vld [vmem:[%s21178_s7 + $0xcc] ss:$16 sps:$4 sm:$0xff]  }
 0x1ce   :  { %7162 = vmatpush1.bf16.msra.mxu1 %v15044_v33  ;;  %13608 = vmatprep.mubr.bf16.mxu1 %v17043_v6  ;;  %v15076_v33 = vld [vmem:[%s21178_s7 + $0x12c] ss:$16 sps:$4 sm:$0xff]  }
 0x1cf   :  { %6385 = vmatpush1.bf16.msra.mxu0 %v15047_v32  ;;  %7163 = vmatprep.subr.bf16.mxu1 %v15052_v38  ;;  %v15077_v38 = vld [vmem:[%s21178_s7 + $0x200] ss:$16 sps:$4 sm:$0xff]  }
 0x1d0   :  { %v2536_v47 = vpop.f32.mrb[96].mxu1  ;;  %6386 = vmatprep.subr.bf16.mxu0 %v15055_v43  ;;  %v15082_v43 = vld [vmem:[%s21178_s7 + $0x14c] ss:$16 sps:$4 sm:$0xff]  }
 0x1d1   :  { %v2537_v49 = vadd.f32 %v2536_v47, %v17050_v7  ;;  %v2538_v51 = vpop.f32.mrb[97].mxu1 }
 0x1d2   :  { %v2539_v54 = vadd.f32 %v2538_v51, %v17053_v8  ;;  %7164 = vmatpush1.bf16.msra.mxu1 %v15050_v44  ;;  %v2540_v55 = vpop.f32.mrb[98].mxu1  ;;  %3160 = vmatmul.mubr.bf16.gmra.mrb[120].mxu0 %v17043_v6  ;;  %v15067_v6 = vld [vmem:[%s21178_s7 + $0x1c4] ss:$16 sps:$4 sm:$0xff]  }
 0x1d3   :  { %v3346_v40 = vadd.f32 %v17471_v46, %v2537_v49  ;;  %v2541_v58 = vadd.f32 %v2540_v55, %v17058_v10  ;;  %v2542_v7 = vpop.f32.mrb[99].mxu1  ;;  %6387 = vmatpush1.bf16.msra.mxu0 %v15053_v45  ;;  %7165 = vmatprep.subr.bf16.mxu1 %v15058_v50  ;;  %v15085_v50 = vld [vmem:[%s21178_s7 + $0x224] ss:$16 sps:$4 sm:$0xff]   ;;  %v15080_v55 = vld [vmem:[%s21178_s7 + $0x148] ss:$16 sps:$4 sm:$0xff]  }
 0x1d4   :  { %v3347_v8 = vadd.f32 %v17481_v48, %v2539_v54  ;;  %v2543_v0 = vadd.f32 %v2542_v7, %v17063_v13  ;;  %6388 = vmatprep.subr.bf16.mxu0 %v15061_v52  ;;  %3169 = vmatprep.mubr.bf16.mxu0 %v21184_v1  ;;  %v15065_v13 = vld [vmem:[%s21178_s7 + $0x1c0] ss:$16 sps:$4 sm:$0xff]  }
 0x1d5   :  { %v3359_v10 = vadd.f32 %v17471_v46, %v2541_v58  ;;  %13609 = vmatmul.mubr.bf16.gmra.mrb[92].mxu1 %v17035_v3  ;;  %v3554_v62 = vmax.f32 %v3346_v40, 0.0  ;;  %v15083_v7 = vld [vmem:[%s21178_s7 + $0x220] ss:$16 sps:$4 sm:$0xff]  }
 0x1d6   :  { %v3360_v61 = vadd.f32 %v17481_v48, %v2543_v0  ;;  %7166 = vmatpush1.bf16.msra.mxu1 %v15056_v53  ;;  %v3555_v2 = vmax.f32 %v3347_v8, 0.0  ;;  %v15088_v0 = vld [vmem:[%s21178_s7 + $0x16c] ss:$16 sps:$4 sm:$0xff]  }
 0x1d7   :  { %v3567_v63 = vmax.f32 %v3359_v10, 0.0  ;;  %6389 = vmatpush1.bf16.msra.mxu0 %v15059_v57  ;;  %7167 = vmatprep.subr.bf16.mxu1 %v15064_v59  ;;  %v15086_v10 = vld [vmem:[%s21178_s7 + $0x168] ss:$16 sps:$4 sm:$0xff]  }
 0x1d8   :  { %v3568_v4 = vmax.f32 %v3360_v61, 0.0  ;;  %v2546_v5 = vpop.f32.mrb[100].mxu1  ;;  %6390 = vmatprep.subr.bf16.mxu0 %v15067_v6  ;;  %v15089_v61 = vld [vmem:[%s21178_s7 + $0x240] ss:$16 sps:$4 sm:$0xff]  }
 0x1d9   :  { %v17521_v9 = vpack.c.bf16 %v3567_v63, %v3554_v62  ;;  %v2547_v14 = vadd.f32 %v2546_v5, %v17070_v17  ;;  %v2548_v11 = vpop.f32.mrb[101].mxu1 }
 0x1da   :  { %v17527_v15 = vpack.c.bf16 %v3568_v4, %v3555_v2  ;;  %v2549_v23 = vadd.f32 %v2548_v11, %v17073_v18  ;;  %7168 = vmatpush1.bf16.msra.mxu1 %v15062_v60  ;;  %v2550_v21 = vpop.f32.mrb[102].mxu1  ;;  %3170 = vmatmul.mubr.bf16.gmra.mrb[124].mxu0 %v17035_v3  ;;  %v15074_v3 = vld [vmem:[%s21178_s7 + $0x128] ss:$16 sps:$4 sm:$0xff]  }
 0x1db   :  { %21322 = vst [vmem:[#allocation4_spill] sm:$0xff] %v17521_v9  ;;  %v3372_v22 = vadd.f32 %v17471_v46, %v2547_v14  ;;  %v2551_v17 = vadd.f32 %v2550_v21, %v17075_v19  ;;  %v2552_v25 = vpop.f32.mrb[103].mxu1  ;;  %6391 = vmatpush1.bf16.msra.mxu0 %v15065_v13  ;;  %7169 = vmatprep.subr.bf16.mxu1 %v15070_v16  ;;  %v15079_v19 = vld [vmem:[%s21178_s7 + $0x204] ss:$16 sps:$4 sm:$0xff]  }
 0x1dc   :  { %21323 = vst [vmem:[#allocation5_spill] sm:$0xff] %v17527_v15  ;;  %v3373_v18 = vadd.f32 %v17481_v48, %v2549_v23  ;;  %v2553_v56 = vadd.f32 %v2552_v25, %v17080_v20  ;;  %6394 = vmatprep.mubr.bf16.mxu0 %v17527_v15  ;;  %7185 = vmatprep.mubr.bf16.mxu1 %v17527_v15  ;;  %v15097_v16 = vld [vmem:[%s21178_s7 + $0x264] ss:$16 sps:$4 sm:$0xff]  }
 0x1dd   :  { %v3385_v32 = vadd.f32 %v17471_v46, %v2551_v17  ;;  %6392 = vmatprep.subr.bf16.mxu0 %v15073_v36  ;;  %v3580_v44 = vmax.f32 %v3372_v22, 0.0  ;;  %v15092_v36 = vld [vmem:[%s21178_s7 + $0x188] ss:$16 sps:$4 sm:$0xff]   ;;  %v15095_v22 = vld [vmem:[%s21178_s7 + $0x260] ss:$16 sps:$4 sm:$0xff]  }
 0x1de   :  { %v3386_v20 = vadd.f32 %v17481_v48, %v2553_v56  ;;  %7170 = vmatpush1.bf16.msra.mxu1 %v15068_v12  ;;  %v3581_v47 = vmax.f32 %v3373_v18, 0.0  ;;  %v15103_v56 = vld [vmem:[%s21178_s7 + $0x284] ss:$16 sps:$4 sm:$0xff]  }
 0x1df   :  { %v3593_v45 = vmax.f32 %v3385_v32, 0.0  ;;  %6393 = vmatpush1.bf16.msra.mxu0 %v15071_v31  ;;  %7171 = vmatprep.subr.bf16.mxu1 %v15076_v33  ;;  %v15100_v33 = vld [vmem:[%s21178_s7 + $0x1ac] ss:$16 sps:$4 sm:$0xff]   ;;  %v17631_v32 = vsub.s32 2, %v17434_v30 }
 0x1e0   :  { %v3594_v52 = vmax.f32 %v3386_v20, 0.0  ;;  %v2556_v49 = vpop.f32.mrb[104].mxu1  ;;  %6475 = vmatprep.subr.bf16.mxu0 %v15079_v19  ;;  %v15098_v19 = vld [vmem:[%s21178_s7 + $0x1a8] ss:$16 sps:$4 sm:$0xff]  }
 0x1e1   :  { %v17560_v51 = vpack.c.bf16 %v3593_v45, %v3580_v44  ;;  %v2557_v53 = vadd.f32 %v2556_v49, %v17094_v24  ;;  %v2558_v54 = vpop.f32.mrb[105].mxu1  ;;  %21328 = vst [vmem:[#allocation10_spill] sm:$0xff] %v17631_v32  ;;  %v17637_v44 = vsub.s32 3, %v17434_v30 }
 0x1e2   :  { %v17566_v57 = vpack.c.bf16 %v3594_v52, %v3581_v47  ;;  %v2559_v40 = vadd.f32 %v2558_v54, %v17100_v26  ;;  %7172 = vmatpush1.bf16.msra.mxu1 %v15074_v3  ;;  %v2560_v58 = vpop.f32.mrb[106].mxu1  ;;  %6395 = vmatmul.mubr.bf16.vlgmr.msra.gmra.mrb[128].mxu0 %v17521_v9  ;;  %v15109_v52 = vld [vmem:[%s21178_s7 + $0x2a4] ss:$16 sps:$4 sm:$0xff]  }
 0x1e3   :  { %21324 = vst [vmem:[#allocation6_spill] sm:$0xff] %v17560_v51  ;;  %v3398_v59 = vadd.f32 %v17471_v46, %v2557_v53  ;;  %v2561_v24 = vadd.f32 %v2560_v58, %v17102_v27  ;;  %v2562_v8 = vpop.f32.mrb[107].mxu1  ;;  %6476 = vmatpush1.bf16.msra.mxu0 %v15077_v38  ;;  %7173 = vmatprep.subr.bf16.mxu1 %v15082_v43  ;;  %v15091_v27 = vld [vmem:[%s21178_s7 + $0x244] ss:$16 sps:$4 sm:$0xff]   ;;  %v15106_v43 = vld [vmem:[%s21178_s7 + $0x1cc] ss:$16 sps:$4 sm:$0xff]  }
 0x1e4   :  { %21325 = vst [vmem:[#allocation7_spill] sm:$0xff] %v17566_v57  ;;  %v3399_v26 = vadd.f32 %v17481_v48, %v2559_v40  ;;  %v2563_v6 = vadd.f32 %v2562_v8, %v17104_v29  ;;  %6404 = vmatprep.mubr.bf16.mxu0 %v17566_v57  ;;  %6477 = vmatprep.subr.bf16.mxu0 %v15085_v50  ;;  %v15094_v29 = vld [vmem:[%s21178_s7 + $0x18c] ss:$16 sps:$4 sm:$0xff]   ;;  %21329 = vst [vmem:[#allocation11_spill] sm:$0xff] %v17637_v44 }
 0x1e5   :  { %v3411_v60 = vadd.f32 %v17471_v46, %v2561_v24  ;;  %v3606_v62 = vmax.f32 %v3398_v59, 0.0  ;;  %v17654_v59 = vrot.slane %v17452_v35, %v17631_v32 }
 0x1e6   :  { %v3412_v13 = vadd.f32 %v17481_v48, %v2563_v6  ;;  %7174 = vmatpush1.bf16.msra.mxu1 %v15080_v55  ;;  %v3607_v2 = vmax.f32 %v3399_v26, 0.0  ;;  %v15107_v26 = vld [vmem:[%s21178_s7 + $0x2a0] ss:$16 sps:$4 sm:$0xff]   ;;  %v15112_v6 = vld [vmem:[%s21178_s7 + $0x1ec] ss:$16 sps:$4 sm:$0xff]  }
 0x1e7   :  { %v3619_v63 = vmax.f32 %v3411_v60, 0.0  ;;  %6478 = vmatpush1.bf16.msra.mxu0 %v15083_v7  ;;  %7175 = vmatprep.subr.bf16.mxu1 %v15088_v0  ;;  %v15104_v7 = vld [vmem:[%s21178_s7 + $0x1c8] ss:$16 sps:$4 sm:$0xff]   ;;  %v17659_v0 = vrot.slane %v17452_v35, %v17637_v44 }
 0x1e8   :  { %v3620_v4 = vmax.f32 %v3412_v13, 0.0  ;;  %v2566_v5 = vpop.f32.mrb[108].mxu1  ;;  %6479 = vmatprep.subr.bf16.mxu0 %v15091_v27  ;;  %v15115_v27 = vld [vmem:[%s21178_s7 + $0x2c4] ss:$16 sps:$4 sm:$0xff]  }
 0x1e9   :  { %v17598_v12 = vpack.c.bf16 %v3619_v63, %v3606_v62  ;;  %v2567_v14 = vadd.f32 %v2566_v5, %v17118_v34  ;;  %v2568_v11 = vpop.f32.mrb[109].mxu1 }
 0x1ea   :  { %v17604_v23 = vpack.c.bf16 %v3620_v4, %v3607_v2  ;;  %v2569_v21 = vadd.f32 %v2568_v11, %v17124_v37  ;;  %7176 = vmatpush1.bf16.msra.mxu1 %v15086_v10  ;;  %v2570_v31 = vpop.f32.mrb[110].mxu1  ;;  %6405 = vmatmul.mubr.bf16.gmra.mrb[132].mxu0 %v17560_v51  ;;  %v15110_v2 = vld [vmem:[%s21178_s7 + $0x1e8] ss:$16 sps:$4 sm:$0xff]   ;;  %v15113_v11 = vld [vmem:[%s21178_s7 + $0x2c0] ss:$16 sps:$4 sm:$0xff]  }
 0x1eb   :  { %21326 = vst [vmem:[#allocation8_spill] sm:$0xff] %v17598_v12  ;;  %v3424_v17 = vadd.f32 %v17471_v46, %v2567_v14  ;;  %v2571_v34 = vadd.f32 %v2570_v31, %v17126_v39  ;;  %v2572_v25 = vpop.f32.mrb[111].mxu1  ;;  %6480 = vmatpush1.bf16.msra.mxu0 %v15089_v61  ;;  %7177 = vmatprep.subr.bf16.mxu1 %v15094_v29 }
 0x1ec   :  { %21327 = vst [vmem:[#allocation9_spill] sm:$0xff] %v17604_v23  ;;  %v3425_v37 = vadd.f32 %v17481_v48, %v2569_v21  ;;  %v2573_v18 = vadd.f32 %v2572_v25, %v17128_v41  ;;  %6414 = vmatprep.mubr.bf16.mxu0 %v17604_v23  ;;  %6481 = vmatprep.subr.bf16.mxu0 %v15097_v16  ;;  %v15101_v41 = vld [vmem:[%s21178_s7 + $0x280] ss:$16 sps:$4 sm:$0xff]  }
 0x1ed   :  { %v3437_v39 = vadd.f32 %v17471_v46, %v2571_v34  ;;  %v3632_v38 = vmax.f32 %v3424_v17, 0.0  ;;  %v15118_v17 = vld [vmem:[%s21178_s7 + $0x20c] ss:$16 sps:$4 sm:$0xff]   ;;  %v15121_v34 = vld [vmem:[%s21178_s7 + $0x2e4] ss:$16 sps:$4 sm:$0xff]  }
 0x1ee   :  { %v3438_v3 = vadd.f32 %v17481_v48, %v2573_v18  ;;  %7178 = vmatpush1.bf16.msra.mxu1 %v15092_v36  ;;  %v3633_v45 = vmax.f32 %v3425_v37, 0.0  ;;  %v15116_v18 = vld [vmem:[%s21178_s7 + $0x208] ss:$16 sps:$4 sm:$0xff]  }
 0x1ef   :  { %v3645_v20 = vmax.f32 %v3437_v39, 0.0  ;;  %6482 = vmatpush1.bf16.msra.mxu0 %v15095_v22  ;;  %7179 = vmatprep.subr.bf16.mxu1 %v15100_v33 }
 0x1f0   :  { %v3646_v50 = vmax.f32 %v3438_v3, 0.0  ;;  %v2576_v47 = vpop.f32.mrb[0].mxu1  ;;  %6483 = vmatprep.subr.bf16.mxu0 %v15103_v56 }
 0x1f1   :  { %v17642_v49 = vpack.c.bf16 %v3645_v20, %v3632_v38  ;;  %v3450_v53 = vadd.f32 %v17471_v46, %v2576_v47  ;;  %v2578_v54 = vpop.f32.mrb[1].mxu1 }
 0x1f2   :  { %v17645_v55 = vpack.c.bf16 %v3646_v50, %v3633_v45  ;;  %v3451_v40 = vadd.f32 %v17481_v48, %v2578_v54  ;;  %7180 = vmatpush1.bf16.msra.mxu1 %v15098_v19  ;;  %v2580_v58 = vpop.f32.mrb[2].mxu1  ;;  %6415 = vmatmul.mubr.bf16.gmra.mrb[136].mxu0 %v17598_v12  ;;  %v15124_v50 = vld [vmem:[%s21178_s7 + $0x22c] ss:$16 sps:$4 sm:$0xff]  }
 0x1f3   :  { %21330 = vst [vmem:[#allocation12_spill] sm:$0xff] %v17642_v49  ;;  %v3463_v24 = vadd.f32 %v17471_v46, %v2580_v58  ;;  %v2582_v8 = vpop.f32.mrb[3].mxu1  ;;  %6484 = vmatpush1.bf16.msra.mxu0 %v15101_v41  ;;  %7181 = vmatprep.subr.bf16.mxu1 %v15106_v43  ;;  %v3658_v60 = vmax.f32 %v3450_v53, 0.0  ;;  %v15119_v41 = vld [vmem:[%s21178_s7 + $0x2e0] ss:$16 sps:$4 sm:$0xff]  }
 0x1f4   :  { %21331 = vst [vmem:[#allocation13_spill] sm:$0xff] %v17645_v55  ;;  %v3464_v10 = vadd.f32 %v17481_v48, %v2582_v8  ;;  %6424 = vmatprep.mubr.bf16.mxu0 %v17645_v55  ;;  %6485 = vmatprep.subr.bf16.mxu0 %v15109_v52  ;;  %v3659_v29 = vmax.f32 %v3451_v40, 0.0  ;;  %v15127_v53 = vld [vmem:[%s21178_s7 + $0x304] ss:$16 sps:$4 sm:$0xff]  }
 0x1f5   :  { %v3671_v61 = vmax.f32 %v3463_v24, 0.0  ;;  %v2649_v13 = vpop.f32.mrb[32].mxu0 }
 0x1f6   :  { %v3672_v62 = vmax.f32 %v3464_v10, 0.0  ;;  %v3348_v63 = vadd.f32 %v17654_v59, %v2649_v13  ;;  %7182 = vmatpush1.bf16.msra.mxu1 %v15104_v7  ;;  %v2651_v16 = vpop.f32.mrb[33].mxu0  ;;  %v15122_v10 = vld [vmem:[%s21178_s7 + $0x228] ss:$16 sps:$4 sm:$0xff]   ;;  %v15125_v13 = vld [vmem:[%s21178_s7 + $0x300] ss:$16 sps:$4 sm:$0xff]  }
 0x1f7   :  { %v17676_v4 = vpack.c.bf16 %v3671_v61, %v3658_v60  ;;  %v3349_v5 = vadd.f32 %v17659_v0, %v2651_v16  ;;  %v2653_v14 = vpop.f32.mrb[34].mxu0  ;;  %6486 = vmatpush1.bf16.msra.mxu0 %v15107_v26  ;;  %7183 = vmatprep.subr.bf16.mxu1 %v15112_v6 }
 0x1f8   :  { %v17682_v36 = vpack.c.bf16 %v3672_v62, %v3659_v29  ;;  %v3361_v21 = vadd.f32 %v17654_v59, %v2653_v14  ;;  %v2586_v31 = vpop.f32.mrb[4].mxu1  ;;  %v2655_v22 = vpop.f32.mrb[35].mxu0  ;;  %6487 = vmatprep.subr.bf16.mxu0 %v15115_v27  ;;  %v3556_v56 = vmax.f32 %v3348_v63, 0.0 }
 0x1f9   :  { %21332 = vst [vmem:[#allocation14_spill] sm:$0xff] %v17676_v4  ;;  %v3476_v25 = vadd.f32 %v17471_v46, %v2586_v31  ;;  %v3362_v33 = vadd.f32 %v17659_v0, %v2655_v22  ;;  %v2588_v37 = vpop.f32.mrb[5].mxu1  ;;  %v3557_v38 = vmax.f32 %v3349_v5, 0.0  ;;  %v15133_v5 = vld [vmem:[%s21178_s7 + $0x324] ss:$16 sps:$4 sm:$0xff]  }
 0x1fa   :  { %21333 = vst [vmem:[#allocation15_spill] sm:$0xff] %v17682_v36  ;;  %v3569_v39 = vmax.f32 %v3361_v21, 0.0  ;;  %v3477_v3 = vadd.f32 %v17481_v48, %v2588_v37  ;;  %7184 = vmatpush1.bf16.msra.mxu1 %v15110_v2  ;;  %v2590_v19 = vpop.f32.mrb[6].mxu1  ;;  %6425 = vmatmul.mubr.bf16.gmra.mrb[140].mxu0 %v17642_v49  ;;  %v15130_v2 = vld [vmem:[%s21178_s7 + $0x24c] ss:$16 sps:$4 sm:$0xff]  }
 0x1fb   :  { %v3570_v20 = vmax.f32 %v3362_v33, 0.0  ;;  %v3489_v43 = vadd.f32 %v17471_v46, %v2590_v19  ;;  %v2592_v45 = vpop.f32.mrb[7].mxu1  ;;  %6434 = vmatprep.mubr.bf16.mxu0 %v17682_v36  ;;  %6488 = vmatpush1.bf16.msra.mxu0 %v15113_v11  ;;  %v3684_v54 = vmax.f32 %v3476_v25, 0.0  ;;  %v15128_v31 = vld [vmem:[%s21178_s7 + $0x248] ss:$16 sps:$4 sm:$0xff]  }
 0x1fc   :  { %v17706_v47 = vpack.c.bf16 %v3569_v39, %v3556_v56  ;;  %v3490_v52 = vadd.f32 %v17481_v48, %v2592_v45  ;;  %7266 = vmatprep.subr.bf16.mxu1 %v15118_v17  ;;  %6489 = vmatprep.subr.bf16.mxu0 %v15121_v34  ;;  %v3685_v24 = vmax.f32 %v3477_v3, 0.0  ;;  %v15131_v33 = vld [vmem:[%s21178_s7 + $0x320] ss:$16 sps:$4 sm:$0xff]   ;;  %v15136_v3 = vld [vmem:[%s21178_s7 + $0x26c] ss:$16 sps:$4 sm:$0xff]  }
 0x1fd   :  { %v17712_v40 = vpack.c.bf16 %v3570_v20, %v3557_v38  ;;  %v3697_v58 = vmax.f32 %v3489_v43, 0.0  ;;  %7186 = vmatmul.mubr.bf16.vlgmr.msra.gmra.mrb[112].mxu1 %v17521_v9  ;;  %v2659_v7 = vpop.f32.mrb[36].mxu0  ;;  %v15139_v38 = vld [vmem:[%s21178_s7 + $0x344] ss:$16 sps:$4 sm:$0xff]  }
 0x1fe   :  { %21334 = vst [vmem:[#allocation16_spill] sm:$0xff] %v17706_v47  ;;  %v3698_v8 = vmax.f32 %v3490_v52, 0.0  ;;  %v3374_v26 = vadd.f32 %v17654_v59, %v2659_v7  ;;  %7195 = vmatprep.mubr.bf16.mxu1 %v17566_v57  ;;  %7267 = vmatpush1.bf16.msra.mxu1 %v15116_v18  ;;  %v2661_v6 = vpop.f32.mrb[37].mxu0  ;;  %v15134_v7 = vld [vmem:[%s21178_s7 + $0x268] ss:$16 sps:$4 sm:$0xff]  }
 0x1ff   :  { %21335 = vst [vmem:[#allocation17_spill] sm:$0xff] %v17712_v40  ;;  %v17720_v27 = vpack.c.bf16 %v3697_v58, %v3684_v54  ;;  %v3375_v60 = vadd.f32 %v17659_v0, %v2661_v6  ;;  %v2663_v61 = vpop.f32.mrb[38].mxu0  ;;  %6490 = vmatpush1.bf16.msra.mxu0 %v15119_v41  ;;  %7268 = vmatprep.subr.bf16.mxu1 %v15124_v50  ;;  %v15137_v6 = vld [vmem:[%s21178_s7 + $0x340] ss:$16 sps:$4 sm:$0xff]  }
 0x200   :  { %v17726_v29 = vpack.c.bf16 %v3698_v8, %v3685_v24  ;;  %v3387_v62 = vadd.f32 %v17654_v59, %v2663_v61  ;;  %v2596_v63 = vpop.f32.mrb[8].mxu1  ;;  %v2665_v16 = vpop.f32.mrb[39].mxu0  ;;  %6491 = vmatprep.subr.bf16.mxu0 %v15127_v53  ;;  %v3582_v22 = vmax.f32 %v3374_v26, 0.0 }
 0x201   :  { %21336 = vst [vmem:[#allocation18_spill] sm:$0xff] %v17720_v27  ;;  %v3502_v14 = vadd.f32 %v17471_v46, %v2596_v63  ;;  %v3388_v11 = vadd.f32 %v17659_v0, %v2665_v16  ;;  %v2598_v21 = vpop.f32.mrb[9].mxu1  ;;  %v3583_v37 = vmax.f32 %v3375_v60, 0.0  ;;  %v15145_v63 = vld [vmem:[%s21178_s7 + $0x364] ss:$16 sps:$4 sm:$0xff]  }
 0x202   :  { %21337 = vst [vmem:[#allocation19_spill] sm:$0xff] %v17726_v29  ;;  %v3595_v17 = vmax.f32 %v3387_v62, 0.0  ;;  %v3503_v34 = vadd.f32 %v17481_v48, %v2598_v21  ;;  %7269 = vmatpush1.bf16.msra.mxu1 %v15122_v10  ;;  %v2600_v25 = vpop.f32.mrb[10].mxu1  ;;  %6435 = vmatmul.mubr.bf16.gmra.mrb[144].mxu0 %v17676_v4  ;;  %v15142_v62 = vld [vmem:[%s21178_s7 + $0x28c] ss:$16 sps:$4 sm:$0xff]  }
 0x203   :  { %v3596_v18 = vmax.f32 %v3388_v11, 0.0  ;;  %v3515_v56 = vadd.f32 %v17471_v46, %v2600_v25  ;;  %v2602_v39 = vpop.f32.mrb[11].mxu1  ;;  %6444 = vmatprep.mubr.bf16.mxu0 %v17726_v29  ;;  %6492 = vmatpush1.bf16.msra.mxu0 %v15125_v13  ;;  %v3710_v20 = vmax.f32 %v3502_v14, 0.0  ;;  %v15140_v14 = vld [vmem:[%s21178_s7 + $0x288] ss:$16 sps:$4 sm:$0xff]   ;;  %v21186_v11 = vsub.s32 4, %v17434_v30 }
 0x204   :  { %v17750_v19 = vpack.c.bf16 %v3595_v17, %v3582_v22  ;;  %v3516_v41 = vadd.f32 %v17481_v48, %v2602_v39  ;;  %7270 = vmatprep.subr.bf16.mxu1 %v15130_v2  ;;  %6493 = vmatprep.subr.bf16.mxu0 %v15133_v5  ;;  %v3711_v52 = vmax.f32 %v3503_v34, 0.0  ;;  %v15143_v34 = vld [vmem:[%s21178_s7 + $0x360] ss:$16 sps:$4 sm:$0xff]   ;;  %v3303_v25 = vsub.s32 5, %v17434_v30  ;;  %v15148_v39 = vld [vmem:[%s21178_s7 + $0x2ac] ss:$16 sps:$4 sm:$0xff]  }
 0x205   :  { %v17756_v43 = vpack.c.bf16 %v3596_v18, %v3583_v37  ;;  %v3723_v45 = vmax.f32 %v3515_v56, 0.0  ;;  %7196 = vmatmul.mubr.bf16.gmra.mrb[116].mxu1 %v17560_v51  ;;  %v2669_v50 = vpop.f32.mrb[40].mxu0 }
 0x206   :  { %21338 = vst [vmem:[#allocation20_spill] sm:$0xff] %v17750_v19  ;;  %v3724_v53 = vmax.f32 %v3516_v41, 0.0  ;;  %v3400_v54 = vadd.f32 %v17654_v59, %v2669_v50  ;;  %7205 = vmatprep.mubr.bf16.mxu1 %v17604_v23  ;;  %7271 = vmatpush1.bf16.msra.mxu1 %v15128_v31  ;;  %v2671_v58 = vpop.f32.mrb[41].mxu0 }
 0x207   :  { %21339 = vst [vmem:[#allocation21_spill] sm:$0xff] %v17756_v43  ;;  %v17764_v24 = vpack.c.bf16 %v3723_v45, %v3710_v20  ;;  %v3401_v8 = vadd.f32 %v17659_v0, %v2671_v58  ;;  %v2673_v26 = vpop.f32.mrb[42].mxu0  ;;  %6494 = vmatpush1.bf16.msra.mxu0 %v15131_v33  ;;  %7272 = vmatprep.subr.bf16.mxu1 %v15136_v3 }
 0x208   :  { %v17770_v10 = vpack.c.bf16 %v3724_v53, %v3711_v52  ;;  %v3413_v60 = vadd.f32 %v17654_v59, %v2673_v26  ;;  %v2606_v61 = vpop.f32.mrb[12].mxu1  ;;  %v2675_v13 = vpop.f32.mrb[43].mxu0  ;;  %6495 = vmatprep.subr.bf16.mxu0 %v15139_v38  ;;  %v3608_v21 = vmax.f32 %v3400_v54, 0.0  ;;  %v15151_v38 = vld [vmem:[%s21178_s7 + $0x384] ss:$16 sps:$4 sm:$0xff]   ;;  %v17808_v52 = vrot.slane %v17452_v35, %v21186_v11 }
 0x209   :  { %21340 = vst [vmem:[#allocation22_spill] sm:$0xff] %v17764_v24  ;;  %v3528_v16 = vadd.f32 %v17471_v46, %v2606_v61  ;;  %v3414_v2 = vadd.f32 %v17659_v0, %v2675_v13  ;;  %v2608_v5 = vpop.f32.mrb[13].mxu1  ;;  %v3609_v33 = vmax.f32 %v3401_v8, 0.0  ;;  %v17816_v8 = vrot.slane %v17452_v35, %v3303_v25  ;;  %v15149_v61 = vld [vmem:[%s21178_s7 + $0x380] ss:$16 sps:$4 sm:$0xff]  }
 0x20a   :  { %21341 = vst [vmem:[#allocation23_spill] sm:$0xff] %v17770_v10  ;;  %v3621_v31 = vmax.f32 %v3413_v60, 0.0  ;;  %v3529_v22 = vadd.f32 %v17481_v48, %v2608_v5  ;;  %7273 = vmatpush1.bf16.msra.mxu1 %v15134_v7  ;;  %v2610_v17 = vpop.f32.mrb[14].mxu1  ;;  %6445 = vmatmul.mubr.bf16.gmra.mrb[148].mxu0 %v17720_v27  ;;  %v15146_v7 = vld [vmem:[%s21178_s7 + $0x2a8] ss:$16 sps:$4 sm:$0xff]  }
 0x20b   :  { %v3622_v37 = vmax.f32 %v3414_v2, 0.0  ;;  %v3541_v18 = vadd.f32 %v17471_v46, %v2610_v17  ;;  %v2612_v56 = vpop.f32.mrb[15].mxu1  ;;  %6454 = vmatprep.mubr.bf16.mxu0 %v17770_v10  ;;  %6496 = vmatpush1.bf16.msra.mxu0 %v15137_v6  ;;  %v3736_v20 = vmax.f32 %v3528_v16, 0.0  ;;  %v15154_v35 = vld [vmem:[%s21178_s7 + $0x2cc] ss:$16 sps:$4 sm:$0xff]  }
 0x20c   :  { %v17796_v3 = vpack.c.bf16 %v3621_v31, %v3608_v21  ;;  %v3542_v41 = vadd.f32 %v17481_v48, %v2612_v56  ;;  %7274 = vmatprep.subr.bf16.mxu1 %v15142_v62  ;;  %6497 = vmatprep.subr.bf16.mxu0 %v15145_v63  ;;  %v3737_v53 = vmax.f32 %v3529_v22, 0.0  ;;  %v15157_v2 = vld [vmem:[%s21178_s7 + $0x3a4] ss:$16 sps:$4 sm:$0xff]   ;;  %v15152_v31 = vld [vmem:[%s21178_s7 + $0x2c8] ss:$16 sps:$4 sm:$0xff]  }
 0x20d   :  { %v17802_v46 = vpack.c.bf16 %v3622_v37, %v3609_v33  ;;  %v3749_v45 = vmax.f32 %v3541_v18, 0.0  ;;  %7206 = vmatmul.mubr.bf16.gmra.mrb[120].mxu1 %v17598_v12  ;;  %v2679_v50 = vpop.f32.mrb[44].mxu0  ;;  %v15155_v33 = vld [vmem:[%s21178_s7 + $0x3a0] ss:$16 sps:$4 sm:$0xff]  }
 0x20e   :  { %21342 = vst [vmem:[#allocation24_spill] sm:$0xff] %v17796_v3  ;;  %v3750_v48 = vmax.f32 %v3542_v41, 0.0  ;;  %v3426_v54 = vadd.f32 %v17654_v59, %v2679_v50  ;;  %7215 = vmatprep.mubr.bf16.mxu1 %v17645_v55  ;;  %7275 = vmatpush1.bf16.msra.mxu1 %v15140_v14  ;;  %v2681_v58 = vpop.f32.mrb[45].mxu0  ;;  %v15160_v41 = vld [vmem:[%s21178_s7 + $0x2ec] ss:$16 sps:$4 sm:$0xff]  }
 0x20f   :  { %21343 = vst [vmem:[#allocation25_spill] sm:$0xff] %v17802_v46  ;;  %v17818_v26 = vpack.c.bf16 %v3749_v45, %v3736_v20  ;;  %v3427_v6 = vadd.f32 %v17659_v0, %v2681_v58  ;;  %v2683_v60 = vpop.f32.mrb[46].mxu0  ;;  %6498 = vmatpush1.bf16.msra.mxu0 %v15143_v34  ;;  %7276 = vmatprep.subr.bf16.mxu1 %v15148_v39  ;;  %v15163_v45 = vld [vmem:[%s21178_s7 + $0x3c4] ss:$16 sps:$4 sm:$0xff]  }
 0x210   :  { %v17824_v13 = vpack.c.bf16 %v3750_v48, %v3737_v53  ;;  %v3439_v62 = vadd.f32 %v17654_v59, %v2683_v60  ;;  %v2685_v63 = vpop.f32.mrb[47].mxu0  ;;  %v2762_v16 = vpop.f32.mrb[16].mxu1  ;;  %6499 = vmatprep.subr.bf16.mxu0 %v15151_v38  ;;  %v3634_v22 = vmax.f32 %v3426_v54, 0.0 }
 0x211   :  { %21344 = vst [vmem:[#allocation26_spill] sm:$0xff] %v17818_v26  ;;  %v3440_v5 = vadd.f32 %v17659_v0, %v2685_v63  ;;  %v3350_v14 = vadd.f32 %v17808_v52, %v2762_v16  ;;  %v2764_v21 = vpop.f32.mrb[17].mxu1  ;;  %v3635_v37 = vmax.f32 %v3427_v6, 0.0 }
 0x212   :  { %21345 = vst [vmem:[#allocation27_spill] sm:$0xff] %v17824_v13  ;;  %v3647_v17 = vmax.f32 %v3439_v62, 0.0  ;;  %v3351_v34 = vadd.f32 %v17816_v8, %v2764_v21  ;;  %7277 = vmatpush1.bf16.msra.mxu1 %v15146_v7  ;;  %v2766_v25 = vpop.f32.mrb[18].mxu1  ;;  %6455 = vmatmul.mubr.bf16.gmra.mrb[152].mxu0 %v17764_v24 }
 0x213   :  { %v3648_v18 = vmax.f32 %v3440_v5, 0.0  ;;  %v3363_v56 = vadd.f32 %v17808_v52, %v2766_v25  ;;  %v2768_v39 = vpop.f32.mrb[19].mxu1  ;;  %6464 = vmatprep.mubr.bf16.mxu0 %v17824_v13  ;;  %6500 = vmatpush1.bf16.msra.mxu0 %v15149_v61  ;;  %v3558_v53 = vmax.f32 %v3350_v14, 0.0  ;;  %v15158_v61 = vld [vmem:[%s21178_s7 + $0x2e8] ss:$16 sps:$4 sm:$0xff]  }
 0x214   :  { %v17848_v38 = vpack.c.bf16 %v3647_v17, %v3634_v22  ;;  %v3364_v20 = vadd.f32 %v17816_v8, %v2768_v39  ;;  %7278 = vmatprep.subr.bf16.mxu1 %v15154_v35  ;;  %6501 = vmatprep.subr.bf16.mxu0 %v15157_v2  ;;  %v3559_v58 = vmax.f32 %v3351_v34, 0.0  ;;  %v15161_v35 = vld [vmem:[%s21178_s7 + $0x3c0] ss:$16 sps:$4 sm:$0xff]   ;;  %v15169_v22 = vld [vmem:[%s21178_s7 + $0x3e4] ss:$16 sps:$4 sm:$0xff]  }
 0x215   :  { %v17854_v50 = vpack.c.bf16 %v3648_v18, %v3635_v37  ;;  %v3571_v48 = vmax.f32 %v3363_v56, 0.0  ;;  %7216 = vmatmul.mubr.bf16.gmra.mrb[124].mxu1 %v17642_v49  ;;  %v2689_v54 = vpop.f32.mrb[48].mxu0 }
 0x216   :  { %21346 = vst [vmem:[#allocation28_spill] sm:$0xff] %v17848_v38  ;;  %v3572_v7 = vmax.f32 %v3364_v20, 0.0  ;;  %v3452_v6 = vadd.f32 %v17654_v59, %v2689_v54  ;;  %7225 = vmatprep.mubr.bf16.mxu1 %v17682_v36  ;;  %7279 = vmatpush1.bf16.msra.mxu1 %v15152_v31  ;;  %v2691_v60 = vpop.f32.mrb[49].mxu0  ;;  %v15166_v31 = vld [vmem:[%s21178_s7 + $0x30c] ss:$16 sps:$4 sm:$0xff]  }
 0x217   :  { %21347 = vst [vmem:[#allocation29_spill] sm:$0xff] %v17854_v50  ;;  %v17862_v62 = vpack.c.bf16 %v3571_v48, %v3558_v53  ;;  %v3453_v63 = vadd.f32 %v17659_v0, %v2691_v60  ;;  %v2693_v16 = vpop.f32.mrb[50].mxu0  ;;  %6502 = vmatpush1.bf16.msra.mxu0 %v15155_v33  ;;  %7280 = vmatprep.subr.bf16.mxu1 %v15160_v41  ;;  %v15164_v33 = vld [vmem:[%s21178_s7 + $0x308] ss:$16 sps:$4 sm:$0xff]   ;;  %v15167_v41 = vld [vmem:[%s21178_s7 + $0x3e0] ss:$16 sps:$4 sm:$0xff]  }
 0x218   :  { %v17868_v2 = vpack.c.bf16 %v3572_v7, %v3559_v58  ;;  %v3465_v5 = vadd.f32 %v17654_v59, %v2693_v16  ;;  %v2695_v14 = vpop.f32.mrb[51].mxu0  ;;  %v2772_v21 = vpop.f32.mrb[20].mxu1  ;;  %6503 = vmatprep.subr.bf16.mxu0 %v15163_v45  ;;  %v3660_v37 = vmax.f32 %v3452_v6, 0.0  ;;  %v15172_v54 = vld [vmem:[%s21178_s7 + $0x32c] ss:$16 sps:$4 sm:$0xff]  }
 0x219   :  { %21348 = vst [vmem:[#allocation30_spill] sm:$0xff] %v17862_v62  ;;  %v3466_v17 = vadd.f32 %v17659_v0, %v2695_v14  ;;  %v3376_v34 = vadd.f32 %v17808_v52, %v2772_v21  ;;  %v2774_v25 = vpop.f32.mrb[21].mxu1  ;;  %v3661_v20 = vmax.f32 %v3453_v63, 0.0  ;;  %v15175_v6 = vld [vmem:[%s21178_s7 + $0x404] ss:$16 sps:$4 sm:$0xff]  }
 0x21a   :  { %21349 = vst [vmem:[#allocation31_spill] sm:$0xff] %v17868_v2  ;;  %v3673_v18 = vmax.f32 %v3465_v5, 0.0  ;;  %v3377_v56 = vadd.f32 %v17816_v8, %v2774_v25  ;;  %7281 = vmatpush1.bf16.msra.mxu1 %v15158_v61  ;;  %v2776_v39 = vpop.f32.mrb[22].mxu1  ;;  %6465 = vmatmul.mubr.bf16.gmra.mrb[156].mxu0 %v17818_v26  ;;  %v15173_v25 = vld [vmem:[%s21178_s7 + $0x400] ss:$16 sps:$4 sm:$0xff]  }
 0x21b   :  { %v3674_v45 = vmax.f32 %v3466_v17, 0.0  ;;  %v3389_v53 = vadd.f32 %v17808_v52, %v2776_v39  ;;  %v2778_v48 = vpop.f32.mrb[23].mxu1  ;;  %6504 = vmatpush1.bf16.msra.mxu0 %v15161_v35  ;;  %6507 = vmatprep.mubr.bf16.mxu0 %v17712_v40  ;;  %v3584_v61 = vmax.f32 %v3376_v34, 0.0  ;;  %v15178_v39 = vld [vmem:[%s21178_s7 + $0x34c] ss:$16 sps:$4 sm:$0xff]  }
 0x21c   :  { %v17892_v58 = vpack.c.bf16 %v3673_v18, %v3660_v37  ;;  %v3390_v7 = vadd.f32 %v17816_v8, %v2778_v48  ;;  %7282 = vmatprep.subr.bf16.mxu1 %v15166_v31  ;;  %6505 = vmatprep.subr.bf16.mxu0 %v15169_v22  ;;  %v3585_v35 = vmax.f32 %v3377_v56, 0.0  ;;  %v15170_v31 = vld [vmem:[%s21178_s7 + $0x328] ss:$16 sps:$4 sm:$0xff]  }
 0x21d   :  { %v17898_v60 = vpack.c.bf16 %v3674_v45, %v3661_v20  ;;  %v3597_v63 = vmax.f32 %v3389_v53, 0.0  ;;  %7226 = vmatmul.mubr.bf16.gmra.mrb[128].mxu1 %v17676_v4  ;;  %v2699_v16 = vpop.f32.mrb[52].mxu0  ;;  %v15176_v48 = vld [vmem:[%s21178_s7 + $0x348] ss:$16 sps:$4 sm:$0xff]  }
 0x21e   :  { %21350 = vst [vmem:[#allocation32_spill] sm:$0xff] %v17892_v58  ;;  %v3598_v5 = vmax.f32 %v3390_v7, 0.0  ;;  %v3478_v14 = vadd.f32 %v17654_v59, %v2699_v16  ;;  %7235 = vmatprep.mubr.bf16.mxu1 %v17726_v29  ;;  %7283 = vmatpush1.bf16.msra.mxu1 %v15164_v33  ;;  %v2701_v21 = vpop.f32.mrb[53].mxu0 }
 0x21f   :  { %21351 = vst [vmem:[#allocation33_spill] sm:$0xff] %v17898_v60  ;;  %v17906_v22 = vpack.c.bf16 %v3597_v63, %v3584_v61  ;;  %v3479_v17 = vadd.f32 %v17659_v0, %v2701_v21  ;;  %v2703_v34 = vpop.f32.mrb[54].mxu0  ;;  %6506 = vmatpush1.bf16.msra.mxu0 %v15167_v41  ;;  %7284 = vmatprep.subr.bf16.mxu1 %v15172_v54  ;;  %v15181_v41 = vld [vmem:[%s21178_s7 + $0x424] ss:$16 sps:$4 sm:$0xff]   ;;  %v15179_v63 = vld [vmem:[%s21178_s7 + $0x420] ss:$16 sps:$4 sm:$0xff]  }
 0x220   :  { %v17912_v37 = vpack.c.bf16 %v3598_v5, %v3585_v35  ;;  %v3491_v33 = vadd.f32 %v17654_v59, %v2703_v34  ;;  %v2705_v18 = vpop.f32.mrb[55].mxu0  ;;  %v2782_v56 = vpop.f32.mrb[24].mxu1  ;;  %6588 = vmatprep.subr.bf16.mxu0 %v15175_v6  ;;  %v3686_v54 = vmax.f32 %v3478_v14, 0.0  ;;  %v15184_v14 = vld [vmem:[%s21178_s7 + $0x36c] ss:$16 sps:$4 sm:$0xff]  }
 0x221   :  { %21352 = vst [vmem:[#allocation34_spill] sm:$0xff] %v17906_v22  ;;  %v3492_v20 = vadd.f32 %v17659_v0, %v2705_v18  ;;  %v3402_v45 = vadd.f32 %v17808_v52, %v2782_v56  ;;  %v2784_v53 = vpop.f32.mrb[25].mxu1  ;;  %v3687_v16 = vmax.f32 %v3479_v17, 0.0  ;;  %v15187_v17 = vld [vmem:[%s21178_s7 + $0x444] ss:$16 sps:$4 sm:$0xff]  }
 0x222   :  { %21353 = vst [vmem:[#allocation35_spill] sm:$0xff] %v17912_v37  ;;  %v3699_v7 = vmax.f32 %v3491_v33, 0.0  ;;  %v3403_v6 = vadd.f32 %v17816_v8, %v2784_v53  ;;  %7285 = vmatpush1.bf16.msra.mxu1 %v15170_v31  ;;  %v2786_v61 = vpop.f32.mrb[26].mxu1  ;;  %6508 = vmatmul.mubr.bf16.vlgmr.msra.gmra.mrb[128].mxu0 %v17706_v47 }
 0x223   :  { %v3700_v35 = vmax.f32 %v3492_v20, 0.0  ;;  %v3415_v5 = vadd.f32 %v17808_v52, %v2786_v61  ;;  %v2788_v21 = vpop.f32.mrb[27].mxu1  ;;  %6517 = vmatprep.mubr.bf16.mxu0 %v17756_v43  ;;  %6589 = vmatpush1.bf16.msra.mxu0 %v15173_v25  ;;  %v3610_v18 = vmax.f32 %v3402_v45, 0.0 }
 0x224   :  { %v17936_v31 = vpack.c.bf16 %v3699_v7, %v3686_v54  ;;  %v3416_v34 = vadd.f32 %v17816_v8, %v2788_v21  ;;  %7286 = vmatprep.subr.bf16.mxu1 %v15178_v39  ;;  %6590 = vmatprep.subr.bf16.mxu0 %v15181_v41  ;;  %v3611_v20 = vmax.f32 %v3403_v6, 0.0  ;;  %v15182_v41 = vld [vmem:[%s21178_s7 + $0x368] ss:$16 sps:$4 sm:$0xff]   ;;  %v15185_v6 = vld [vmem:[%s21178_s7 + $0x440] ss:$16 sps:$4 sm:$0xff]  }
 0x225   :  { %v17942_v33 = vpack.c.bf16 %v3700_v35, %v3687_v16  ;;  %v3623_v56 = vmax.f32 %v3415_v5, 0.0  ;;  %7236 = vmatmul.mubr.bf16.gmra.mrb[132].mxu1 %v17720_v27  ;;  %v2709_v25 = vpop.f32.mrb[56].mxu0  ;;  %v15190_v21 = vld [vmem:[%s21178_s7 + $0x38c] ss:$16 sps:$4 sm:$0xff]  }
 0x226   :  { %21354 = vst [vmem:[#allocation36_spill] sm:$0xff] %v17936_v31  ;;  %v3624_v53 = vmax.f32 %v3416_v34, 0.0  ;;  %v3504_v54 = vadd.f32 %v17654_v59, %v2709_v25  ;;  %7245 = vmatprep.mubr.bf16.mxu1 %v17770_v10  ;;  %7287 = vmatpush1.bf16.msra.mxu1 %v15176_v48  ;;  %v2711_v39 = vpop.f32.mrb[57].mxu0 }
 0x227   :  { %21355 = vst [vmem:[#allocation37_spill] sm:$0xff] %v17942_v33  ;;  %v17950_v7 = vpack.c.bf16 %v3623_v56, %v3610_v18  ;;  %v3505_v45 = vadd.f32 %v17659_v0, %v2711_v39  ;;  %v2713_v61 = vpop.f32.mrb[58].mxu0  ;;  %6591 = vmatpush1.bf16.msra.mxu0 %v15179_v63  ;;  %7288 = vmatprep.subr.bf16.mxu1 %v15184_v14  ;;  %v15193_v63 = vld [vmem:[%s21178_s7 + $0x464] ss:$16 sps:$4 sm:$0xff]   ;;  %v15188_v56 = vld [vmem:[%s21178_s7 + $0x388] ss:$16 sps:$4 sm:$0xff]  }
 0x228   :  { %v17956_v16 = vpack.c.bf16 %v3624_v53, %v3611_v20  ;;  %v3517_v48 = vadd.f32 %v17654_v59, %v2713_v61  ;;  %v2715_v35 = vpop.f32.mrb[59].mxu0  ;;  %v2792_v5 = vpop.f32.mrb[28].mxu1  ;;  %6592 = vmatprep.subr.bf16.mxu0 %v15187_v17  ;;  %v3712_v25 = vmax.f32 %v3504_v54, 0.0  ;;  %v15191_v39 = vld [vmem:[%s21178_s7 + $0x460] ss:$16 sps:$4 sm:$0xff]  }
 0x229   :  { %21356 = vst [vmem:[#allocation38_spill] sm:$0xff] %v17950_v7  ;;  %v3518_v14 = vadd.f32 %v17659_v0, %v2715_v35  ;;  %v3428_v34 = vadd.f32 %v17808_v52, %v2792_v5  ;;  %v2794_v18 = vpop.f32.mrb[29].mxu1  ;;  %v3713_v61 = vmax.f32 %v3505_v45, 0.0  ;;  %v15196_v54 = vld [vmem:[%s21178_s7 + $0x3ac] ss:$16 sps:$4 sm:$0xff]  }
 0x22a   :  { %21357 = vst [vmem:[#allocation39_spill] sm:$0xff] %v17956_v16  ;;  %v3725_v20 = vmax.f32 %v3517_v48, 0.0  ;;  %v3429_v17 = vadd.f32 %v17816_v8, %v2794_v18  ;;  %7289 = vmatpush1.bf16.msra.mxu1 %v15182_v41  ;;  %v2796_v53 = vpop.f32.mrb[30].mxu1  ;;  %6518 = vmatmul.mubr.bf16.gmra.mrb[132].mxu0 %v17750_v19  ;;  %v15199_v45 = vld [vmem:[%s21178_s7 + $0x484] ss:$16 sps:$4 sm:$0xff]  }
 0x22b   :  { %v3726_v35 = vmax.f32 %v3518_v14, 0.0  ;;  %v3441_v5 = vadd.f32 %v17808_v52, %v2796_v53  ;;  %v2798_v1 = vpop.f32.mrb[31].mxu1  ;;  %6527 = vmatprep.mubr.bf16.mxu0 %v17802_v46  ;;  %6593 = vmatpush1.bf16.msra.mxu0 %v15185_v6  ;;  %v3636_v18 = vmax.f32 %v3428_v34, 0.0 }
 0x22c   :  { %v17980_v41 = vpack.c.bf16 %v3725_v20, %v3712_v25  ;;  %v3442_v48 = vadd.f32 %v17816_v8, %v2798_v1  ;;  %7290 = vmatprep.subr.bf16.mxu1 %v15190_v21  ;;  %6594 = vmatprep.subr.bf16.mxu0 %v15193_v63  ;;  %v3637_v11 = vmax.f32 %v3429_v17, 0.0  ;;  %v15194_v21 = vld [vmem:[%s21178_s7 + $0x3a8] ss:$16 sps:$4 sm:$0xff]   ;;  %v3307_v63 = vsub.s32 6, %v17434_v30  ;;  %v15197_v17 = vld [vmem:[%s21178_s7 + $0x480] ss:$16 sps:$4 sm:$0xff]  }
 0x22d   :  { %v17986_v14 = vpack.c.bf16 %v3726_v35, %v3713_v61  ;;  %v3649_v53 = vmax.f32 %v3441_v5, 0.0  ;;  %7246 = vmatmul.mubr.bf16.gmra.mrb[136].mxu1 %v17764_v24  ;;  %v2719_v6 = vpop.f32.mrb[60].mxu0 }
 0x22e   :  { %21358 = vst [vmem:[#allocation40_spill] sm:$0xff] %v17980_v41  ;;  %v3650_v10 = vmax.f32 %v3442_v48, 0.0  ;;  %v3530_v25 = vadd.f32 %v17654_v59, %v2719_v6  ;;  %7255 = vmatprep.mubr.bf16.mxu1 %v17824_v13  ;;  %7291 = vmatpush1.bf16.msra.mxu1 %v15188_v56  ;;  %v2721_v1 = vpop.f32.mrb[61].mxu0  ;;  %v3311_v56 = vsub.s32 7, %v17434_v30  ;;  %v16251_v13 = vld [vmem:[%s21179_s6] sm:$0xff] }
 0x22f   :  { %21359 = vst [vmem:[#allocation41_spill] sm:$0xff] %v17986_v14  ;;  %v17995_v20 = vpack.c.bf16 %v3649_v53, %v3636_v18  ;;  %v3531_v34 = vadd.f32 %v17659_v0, %v2721_v1  ;;  %v2723_v61 = vpop.f32.mrb[62].mxu0  ;;  %6595 = vmatpush1.bf16.msra.mxu0 %v15191_v39  ;;  %7292 = vmatprep.subr.bf16.mxu1 %v15196_v54  ;;  %v15202_v18 = vld [vmem:[%s21178_s7 + $0x3cc] ss:$16 sps:$4 sm:$0xff]   ;;  %v15205_v39 = vld [vmem:[%s21178_s7 + $0x4a4] ss:$16 sps:$4 sm:$0xff]  }
 0x230   :  { %v18002_v35 = vpack.c.bf16 %v3650_v10, %v3637_v11  ;;  %v3543_v5 = vadd.f32 %v17654_v59, %v2723_v61  ;;  %v2725_v48 = vpop.f32.mrb[63].mxu0  ;;  %v2802_v6 = vpop.f32.mrb[32].mxu1  ;;  %6596 = vmatprep.subr.bf16.mxu0 %v15199_v45  ;;  %v15200_v59 = vld [vmem:[%s21178_s7 + $0x3c8] ss:$16 sps:$4 sm:$0xff]   ;;  %v3738_v10 = vmax.f32 %v3530_v25, 0.0 }
 0x231   :  { %21360 = vst [vmem:[#allocation42_spill] sm:$0xff] %v17995_v20  ;;  %v3544_v54 = vadd.f32 %v17659_v0, %v2725_v48  ;;  %v3454_v53 = vadd.f32 %v17808_v52, %v2802_v6  ;;  %v2804_v1 = vpop.f32.mrb[33].mxu1  ;;  %v18021_v0 = vrot.slane %v16251_v13, %v3307_v63  ;;  %v15203_v48 = vld [vmem:[%s21178_s7 + $0x4a0] ss:$16 sps:$4 sm:$0xff]   ;;  %v3739_v6 = vmax.f32 %v3531_v34, 0.0 }
 0x232   :  { %21361 = vst [vmem:[#allocation43_spill] sm:$0xff] %v18002_v35  ;;  %v3751_v11 = vmax.f32 %v3543_v5, 0.0  ;;  %v3455_v45 = vadd.f32 %v17816_v8, %v2804_v1  ;;  %7293 = vmatpush1.bf16.msra.mxu1 %v15194_v21  ;;  %v2806_v61 = vpop.f32.mrb[34].mxu1  ;;  %6528 = vmatmul.mubr.bf16.gmra.mrb[136].mxu0 %v17796_v3  ;;  %v18028_v21 = vrot.slane %v16251_v13, %v3311_v56  ;;  %v15208_v1 = vld [vmem:[%s21178_s7 + $0x3ec] ss:$16 sps:$4 sm:$0xff]  }
 0x233   :  { %v3752_v24 = vmax.f32 %v3544_v54, 0.0  ;;  %v3467_v25 = vadd.f32 %v17808_v52, %v2806_v61  ;;  %v2808_v5 = vpop.f32.mrb[35].mxu1  ;;  %6537 = vmatprep.mubr.bf16.mxu0 %v17854_v50  ;;  %6597 = vmatpush1.bf16.msra.mxu0 %v15197_v17  ;;  %v15211_v34 = vld [vmem:[%s21178_s7 + $0x4c4] ss:$16 sps:$4 sm:$0xff]   ;;  %v3662_v61 = vmax.f32 %v3454_v53, 0.0 }
 0x234   :  { %v18033_v63 = vpack.c.bf16 %v3751_v11, %v3738_v10  ;;  %v3468_v27 = vadd.f32 %v17816_v8, %v2808_v5  ;;  %7294 = vmatprep.subr.bf16.mxu1 %v15202_v18  ;;  %6598 = vmatprep.subr.bf16.mxu0 %v15205_v39  ;;  %v3663_v56 = vmax.f32 %v3455_v45, 0.0  ;;  %v15206_v39 = vld [vmem:[%s21178_s7 + $0x3e8] ss:$16 sps:$4 sm:$0xff]   ;;  %v15214_v5 = vld [vmem:[%s21178_s7 + $0x40c] ss:$16 sps:$4 sm:$0xff]  }
 0x235   :  { %v18039_v54 = vpack.c.bf16 %v3752_v24, %v3739_v6  ;;  %v3675_v17 = vmax.f32 %v3467_v25, 0.0  ;;  %7256 = vmatmul.mubr.bf16.gmra.mrb[140].mxu1 %v17818_v26  ;;  %v2875_v13 = vpop.f32.mrb[64].mxu0 }
 0x236   :  { %21362 = vst [vmem:[#allocation44_spill] sm:$0xff] %v18033_v63  ;;  %v3676_v29 = vmax.f32 %v3468_v27, 0.0  ;;  %v3352_v10 = vadd.f32 %v18021_v0, %v2875_v13  ;;  %7295 = vmatpush1.bf16.msra.mxu1 %v15200_v59  ;;  %7298 = vmatprep.mubr.bf16.mxu1 %v17712_v40  ;;  %v2877_v18 = vpop.f32.mrb[65].mxu0  ;;  %v15209_v27 = vld [vmem:[%s21178_s7 + $0x4c0] ss:$16 sps:$4 sm:$0xff]  }
 0x237   :  { %21363 = vst [vmem:[#allocation45_spill] sm:$0xff] %v18039_v54  ;;  %v18047_v11 = vpack.c.bf16 %v3675_v17, %v3662_v61  ;;  %v3353_v24 = vadd.f32 %v18028_v21, %v2877_v18  ;;  %v2879_v53 = vpop.f32.mrb[66].mxu0  ;;  %6599 = vmatpush1.bf16.msra.mxu0 %v15203_v48  ;;  %7296 = vmatprep.subr.bf16.mxu1 %v15208_v1  ;;  %v15217_v48 = vld [vmem:[%s21178_s7 + $0x4e4] ss:$16 sps:$4 sm:$0xff]  }
 0x238   :  { %v18053_v45 = vpack.c.bf16 %v3676_v29, %v3663_v56  ;;  %v3365_v59 = vadd.f32 %v18021_v0, %v2879_v53  ;;  %v2812_v6 = vpop.f32.mrb[36].mxu1  ;;  %v2881_v25 = vpop.f32.mrb[67].mxu0  ;;  %6600 = vmatprep.subr.bf16.mxu0 %v15211_v34  ;;  %v15212_v29 = vld [vmem:[%s21178_s7 + $0x408] ss:$16 sps:$4 sm:$0xff]   ;;  %v3560_v13 = vmax.f32 %v3352_v10, 0.0 }
 0x239   :  { %21364 = vst [vmem:[#allocation46_spill] sm:$0xff] %v18047_v11  ;;  %v3480_v1 = vadd.f32 %v17808_v52, %v2812_v6  ;;  %v3366_v61 = vadd.f32 %v18028_v21, %v2881_v25  ;;  %v2814_v17 = vpop.f32.mrb[37].mxu1  ;;  %v15215_v53 = vld [vmem:[%s21178_s7 + $0x4e0] ss:$16 sps:$4 sm:$0xff]   ;;  %v3561_v6 = vmax.f32 %v3353_v24, 0.0 }
 0x23a   :  { %21365 = vst [vmem:[#allocation47_spill] sm:$0xff] %v18053_v45  ;;  %v3573_v56 = vmax.f32 %v3365_v59, 0.0  ;;  %v3481_v34 = vadd.f32 %v17816_v8, %v2814_v17  ;;  %7297 = vmatpush1.bf16.msra.mxu1 %v15206_v39  ;;  %v2816_v18 = vpop.f32.mrb[38].mxu1  ;;  %6538 = vmatmul.mubr.bf16.gmra.mrb[140].mxu0 %v17848_v38  ;;  %v15220_v10 = vld [vmem:[%s21178_s7 + $0x42c] ss:$16 sps:$4 sm:$0xff]  }
 0x23b   :  { %v3574_v40 = vmax.f32 %v3366_v61, 0.0  ;;  %v3493_v25 = vadd.f32 %v17808_v52, %v2816_v18  ;;  %v2818_v26 = vpop.f32.mrb[39].mxu1  ;;  %6547 = vmatprep.mubr.bf16.mxu0 %v17898_v60  ;;  %6601 = vmatpush1.bf16.msra.mxu0 %v15209_v27  ;;  %v15223_v24 = vld [vmem:[%s21178_s7 + $0x504] ss:$16 sps:$4 sm:$0xff]   ;;  %v3688_v61 = vmax.f32 %v3480_v1, 0.0 }
 0x23c   :  { %v18077_v39 = vpack.c.bf16 %v3573_v56, %v3560_v13  ;;  %v3494_v59 = vadd.f32 %v17816_v8, %v2818_v26  ;;  %7379 = vmatprep.subr.bf16.mxu1 %v15214_v5  ;;  %6602 = vmatprep.subr.bf16.mxu0 %v15217_v48  ;;  %v3689_v4 = vmax.f32 %v3481_v34, 0.0  ;;  %v15218_v5 = vld [vmem:[%s21178_s7 + $0x428] ss:$16 sps:$4 sm:$0xff]   ;;  %v15221_v56 = vld [vmem:[%s21178_s7 + $0x500] ss:$16 sps:$4 sm:$0xff]  }
 0x23d   :  { %v18083_v17 = vpack.c.bf16 %v3574_v40, %v3561_v6  ;;  %v3701_v18 = vmax.f32 %v3493_v25, 0.0  ;;  %7299 = vmatmul.mubr.bf16.vlgmr.msra.gmra.mrb[112].mxu1 %v17706_v47  ;;  %v2885_v27 = vpop.f32.mrb[68].mxu0 }
 0x23e   :  { %v3702_v36 = vmax.f32 %v3494_v59, 0.0  ;;  %v3378_v13 = vadd.f32 %v18021_v0, %v2885_v27  ;;  %7308 = vmatprep.mubr.bf16.mxu1 %v17756_v43  ;;  %7380 = vmatpush1.bf16.msra.mxu1 %v15212_v29  ;;  %v2887_v26 = vpop.f32.mrb[69].mxu0  ;;  %v15226_v59 = vld [vmem:[%s21178_s7 + $0x44c] ss:$16 sps:$4 sm:$0xff]  }
 0x23f   :  { %v18091_v48 = vpack.c.bf16 %v3701_v18, %v3688_v61  ;;  %v3379_v40 = vadd.f32 %v18028_v21, %v2887_v26  ;;  %v2889_v1 = vpop.f32.mrb[70].mxu0  ;;  %6603 = vmatpush1.bf16.msra.mxu0 %v15215_v53  ;;  %7381 = vmatprep.subr.bf16.mxu1 %v15220_v10  ;;  %v15229_v53 = vld [vmem:[%s21178_s7 + $0x524] ss:$16 sps:$4 sm:$0xff]  }
 0x240   :  { %v18097_v34 = vpack.c.bf16 %v3702_v36, %v3689_v4  ;;  %v3391_v29 = vadd.f32 %v18021_v0, %v2889_v1  ;;  %v2822_v6 = vpop.f32.mrb[40].mxu1  ;;  %v2891_v25 = vpop.f32.mrb[71].mxu0  ;;  %6604 = vmatprep.subr.bf16.mxu0 %v15223_v24  ;;  %v15224_v4 = vld [vmem:[%s21178_s7 + $0x448] ss:$16 sps:$4 sm:$0xff]   ;;  %v3586_v36 = vmax.f32 %v3378_v13, 0.0 }
 0x241   :  { %21366 = vst [vmem:[#allocation48_spill] sm:$0xff] %v18091_v48  ;;  %v3506_v10 = vadd.f32 %v17808_v52, %v2822_v6  ;;  %v3392_v61 = vadd.f32 %v18028_v21, %v2891_v25  ;;  %v2824_v18 = vpop.f32.mrb[41].mxu1  ;;  %v15227_v1 = vld [vmem:[%s21178_s7 + $0x520] ss:$16 sps:$4 sm:$0xff]   ;;  %v3587_v6 = vmax.f32 %v3379_v40, 0.0 }
 0x242   :  { %21367 = vst [vmem:[#allocation49_spill] sm:$0xff] %v18097_v34  ;;  %v3599_v27 = vmax.f32 %v3391_v29, 0.0  ;;  %v3507_v24 = vadd.f32 %v17816_v8, %v2824_v18  ;;  %7382 = vmatpush1.bf16.msra.mxu1 %v15218_v5  ;;  %v2826_v26 = vpop.f32.mrb[42].mxu1  ;;  %6548 = vmatmul.mubr.bf16.gmra.mrb[144].mxu0 %v17892_v58  ;;  %v15232_v13 = vld [vmem:[%s21178_s7 + $0x46c] ss:$16 sps:$4 sm:$0xff]  }
 0x243   :  { %v3600_v43 = vmax.f32 %v3392_v61, 0.0  ;;  %v3519_v25 = vadd.f32 %v17808_v52, %v2826_v26  ;;  %v2828_v47 = vpop.f32.mrb[43].mxu1  ;;  %6557 = vmatprep.mubr.bf16.mxu0 %v17942_v33  ;;  %6605 = vmatpush1.bf16.msra.mxu0 %v15221_v56  ;;  %v15235_v40 = vld [vmem:[%s21178_s7 + $0x544] ss:$16 sps:$4 sm:$0xff]   ;;  %v3714_v61 = vmax.f32 %v3506_v10, 0.0 }
 0x244   :  { %v18121_v5 = vpack.c.bf16 %v3599_v27, %v3586_v36  ;;  %v3520_v29 = vadd.f32 %v17816_v8, %v2828_v47  ;;  %7383 = vmatprep.subr.bf16.mxu1 %v15226_v59  ;;  %6606 = vmatprep.subr.bf16.mxu0 %v15229_v53  ;;  %v3715_v49 = vmax.f32 %v3507_v24, 0.0  ;;  %v15230_v59 = vld [vmem:[%s21178_s7 + $0x468] ss:$16 sps:$4 sm:$0xff]   ;;  %v15233_v27 = vld [vmem:[%s21178_s7 + $0x540] ss:$16 sps:$4 sm:$0xff]  }
 0x245   :  { %v18127_v18 = vpack.c.bf16 %v3600_v43, %v3587_v6  ;;  %v3727_v26 = vmax.f32 %v3519_v25, 0.0  ;;  %7309 = vmatmul.mubr.bf16.gmra.mrb[116].mxu1 %v17750_v19  ;;  %v2895_v56 = vpop.f32.mrb[72].mxu0 }
 0x246   :  { %v3728_v55 = vmax.f32 %v3520_v29, 0.0  ;;  %v3404_v36 = vadd.f32 %v18021_v0, %v2895_v56  ;;  %7318 = vmatprep.mubr.bf16.mxu1 %v17802_v46  ;;  %7384 = vmatpush1.bf16.msra.mxu1 %v15224_v4  ;;  %v2897_v47 = vpop.f32.mrb[73].mxu0  ;;  %v15238_v29 = vld [vmem:[%s21178_s7 + $0x48c] ss:$16 sps:$4 sm:$0xff]  }
 0x247   :  { %v18135_v53 = vpack.c.bf16 %v3727_v26, %v3714_v61  ;;  %v3405_v43 = vadd.f32 %v18028_v21, %v2897_v47  ;;  %v2899_v10 = vpop.f32.mrb[74].mxu0  ;;  %6607 = vmatpush1.bf16.msra.mxu0 %v15227_v1  ;;  %7385 = vmatprep.subr.bf16.mxu1 %v15232_v13  ;;  %v15241_v1 = vld [vmem:[%s21178_s7 + $0x564] ss:$16 sps:$4 sm:$0xff]  }
 0x248   :  { %v18141_v24 = vpack.c.bf16 %v3728_v55, %v3715_v49  ;;  %v3417_v4 = vadd.f32 %v18021_v0, %v2899_v10  ;;  %v2832_v6 = vpop.f32.mrb[44].mxu1  ;;  %v2901_v25 = vpop.f32.mrb[75].mxu0  ;;  %6608 = vmatprep.subr.bf16.mxu0 %v15235_v40  ;;  %v15236_v49 = vld [vmem:[%s21178_s7 + $0x488] ss:$16 sps:$4 sm:$0xff]   ;;  %v15239_v55 = vld [vmem:[%s21178_s7 + $0x560] ss:$16 sps:$4 sm:$0xff]  }
 0x249   :  { %v3532_v13 = vadd.f32 %v17808_v52, %v2832_v6  ;;  %v3418_v61 = vadd.f32 %v18028_v21, %v2901_v25  ;;  %v2834_v26 = vpop.f32.mrb[45].mxu1  ;;  %v3612_v40 = vmax.f32 %v3404_v36, 0.0  ;;  %v18163_v6 = vld [vmem:[%s21179_s6 + $0x8] sm:$0x1f]  ;;  %v3613_v25 = vmax.f32 %v3405_v43, 0.0 }
 0x24a   :  { %21368 = vst [vmem:[#allocation50_spill] sm:$0xff] %v18141_v24  ;;  %v3625_v56 = vmax.f32 %v3417_v4, 0.0  ;;  %v3533_v47 = vadd.f32 %v17816_v8, %v2834_v26  ;;  %7386 = vmatpush1.bf16.msra.mxu1 %v15230_v59  ;;  %v2836_v10 = vpop.f32.mrb[46].mxu1  ;;  %6558 = vmatmul.mubr.bf16.gmra.mrb[148].mxu0 %v17936_v31  ;;  %v15244_v36 = vld [vmem:[%s21178_s7 + $0x4ac] ss:$16 sps:$4 sm:$0xff]  }
 0x24b   :  { %v3626_v46 = vmax.f32 %v3418_v61, 0.0  ;;  %v3545_v19 = vadd.f32 %v17808_v52, %v2836_v10  ;;  %v2838_v12 = vpop.f32.mrb[47].mxu1  ;;  %6567 = vmatprep.mubr.bf16.mxu0 %v17986_v14  ;;  %6609 = vmatpush1.bf16.msra.mxu0 %v15233_v27  ;;  %v15247_v43 = vld [vmem:[%s21178_s7 + $0x584] ss:$16 sps:$4 sm:$0xff]   ;;  %v3740_v61 = vmax.f32 %v3532_v13, 0.0  ;;  %v18181_v10 = vrot.slane %v18163_v6, %v17455_v28 }
 0x24c   :  { %v18170_v59 = vpack.c.bf16 %v3625_v56, %v3612_v40  ;;  %v3546_v4 = vadd.f32 %v17816_v8, %v2838_v12  ;;  %7387 = vmatprep.subr.bf16.mxu1 %v15238_v29  ;;  %6610 = vmatprep.subr.bf16.mxu0 %v15241_v1  ;;  %v3741_v40 = vmax.f32 %v3533_v47, 0.0  ;;  %v15251_v28 = vld [vmem:[%s21178_s7 + $0x5a0] ss:$16 sps:$4 sm:$0xff]  }
 0x24d   :  { %v18176_v52 = vpack.c.bf16 %v3626_v46, %v3613_v25  ;;  %v3753_v26 = vmax.f32 %v3545_v19, 0.0  ;;  %7319 = vmatmul.mubr.bf16.gmra.mrb[120].mxu1 %v17796_v3  ;;  %v2905_v27 = vpop.f32.mrb[76].mxu0  ;;  %v15242_v46 = vld [vmem:[%s21178_s7 + $0x4a8] ss:$16 sps:$4 sm:$0xff]   ;;  %v18190_v19 = vrot.slane %v18163_v6, %v17458_v42 }
 0x24e   :  { %v3754_v56 = vmax.f32 %v3546_v4, 0.0  ;;  %v3430_v12 = vadd.f32 %v18021_v0, %v2905_v27  ;;  %7328 = vmatprep.mubr.bf16.mxu1 %v17854_v50  ;;  %7388 = vmatpush1.bf16.msra.mxu1 %v15236_v49  ;;  %v2907_v8 = vpop.f32.mrb[77].mxu0  ;;  %v15245_v49 = vld [vmem:[%s21178_s7 + $0x580] ss:$16 sps:$4 sm:$0xff]  }
 0x24f   :  { %v18192_v29 = vpack.c.bf16 %v3753_v26, %v3740_v61  ;;  %v3431_v1 = vadd.f32 %v18028_v21, %v2907_v8  ;;  %v2909_v13 = vpop.f32.mrb[78].mxu0  ;;  %6611 = vmatpush1.bf16.msra.mxu0 %v15239_v55  ;;  %7389 = vmatprep.subr.bf16.mxu1 %v15244_v36  ;;  %v15250_v61 = vld [vmem:[%s21178_s7 + $0x4cc] ss:$16 sps:$4 sm:$0xff]   ;;  %v15253_v55 = vld [vmem:[%s21178_s7 + $0x5a4] ss:$16 sps:$4 sm:$0xff]  }
 0x250   :  { %v18198_v47 = vpack.c.bf16 %v3754_v56, %v3741_v40  ;;  %v3443_v25 = vadd.f32 %v18021_v0, %v2909_v13  ;;  %v2911_v4 = vpop.f32.mrb[79].mxu0  ;;  %v2988_v27 = vpop.f32.mrb[48].mxu1  ;;  %6612 = vmatprep.subr.bf16.mxu0 %v15247_v43  ;;  %v15248_v40 = vld [vmem:[%s21178_s7 + $0x4c8] ss:$16 sps:$4 sm:$0xff]   ;;  %v3638_v56 = vmax.f32 %v3430_v12, 0.0 }
 0x251   :  { %v3444_v36 = vadd.f32 %v18028_v21, %v2911_v4  ;;  %v3354_v26 = vadd.f32 %v18181_v10, %v2988_v27  ;;  %v2990_v8 = vpop.f32.mrb[49].mxu1  ;;  %v3639_v4 = vmax.f32 %v3431_v1, 0.0  ;;  %v15256_v12 = vld [vmem:[%s21178_s7 + $0x4ec] ss:$16 sps:$4 sm:$0xff]   ;;  %v15259_v1 = vld [vmem:[%s21178_s7 + $0x5c4] ss:$16 sps:$4 sm:$0xff]  }
 0x252   :  { %v3651_v13 = vmax.f32 %v3443_v25, 0.0  ;;  %v3355_v43 = vadd.f32 %v18190_v19, %v2990_v8  ;;  %7390 = vmatpush1.bf16.msra.mxu1 %v15242_v46  ;;  %v2992_v42 = vpop.f32.mrb[50].mxu1  ;;  %6568 = vmatmul.mubr.bf16.gmra.mrb[152].mxu0 %v17980_v41 }
 0x253   :  { %v3652_v50 = vmax.f32 %v3444_v36, 0.0  ;;  %v3367_v27 = vadd.f32 %v18181_v10, %v2992_v42  ;;  %v2994_v3 = vpop.f32.mrb[51].mxu1  ;;  %6577 = vmatprep.mubr.bf16.mxu0 %v18039_v54  ;;  %6613 = vmatpush1.bf16.msra.mxu0 %v15245_v49  ;;  %v3562_v42 = vmax.f32 %v3354_v26, 0.0 }
 0x254   :  { %v18222_v46 = vpack.c.bf16 %v3651_v13, %v3638_v56  ;;  %v3368_v25 = vadd.f32 %v18190_v19, %v2994_v3  ;;  %7391 = vmatprep.subr.bf16.mxu1 %v15250_v61  ;;  %6614 = vmatprep.subr.bf16.mxu0 %v15253_v55  ;;  %v3563_v23 = vmax.f32 %v3355_v43, 0.0  ;;  %v15254_v61 = vld [vmem:[%s21178_s7 + $0x4e8] ss:$16 sps:$4 sm:$0xff]   ;;  %v15257_v13 = vld [vmem:[%s21178_s7 + $0x5c0] ss:$16 sps:$4 sm:$0xff]  }
 0x255   :  { %v18228_v36 = vpack.c.bf16 %v3652_v50, %v3639_v4  ;;  %v3575_v8 = vmax.f32 %v3367_v27, 0.0  ;;  %7329 = vmatmul.mubr.bf16.gmra.mrb[124].mxu1 %v17848_v38  ;;  %v2915_v49 = vpop.f32.mrb[80].mxu0 }
 0x256   :  { %v3576_v51 = vmax.f32 %v3368_v25, 0.0  ;;  %v3456_v56 = vadd.f32 %v18021_v0, %v2915_v49  ;;  %7338 = vmatprep.mubr.bf16.mxu1 %v17898_v60  ;;  %7392 = vmatpush1.bf16.msra.mxu1 %v15248_v40  ;;  %v2917_v3 = vpop.f32.mrb[81].mxu0  ;;  %v15262_v25 = vld [vmem:[%s21178_s7 + $0x50c] ss:$16 sps:$4 sm:$0xff]  }
 0x257   :  { %v18236_v55 = vpack.c.bf16 %v3575_v8, %v3562_v42  ;;  %v3457_v50 = vadd.f32 %v18028_v21, %v2917_v3  ;;  %v2919_v26 = vpop.f32.mrb[82].mxu0  ;;  %6615 = vmatpush1.bf16.msra.mxu0 %v15251_v28  ;;  %7393 = vmatprep.subr.bf16.mxu1 %v15256_v12  ;;  %v15265_v28 = vld [vmem:[%s21178_s7 + $0x5e4] ss:$16 sps:$4 sm:$0xff]  }
 0x258   :  { %v18242_v43 = vpack.c.bf16 %v3576_v51, %v3563_v23  ;;  %v3469_v40 = vadd.f32 %v18021_v0, %v2919_v26  ;;  %v2921_v4 = vpop.f32.mrb[83].mxu0  ;;  %v2998_v27 = vpop.f32.mrb[52].mxu1  ;;  %6616 = vmatprep.subr.bf16.mxu0 %v15259_v1  ;;  %v15260_v51 = vld [vmem:[%s21178_s7 + $0x508] ss:$16 sps:$4 sm:$0xff]   ;;  %v3664_v23 = vmax.f32 %v3456_v56, 0.0 }
 0x259   :  { %v3470_v12 = vadd.f32 %v18028_v21, %v2921_v4  ;;  %v3380_v42 = vadd.f32 %v18181_v10, %v2998_v27  ;;  %v3000_v8 = vpop.f32.mrb[53].mxu1  ;;  %v15263_v26 = vld [vmem:[%s21178_s7 + $0x5e0] ss:$16 sps:$4 sm:$0xff]   ;;  %v3665_v4 = vmax.f32 %v3457_v50, 0.0  ;;  %v15268_v56 = vld [vmem:[%s21178_s7 + $0x52c] ss:$16 sps:$4 sm:$0xff]  }
 0x25a   :  { %v3677_v49 = vmax.f32 %v3469_v40, 0.0  ;;  %v3381_v1 = vadd.f32 %v18190_v19, %v3000_v8  ;;  %7394 = vmatpush1.bf16.msra.mxu1 %v15254_v61  ;;  %v3002_v3 = vpop.f32.mrb[54].mxu1  ;;  %6578 = vmatmul.mubr.bf16.gmra.mrb[156].mxu0 %v18033_v63  ;;  %v15271_v50 = vld [vmem:[%s21178_s7 + $0x604] ss:$16 sps:$4 sm:$0xff]  }
 0x25b   :  { %v3678_v60 = vmax.f32 %v3470_v12, 0.0  ;;  %v3393_v27 = vadd.f32 %v18181_v10, %v3002_v3  ;;  %v3004_v38 = vpop.f32.mrb[55].mxu1  ;;  %6617 = vmatpush1.bf16.msra.mxu0 %v15257_v13  ;;  %6620 = vmatprep.mubr.bf16.mxu0 %v17868_v2  ;;  %v3588_v8 = vmax.f32 %v3380_v42, 0.0 }
 0x25c   :  { %v18266_v61 = vpack.c.bf16 %v3677_v49, %v3664_v23  ;;  %v3394_v40 = vadd.f32 %v18190_v19, %v3004_v38  ;;  %7395 = vmatprep.subr.bf16.mxu1 %v15262_v25  ;;  %6618 = vmatprep.subr.bf16.mxu0 %v15265_v28  ;;  %v3589_v57 = vmax.f32 %v3381_v1, 0.0  ;;  %v15266_v25 = vld [vmem:[%s21178_s7 + $0x528] ss:$16 sps:$4 sm:$0xff]   ;;  %v15269_v49 = vld [vmem:[%s21178_s7 + $0x600] ss:$16 sps:$4 sm:$0xff]  }
 0x25d   :  { %v18272_v12 = vpack.c.bf16 %v3678_v60, %v3665_v4  ;;  %v3601_v13 = vmax.f32 %v3393_v27, 0.0  ;;  %7339 = vmatmul.mubr.bf16.gmra.mrb[128].mxu1 %v17892_v58  ;;  %v2925_v3 = vpop.f32.mrb[84].mxu0 }
 0x25e   :  { %v3602_v9 = vmax.f32 %v3394_v40, 0.0  ;;  %v3482_v23 = vadd.f32 %v18021_v0, %v2925_v3  ;;  %7348 = vmatprep.mubr.bf16.mxu1 %v17942_v33  ;;  %7396 = vmatpush1.bf16.msra.mxu1 %v15260_v51  ;;  %v2927_v38 = vpop.f32.mrb[85].mxu0  ;;  %v15274_v40 = vld [vmem:[%s21178_s7 + $0x54c] ss:$16 sps:$4 sm:$0xff]  }
 0x25f   :  { %v18280_v28 = vpack.c.bf16 %v3601_v13, %v3588_v8  ;;  %v3483_v60 = vadd.f32 %v18028_v21, %v2927_v38  ;;  %v2929_v42 = vpop.f32.mrb[86].mxu0  ;;  %6619 = vmatpush1.bf16.msra.mxu0 %v15263_v26  ;;  %7397 = vmatprep.subr.bf16.mxu1 %v15268_v56  ;;  %v15277_v26 = vld [vmem:[%s21178_s7 + $0x624] ss:$16 sps:$4 sm:$0xff]  }
 0x260   :  { %v18286_v1 = vpack.c.bf16 %v3602_v9, %v3589_v57  ;;  %v3495_v51 = vadd.f32 %v18021_v0, %v2929_v42  ;;  %v2931_v4 = vpop.f32.mrb[87].mxu0  ;;  %v3008_v27 = vpop.f32.mrb[56].mxu1  ;;  %6701 = vmatprep.subr.bf16.mxu0 %v15271_v50  ;;  %v15272_v9 = vld [vmem:[%s21178_s7 + $0x548] ss:$16 sps:$4 sm:$0xff]   ;;  %v3690_v57 = vmax.f32 %v3482_v23, 0.0 }
 0x261   :  { %21369 = vst [vmem:[#allocation51_spill] sm:$0xff] %v18280_v28  ;;  %v3496_v56 = vadd.f32 %v18028_v21, %v2931_v4  ;;  %v3406_v8 = vadd.f32 %v18181_v10, %v3008_v27  ;;  %v3010_v13 = vpop.f32.mrb[57].mxu1  ;;  %v15275_v42 = vld [vmem:[%s21178_s7 + $0x620] ss:$16 sps:$4 sm:$0xff]   ;;  %v3691_v4 = vmax.f32 %v3483_v60, 0.0 }
 0x262   :  { %v3703_v3 = vmax.f32 %v3495_v51, 0.0  ;;  %v3407_v50 = vadd.f32 %v18190_v19, %v3010_v13  ;;  %7398 = vmatpush1.bf16.msra.mxu1 %v15266_v25  ;;  %v3012_v38 = vpop.f32.mrb[58].mxu1  ;;  %6621 = vmatmul.mubr.bf16.vlgmr.msra.gmra.mrb[128].mxu0 %v17862_v62  ;;  %v15280_v23 = vld [vmem:[%s21178_s7 + $0x56c] ss:$16 sps:$4 sm:$0xff]   ;;  %v15283_v60 = vld [vmem:[%s21178_s7 + $0x644] ss:$16 sps:$4 sm:$0xff]  }
 0x263   :  { %v3704_v33 = vmax.f32 %v3496_v56, 0.0  ;;  %v3419_v27 = vadd.f32 %v18181_v10, %v3012_v38  ;;  %v3014_v58 = vpop.f32.mrb[59].mxu1  ;;  %6630 = vmatprep.mubr.bf16.mxu0 %v17912_v37  ;;  %6702 = vmatpush1.bf16.msra.mxu0 %v15269_v49  ;;  %v3614_v13 = vmax.f32 %v3406_v8, 0.0 }
 0x264   :  { %v18310_v25 = vpack.c.bf16 %v3703_v3, %v3690_v57  ;;  %v3420_v51 = vadd.f32 %v18190_v19, %v3014_v58  ;;  %7399 = vmatprep.subr.bf16.mxu1 %v15274_v40  ;;  %6703 = vmatprep.subr.bf16.mxu0 %v15277_v26  ;;  %v3615_v15 = vmax.f32 %v3407_v50, 0.0  ;;  %v15278_v40 = vld [vmem:[%s21178_s7 + $0x568] ss:$16 sps:$4 sm:$0xff]   ;;  %v15281_v3 = vld [vmem:[%s21178_s7 + $0x640] ss:$16 sps:$4 sm:$0xff]  }
 0x265   :  { %v18316_v56 = vpack.c.bf16 %v3704_v33, %v3691_v4  ;;  %v3627_v38 = vmax.f32 %v3419_v27, 0.0  ;;  %7349 = vmatmul.mubr.bf16.gmra.mrb[132].mxu1 %v17936_v31  ;;  %v2935_v49 = vpop.f32.mrb[88].mxu0 }
 0x266   :  { %v3628_v28 = vmax.f32 %v3420_v51, 0.0  ;;  %v3508_v57 = vadd.f32 %v18021_v0, %v2935_v49  ;;  %7358 = vmatprep.mubr.bf16.mxu1 %v17986_v14  ;;  %7400 = vmatpush1.bf16.msra.mxu1 %v15272_v9  ;;  %v2937_v58 = vpop.f32.mrb[89].mxu0  ;;  %v15286_v51 = vld [vmem:[%s21178_s7 + $0x58c] ss:$16 sps:$4 sm:$0xff]  }
 0x267   :  { %v18324_v26 = vpack.c.bf16 %v3627_v38, %v3614_v13  ;;  %v3509_v33 = vadd.f32 %v18028_v21, %v2937_v58  ;;  %v2939_v8 = vpop.f32.mrb[90].mxu0  ;;  %6704 = vmatpush1.bf16.msra.mxu0 %v15275_v42  ;;  %7401 = vmatprep.subr.bf16.mxu1 %v15280_v23  ;;  %v15289_v42 = vld [vmem:[%s21178_s7 + $0x664] ss:$16 sps:$4 sm:$0xff]  }
 0x268   :  { %v18330_v50 = vpack.c.bf16 %v3628_v28, %v3615_v15  ;;  %v3521_v9 = vadd.f32 %v18021_v0, %v2939_v8  ;;  %v2941_v4 = vpop.f32.mrb[91].mxu0  ;;  %v3018_v27 = vpop.f32.mrb[60].mxu1  ;;  %6705 = vmatprep.subr.bf16.mxu0 %v15283_v60  ;;  %v15284_v15 = vld [vmem:[%s21178_s7 + $0x588] ss:$16 sps:$4 sm:$0xff]   ;;  %v3716_v28 = vmax.f32 %v3508_v57, 0.0 }
 0x269   :  { %21370 = vst [vmem:[#allocation52_spill] sm:$0xff] %v18324_v26  ;;  %v3522_v23 = vadd.f32 %v18028_v21, %v2941_v4  ;;  %v3432_v13 = vadd.f32 %v18181_v10, %v3018_v27  ;;  %v3020_v38 = vpop.f32.mrb[61].mxu1  ;;  %v15287_v8 = vld [vmem:[%s21178_s7 + $0x660] ss:$16 sps:$4 sm:$0xff]   ;;  %v3717_v4 = vmax.f32 %v3509_v33, 0.0 }
 0x26a   :  { %21371 = vst [vmem:[#allocation53_spill] sm:$0xff] %v18330_v50  ;;  %v3729_v49 = vmax.f32 %v3521_v9, 0.0  ;;  %v3433_v60 = vadd.f32 %v18190_v19, %v3020_v38  ;;  %7402 = vmatpush1.bf16.msra.mxu1 %v15278_v40  ;;  %v3022_v58 = vpop.f32.mrb[62].mxu1  ;;  %6631 = vmatmul.mubr.bf16.gmra.mrb[132].mxu0 %v17906_v22  ;;  %v15292_v57 = vld [vmem:[%s21178_s7 + $0x5ac] ss:$16 sps:$4 sm:$0xff]  }
 0x26b   :  { %v3730_v14 = vmax.f32 %v3522_v23, 0.0  ;;  %v3445_v27 = vadd.f32 %v18181_v10, %v3022_v58  ;;  %v3024_v31 = vpop.f32.mrb[63].mxu1  ;;  %6640 = vmatprep.mubr.bf16.mxu0 %v17956_v16  ;;  %6706 = vmatpush1.bf16.msra.mxu0 %v15281_v3  ;;  %v15295_v33 = vld [vmem:[%s21178_s7 + $0x684] ss:$16 sps:$4 sm:$0xff]   ;;  %v3640_v38 = vmax.f32 %v3432_v13, 0.0 }
 0x26c   :  { %v18354_v40 = vpack.c.bf16 %v3729_v49, %v3716_v28  ;;  %v3446_v9 = vadd.f32 %v18190_v19, %v3024_v31  ;;  %7403 = vmatprep.subr.bf16.mxu1 %v15286_v51  ;;  %6707 = vmatprep.subr.bf16.mxu0 %v15289_v42  ;;  %v3641_v26 = vmax.f32 %v3433_v60, 0.0  ;;  %v15290_v51 = vld [vmem:[%s21178_s7 + $0x5a8] ss:$16 sps:$4 sm:$0xff]   ;;  %v15293_v49 = vld [vmem:[%s21178_s7 + $0x680] ss:$16 sps:$4 sm:$0xff]  }
 0x26d   :  { %v18360_v23 = vpack.c.bf16 %v3730_v14, %v3717_v4  ;;  %v3653_v58 = vmax.f32 %v3445_v27, 0.0  ;;  %7359 = vmatmul.mubr.bf16.gmra.mrb[136].mxu1 %v17980_v41  ;;  %v2945_v3 = vpop.f32.mrb[92].mxu0 }
 0x26e   :  { %v3654_v50 = vmax.f32 %v3446_v9, 0.0  ;;  %v3534_v28 = vadd.f32 %v18021_v0, %v2945_v3  ;;  %7368 = vmatprep.mubr.bf16.mxu1 %v18039_v54  ;;  %7404 = vmatpush1.bf16.msra.mxu1 %v15284_v15  ;;  %v2947_v31 = vpop.f32.mrb[93].mxu0  ;;  %v15298_v9 = vld [vmem:[%s21178_s7 + $0x5cc] ss:$16 sps:$4 sm:$0xff]  }
 0x26f   :  { %v18368_v42 = vpack.c.bf16 %v3653_v58, %v3640_v38  ;;  %v3535_v14 = vadd.f32 %v18028_v21, %v2947_v31  ;;  %v2949_v13 = vpop.f32.mrb[94].mxu0  ;;  %6708 = vmatpush1.bf16.msra.mxu0 %v15287_v8  ;;  %7405 = vmatprep.subr.bf16.mxu1 %v15292_v57  ;;  %v15301_v8 = vld [vmem:[%s21178_s7 + $0x6a4] ss:$16 sps:$4 sm:$0xff]   ;;  %v18392_v31 = vrot.slane %v18163_v6, %v17631_v32 }
 0x270   :  { %v18374_v60 = vpack.c.bf16 %v3654_v50, %v3641_v26  ;;  %v3547_v15 = vadd.f32 %v18021_v0, %v2949_v13  ;;  %v2951_v4 = vpop.f32.mrb[95].mxu0  ;;  %v3028_v27 = vpop.f32.mrb[64].mxu1  ;;  %6709 = vmatprep.subr.bf16.mxu0 %v15295_v33  ;;  %v15296_v0 = vld [vmem:[%s21178_s7 + $0x5c8] ss:$16 sps:$4 sm:$0xff]   ;;  %v3742_v26 = vmax.f32 %v3534_v28, 0.0 }
 0x271   :  { %v3548_v57 = vadd.f32 %v18028_v21, %v2951_v4  ;;  %v3458_v38 = vadd.f32 %v18181_v10, %v3028_v27  ;;  %v3030_v58 = vpop.f32.mrb[65].mxu1  ;;  %v15299_v21 = vld [vmem:[%s21178_s7 + $0x6a0] ss:$16 sps:$4 sm:$0xff]   ;;  %v3743_v13 = vmax.f32 %v3535_v14, 0.0  ;;  %v15307_v14 = vld [vmem:[%s21178_s7 + $0x6c4] ss:$16 sps:$4 sm:$0xff]  }
 0x272   :  { %v3755_v50 = vmax.f32 %v3547_v15, 0.0  ;;  %v3459_v33 = vadd.f32 %v18190_v19, %v3030_v58  ;;  %7406 = vmatpush1.bf16.msra.mxu1 %v15290_v51  ;;  %v3032_v3 = vpop.f32.mrb[66].mxu1  ;;  %6641 = vmatmul.mubr.bf16.gmra.mrb[136].mxu0 %v17950_v7  ;;  %v18401_v51 = vrot.slane %v18163_v6, %v17637_v44  ;;  %v15304_v15 = vld [vmem:[%s21178_s7 + $0x5ec] ss:$16 sps:$4 sm:$0xff]  }
 0x273   :  { %v3756_v4 = vmax.f32 %v3548_v57, 0.0  ;;  %v3471_v27 = vadd.f32 %v18181_v10, %v3032_v3  ;;  %v3034_v28 = vpop.f32.mrb[67].mxu1  ;;  %6650 = vmatprep.mubr.bf16.mxu0 %v18002_v35  ;;  %6710 = vmatpush1.bf16.msra.mxu0 %v15293_v49  ;;  %v3666_v49 = vmax.f32 %v3458_v38, 0.0 }
 0x274   :  { %v18406_v58 = vpack.c.bf16 %v3755_v50, %v3742_v26  ;;  %v3472_v32 = vadd.f32 %v18190_v19, %v3034_v28  ;;  %7407 = vmatprep.subr.bf16.mxu1 %v15298_v9  ;;  %6711 = vmatprep.subr.bf16.mxu0 %v15301_v8  ;;  %v3667_v54 = vmax.f32 %v3459_v33, 0.0  ;;  %v15302_v8 = vld [vmem:[%s21178_s7 + $0x5e8] ss:$16 sps:$4 sm:$0xff]  }
 0x275   :  { %v18412_v57 = vpack.c.bf16 %v3756_v4, %v3743_v13  ;;  %v3679_v3 = vmax.f32 %v3471_v27, 0.0  ;;  %7369 = vmatmul.mubr.bf16.gmra.mrb[140].mxu1 %v18033_v63  ;;  %v3101_v44 = vpop.f32.mrb[96].mxu0  ;;  %v15310_v27 = vld [vmem:[%s21178_s7 + $0x60c] ss:$16 sps:$4 sm:$0xff]  }
 0x276   :  { %v3680_v41 = vmax.f32 %v3472_v32, 0.0  ;;  %v3356_v26 = vadd.f32 %v18392_v31, %v3101_v44  ;;  %7408 = vmatpush1.bf16.msra.mxu1 %v15296_v0  ;;  %7411 = vmatprep.mubr.bf16.mxu1 %v17868_v2  ;;  %v3103_v9 = vpop.f32.mrb[97].mxu0  ;;  %v15305_v32 = vld [vmem:[%s21178_s7 + $0x6c0] ss:$16 sps:$4 sm:$0xff]  }
 0x277   :  { %v18420_v50 = vpack.c.bf16 %v3679_v3, %v3666_v49  ;;  %v3357_v38 = vadd.f32 %v18401_v51, %v3103_v9  ;;  %v3105_v13 = vpop.f32.mrb[98].mxu0  ;;  %6712 = vmatpush1.bf16.msra.mxu0 %v15299_v21  ;;  %7409 = vmatprep.subr.bf16.mxu1 %v15304_v15  ;;  %v15313_v21 = vld [vmem:[%s21178_s7 + $0x6e4] ss:$16 sps:$4 sm:$0xff]  }
 0x278   :  { %v18426_v44 = vpack.c.bf16 %v3680_v41, %v3667_v54  ;;  %v3369_v0 = vadd.f32 %v18392_v31, %v3105_v13  ;;  %v3038_v33 = vpop.f32.mrb[68].mxu1  ;;  %v3107_v4 = vpop.f32.mrb[99].mxu0  ;;  %6713 = vmatprep.subr.bf16.mxu0 %v15307_v14  ;;  %v15308_v41 = vld [vmem:[%s21178_s7 + $0x608] ss:$16 sps:$4 sm:$0xff]   ;;  %v3564_v54 = vmax.f32 %v3356_v26, 0.0 }
 0x279   :  { %21372 = vst [vmem:[#allocation54_spill] sm:$0xff] %v18420_v50  ;;  %v3484_v28 = vadd.f32 %v18181_v10, %v3038_v33  ;;  %v3370_v15 = vadd.f32 %v18401_v51, %v3107_v4  ;;  %v3040_v49 = vpop.f32.mrb[69].mxu1  ;;  %v15311_v13 = vld [vmem:[%s21178_s7 + $0x6e0] ss:$16 sps:$4 sm:$0xff]   ;;  %v3565_v33 = vmax.f32 %v3357_v38, 0.0 }
 0x27a   :  { %21373 = vst [vmem:[#allocation55_spill] sm:$0xff] %v18426_v44  ;;  %v3577_v3 = vmax.f32 %v3369_v0, 0.0  ;;  %v3485_v14 = vadd.f32 %v18190_v19, %v3040_v49  ;;  %7410 = vmatpush1.bf16.msra.mxu1 %v15302_v8  ;;  %v3042_v9 = vpop.f32.mrb[70].mxu1  ;;  %6651 = vmatmul.mubr.bf16.gmra.mrb[140].mxu0 %v17995_v20  ;;  %v15316_v26 = vld [vmem:[%s21178_s7 + $0x62c] ss:$16 sps:$4 sm:$0xff]  }
 0x27b   :  { %v3578_v2 = vmax.f32 %v3370_v15, 0.0  ;;  %v3497_v4 = vadd.f32 %v18181_v10, %v3042_v9  ;;  %v3044_v63 = vpop.f32.mrb[71].mxu1  ;;  %6660 = vmatprep.mubr.bf16.mxu0 %v18053_v45  ;;  %6714 = vmatpush1.bf16.msra.mxu0 %v15305_v32  ;;  %v15319_v38 = vld [vmem:[%s21178_s7 + $0x704] ss:$16 sps:$4 sm:$0xff]   ;;  %v3692_v15 = vmax.f32 %v3484_v28, 0.0 }
 0x27c   :  { %v18450_v8 = vpack.c.bf16 %v3577_v3, %v3564_v54  ;;  %v3498_v0 = vadd.f32 %v18190_v19, %v3044_v63  ;;  %7492 = vmatprep.subr.bf16.mxu1 %v15310_v27  ;;  %6715 = vmatprep.subr.bf16.mxu0 %v15313_v21  ;;  %v3693_v50 = vmax.f32 %v3485_v14, 0.0  ;;  %v15314_v27 = vld [vmem:[%s21178_s7 + $0x628] ss:$16 sps:$4 sm:$0xff]   ;;  %v15317_v3 = vld [vmem:[%s21178_s7 + $0x700] ss:$16 sps:$4 sm:$0xff]  }
 0x27d   :  { %v18456_v49 = vpack.c.bf16 %v3578_v2, %v3565_v33  ;;  %v3705_v9 = vmax.f32 %v3497_v4, 0.0  ;;  %7412 = vmatmul.mubr.bf16.vlgmr.msra.gmra.mrb[112].mxu1 %v17862_v62  ;;  %v3111_v32 = vpop.f32.mrb[100].mxu0 }
 0x27e   :  { %21374 = vst [vmem:[#allocation56_spill] sm:$0xff] %v18450_v8  ;;  %v3706_v44 = vmax.f32 %v3498_v0, 0.0  ;;  %v3382_v54 = vadd.f32 %v18392_v31, %v3111_v32  ;;  %7421 = vmatprep.mubr.bf16.mxu1 %v17912_v37  ;;  %7493 = vmatpush1.bf16.msra.mxu1 %v15308_v41  ;;  %v3113_v63 = vpop.f32.mrb[101].mxu0  ;;  %v15322_v0 = vld [vmem:[%s21178_s7 + $0x64c] ss:$16 sps:$4 sm:$0xff]  }
 0x27f   :  { %21375 = vst [vmem:[#allocation57_spill] sm:$0xff] %v18456_v49  ;;  %v18464_v21 = vpack.c.bf16 %v3705_v9, %v3692_v15  ;;  %v3383_v2 = vadd.f32 %v18401_v51, %v3113_v63  ;;  %v3115_v28 = vpop.f32.mrb[102].mxu0  ;;  %6716 = vmatpush1.bf16.msra.mxu0 %v15311_v13  ;;  %7494 = vmatprep.subr.bf16.mxu1 %v15316_v26  ;;  %v15325_v13 = vld [vmem:[%s21178_s7 + $0x724] ss:$16 sps:$4 sm:$0xff]  }
 0x280   :  { %v18470_v14 = vpack.c.bf16 %v3706_v44, %v3693_v50  ;;  %v3395_v41 = vadd.f32 %v18392_v31, %v3115_v28  ;;  %v3048_v33 = vpop.f32.mrb[72].mxu1  ;;  %v3117_v4 = vpop.f32.mrb[103].mxu0  ;;  %6717 = vmatprep.subr.bf16.mxu0 %v15319_v38  ;;  %v15320_v50 = vld [vmem:[%s21178_s7 + $0x648] ss:$16 sps:$4 sm:$0xff]   ;;  %v3590_v44 = vmax.f32 %v3382_v54, 0.0 }
 0x281   :  { %v3510_v26 = vadd.f32 %v18181_v10, %v3048_v33  ;;  %v3396_v15 = vadd.f32 %v18401_v51, %v3117_v4  ;;  %v3050_v9 = vpop.f32.mrb[73].mxu1  ;;  %v15323_v28 = vld [vmem:[%s21178_s7 + $0x720] ss:$16 sps:$4 sm:$0xff]   ;;  %v3591_v33 = vmax.f32 %v3383_v2, 0.0  ;;  %v15328_v54 = vld [vmem:[%s21178_s7 + $0x66c] ss:$16 sps:$4 sm:$0xff]  }
 0x282   :  { %v3603_v32 = vmax.f32 %v3395_v41, 0.0  ;;  %v3511_v38 = vadd.f32 %v18190_v19, %v3050_v9  ;;  %7495 = vmatpush1.bf16.msra.mxu1 %v15314_v27  ;;  %v3052_v63 = vpop.f32.mrb[74].mxu1  ;;  %6661 = vmatmul.mubr.bf16.gmra.mrb[144].mxu0 %v18047_v11  ;;  %v15331_v2 = vld [vmem:[%s21178_s7 + $0x744] ss:$16 sps:$4 sm:$0xff]  }
 0x283   :  { %v3604_v37 = vmax.f32 %v3396_v15, 0.0  ;;  %v3523_v4 = vadd.f32 %v18181_v10, %v3052_v63  ;;  %v3054_v62 = vpop.f32.mrb[75].mxu1  ;;  %6670 = vmatprep.mubr.bf16.mxu0 %v18097_v34  ;;  %6718 = vmatpush1.bf16.msra.mxu0 %v15317_v3  ;;  %v3718_v15 = vmax.f32 %v3510_v26, 0.0 }
 0x284   :  { %v18494_v27 = vpack.c.bf16 %v3603_v32, %v3590_v44  ;;  %v3524_v41 = vadd.f32 %v18190_v19, %v3054_v62  ;;  %7496 = vmatprep.subr.bf16.mxu1 %v15322_v0  ;;  %6719 = vmatprep.subr.bf16.mxu0 %v15325_v13  ;;  %v3719_v8 = vmax.f32 %v3511_v38, 0.0  ;;  %v15326_v0 = vld [vmem:[%s21178_s7 + $0x668] ss:$16 sps:$4 sm:$0xff]   ;;  %v15329_v32 = vld [vmem:[%s21178_s7 + $0x740] ss:$16 sps:$4 sm:$0xff]  }
 0x285   :  { %v18500_v9 = vpack.c.bf16 %v3604_v37, %v3591_v33  ;;  %v3731_v63 = vmax.f32 %v3523_v4, 0.0  ;;  %7422 = vmatmul.mubr.bf16.gmra.mrb[116].mxu1 %v17906_v22  ;;  %v3121_v3 = vpop.f32.mrb[104].mxu0 }
 0x286   :  { %v3732_v49 = vmax.f32 %v3524_v41, 0.0  ;;  %v3408_v44 = vadd.f32 %v18392_v31, %v3121_v3  ;;  %7431 = vmatprep.mubr.bf16.mxu1 %v17956_v16  ;;  %7497 = vmatpush1.bf16.msra.mxu1 %v15320_v50  ;;  %v3123_v62 = vpop.f32.mrb[105].mxu0  ;;  %v15334_v41 = vld [vmem:[%s21178_s7 + $0x68c] ss:$16 sps:$4 sm:$0xff]  }
 0x287   :  { %v18508_v13 = vpack.c.bf16 %v3731_v63, %v3718_v15  ;;  %v3409_v37 = vadd.f32 %v18401_v51, %v3123_v62  ;;  %v3125_v26 = vpop.f32.mrb[106].mxu0  ;;  %6720 = vmatpush1.bf16.msra.mxu0 %v15323_v28  ;;  %7498 = vmatprep.subr.bf16.mxu1 %v15328_v54  ;;  %v15337_v28 = vld [vmem:[%s21178_s7 + $0x764] ss:$16 sps:$4 sm:$0xff]  }
 0x288   :  { %v18514_v38 = vpack.c.bf16 %v3732_v49, %v3719_v8  ;;  %v3421_v50 = vadd.f32 %v18392_v31, %v3125_v26  ;;  %v3058_v33 = vpop.f32.mrb[76].mxu1  ;;  %v3127_v4 = vpop.f32.mrb[107].mxu0  ;;  %6721 = vmatprep.subr.bf16.mxu0 %v15331_v2  ;;  %v15332_v8 = vld [vmem:[%s21178_s7 + $0x688] ss:$16 sps:$4 sm:$0xff]   ;;  %v3616_v49 = vmax.f32 %v3408_v44, 0.0 }
 0x289   :  { %v3536_v54 = vadd.f32 %v18181_v10, %v3058_v33  ;;  %v3422_v15 = vadd.f32 %v18401_v51, %v3127_v4  ;;  %v3060_v63 = vpop.f32.mrb[77].mxu1  ;;  %v15335_v26 = vld [vmem:[%s21178_s7 + $0x760] ss:$16 sps:$4 sm:$0xff]   ;;  %v3617_v33 = vmax.f32 %v3409_v37, 0.0  ;;  %v15340_v44 = vld [vmem:[%s21178_s7 + $0x6ac] ss:$16 sps:$4 sm:$0xff]  }
 0x28a   :  { %v3629_v3 = vmax.f32 %v3421_v50, 0.0  ;;  %v3537_v2 = vadd.f32 %v18190_v19, %v3060_v63  ;;  %7499 = vmatpush1.bf16.msra.mxu1 %v15326_v0  ;;  %v3062_v62 = vpop.f32.mrb[78].mxu1  ;;  %6671 = vmatmul.mubr.bf16.gmra.mrb[148].mxu0 %v18091_v48  ;;  %v15343_v37 = vld [vmem:[%s21178_s7 + $0x784] ss:$16 sps:$4 sm:$0xff]  }
 0x28b   :  { %v3630_v16 = vmax.f32 %v3422_v15, 0.0  ;;  %v3549_v4 = vadd.f32 %v18181_v10, %v3062_v62  ;;  %v3064_v22 = vpop.f32.mrb[79].mxu1  ;;  %6680 = vmatprep.mubr.bf16.mxu0 %v18141_v24  ;;  %6722 = vmatpush1.bf16.msra.mxu0 %v15329_v32  ;;  %v3744_v15 = vmax.f32 %v3536_v54, 0.0  ;;  %v21377_v62 = vsub.s32 4, %v17434_v30 }
 0x28c   :  { %v18538_v0 = vpack.c.bf16 %v3629_v3, %v3616_v49  ;;  %v3550_v50 = vadd.f32 %v18190_v19, %v3064_v22  ;;  %7500 = vmatprep.subr.bf16.mxu1 %v15334_v41  ;;  %6723 = vmatprep.subr.bf16.mxu0 %v15337_v28  ;;  %v3745_v3 = vmax.f32 %v3537_v2, 0.0 }
 0x28d   :  { %v18544_v10 = vpack.c.bf16 %v3630_v16, %v3617_v33  ;;  %v3757_v63 = vmax.f32 %v3549_v4, 0.0  ;;  %7432 = vmatmul.mubr.bf16.gmra.mrb[120].mxu1 %v17950_v7  ;;  %v3131_v32 = vpop.f32.mrb[108].mxu0  ;;  %v18550_v49 = vrot.slane %v18163_v6, %v21377_v62  ;;  %v15338_v16 = vld [vmem:[%s21178_s7 + $0x6a8] ss:$16 sps:$4 sm:$0xff]   ;;  %v15341_v6 = vld [vmem:[%s21178_s7 + $0x780] ss:$16 sps:$4 sm:$0xff]  }
 0x28e   :  { %21376 = vst [vmem:[#allocation58_spill] sm:$0xff] %v18538_v0  ;;  %v3758_v22 = vmax.f32 %v3550_v50, 0.0  ;;  %v3434_v19 = vadd.f32 %v18392_v31, %v3131_v32  ;;  %7441 = vmatprep.mubr.bf16.mxu1 %v18002_v35  ;;  %7501 = vmatpush1.bf16.msra.mxu1 %v15332_v8  ;;  %v3133_v41 = vpop.f32.mrb[109].mxu0  ;;  %v15346_v50 = vld [vmem:[%s21178_s7 + $0x6cc] ss:$16 sps:$4 sm:$0xff]  }
 0x28f   :  { %v18557_v28 = vpack.c.bf16 %v3757_v63, %v3744_v15  ;;  %v3435_v54 = vadd.f32 %v18401_v51, %v3133_v41  ;;  %v3135_v30 = vpop.f32.mrb[110].mxu0  ;;  %6724 = vmatpush1.bf16.msra.mxu0 %v15335_v26  ;;  %7502 = vmatprep.subr.bf16.mxu1 %v15340_v44  ;;  %v15349_v26 = vld [vmem:[%s21178_s7 + $0x7a4] ss:$16 sps:$4 sm:$0xff]   ;;  %v15344_v32 = vld [vmem:[%s21178_s7 + $0x6c8] ss:$16 sps:$4 sm:$0xff]  }
 0x290   :  { %v18563_v2 = vpack.c.bf16 %v3758_v22, %v3745_v3  ;;  %v3447_v8 = vadd.f32 %v18392_v31, %v3135_v30  ;;  %v3137_v33 = vpop.f32.mrb[111].mxu0  ;;  %v13598_v4 = vpop.f32.mrb[80].mxu1  ;;  %6725 = vmatprep.subr.bf16.mxu0 %v15343_v37  ;;  %v3642_v62 = vmax.f32 %v3434_v19, 0.0  ;;  %v15347_v41 = vld [vmem:[%s21178_s7 + $0x7a0] ss:$16 sps:$4 sm:$0xff]  }
 0x291   :  { %v3448_v44 = vadd.f32 %v18401_v51, %v3137_v33  ;;  %v3384_v15 = vadd.f32 %v13598_v4, %v18550_v49  ;;  %v3214_v63 = vpop.f32.mrb[81].mxu1  ;;  %v3643_v30 = vmax.f32 %v3435_v54, 0.0  ;;  %v15352_v19 = vld [vmem:[%s21178_s7 + $0x6ec] ss:$16 sps:$4 sm:$0xff]   ;;  %v15355_v54 = vld [vmem:[%s21178_s7 + $0x7c4] ss:$16 sps:$4 sm:$0xff]  }
 0x292   :  { %v3655_v3 = vmax.f32 %v3447_v8, 0.0  ;;  %v3358_v37 = vadd.f32 %v18550_v49, %v3214_v63  ;;  %7503 = vmatpush1.bf16.msra.mxu1 %v15338_v16  ;;  %v13599_v22 = vpop.f32.mrb[82].mxu1  ;;  %6681 = vmatmul.mubr.bf16.gmra.mrb[152].mxu0 %v18135_v53 }
 0x293   :  { %v3656_v33 = vmax.f32 %v3448_v44, 0.0  ;;  %v3397_v4 = vadd.f32 %v13599_v22, %v18550_v49  ;;  %v3217_v35 = vpop.f32.mrb[83].mxu1  ;;  %6690 = vmatprep.mubr.bf16.mxu0 %v18198_v47  ;;  %6726 = vmatpush1.bf16.msra.mxu0 %v15341_v6  ;;  %v3592_v63 = vmax.f32 %v3384_v15, 0.0 }
 0x294   :  { %v18587_v16 = vpack.c.bf16 %v3655_v3, %v3642_v62  ;;  %v3371_v8 = vadd.f32 %v18550_v49, %v3217_v35  ;;  %7504 = vmatprep.subr.bf16.mxu1 %v15346_v50  ;;  %6727 = vmatprep.subr.bf16.mxu0 %v15349_v26  ;;  %v3566_v7 = vmax.f32 %v3358_v37, 0.0  ;;  %v15350_v50 = vld [vmem:[%s21178_s7 + $0x6e8] ss:$16 sps:$4 sm:$0xff]   ;;  %v15353_v37 = vld [vmem:[%s21178_s7 + $0x7c0] ss:$16 sps:$4 sm:$0xff]  }
 0x295   :  { %v18593_v44 = vpack.c.bf16 %v3656_v33, %v3643_v30  ;;  %v3605_v22 = vmax.f32 %v3397_v4, 0.0  ;;  %7442 = vmatmul.mubr.bf16.gmra.mrb[124].mxu1 %v17995_v20  ;;  %v3141_v6 = vpop.f32.mrb[112].mxu0 }
 0x296   :  { %v3579_v0 = vmax.f32 %v3371_v8, 0.0  ;;  %v3460_v62 = vadd.f32 %v18392_v31, %v3141_v6  ;;  %7451 = vmatprep.mubr.bf16.mxu1 %v18053_v45  ;;  %7505 = vmatpush1.bf16.msra.mxu1 %v15344_v32  ;;  %v3143_v35 = vpop.f32.mrb[113].mxu0  ;;  %v15358_v8 = vld [vmem:[%s21178_s7 + $0x70c] ss:$16 sps:$4 sm:$0xff]  }
 0x297   :  { %v18601_v26 = vpack.c.bf16 %v3605_v22, %v3592_v63  ;;  %v3461_v15 = vadd.f32 %v18401_v51, %v3143_v35  ;;  %v3145_v3 = vpop.f32.mrb[114].mxu0  ;;  %6728 = vmatpush1.bf16.msra.mxu0 %v15347_v41  ;;  %7506 = vmatprep.subr.bf16.mxu1 %v15352_v19  ;;  %v15361_v41 = vld [vmem:[%s21178_s7 + $0x7e4] ss:$16 sps:$4 sm:$0xff]  }
 0x298   :  { %v18607_v30 = vpack.c.bf16 %v3579_v0, %v3566_v7  ;;  %v3473_v32 = vadd.f32 %v18392_v31, %v3145_v3  ;;  %v3147_v33 = vpop.f32.mrb[115].mxu0  ;;  %v13602_v4 = vpop.f32.mrb[84].mxu1  ;;  %6729 = vmatprep.subr.bf16.mxu0 %v15355_v54  ;;  %v15356_v7 = vld [vmem:[%s21178_s7 + $0x708] ss:$16 sps:$4 sm:$0xff]   ;;  %v3668_v0 = vmax.f32 %v3460_v62, 0.0 }
 0x299   :  { %21378 = vst [vmem:[#allocation59_spill] sm:$0xff] %v18601_v26  ;;  %v3474_v19 = vadd.f32 %v18401_v51, %v3147_v33  ;;  %v3436_v63 = vadd.f32 %v13602_v4, %v18550_v49  ;;  %v3230_v22 = vpop.f32.mrb[85].mxu1  ;;  %v15359_v3 = vld [vmem:[%s21178_s7 + $0x7e0] ss:$16 sps:$4 sm:$0xff]   ;;  %v3669_v33 = vmax.f32 %v3461_v15, 0.0 }
 0x29a   :  { %21379 = vst [vmem:[#allocation60_spill] sm:$0xff] %v18607_v30  ;;  %v3681_v6 = vmax.f32 %v3473_v32, 0.0  ;;  %v3410_v54 = vadd.f32 %v18550_v49, %v3230_v22  ;;  %7507 = vmatpush1.bf16.msra.mxu1 %v15350_v50  ;;  %v13603_v35 = vpop.f32.mrb[86].mxu1  ;;  %6691 = vmatmul.mubr.bf16.gmra.mrb[156].mxu0 %v18192_v29  ;;  %v15364_v62 = vld [vmem:[%s21178_s7 + $0x72c] ss:$16 sps:$4 sm:$0xff]  }
 0x29b   :  { %v3682_v45 = vmax.f32 %v3474_v19, 0.0  ;;  %v3449_v4 = vadd.f32 %v13603_v35, %v18550_v49  ;;  %v3233_v20 = vpop.f32.mrb[87].mxu1  ;;  %6730 = vmatpush1.bf16.msra.mxu0 %v15353_v37  ;;  %6733 = vmatprep.mubr.bf16.mxu0 %v18083_v17  ;;  %v15367_v15 = vld [vmem:[%s21178_s7 + $0x804] ss:$16 sps:$4 sm:$0xff]   ;;  %v3644_v22 = vmax.f32 %v3436_v63, 0.0 }
 0x29c   :  { %v18631_v50 = vpack.c.bf16 %v3681_v6, %v3668_v0  ;;  %v3423_v32 = vadd.f32 %v18550_v49, %v3233_v20  ;;  %7508 = vmatprep.subr.bf16.mxu1 %v15358_v8  ;;  %6731 = vmatprep.subr.bf16.mxu0 %v15361_v41  ;;  %v3618_v26 = vmax.f32 %v3410_v54, 0.0  ;;  %v15362_v8 = vld [vmem:[%s21178_s7 + $0x728] ss:$16 sps:$4 sm:$0xff]   ;;  %v15365_v6 = vld [vmem:[%s21178_s7 + $0x800] ss:$16 sps:$4 sm:$0xff]  }
 0x29d   :  { %v18637_v19 = vpack.c.bf16 %v3682_v45, %v3669_v33  ;;  %v3657_v37 = vmax.f32 %v3449_v4, 0.0  ;;  %7452 = vmatmul.mubr.bf16.gmra.mrb[128].mxu1 %v18047_v11  ;;  %v3151_v35 = vpop.f32.mrb[116].mxu0 }
 0x29e   :  { %21380 = vst [vmem:[#allocation61_spill] sm:$0xff] %v18631_v50  ;;  %v3631_v30 = vmax.f32 %v3423_v32, 0.0  ;;  %v3486_v0 = vadd.f32 %v18392_v31, %v3151_v35  ;;  %7461 = vmatprep.mubr.bf16.mxu1 %v18097_v34  ;;  %7509 = vmatpush1.bf16.msra.mxu1 %v15356_v7  ;;  %v3153_v20 = vpop.f32.mrb[117].mxu0  ;;  %v15370_v32 = vld [vmem:[%s21178_s7 + $0x74c] ss:$16 sps:$4 sm:$0xff]  }
 0x29f   :  { %v18645_v41 = vpack.c.bf16 %v3657_v37, %v3644_v22  ;;  %v3487_v45 = vadd.f32 %v18401_v51, %v3153_v20  ;;  %v3155_v63 = vpop.f32.mrb[118].mxu0  ;;  %6732 = vmatpush1.bf16.msra.mxu0 %v15359_v3  ;;  %7510 = vmatprep.subr.bf16.mxu1 %v15364_v62  ;;  %v15373_v3 = vld [vmem:[%s21178_s7 + $0x824] ss:$16 sps:$4 sm:$0xff]  }
 0x2a0   :  { %v18651_v54 = vpack.c.bf16 %v3631_v30, %v3618_v26  ;;  %v3499_v7 = vadd.f32 %v18392_v31, %v3155_v63  ;;  %v3157_v33 = vpop.f32.mrb[119].mxu0  ;;  %v13606_v4 = vpop.f32.mrb[88].mxu1  ;;  %6814 = vmatprep.subr.bf16.mxu0 %v15367_v15  ;;  %v15368_v26 = vld [vmem:[%s21178_s7 + $0x748] ss:$16 sps:$4 sm:$0xff]   ;;  %v3694_v30 = vmax.f32 %v3486_v0, 0.0 }
 0x2a1   :  { %21381 = vst [vmem:[#allocation62_spill] sm:$0xff] %v18645_v41  ;;  %v3500_v62 = vadd.f32 %v18401_v51, %v3157_v33  ;;  %v3488_v22 = vadd.f32 %v13606_v4, %v18550_v49  ;;  %v3246_v37 = vpop.f32.mrb[89].mxu1  ;;  %v15371_v63 = vld [vmem:[%s21178_s7 + $0x820] ss:$16 sps:$4 sm:$0xff]   ;;  %v3695_v33 = vmax.f32 %v3487_v45, 0.0 }
 0x2a2   :  { %21382 = vst [vmem:[#allocation63_spill] sm:$0xff] %v18651_v54  ;;  %v3707_v35 = vmax.f32 %v3499_v7, 0.0  ;;  %v3462_v15 = vadd.f32 %v18550_v49, %v3246_v37  ;;  %7511 = vmatpush1.bf16.msra.mxu1 %v15362_v8  ;;  %v13607_v20 = vpop.f32.mrb[90].mxu1  ;;  %6734 = vmatmul.mubr.bf16.vlgmr.msra.gmra.mrb[128].mxu0 %v18077_v39  ;;  %v15376_v0 = vld [vmem:[%s21178_s7 + $0x76c] ss:$16 sps:$4 sm:$0xff]  }
 0x2a3   :  { %v3708_v34 = vmax.f32 %v3500_v62, 0.0  ;;  %v3501_v4 = vadd.f32 %v13607_v20, %v18550_v49  ;;  %v3249_v11 = vpop.f32.mrb[91].mxu1  ;;  %6743 = vmatprep.mubr.bf16.mxu0 %v18127_v18  ;;  %6815 = vmatpush1.bf16.msra.mxu0 %v15365_v6  ;;  %v15379_v45 = vld [vmem:[%s21178_s7 + $0x844] ss:$16 sps:$4 sm:$0xff]   ;;  %v3696_v37 = vmax.f32 %v3488_v22, 0.0 }
 0x2a4   :  { %v18675_v8 = vpack.c.bf16 %v3707_v35, %v3694_v30  ;;  %v3475_v7 = vadd.f32 %v18550_v49, %v3249_v11  ;;  %7512 = vmatprep.subr.bf16.mxu1 %v15370_v32  ;;  %6816 = vmatprep.subr.bf16.mxu0 %v15373_v3  ;;  %v3670_v41 = vmax.f32 %v3462_v15, 0.0  ;;  %v15374_v32 = vld [vmem:[%s21178_s7 + $0x768] ss:$16 sps:$4 sm:$0xff]   ;;  %v15377_v35 = vld [vmem:[%s21178_s7 + $0x840] ss:$16 sps:$4 sm:$0xff]  }
 0x2a5   :  { %v18681_v62 = vpack.c.bf16 %v3708_v34, %v3695_v33  ;;  %v3709_v20 = vmax.f32 %v3501_v4, 0.0  ;;  %7462 = vmatmul.mubr.bf16.gmra.mrb[132].mxu1 %v18091_v48  ;;  %v3161_v6 = vpop.f32.mrb[120].mxu0 }
 0x2a6   :  { %21383 = vst [vmem:[#allocation64_spill] sm:$0xff] %v18675_v8  ;;  %v3683_v54 = vmax.f32 %v3475_v7, 0.0  ;;  %v3512_v30 = vadd.f32 %v18392_v31, %v3161_v6  ;;  %7471 = vmatprep.mubr.bf16.mxu1 %v18141_v24  ;;  %7513 = vmatpush1.bf16.msra.mxu1 %v15368_v26  ;;  %v3163_v11 = vpop.f32.mrb[121].mxu0  ;;  %v15382_v7 = vld [vmem:[%s21178_s7 + $0x78c] ss:$16 sps:$4 sm:$0xff]  }
 0x2a7   :  { %21384 = vst [vmem:[#allocation65_spill] sm:$0xff] %v18681_v62  ;;  %v18689_v3 = vpack.c.bf16 %v3709_v20, %v3696_v37  ;;  %v3513_v34 = vadd.f32 %v18401_v51, %v3163_v11  ;;  %v3165_v22 = vpop.f32.mrb[122].mxu0  ;;  %6817 = vmatpush1.bf16.msra.mxu0 %v15371_v63  ;;  %7514 = vmatprep.subr.bf16.mxu1 %v15376_v0  ;;  %v15385_v63 = vld [vmem:[%s21178_s7 + $0x864] ss:$16 sps:$4 sm:$0xff]  }
 0x2a8   :  { %v18695_v15 = vpack.c.bf16 %v3683_v54, %v3670_v41  ;;  %v3525_v26 = vadd.f32 %v18392_v31, %v3165_v22  ;;  %v3167_v33 = vpop.f32.mrb[123].mxu0  ;;  %v13610_v4 = vpop.f32.mrb[92].mxu1  ;;  %6818 = vmatprep.subr.bf16.mxu0 %v15379_v45  ;;  %v15380_v41 = vld [vmem:[%s21178_s7 + $0x788] ss:$16 sps:$4 sm:$0xff]   ;;  %v3720_v54 = vmax.f32 %v3512_v30, 0.0 }
 0x2a9   :  { %21385 = vst [vmem:[#allocation66_spill] sm:$0xff] %v18689_v3  ;;  %v3526_v0 = vadd.f32 %v18401_v51, %v3167_v33  ;;  %v3540_v37 = vadd.f32 %v13610_v4, %v18550_v49  ;;  %v3262_v20 = vpop.f32.mrb[93].mxu1  ;;  %v15383_v22 = vld [vmem:[%s21178_s7 + $0x860] ss:$16 sps:$4 sm:$0xff]   ;;  %v3721_v33 = vmax.f32 %v3513_v34, 0.0 }
 0x2aa   :  { %21386 = vst [vmem:[#allocation67_spill] sm:$0xff] %v18695_v15  ;;  %v3733_v6 = vmax.f32 %v3525_v26, 0.0  ;;  %v3514_v45 = vadd.f32 %v18550_v49, %v3262_v20  ;;  %7515 = vmatpush1.bf16.msra.mxu1 %v15374_v32  ;;  %v13611_v11 = vpop.f32.mrb[94].mxu1  ;;  %6744 = vmatmul.mubr.bf16.gmra.mrb[132].mxu0 %v18121_v5  ;;  %v15388_v30 = vld [vmem:[%s21178_s7 + $0x7ac] ss:$16 sps:$4 sm:$0xff]  }
 0x2ab   :  { %v3734_v24 = vmax.f32 %v3526_v0, 0.0  ;;  %v3553_v4 = vadd.f32 %v13611_v11, %v18550_v49  ;;  %v3265_v48 = vpop.f32.mrb[95].mxu1  ;;  %6753 = vmatprep.mubr.bf16.mxu0 %v18176_v52  ;;  %6819 = vmatpush1.bf16.msra.mxu0 %v15377_v35  ;;  %v15391_v34 = vld [vmem:[%s21178_s7 + $0x884] ss:$16 sps:$4 sm:$0xff]   ;;  %v3748_v20 = vmax.f32 %v3540_v37, 0.0 }
 0x2ac   :  { %v18719_v32 = vpack.c.bf16 %v3733_v6, %v3720_v54  ;;  %v3527_v26 = vadd.f32 %v18550_v49, %v3265_v48  ;;  %7516 = vmatprep.subr.bf16.mxu1 %v15382_v7  ;;  %6820 = vmatprep.subr.bf16.mxu0 %v15385_v63  ;;  %v3722_v3 = vmax.f32 %v3514_v45, 0.0  ;;  %v15386_v49 = vld [vmem:[%s21178_s7 + $0x7a8] ss:$16 sps:$4 sm:$0xff]   ;;  %v15389_v37 = vld [vmem:[%s21178_s7 + $0x880] ss:$16 sps:$4 sm:$0xff]  }
 0x2ad   :  { %v18725_v0 = vpack.c.bf16 %v3734_v24, %v3721_v33  ;;  %v3761_v11 = vmax.f32 %v3553_v4, 0.0  ;;  %7472 = vmatmul.mubr.bf16.gmra.mrb[136].mxu1 %v18135_v53  ;;  %v3171_v35 = vpop.f32.mrb[124].mxu0  ;;  %v15394_v33 = vld [vmem:[%s21178_s7 + $0x7cc] ss:$16 sps:$4 sm:$0xff]   ;;  %v15397_v4 = vld [vmem:[%s21178_s7 + $0x8a4] ss:$16 sps:$4 sm:$0xff]  }
 0x2ae   :  { %21387 = vst [vmem:[#allocation68_spill] sm:$0xff] %v18719_v32  ;;  %v3735_v15 = vmax.f32 %v3527_v26, 0.0  ;;  %v3538_v54 = vadd.f32 %v18392_v31, %v3171_v35  ;;  %7481 = vmatprep.mubr.bf16.mxu1 %v18198_v47  ;;  %7517 = vmatpush1.bf16.msra.mxu1 %v15380_v41  ;;  %v3173_v48 = vpop.f32.mrb[125].mxu0 }
 0x2af   :  { %21388 = vst [vmem:[#allocation69_spill] sm:$0xff] %v18725_v0  ;;  %v18733_v7 = vpack.c.bf16 %v3761_v11, %v3748_v20  ;;  %v3539_v24 = vadd.f32 %v18401_v51, %v3173_v48  ;;  %v3175_v63 = vpop.f32.mrb[126].mxu0  ;;  %6821 = vmatpush1.bf16.msra.mxu0 %v15383_v22  ;;  %7518 = vmatprep.subr.bf16.mxu1 %v15388_v30  ;;  %v15403_v11 = vld [vmem:[%s21178_s7 + $0x8c4] ss:$16 sps:$4 sm:$0xff]   ;;  %v15401_v48 = vld [vmem:[%s21178_s7 + $0x8c0] ss:$16 sps:$4 sm:$0xff]  }
 0x2b0   :  { %v18739_v6 = vpack.c.bf16 %v3735_v15, %v3722_v3  ;;  %v3551_v41 = vadd.f32 %v18392_v31, %v3175_v63  ;;  %v3177_v45 = vpop.f32.mrb[127].mxu0  ;;  %6822 = vmatprep.subr.bf16.mxu0 %v15391_v34  ;;  %v3746_v30 = vmax.f32 %v3538_v54, 0.0  ;;  %v15392_v31 = vld [vmem:[%s21178_s7 + $0x7c8] ss:$16 sps:$4 sm:$0xff]   ;;  %v15395_v34 = vld [vmem:[%s21178_s7 + $0x8a0] ss:$16 sps:$4 sm:$0xff]  }
 0x2b1   :  { %21389 = vst [vmem:[#allocation70_spill] sm:$0xff] %v18733_v7  ;;  %v3552_v22 = vadd.f32 %v18401_v51, %v3177_v45  ;;  %v3747_v3 = vmax.f32 %v3539_v24, 0.0  ;;  %v15400_v51 = vld [vmem:[%s21178_s7 + $0x7ec] ss:$16 sps:$4 sm:$0xff]   ;;  %v15398_v54 = vld [vmem:[%s21178_s7 + $0x7e8] ss:$16 sps:$4 sm:$0xff]  }
 0x2b2   :  { %21390 = vst [vmem:[#allocation71_spill] sm:$0xff] %v18739_v6  ;;  %v3759_v26 = vmax.f32 %v3551_v41, 0.0  ;;  %7519 = vmatpush1.bf16.msra.mxu1 %v15386_v49  ;;  %6754 = vmatmul.mubr.bf16.gmra.mrb[136].mxu0 %v18170_v59  ;;  %v15406_v49 = vld [vmem:[%s21178_s7 + $0x80c] ss:$16 sps:$4 sm:$0xff]   ;;  %v15409_v24 = vld [vmem:[%s21178_s7 + $0x8e4] ss:$16 sps:$4 sm:$0xff]  }
 0x2b3   :  { %v3760_v15 = vmax.f32 %v3552_v22, 0.0  ;;  %6763 = vmatprep.mubr.bf16.mxu0 %v18228_v36  ;;  %6823 = vmatpush1.bf16.msra.mxu0 %v15389_v37  ;;  %v15404_v63 = vld [vmem:[%s21178_s7 + $0x808] ss:$16 sps:$4 sm:$0xff]   ;;  %v15407_v37 = vld [vmem:[%s21178_s7 + $0x8e0] ss:$16 sps:$4 sm:$0xff]  }
 0x2b4   :  { %v18760_v20 = vpack.c.bf16 %v3759_v26, %v3746_v30  ;;  %7520 = vmatprep.subr.bf16.mxu1 %v15394_v33  ;;  %6824 = vmatprep.subr.bf16.mxu0 %v15397_v4  ;;  %v15412_v41 = vld [vmem:[%s21178_s7 + $0x82c] ss:$16 sps:$4 sm:$0xff]   ;;  %v15415_v45 = vld [vmem:[%s21178_s7 + $0x904] ss:$16 sps:$4 sm:$0xff]   ;;  %v15410_v33 = vld [vmem:[%s21178_s7 + $0x828] ss:$16 sps:$4 sm:$0xff]  }
 0x2b5   :  { %v18765_v35 = vpack.c.bf16 %v3760_v15, %v3747_v3  ;;  %7482 = vmatmul.mubr.bf16.gmra.mrb[140].mxu1 %v18192_v29  ;;  %v15413_v4 = vld [vmem:[%s21178_s7 + $0x900] ss:$16 sps:$4 sm:$0xff]   ;;  %v15418_v22 = vld [vmem:[%s21178_s7 + $0x84c] ss:$16 sps:$4 sm:$0xff]   ;;  %v15421_v30 = vld [vmem:[%s21178_s7 + $0x924] ss:$16 sps:$4 sm:$0xff]  }
 0x2b6   :  { %21391 = vst [vmem:[#allocation72_spill] sm:$0xff] %v18760_v20  ;;  %7521 = vmatpush1.bf16.msra.mxu1 %v15392_v31  ;;  %7524 = vmatprep.mubr.bf16.mxu1 %v18083_v17  ;;  %v15416_v26 = vld [vmem:[%s21178_s7 + $0x848] ss:$16 sps:$4 sm:$0xff]   ;;  %v15419_v31 = vld [vmem:[%s21178_s7 + $0x920] ss:$16 sps:$4 sm:$0xff]  }
 0x2b7   :  { %21392 = vst [vmem:[#allocation73_spill] sm:$0xff] %v18765_v35  ;;  %6825 = vmatpush1.bf16.msra.mxu0 %v15395_v34  ;;  %7522 = vmatprep.subr.bf16.mxu1 %v15400_v51  ;;  %v15424_v3 = vld [vmem:[%s21178_s7 + $0x86c] ss:$16 sps:$4 sm:$0xff]   ;;  %v15427_v15 = vld [vmem:[%s21178_s7 + $0x944] ss:$16 sps:$4 sm:$0xff]  }
 0x2b8   :  { %6826 = vmatprep.subr.bf16.mxu0 %v15403_v11  ;;  %v15422_v34 = vld [vmem:[%s21178_s7 + $0x868] ss:$16 sps:$4 sm:$0xff]   ;;  %v15425_v51 = vld [vmem:[%s21178_s7 + $0x940] ss:$16 sps:$4 sm:$0xff]   ;;  %v15430_v11 = vld [vmem:[%s21178_s7 + $0x88c] ss:$16 sps:$4 sm:$0xff]  }
 0x2ba   :  { %7523 = vmatpush1.bf16.msra.mxu1 %v15398_v54  ;;  %6764 = vmatmul.mubr.bf16.gmra.mrb[140].mxu0 %v18222_v46  ;;  %v15433_v54 = vld [vmem:[%s21178_s7 + $0x964] ss:$16 sps:$4 sm:$0xff]  }
 0x2bb   :  { %6773 = vmatprep.mubr.bf16.mxu0 %v18272_v12  ;;  %6827 = vmatpush1.bf16.msra.mxu0 %v15401_v48  ;;  %v15428_v48 = vld [vmem:[%s21178_s7 + $0x888] ss:$16 sps:$4 sm:$0xff]  }
 0x2bc   :  { %7605 = vmatprep.subr.bf16.mxu1 %v15406_v49  ;;  %6828 = vmatprep.subr.bf16.mxu0 %v15409_v24  ;;  %v15431_v49 = vld [vmem:[%s21178_s7 + $0x960] ss:$16 sps:$4 sm:$0xff]   ;;  %v15436_v24 = vld [vmem:[%s21178_s7 + $0x8ac] ss:$16 sps:$4 sm:$0xff]  }
 0x2bd   :  { %7525 = vmatmul.mubr.bf16.vlgmr.msra.gmra.mrb[112].mxu1 %v18077_v39 }
 0x2be   :  { %7534 = vmatprep.mubr.bf16.mxu1 %v18127_v18  ;;  %7606 = vmatpush1.bf16.msra.mxu1 %v15404_v63  ;;  %v15439_v63 = vld [vmem:[%s21178_s7 + $0x984] ss:$16 sps:$4 sm:$0xff]  }
 0x2bf   :  { %6829 = vmatpush1.bf16.msra.mxu0 %v15407_v37  ;;  %7607 = vmatprep.subr.bf16.mxu1 %v15412_v41  ;;  %v15434_v37 = vld [vmem:[%s21178_s7 + $0x8a8] ss:$16 sps:$4 sm:$0xff]   ;;  %v15437_v41 = vld [vmem:[%s21178_s7 + $0x980] ss:$16 sps:$4 sm:$0xff]  }
 0x2c0   :  { %6830 = vmatprep.subr.bf16.mxu0 %v15415_v45  ;;  %v15442_v45 = vld [vmem:[%s21178_s7 + $0x8cc] ss:$16 sps:$4 sm:$0xff]  }
 0x2c2   :  { %7608 = vmatpush1.bf16.msra.mxu1 %v15410_v33  ;;  %6774 = vmatmul.mubr.bf16.gmra.mrb[144].mxu0 %v18266_v61  ;;  %v15445_v33 = vld [vmem:[%s21178_s7 + $0x9a4] ss:$16 sps:$4 sm:$0xff]  }
 0x2c3   :  { %6783 = vmatprep.mubr.bf16.mxu0 %v18316_v56  ;;  %6831 = vmatpush1.bf16.msra.mxu0 %v15413_v4  ;;  %v15440_v4 = vld [vmem:[%s21178_s7 + $0x8c8] ss:$16 sps:$4 sm:$0xff]  }
 0x2c4   :  { %7609 = vmatprep.subr.bf16.mxu1 %v15418_v22  ;;  %6832 = vmatprep.subr.bf16.mxu0 %v15421_v30  ;;  %v15443_v22 = vld [vmem:[%s21178_s7 + $0x9a0] ss:$16 sps:$4 sm:$0xff]   ;;  %v15448_v30 = vld [vmem:[%s21178_s7 + $0x8ec] ss:$16 sps:$4 sm:$0xff]  }
 0x2c5   :  { %7535 = vmatmul.mubr.bf16.gmra.mrb[116].mxu1 %v18121_v5 }
 0x2c6   :  { %7544 = vmatprep.mubr.bf16.mxu1 %v18176_v52  ;;  %7610 = vmatpush1.bf16.msra.mxu1 %v15416_v26  ;;  %v15451_v26 = vld [vmem:[%s21178_s7 + $0x9c4] ss:$16 sps:$4 sm:$0xff]  }
 0x2c7   :  { %6833 = vmatpush1.bf16.msra.mxu0 %v15419_v31  ;;  %7611 = vmatprep.subr.bf16.mxu1 %v15424_v3  ;;  %v15446_v31 = vld [vmem:[%s21178_s7 + $0x8e8] ss:$16 sps:$4 sm:$0xff]   ;;  %v15449_v3 = vld [vmem:[%s21178_s7 + $0x9c0] ss:$16 sps:$4 sm:$0xff]  }
 0x2c8   :  { %6834 = vmatprep.subr.bf16.mxu0 %v15427_v15  ;;  %v15454_v15 = vld [vmem:[%s21178_s7 + $0x90c] ss:$16 sps:$4 sm:$0xff]  }
 0x2ca   :  { %7612 = vmatpush1.bf16.msra.mxu1 %v15422_v34  ;;  %6784 = vmatmul.mubr.bf16.gmra.mrb[148].mxu0 %v18310_v25  ;;  %v15457_v34 = vld [vmem:[%s21178_s7 + $0x9e4] ss:$16 sps:$4 sm:$0xff]  }
 0x2cb   :  { %6793 = vmatprep.mubr.bf16.mxu0 %v18360_v23  ;;  %6835 = vmatpush1.bf16.msra.mxu0 %v15425_v51  ;;  %v15452_v51 = vld [vmem:[%s21178_s7 + $0x908] ss:$16 sps:$4 sm:$0xff]  }
 0x2cc   :  { %7613 = vmatprep.subr.bf16.mxu1 %v15430_v11  ;;  %6836 = vmatprep.subr.bf16.mxu0 %v15433_v54  ;;  %v15455_v11 = vld [vmem:[%s21178_s7 + $0x9e0] ss:$16 sps:$4 sm:$0xff]   ;;  %v15460_v54 = vld [vmem:[%s21178_s7 + $0x92c] ss:$16 sps:$4 sm:$0xff]  }
 0x2cd   :  { %7545 = vmatmul.mubr.bf16.gmra.mrb[120].mxu1 %v18170_v59 }
 0x2ce   :  { %7554 = vmatprep.mubr.bf16.mxu1 %v18228_v36  ;;  %7614 = vmatpush1.bf16.msra.mxu1 %v15428_v48  ;;  %v15463_v48 = vld [vmem:[%s21178_s7 + $0xa04] ss:$16 sps:$4 sm:$0xff]  }
 0x2cf   :  { %6837 = vmatpush1.bf16.msra.mxu0 %v15431_v49  ;;  %7615 = vmatprep.subr.bf16.mxu1 %v15436_v24  ;;  %v15458_v49 = vld [vmem:[%s21178_s7 + $0x928] ss:$16 sps:$4 sm:$0xff]   ;;  %v15461_v24 = vld [vmem:[%s21178_s7 + $0xa00] ss:$16 sps:$4 sm:$0xff]  }
 0x2d0   :  { %6838 = vmatprep.subr.bf16.mxu0 %v15439_v63  ;;  %v15464_v63 = vld [vmem:[%s21178_s7 + $0x948] ss:$16 sps:$4 sm:$0xff]  }
 0x2d2   :  { %7616 = vmatpush1.bf16.msra.mxu1 %v15434_v37  ;;  %6794 = vmatmul.mubr.bf16.gmra.mrb[152].mxu0 %v18354_v40  ;;  %v15466_v37 = vld [vmem:[%s21178_s7 + $0x94c] ss:$16 sps:$4 sm:$0xff]  }
 0x2d3   :  { %6803 = vmatprep.mubr.bf16.mxu0 %v18412_v57  ;;  %6839 = vmatpush1.bf16.msra.mxu0 %v15437_v41  ;;  %v15469_v41 = vld [vmem:[%s21178_s7 + $0xa24] ss:$16 sps:$4 sm:$0xff]  }
 0x2d4   :  { %7617 = vmatprep.subr.bf16.mxu1 %v15442_v45  ;;  %6840 = vmatprep.subr.bf16.mxu0 %v15445_v33  ;;  %v15467_v45 = vld [vmem:[%s21178_s7 + $0xa20] ss:$16 sps:$4 sm:$0xff]   ;;  %v15472_v33 = vld [vmem:[%s21178_s7 + $0x96c] ss:$16 sps:$4 sm:$0xff]  }
 0x2d5   :  { %7555 = vmatmul.mubr.bf16.gmra.mrb[124].mxu1 %v18222_v46 }
 0x2d6   :  { %7564 = vmatprep.mubr.bf16.mxu1 %v18272_v12  ;;  %7618 = vmatpush1.bf16.msra.mxu1 %v15440_v4  ;;  %v15475_v4 = vld [vmem:[%s21178_s7 + $0xa44] ss:$16 sps:$4 sm:$0xff]  }
 0x2d7   :  { %6841 = vmatpush1.bf16.msra.mxu0 %v15443_v22  ;;  %7619 = vmatprep.subr.bf16.mxu1 %v15448_v30  ;;  %v15470_v22 = vld [vmem:[%s21178_s7 + $0x968] ss:$16 sps:$4 sm:$0xff]   ;;  %v15473_v30 = vld [vmem:[%s21178_s7 + $0xa40] ss:$16 sps:$4 sm:$0xff]  }
 0x2d8   :  { %6842 = vmatprep.subr.bf16.mxu0 %v15451_v26  ;;  %v15478_v26 = vld [vmem:[%s21178_s7 + $0x98c] ss:$16 sps:$4 sm:$0xff]  }
 0x2da   :  { %7620 = vmatpush1.bf16.msra.mxu1 %v15446_v31  ;;  %6804 = vmatmul.mubr.bf16.gmra.mrb[156].mxu0 %v18406_v58  ;;  %v15481_v31 = vld [vmem:[%s21178_s7 + $0xa64] ss:$16 sps:$4 sm:$0xff]  }
 0x2db   :  { %6843 = vmatpush1.bf16.msra.mxu0 %v15449_v3  ;;  %6846 = vmatprep.mubr.bf16.mxu0 %v18242_v43  ;;  %v15476_v3 = vld [vmem:[%s21178_s7 + $0x988] ss:$16 sps:$4 sm:$0xff]  }
 0x2dc   :  { %7621 = vmatprep.subr.bf16.mxu1 %v15454_v15  ;;  %6844 = vmatprep.subr.bf16.mxu0 %v15457_v34  ;;  %v15479_v15 = vld [vmem:[%s21178_s7 + $0xa60] ss:$16 sps:$4 sm:$0xff]   ;;  %v15484_v34 = vld [vmem:[%s21178_s7 + $0x9ac] ss:$16 sps:$4 sm:$0xff]  }
 0x2dd   :  { %7565 = vmatmul.mubr.bf16.gmra.mrb[128].mxu1 %v18266_v61 }
 0x2de   :  { %7574 = vmatprep.mubr.bf16.mxu1 %v18316_v56  ;;  %7622 = vmatpush1.bf16.msra.mxu1 %v15452_v51  ;;  %v21393_v51 = vld [vmem:[#allocation51_spill] sm:$0xff] }
 0x2df   :  { %6845 = vmatpush1.bf16.msra.mxu0 %v15455_v11  ;;  %7623 = vmatprep.subr.bf16.mxu1 %v15460_v54  ;;  %v15487_v11 = vld [vmem:[%s21178_s7 + $0xa84] ss:$16 sps:$4 sm:$0xff]   ;;  %v21394_v54 = vld [vmem:[#allocation53_spill] sm:$0xff] }
 0x2e0   :  { %6927 = vmatprep.subr.bf16.mxu0 %v15463_v48  ;;  %v15482_v48 = vld [vmem:[%s21178_s7 + $0x9a8] ss:$16 sps:$4 sm:$0xff]  }
 0x2e2   :  { %7624 = vmatpush1.bf16.msra.mxu1 %v15458_v49  ;;  %6847 = vmatmul.mubr.bf16.vlgmr.msra.gmra.mrb[128].mxu0 %v18236_v55  ;;  %v15485_v49 = vld [vmem:[%s21178_s7 + $0xa80] ss:$16 sps:$4 sm:$0xff]  }
 0x2e3   :  { %6856 = vmatprep.mubr.bf16.mxu0 %v18286_v1  ;;  %6928 = vmatpush1.bf16.msra.mxu0 %v15461_v24  ;;  %v15490_v24 = vld [vmem:[%s21178_s7 + $0x9cc] ss:$16 sps:$4 sm:$0xff]  }
 0x2e4   :  { %7625 = vmatprep.subr.bf16.mxu1 %v15466_v37  ;;  %6929 = vmatprep.subr.bf16.mxu0 %v15469_v41  ;;  %v15488_v37 = vld [vmem:[%s21178_s7 + $0x9c8] ss:$16 sps:$4 sm:$0xff]   ;;  %v15491_v41 = vld [vmem:[%s21178_s7 + $0xaa0] ss:$16 sps:$4 sm:$0xff]  }
 0x2e5   :  { %7575 = vmatmul.mubr.bf16.gmra.mrb[132].mxu1 %v18310_v25 }
 0x2e6   :  { %7584 = vmatprep.mubr.bf16.mxu1 %v18360_v23  ;;  %7626 = vmatpush1.bf16.msra.mxu1 %v15464_v63  ;;  %v15493_v63 = vld [vmem:[%s21178_s7 + $0xaa4] ss:$16 sps:$4 sm:$0xff]  }
 0x2e7   :  { %6930 = vmatpush1.bf16.msra.mxu0 %v15467_v45  ;;  %7627 = vmatprep.subr.bf16.mxu1 %v15472_v33  ;;  %v15496_v45 = vld [vmem:[%s21178_s7 + $0x9ec] ss:$16 sps:$4 sm:$0xff]   ;;  %v21395_v33 = vld [vmem:[#allocation52_spill] sm:$0xff] }
 0x2e8   :  { %6931 = vmatprep.subr.bf16.mxu0 %v15475_v4  ;;  %v15499_v4 = vld [vmem:[%s21178_s7 + $0xac4] ss:$16 sps:$4 sm:$0xff]  }
 0x2ea   :  { %7628 = vmatpush1.bf16.msra.mxu1 %v15470_v22  ;;  %6857 = vmatmul.mubr.bf16.gmra.mrb[132].mxu0 %v21393_v51  ;;  %v15494_v22 = vld [vmem:[%s21178_s7 + $0x9e8] ss:$16 sps:$4 sm:$0xff]  }
 0x2eb   :  { %6866 = vmatprep.mubr.bf16.mxu0 %v21394_v54  ;;  %6932 = vmatpush1.bf16.msra.mxu0 %v15473_v30  ;;  %v15497_v30 = vld [vmem:[%s21178_s7 + $0xac0] ss:$16 sps:$4 sm:$0xff]  }
 0x2ec   :  { %7629 = vmatprep.subr.bf16.mxu1 %v15478_v26  ;;  %6933 = vmatprep.subr.bf16.mxu0 %v15481_v31  ;;  %v15502_v26 = vld [vmem:[%s21178_s7 + $0xa0c] ss:$16 sps:$4 sm:$0xff]   ;;  %v15505_v31 = vld [vmem:[%s21178_s7 + $0xae4] ss:$16 sps:$4 sm:$0xff]  }
 0x2ed   :  { %7585 = vmatmul.mubr.bf16.gmra.mrb[136].mxu1 %v18354_v40 }
 0x2ee   :  { %7594 = vmatprep.mubr.bf16.mxu1 %v18412_v57  ;;  %7630 = vmatpush1.bf16.msra.mxu1 %v15476_v3  ;;  %v15500_v3 = vld [vmem:[%s21178_s7 + $0xa08] ss:$16 sps:$4 sm:$0xff]  }
 0x2ef   :  { %6934 = vmatpush1.bf16.msra.mxu0 %v15479_v15  ;;  %7631 = vmatprep.subr.bf16.mxu1 %v15484_v34  ;;  %v15503_v15 = vld [vmem:[%s21178_s7 + $0xae0] ss:$16 sps:$4 sm:$0xff]   ;;  %v21396_v34 = vld [vmem:[#allocation55_spill] sm:$0xff] }
 0x2f0   :  { %6935 = vmatprep.subr.bf16.mxu0 %v15487_v11  ;;  %v15508_v11 = vld [vmem:[%s21178_s7 + $0xa2c] ss:$16 sps:$4 sm:$0xff]  }
 0x2f2   :  { %7632 = vmatpush1.bf16.msra.mxu1 %v15482_v48  ;;  %6867 = vmatmul.mubr.bf16.gmra.mrb[136].mxu0 %v21395_v33  ;;  %v15511_v48 = vld [vmem:[%s21178_s7 + $0xb04] ss:$16 sps:$4 sm:$0xff]  }
 0x2f3   :  { %6876 = vmatprep.mubr.bf16.mxu0 %v18374_v60  ;;  %6936 = vmatpush1.bf16.msra.mxu0 %v15485_v49  ;;  %v15506_v49 = vld [vmem:[%s21178_s7 + $0xa28] ss:$16 sps:$4 sm:$0xff]  }
 0x2f4   :  { %7633 = vmatprep.subr.bf16.mxu1 %v15490_v24  ;;  %6937 = vmatprep.subr.bf16.mxu0 %v15493_v63  ;;  %v15509_v24 = vld [vmem:[%s21178_s7 + $0xb00] ss:$16 sps:$4 sm:$0xff]   ;;  %v15514_v63 = vld [vmem:[%s21178_s7 + $0xa4c] ss:$16 sps:$4 sm:$0xff]  }
 0x2f5   :  { %7595 = vmatmul.mubr.bf16.gmra.mrb[140].mxu1 %v18406_v58 }
 0x2f6   :  { %7634 = vmatpush1.bf16.msra.mxu1 %v15488_v37  ;;  %7637 = vmatprep.mubr.bf16.mxu1 %v18242_v43  ;;  %v15517_v37 = vld [vmem:[%s21178_s7 + $0xb24] ss:$16 sps:$4 sm:$0xff]  }
 0x2f7   :  { %6938 = vmatpush1.bf16.msra.mxu0 %v15491_v41  ;;  %7635 = vmatprep.subr.bf16.mxu1 %v15496_v45  ;;  %v15512_v41 = vld [vmem:[%s21178_s7 + $0xa48] ss:$16 sps:$4 sm:$0xff]   ;;  %v21397_v45 = vld [vmem:[#allocation54_spill] sm:$0xff] }
 0x2f8   :  { %6939 = vmatprep.subr.bf16.mxu0 %v15499_v4  ;;  %v15515_v4 = vld [vmem:[%s21178_s7 + $0xb20] ss:$16 sps:$4 sm:$0xff]  }
 0x2fa   :  { %7636 = vmatpush1.bf16.msra.mxu1 %v15494_v22  ;;  %6877 = vmatmul.mubr.bf16.gmra.mrb[140].mxu0 %v18368_v42  ;;  %v15520_v22 = vld [vmem:[%s21178_s7 + $0xa6c] ss:$16 sps:$4 sm:$0xff]  }
 0x2fb   :  { %6886 = vmatprep.mubr.bf16.mxu0 %v21396_v34  ;;  %6940 = vmatpush1.bf16.msra.mxu0 %v15497_v30  ;;  %v15523_v30 = vld [vmem:[%s21178_s7 + $0xb44] ss:$16 sps:$4 sm:$0xff]  }
 0x2fc   :  { %7718 = vmatprep.subr.bf16.mxu1 %v15502_v26  ;;  %6941 = vmatprep.subr.bf16.mxu0 %v15505_v31  ;;  %v15518_v26 = vld [vmem:[%s21178_s7 + $0xa68] ss:$16 sps:$4 sm:$0xff]   ;;  %v15521_v31 = vld [vmem:[%s21178_s7 + $0xb40] ss:$16 sps:$4 sm:$0xff]  }
 0x2fd   :  { %7638 = vmatmul.mubr.bf16.vlgmr.msra.gmra.mrb[112].mxu1 %v18236_v55 }
 0x2fe   :  { %7647 = vmatprep.mubr.bf16.mxu1 %v18286_v1  ;;  %7719 = vmatpush1.bf16.msra.mxu1 %v15500_v3  ;;  %v15526_v3 = vld [vmem:[%s21178_s7 + $0xa8c] ss:$16 sps:$4 sm:$0xff]  }
 0x2ff   :  { %6942 = vmatpush1.bf16.msra.mxu0 %v15503_v15  ;;  %7720 = vmatprep.subr.bf16.mxu1 %v15508_v11  ;;  %v15529_v15 = vld [vmem:[%s21178_s7 + $0xb64] ss:$16 sps:$4 sm:$0xff]   ;;  %v15524_v11 = vld [vmem:[%s21178_s7 + $0xa88] ss:$16 sps:$4 sm:$0xff]  }
 0x300   :  { %6943 = vmatprep.subr.bf16.mxu0 %v15511_v48  ;;  %v15527_v48 = vld [vmem:[%s21178_s7 + $0xb60] ss:$16 sps:$4 sm:$0xff]  }
 0x302   :  { %7721 = vmatpush1.bf16.msra.mxu1 %v15506_v49  ;;  %6887 = vmatmul.mubr.bf16.gmra.mrb[144].mxu0 %v21397_v45  ;;  %v15532_v49 = vld [vmem:[%s21178_s7 + $0xaac] ss:$16 sps:$4 sm:$0xff]  }
 0x303   :  { %6896 = vmatprep.mubr.bf16.mxu0 %v18470_v14  ;;  %6944 = vmatpush1.bf16.msra.mxu0 %v15509_v24  ;;  %v15535_v24 = vld [vmem:[%s21178_s7 + $0xb84] ss:$16 sps:$4 sm:$0xff]  }
 0x304   :  { %7722 = vmatprep.subr.bf16.mxu1 %v15514_v63  ;;  %6945 = vmatprep.subr.bf16.mxu0 %v15517_v37  ;;  %v15530_v63 = vld [vmem:[%s21178_s7 + $0xaa8] ss:$16 sps:$4 sm:$0xff]   ;;  %v15533_v37 = vld [vmem:[%s21178_s7 + $0xb80] ss:$16 sps:$4 sm:$0xff]  }
 0x305   :  { %7648 = vmatmul.mubr.bf16.gmra.mrb[116].mxu1 %v21393_v51 }
 0x306   :  { %7657 = vmatprep.mubr.bf16.mxu1 %v21394_v54  ;;  %7723 = vmatpush1.bf16.msra.mxu1 %v15512_v41  ;;  %v15538_v41 = vld [vmem:[%s21178_s7 + $0xacc] ss:$16 sps:$4 sm:$0xff]  }
 0x307   :  { %6946 = vmatpush1.bf16.msra.mxu0 %v15515_v4  ;;  %7724 = vmatprep.subr.bf16.mxu1 %v15520_v22  ;;  %v15541_v4 = vld [vmem:[%s21178_s7 + $0xba4] ss:$16 sps:$4 sm:$0xff]   ;;  %v15536_v22 = vld [vmem:[%s21178_s7 + $0xac8] ss:$16 sps:$4 sm:$0xff]  }
 0x308   :  { %6947 = vmatprep.subr.bf16.mxu0 %v15523_v30  ;;  %v15539_v30 = vld [vmem:[%s21178_s7 + $0xba0] ss:$16 sps:$4 sm:$0xff]  }
 0x30a   :  { %7725 = vmatpush1.bf16.msra.mxu1 %v15518_v26  ;;  %6897 = vmatmul.mubr.bf16.gmra.mrb[148].mxu0 %v18464_v21  ;;  %v15544_v26 = vld [vmem:[%s21178_s7 + $0xaec] ss:$16 sps:$4 sm:$0xff]  }
 0x30b   :  { %6906 = vmatprep.mubr.bf16.mxu0 %v18514_v38  ;;  %6948 = vmatpush1.bf16.msra.mxu0 %v15521_v31  ;;  %v15547_v31 = vld [vmem:[%s21178_s7 + $0xbc4] ss:$16 sps:$4 sm:$0xff]  }
 0x30c   :  { %7726 = vmatprep.subr.bf16.mxu1 %v15526_v3  ;;  %6949 = vmatprep.subr.bf16.mxu0 %v15529_v15  ;;  %v15542_v3 = vld [vmem:[%s21178_s7 + $0xae8] ss:$16 sps:$4 sm:$0xff]   ;;  %v15545_v15 = vld [vmem:[%s21178_s7 + $0xbc0] ss:$16 sps:$4 sm:$0xff]  }
 0x30d   :  { %7658 = vmatmul.mubr.bf16.gmra.mrb[120].mxu1 %v21395_v33 }
 0x30e   :  { %7667 = vmatprep.mubr.bf16.mxu1 %v18374_v60  ;;  %7727 = vmatpush1.bf16.msra.mxu1 %v15524_v11  ;;  %v15550_v11 = vld [vmem:[%s21178_s7 + $0xb0c] ss:$16 sps:$4 sm:$0xff]  }
 0x30f   :  { %6950 = vmatpush1.bf16.msra.mxu0 %v15527_v48  ;;  %7728 = vmatprep.subr.bf16.mxu1 %v15532_v49  ;;  %v15553_v48 = vld [vmem:[%s21178_s7 + $0xbe4] ss:$16 sps:$4 sm:$0xff]   ;;  %v15548_v49 = vld [vmem:[%s21178_s7 + $0xb08] ss:$16 sps:$4 sm:$0xff]  }
 0x310   :  { %6951 = vmatprep.subr.bf16.mxu0 %v15535_v24  ;;  %v15551_v24 = vld [vmem:[%s21178_s7 + $0xbe0] ss:$16 sps:$4 sm:$0xff]  }
 0x312   :  { %7729 = vmatpush1.bf16.msra.mxu1 %v15530_v63  ;;  %6907 = vmatmul.mubr.bf16.gmra.mrb[152].mxu0 %v18508_v13  ;;  %v21398_v63 = vld [vmem:[#allocation57_spill] sm:$0xff] }
 0x313   :  { %6916 = vmatprep.mubr.bf16.mxu0 %v18563_v2  ;;  %6952 = vmatpush1.bf16.msra.mxu0 %v15533_v37  ;;  %v15556_v37 = vld [vmem:[%s21178_s7 + $0xb2c] ss:$16 sps:$4 sm:$0xff]  }
 0x314   :  { %7730 = vmatprep.subr.bf16.mxu1 %v15538_v41  ;;  %6953 = vmatprep.subr.bf16.mxu0 %v15541_v4  ;;  %v15577_v41 = vld [vmem:[%s21178_s7 + $0xc04] ss:$16 sps:$4 sm:$0xff]   ;;  %v15554_v4 = vld [vmem:[%s21178_s7 + $0xb28] ss:$16 sps:$4 sm:$0xff]  }
 0x315   :  { %7668 = vmatmul.mubr.bf16.gmra.mrb[124].mxu1 %v18368_v42 }
 0x316   :  { %7677 = vmatprep.mubr.bf16.mxu1 %v21396_v34  ;;  %7731 = vmatpush1.bf16.msra.mxu1 %v15536_v22  ;;  %v15559_v22 = vld [vmem:[%s21178_s7 + $0xb4c] ss:$16 sps:$4 sm:$0xff]  }
 0x317   :  { %6954 = vmatpush1.bf16.msra.mxu0 %v15539_v30  ;;  %7732 = vmatprep.subr.bf16.mxu1 %v15544_v26  ;;  %v15575_v30 = vld [vmem:[%s21178_s7 + $0xc00] ss:$16 sps:$4 sm:$0xff]   ;;  %v15583_v26 = vld [vmem:[%s21178_s7 + $0xc24] ss:$16 sps:$4 sm:$0xff]  }
 0x318   :  { %6955 = vmatprep.subr.bf16.mxu0 %v15547_v31  ;;  %v21399_v31 = vld [vmem:[#allocation56_spill] sm:$0xff] }
 0x31a   :  { %7733 = vmatpush1.bf16.msra.mxu1 %v15542_v3  ;;  %6917 = vmatmul.mubr.bf16.gmra.mrb[156].mxu0 %v18557_v28  ;;  %v15557_v3 = vld [vmem:[%s21178_s7 + $0xb48] ss:$16 sps:$4 sm:$0xff]  }
 0x31b   :  { %6956 = vmatpush1.bf16.msra.mxu0 %v15545_v15  ;;  %6959 = vmatprep.mubr.bf16.mxu0 %v21398_v63  ;;  %v15562_v15 = vld [vmem:[%s21178_s7 + $0xb6c] ss:$16 sps:$4 sm:$0xff]  }
 0x31c   :  { %7734 = vmatprep.subr.bf16.mxu1 %v15550_v11  ;;  %6957 = vmatprep.subr.bf16.mxu0 %v15553_v48  ;;  %v15581_v11 = vld [vmem:[%s21178_s7 + $0xc20] ss:$16 sps:$4 sm:$0xff]   ;;  %v15589_v48 = vld [vmem:[%s21178_s7 + $0xc44] ss:$16 sps:$4 sm:$0xff]  }
 0x31d   :  { %7678 = vmatmul.mubr.bf16.gmra.mrb[128].mxu1 %v21397_v45 }
 0x31e   :  { %7687 = vmatprep.mubr.bf16.mxu1 %v18470_v14  ;;  %7735 = vmatpush1.bf16.msra.mxu1 %v15548_v49  ;;  %v15560_v49 = vld [vmem:[%s21178_s7 + $0xb68] ss:$16 sps:$4 sm:$0xff]  }
 0x31f   :  { %6958 = vmatpush1.bf16.msra.mxu0 %v15551_v24  ;;  %7736 = vmatprep.subr.bf16.mxu1 %v15556_v37  ;;  %v15565_v24 = vld [vmem:[%s21178_s7 + $0xb8c] ss:$16 sps:$4 sm:$0xff]   ;;  %v15587_v37 = vld [vmem:[%s21178_s7 + $0xc40] ss:$16 sps:$4 sm:$0xff]  }
 0x320   :  { %7040 = vmatprep.subr.bf16.mxu0 %v15577_v41  ;;  %v15595_v41 = vld [vmem:[%s21178_s7 + $0xc64] ss:$16 sps:$4 sm:$0xff]  }
 0x322   :  { %7737 = vmatpush1.bf16.msra.mxu1 %v15554_v4  ;;  %6960 = vmatmul.mubr.bf16.vlgmr.msra.gmra.mrb[128].mxu0 %v21399_v31  ;;  %v15563_v4 = vld [vmem:[%s21178_s7 + $0xb88] ss:$16 sps:$4 sm:$0xff]  }
 0x323   :  { %6969 = vmatprep.mubr.bf16.mxu0 %v18500_v9  ;;  %7738 = vmatprep.subr.bf16.mxu1 %v15559_v22  ;;  %v15568_v22 = vld [vmem:[%s21178_s7 + $0xbac] ss:$16 sps:$4 sm:$0xff]  }
 0x324   :  { %7041 = vmatpush1.bf16.msra.mxu0 %v15575_v30  ;;  %v15593_v30 = vld [vmem:[%s21178_s7 + $0xc60] ss:$16 sps:$4 sm:$0xff]  }
 0x325   :  { %7688 = vmatmul.mubr.bf16.gmra.mrb[132].mxu1 %v18464_v21  ;;  %7042 = vmatprep.subr.bf16.mxu0 %v15583_v26  ;;  %v15598_v26 = vld [vmem:[%s21178_s7 + $0xc84] ss:$16 sps:$4 sm:$0xff]  }
 0x326   :  { %7697 = vmatprep.mubr.bf16.mxu1 %v18514_v38  ;;  %7739 = vmatpush1.bf16.msra.mxu1 %v15557_v3  ;;  %v15566_v3 = vld [vmem:[%s21178_s7 + $0xba8] ss:$16 sps:$4 sm:$0xff]  }
 0x327   :  { %7740 = vmatprep.subr.bf16.mxu1 %v15562_v15  ;;  %v15571_v15 = vld [vmem:[%s21178_s7 + $0xbcc] ss:$16 sps:$4 sm:$0xff]  }
 0x328   :  { %7043 = vmatpush1.bf16.msra.mxu0 %v15581_v11  ;;  %v15596_v11 = vld [vmem:[%s21178_s7 + $0xc80] ss:$16 sps:$4 sm:$0xff]  }
 0x329   :  { %7044 = vmatprep.subr.bf16.mxu0 %v15589_v48  ;;  %v15604_v48 = vld [vmem:[%s21178_s7 + $0xca4] ss:$16 sps:$4 sm:$0xff]  }
 0x32a   :  { %7741 = vmatpush1.bf16.msra.mxu1 %v15560_v49  ;;  %6970 = vmatmul.mubr.bf16.gmra.mrb[132].mxu0 %v18494_v27  ;;  %v21400_v49 = vld [vmem:[#allocation58_spill] sm:$0xff] }
 0x32b   :  { %6979 = vmatprep.mubr.bf16.mxu0 %v18544_v10  ;;  %7742 = vmatprep.subr.bf16.mxu1 %v15565_v24  ;;  %v15569_v24 = vld [vmem:[%s21178_s7 + $0xbc8] ss:$16 sps:$4 sm:$0xff]  }
 0x32c   :  { %7045 = vmatpush1.bf16.msra.mxu0 %v15587_v37  ;;  %v15574_v37 = vld [vmem:[%s21178_s7 + $0xbec] ss:$16 sps:$4 sm:$0xff]  }
 0x32d   :  { %7698 = vmatmul.mubr.bf16.gmra.mrb[136].mxu1 %v18508_v13  ;;  %7046 = vmatprep.subr.bf16.mxu0 %v15595_v41  ;;  %v15602_v41 = vld [vmem:[%s21178_s7 + $0xca0] ss:$16 sps:$4 sm:$0xff]  }
 0x32e   :  { %7707 = vmatprep.mubr.bf16.mxu1 %v18563_v2  ;;  %7743 = vmatpush1.bf16.msra.mxu1 %v15563_v4  ;;  %v15607_v4 = vld [vmem:[%s21178_s7 + $0xcc4] ss:$16 sps:$4 sm:$0xff]  }
 0x32f   :  { %7744 = vmatprep.subr.bf16.mxu1 %v15568_v22  ;;  %v15572_v22 = vld [vmem:[%s21178_s7 + $0xbe8] ss:$16 sps:$4 sm:$0xff]  }
 0x330   :  { %7047 = vmatpush1.bf16.msra.mxu0 %v15593_v30  ;;  %v15580_v30 = vld [vmem:[%s21178_s7 + $0xc0c] ss:$16 sps:$4 sm:$0xff]  }
 0x331   :  { %7048 = vmatprep.subr.bf16.mxu0 %v15598_v26  ;;  %v15605_v26 = vld [vmem:[%s21178_s7 + $0xcc0] ss:$16 sps:$4 sm:$0xff]  }
 0x332   :  { %7745 = vmatpush1.bf16.msra.mxu1 %v15566_v3  ;;  %6980 = vmatmul.mubr.bf16.gmra.mrb[136].mxu0 %v21400_v49  ;;  %v15613_v3 = vld [vmem:[%s21178_s7 + $0xce4] ss:$16 sps:$4 sm:$0xff]  }
 0x333   :  { %6989 = vmatprep.mubr.bf16.mxu0 %v18593_v44  ;;  %7746 = vmatprep.subr.bf16.mxu1 %v15571_v15  ;;  %v15578_v15 = vld [vmem:[%s21178_s7 + $0xc08] ss:$16 sps:$4 sm:$0xff]  }
 0x334   :  { %7049 = vmatpush1.bf16.msra.mxu0 %v15596_v11  ;;  %v15586_v11 = vld [vmem:[%s21178_s7 + $0xc2c] ss:$16 sps:$4 sm:$0xff]  }
 0x335   :  { %7708 = vmatmul.mubr.bf16.gmra.mrb[140].mxu1 %v18557_v28  ;;  %7050 = vmatprep.subr.bf16.mxu0 %v15604_v48  ;;  %v15611_v48 = vld [vmem:[%s21178_s7 + $0xce0] ss:$16 sps:$4 sm:$0xff]  }
 0x336   :  { %7747 = vmatpush1.bf16.msra.mxu1 %v15569_v24  ;;  %7750 = vmatprep.mubr.bf16.mxu1 %v21398_v63  ;;  %v15616_v24 = vld [vmem:[%s21180_s8 + $0x4] ss:$16 sps:$4 sm:$0xff]  }
 0x337   :  { %7748 = vmatprep.subr.bf16.mxu1 %v15574_v37  ;;  %v15584_v37 = vld [vmem:[%s21178_s7 + $0xc28] ss:$16 sps:$4 sm:$0xff]  }
 0x338   :  { %7051 = vmatpush1.bf16.msra.mxu0 %v15602_v41  ;;  %v15592_v41 = vld [vmem:[%s21178_s7 + $0xc4c] ss:$16 sps:$4 sm:$0xff]  }
 0x339   :  { %7052 = vmatprep.subr.bf16.mxu0 %v15607_v4  ;;  %v15590_v4 = vld [vmem:[%s21178_s7 + $0xc48] ss:$16 sps:$4 sm:$0xff]  }
 0x33a   :  { %7749 = vmatpush1.bf16.msra.mxu1 %v15572_v22  ;;  %6990 = vmatmul.mubr.bf16.gmra.mrb[140].mxu0 %v18587_v16  ;;  %v15601_v22 = vld [vmem:[%s21178_s7 + $0xc6c] ss:$16 sps:$4 sm:$0xff]  }
 0x33b   :  { %6999 = vmatprep.mubr.bf16.mxu0 %v18637_v19  ;;  %7831 = vmatprep.subr.bf16.mxu1 %v15580_v30  ;;  %v15599_v30 = vld [vmem:[%s21178_s7 + $0xc68] ss:$16 sps:$4 sm:$0xff]  }
 0x33c   :  { %7053 = vmatpush1.bf16.msra.mxu0 %v15605_v26  ;;  %v15610_v26 = vld [vmem:[%s21178_s7 + $0xc8c] ss:$16 sps:$4 sm:$0xff]  }
 0x33d   :  { %7751 = vmatmul.mubr.bf16.vlgmr.msra.gmra.mrb[112].mxu1 %v21399_v31  ;;  %7054 = vmatprep.subr.bf16.mxu0 %v15613_v3  ;;  %v15608_v3 = vld [vmem:[%s21178_s7 + $0xc88] ss:$16 sps:$4 sm:$0xff]  }
 0x33e   :  { %7760 = vmatprep.mubr.bf16.mxu1 %v18500_v9  ;;  %7832 = vmatpush1.bf16.msra.mxu1 %v15578_v15  ;;  %v15619_v15 = vld [vmem:[%s21178_s7 + $0xcac] ss:$16 sps:$4 sm:$0xff]  }
 0x33f   :  { %7833 = vmatprep.subr.bf16.mxu1 %v15586_v11  ;;  %v15617_v11 = vld [vmem:[%s21178_s7 + $0xca8] ss:$16 sps:$4 sm:$0xff]  }
 0x340   :  { %7055 = vmatpush1.bf16.msra.mxu0 %v15611_v48  ;;  %v15628_v48 = vld [vmem:[%s21178_s7 + $0xccc] ss:$16 sps:$4 sm:$0xff]  }
 0x341   :  { %10686 = vmatprep.subr.bf16.mxu0 %v15616_v24  ;;  %v15626_v24 = vld [vmem:[%s21178_s7 + $0xcc8] ss:$16 sps:$4 sm:$0xff]  }
 0x342   :  { %7000 = vmatmul.mubr.bf16.gmra.mrb[144].mxu0 %v18631_v50  ;;  %7834 = vmatpush1.bf16.msra.mxu1 %v15584_v37  ;;  %v15637_v37 = vld [vmem:[%s21178_s7 + $0xcec] ss:$16 sps:$4 sm:$0xff]  }
 0x343   :  { %7009 = vmatprep.mubr.bf16.mxu0 %v18681_v62  ;;  %7835 = vmatprep.subr.bf16.mxu1 %v15592_v41  ;;  %v15635_v41 = vld [vmem:[%s21178_s7 + $0xce8] ss:$16 sps:$4 sm:$0xff]  }
 0x345   :  { %7761 = vmatmul.mubr.bf16.gmra.mrb[116].mxu1 %v18494_v27 }
 0x346   :  { %7770 = vmatprep.mubr.bf16.mxu1 %v18544_v10  ;;  %7836 = vmatpush1.bf16.msra.mxu1 %v15590_v4  ;;  %v15646_v4 = vld [vmem:[%s21180_s8 + $0xc] ss:$16 sps:$4 sm:$0xff]  }
 0x347   :  { %7837 = vmatprep.subr.bf16.mxu1 %v15601_v22  ;;  %v21401_v22 = vmov 0  }
 0x34a   :  { %7010 = vmatmul.mubr.bf16.gmra.mrb[148].mxu0 %v18675_v8  ;;  %7838 = vmatpush1.bf16.msra.mxu1 %v15599_v30  ;;  %v15614_v30 = vld [vmem:[%s21180_s8] ss:$16 sps:$4 sm:$0xff]  }
 0x34b   :  { %7019 = vmatprep.mubr.bf16.mxu0 %v18725_v0  ;;  %7839 = vmatprep.subr.bf16.mxu1 %v15610_v26  ;;  %v15622_v26 = vld [vmem:[%s21180_s8 + $0x24] ss:$16 sps:$4 sm:$0xff]  }
 0x34d   :  { %7771 = vmatmul.mubr.bf16.gmra.mrb[120].mxu1 %v21400_v49 }
 0x34e   :  { %7780 = vmatprep.mubr.bf16.mxu1 %v18593_v44  ;;  %7840 = vmatpush1.bf16.msra.mxu1 %v15608_v3  ;;  %v21402_v3 = vld [vmem:[#allocation60_spill] sm:$0xff] }
 0x34f   :  { %7841 = vmatprep.subr.bf16.mxu1 %v15619_v15  ;;  %v15620_v15 = vld [vmem:[%s21180_s8 + $0x20] ss:$16 sps:$4 sm:$0xff]  }
 0x352   :  { %7020 = vmatmul.mubr.bf16.gmra.mrb[152].mxu0 %v18719_v32  ;;  %7842 = vmatpush1.bf16.msra.mxu1 %v15617_v11  ;;  %v15625_v11 = vld [vmem:[%s21180_s8 + $0x44] ss:$16 sps:$4 sm:$0xff]  }
 0x353   :  { %7029 = vmatprep.mubr.bf16.mxu0 %v18765_v35  ;;  %7843 = vmatprep.subr.bf16.mxu1 %v15628_v48  ;;  %v15623_v48 = vld [vmem:[%s21180_s8 + $0x40] ss:$16 sps:$4 sm:$0xff]  }
 0x355   :  { %7781 = vmatmul.mubr.bf16.gmra.mrb[124].mxu1 %v18587_v16 }
 0x356   :  { %7790 = vmatprep.mubr.bf16.mxu1 %v18637_v19  ;;  %7844 = vmatpush1.bf16.msra.mxu1 %v15626_v24  ;;  %v15631_v24 = vld [vmem:[%s21180_s8 + $0x64] ss:$16 sps:$4 sm:$0xff]  }
 0x357   :  { %7845 = vmatprep.subr.bf16.mxu1 %v15637_v37  ;;  %v21403_v37 = vld [vmem:[#allocation59_spill] sm:$0xff] }
 0x35a   :  { %7030 = vmatmul.mubr.bf16.gmra.mrb[156].mxu0 %v18760_v20  ;;  %7846 = vmatpush1.bf16.msra.mxu1 %v15635_v41  ;;  %v15629_v41 = vld [vmem:[%s21180_s8 + $0x60] ss:$16 sps:$4 sm:$0xff]  }
 0x35b   :  { %7072 = vmatprep.mubr.bf16.mxu0 %v21401_v22  ;;  %11477 = vmatprep.subr.bf16.mxu1 %v15646_v4  ;;  %v15634_v4 = vld [vmem:[%s21180_s8 + $0x84] ss:$16 sps:$4 sm:$0xff]  }
 0x35d   :  { %7791 = vmatmul.mubr.bf16.gmra.mrb[128].mxu1 %v18631_v50 }
 0x35e   :  { %7800 = vmatprep.mubr.bf16.mxu1 %v18681_v62 }
 0x362   :  { %7073 = vmatmul.mubr.bf16.vlgmr.msra.gmra.mrb[128].mxu0 %v21402_v3 }
 0x363   :  { %10687 = vmatpush1.bf16.msra.mxu0 %v15614_v30  ;;  %7082 = vmatprep.mubr.bf16.mxu0 %v21401_v22  ;;  %v15632_v30 = vld [vmem:[%s21180_s8 + $0x80] ss:$16 sps:$4 sm:$0xff]  }
 0x364   :  { %10688 = vmatprep.subr.bf16.mxu0 %v15622_v26  ;;  %v15640_v26 = vld [vmem:[%s21180_s8 + $0xa4] ss:$16 sps:$4 sm:$0xff]  }
 0x365   :  { %7801 = vmatmul.mubr.bf16.gmra.mrb[132].mxu1 %v18675_v8 }
 0x366   :  { %7810 = vmatprep.mubr.bf16.mxu1 %v18725_v0  ;;  %v15926_v0 = vld [vmem:[%s21180_s8 + $0x5e8] ss:$16 sps:$4 sm:$0xff]  }
 0x367   :  { %10689 = vmatpush1.bf16.msra.mxu0 %v15620_v15  ;;  %v21404_v15 = vld [vmem:[#allocation63_spill] sm:$0xff] }
 0x368   :  { %10690 = vmatprep.subr.bf16.mxu0 %v15625_v11  ;;  %v15638_v11 = vld [vmem:[%s21180_s8 + $0xa0] ss:$16 sps:$4 sm:$0xff]  }
 0x36a   :  { %7083 = vmatmul.mubr.bf16.gmra.mrb[132].mxu0 %v21403_v37 }
 0x36b   :  { %10691 = vmatpush1.bf16.msra.mxu0 %v15623_v48  ;;  %7092 = vmatprep.mubr.bf16.mxu0 %v21401_v22  ;;  %v15643_v48 = vld [vmem:[%s21180_s8 + $0xc4] ss:$16 sps:$4 sm:$0xff]  }
 0x36c   :  { %10692 = vmatprep.subr.bf16.mxu0 %v15631_v24  ;;  %v15641_v24 = vld [vmem:[%s21180_s8 + $0xc0] ss:$16 sps:$4 sm:$0xff]  }
 0x36d   :  { %7811 = vmatmul.mubr.bf16.gmra.mrb[136].mxu1 %v18719_v32  ;;  %v15724_v32 = vld [vmem:[%s21180_s8 + $0x1ac] ss:$16 sps:$4 sm:$0xff]  }
 0x36e   :  { %7820 = vmatprep.mubr.bf16.mxu1 %v18765_v35  ;;  %v21406_v35 = vld [vmem:[#allocation67_spill] sm:$0xff] }
 0x36f   :  { %10693 = vmatpush1.bf16.msra.mxu0 %v15629_v41  ;;  %v15649_v41 = vld [vmem:[%s21180_s8 + $0xe4] ss:$16 sps:$4 sm:$0xff]  }
 0x370   :  { %10694 = vmatprep.subr.bf16.mxu0 %v15634_v4  ;;  %v15644_v4 = vld [vmem:[%s21180_s8 + $0x8] ss:$16 sps:$4 sm:$0xff]  }
 0x372   :  { %7093 = vmatmul.mubr.bf16.gmra.mrb[136].mxu0 %v21404_v15 }
 0x373   :  { %10695 = vmatpush1.bf16.msra.mxu0 %v15632_v30  ;;  %7102 = vmatprep.mubr.bf16.mxu0 %v21401_v22  ;;  %v21405_v30 = vld [vmem:[#allocation62_spill] sm:$0xff] }
 0x374   :  { %10696 = vmatprep.subr.bf16.mxu0 %v15640_v26  ;;  %v15647_v26 = vld [vmem:[%s21180_s8 + $0xe0] ss:$16 sps:$4 sm:$0xff]  }
 0x375   :  { %7821 = vmatmul.mubr.bf16.gmra.mrb[140].mxu1 %v18760_v20  ;;  %v15650_v20 = vld [vmem:[%s21180_s8 + $0x28] ss:$16 sps:$4 sm:$0xff]  }
 0x376   :  { %7863 = vmatprep.mubr.bf16.mxu1 %v21401_v22 }
 0x377   :  { %10697 = vmatpush1.bf16.msra.mxu0 %v15638_v11  ;;  %v15652_v11 = vld [vmem:[%s21180_s8 + $0x2c] ss:$16 sps:$4 sm:$0xff]  }
 0x378   :  { %10698 = vmatprep.subr.bf16.mxu0 %v15643_v48  ;;  %v15655_v48 = vld [vmem:[%s21180_s8 + $0x104] ss:$16 sps:$4 sm:$0xff]  }
 0x37a   :  { %7103 = vmatmul.mubr.bf16.gmra.mrb[140].mxu0 %v21405_v30 }
 0x37b   :  { %10699 = vmatpush1.bf16.msra.mxu0 %v15641_v24  ;;  %7112 = vmatprep.mubr.bf16.mxu0 %v21401_v22  ;;  %v15653_v24 = vld [vmem:[%s21180_s8 + $0x100] ss:$16 sps:$4 sm:$0xff]  }
 0x37c   :  { %10700 = vmatprep.subr.bf16.mxu0 %v15649_v41  ;;  %v15658_v41 = vld [vmem:[%s21180_s8 + $0x4c] ss:$16 sps:$4 sm:$0xff]  }
 0x37d   :  { %7864 = vmatmul.mubr.bf16.vlgmr.msra.gmra.mrb[112].mxu1 %v21402_v3  ;;  %v15661_v3 = vld [vmem:[%s21180_s8 + $0x124] ss:$16 sps:$4 sm:$0xff]  }
 0x37e   :  { %11478 = vmatpush1.bf16.msra.mxu1 %v15644_v4  ;;  %7873 = vmatprep.mubr.bf16.mxu1 %v21401_v22  ;;  %v15656_v4 = vld [vmem:[%s21180_s8 + $0x48] ss:$16 sps:$4 sm:$0xff]  }
 0x37f   :  { %10701 = vmatpush1.bf16.msra.mxu0 %v15647_v26  ;;  %11479 = vmatprep.subr.bf16.mxu1 %v15652_v11  ;;  %v15659_v26 = vld [vmem:[%s21180_s8 + $0x120] ss:$16 sps:$4 sm:$0xff]   ;;  %v15664_v11 = vld [vmem:[%s21180_s8 + $0x6c] ss:$16 sps:$4 sm:$0xff]  }
 0x380   :  { %10702 = vmatprep.subr.bf16.mxu0 %v15655_v48  ;;  %v15667_v48 = vld [vmem:[%s21180_s8 + $0x144] ss:$16 sps:$4 sm:$0xff]  }
 0x382   :  { %11480 = vmatpush1.bf16.msra.mxu1 %v15650_v20  ;;  %7113 = vmatmul.mubr.bf16.gmra.mrb[144].mxu0 %v21406_v35  ;;  %v15662_v20 = vld [vmem:[%s21180_s8 + $0x68] ss:$16 sps:$4 sm:$0xff]  }
 0x383   :  { %10703 = vmatpush1.bf16.msra.mxu0 %v15653_v24  ;;  %11481 = vmatprep.subr.bf16.mxu1 %v15658_v41  ;;  %v15665_v24 = vld [vmem:[%s21180_s8 + $0x140] ss:$16 sps:$4 sm:$0xff]   ;;  %v15673_v41 = vld [vmem:[%s21180_s8 + $0x164] ss:$16 sps:$4 sm:$0xff]  }
 0x384   :  { %10704 = vmatprep.subr.bf16.mxu0 %v15661_v3  ;;  %7122 = vmatprep.mubr.bf16.mxu0 %v21401_v22  ;;  %v15670_v3 = vld [vmem:[%s21180_s8 + $0x8c] ss:$16 sps:$4 sm:$0xff]  }
 0x385   :  { %7874 = vmatmul.mubr.bf16.gmra.mrb[116].mxu1 %v21403_v37  ;;  %v21407_v37 = vld [vmem:[#allocation66_spill] sm:$0xff] }
 0x386   :  { %11482 = vmatpush1.bf16.msra.mxu1 %v15656_v4  ;;  %7883 = vmatprep.mubr.bf16.mxu1 %v21401_v22  ;;  %v15668_v4 = vld [vmem:[%s21180_s8 + $0x88] ss:$16 sps:$4 sm:$0xff]  }
 0x387   :  { %10705 = vmatpush1.bf16.msra.mxu0 %v15659_v26  ;;  %11483 = vmatprep.subr.bf16.mxu1 %v15664_v11  ;;  %v15671_v26 = vld [vmem:[%s21180_s8 + $0x160] ss:$16 sps:$4 sm:$0xff]   ;;  %v15676_v11 = vld [vmem:[%s21180_s8 + $0xac] ss:$16 sps:$4 sm:$0xff]  }
 0x388   :  { %10706 = vmatprep.subr.bf16.mxu0 %v15667_v48  ;;  %v15679_v48 = vld [vmem:[%s21180_s8 + $0x184] ss:$16 sps:$4 sm:$0xff]  }
 0x38a   :  { %11484 = vmatpush1.bf16.msra.mxu1 %v15662_v20  ;;  %7123 = vmatmul.mubr.bf16.gmra.mrb[148].mxu0 %v21407_v37  ;;  %v15674_v20 = vld [vmem:[%s21180_s8 + $0xa8] ss:$16 sps:$4 sm:$0xff]  }
 0x38b   :  { %10707 = vmatpush1.bf16.msra.mxu0 %v15665_v24  ;;  %11485 = vmatprep.subr.bf16.mxu1 %v15670_v3  ;;  %v15677_v24 = vld [vmem:[%s21180_s8 + $0x180] ss:$16 sps:$4 sm:$0xff]   ;;  %v15682_v3 = vld [vmem:[%s21180_s8 + $0xcc] ss:$16 sps:$4 sm:$0xff]  }
 0x38c   :  { %10708 = vmatprep.subr.bf16.mxu0 %v15673_v41  ;;  %7132 = vmatprep.mubr.bf16.mxu0 %v21401_v22  ;;  %v15685_v41 = vld [vmem:[%s21180_s8 + $0x1a4] ss:$16 sps:$4 sm:$0xff]  }
 0x38d   :  { %7884 = vmatmul.mubr.bf16.gmra.mrb[120].mxu1 %v21404_v15  ;;  %v15712_v15 = vld [vmem:[%s21180_s8 + $0x16c] ss:$16 sps:$4 sm:$0xff]  }
 0x38e   :  { %11486 = vmatpush1.bf16.msra.mxu1 %v15668_v4  ;;  %7893 = vmatprep.mubr.bf16.mxu1 %v21401_v22  ;;  %v15680_v4 = vld [vmem:[%s21180_s8 + $0xc8] ss:$16 sps:$4 sm:$0xff]  }
 0x38f   :  { %10709 = vmatpush1.bf16.msra.mxu0 %v15671_v26  ;;  %11487 = vmatprep.subr.bf16.mxu1 %v15676_v11  ;;  %v15683_v26 = vld [vmem:[%s21180_s8 + $0x1a0] ss:$16 sps:$4 sm:$0xff]   ;;  %v15688_v11 = vld [vmem:[%s21180_s8 + $0xec] ss:$16 sps:$4 sm:$0xff]  }
 0x390   :  { %10710 = vmatprep.subr.bf16.mxu0 %v15679_v48  ;;  %v15691_v48 = vld [vmem:[%s21180_s8 + $0x1c4] ss:$16 sps:$4 sm:$0xff]  }
 0x392   :  { %11488 = vmatpush1.bf16.msra.mxu1 %v15674_v20  ;;  %7133 = vmatmul.mubr.bf16.gmra.mrb[152].mxu0 %v18739_v6  ;;  %v15686_v20 = vld [vmem:[%s21180_s8 + $0xe8] ss:$16 sps:$4 sm:$0xff]  }
 0x393   :  { %10711 = vmatpush1.bf16.msra.mxu0 %v15677_v24  ;;  %11489 = vmatprep.subr.bf16.mxu1 %v15682_v3  ;;  %v15689_v24 = vld [vmem:[%s21180_s8 + $0x1c0] ss:$16 sps:$4 sm:$0xff]   ;;  %v15694_v3 = vld [vmem:[%s21180_s8 + $0x10c] ss:$16 sps:$4 sm:$0xff]  }
 0x394   :  { %10712 = vmatprep.subr.bf16.mxu0 %v15685_v41  ;;  %7142 = vmatprep.mubr.bf16.mxu0 %v21401_v22  ;;  %v15697_v41 = vld [vmem:[%s21180_s8 + $0x1e4] ss:$16 sps:$4 sm:$0xff]  }
 0x395   :  { %7894 = vmatmul.mubr.bf16.gmra.mrb[124].mxu1 %v21405_v30  ;;  %v15700_v30 = vld [vmem:[%s21180_s8 + $0x12c] ss:$16 sps:$4 sm:$0xff]  }
 0x396   :  { %11490 = vmatpush1.bf16.msra.mxu1 %v15680_v4  ;;  %7903 = vmatprep.mubr.bf16.mxu1 %v21401_v22  ;;  %v15692_v4 = vld [vmem:[%s21180_s8 + $0x108] ss:$16 sps:$4 sm:$0xff]  }
 0x397   :  { %10713 = vmatpush1.bf16.msra.mxu0 %v15683_v26  ;;  %11491 = vmatprep.subr.bf16.mxu1 %v15688_v11  ;;  %v15695_v26 = vld [vmem:[%s21180_s8 + $0x1e0] ss:$16 sps:$4 sm:$0xff]   ;;  %v21408_v11 = vld [vmem:[#allocation5_spill] sm:$0xff] }
 0x398   :  { %10714 = vmatprep.subr.bf16.mxu0 %v15691_v48  ;;  %v15703_v48 = vld [vmem:[%s21180_s8 + $0x204] ss:$16 sps:$4 sm:$0xff]  }
 0x39a   :  { %11492 = vmatpush1.bf16.msra.mxu1 %v15686_v20  ;;  %7143 = vmatmul.mubr.bf16.gmra.mrb[156].mxu0 %v18733_v7  ;;  %v15698_v20 = vld [vmem:[%s21180_s8 + $0x128] ss:$16 sps:$4 sm:$0xff]  }
 0x39b   :  { %10715 = vmatpush1.bf16.msra.mxu0 %v15689_v24  ;;  %10718 = vmatprep.mubr.bf16.mxu0 %v21408_v11  ;;  %v15701_v24 = vld [vmem:[%s21180_s8 + $0x200] ss:$16 sps:$4 sm:$0xff]  }
 0x39c   :  { %11493 = vmatprep.subr.bf16.mxu1 %v15694_v3  ;;  %10716 = vmatprep.subr.bf16.mxu0 %v15697_v41  ;;  %v15706_v3 = vld [vmem:[%s21180_s8 + $0x14c] ss:$16 sps:$4 sm:$0xff]   ;;  %v15709_v41 = vld [vmem:[%s21180_s8 + $0x224] ss:$16 sps:$4 sm:$0xff]  }
 0x39d   :  { %7904 = vmatmul.mubr.bf16.gmra.mrb[128].mxu1 %v21406_v35  ;;  %v21409_v35 = vld [vmem:[#allocation4_spill] sm:$0xff] }
 0x39e   :  { %11494 = vmatpush1.bf16.msra.mxu1 %v15692_v4  ;;  %7913 = vmatprep.mubr.bf16.mxu1 %v21401_v22  ;;  %v15704_v4 = vld [vmem:[%s21180_s8 + $0x148] ss:$16 sps:$4 sm:$0xff]  }
 0x39f   :  { %10717 = vmatpush1.bf16.msra.mxu0 %v15695_v26  ;;  %11495 = vmatprep.subr.bf16.mxu1 %v15700_v30  ;;  %v15707_v30 = vld [vmem:[%s21180_s8 + $0x220] ss:$16 sps:$4 sm:$0xff]   ;;  %v21410_v26 = vld [vmem:[#allocation7_spill] sm:$0xff] }
 0x3a0   :  { %10799 = vmatprep.subr.bf16.mxu0 %v15703_v48  ;;  %v15715_v48 = vld [vmem:[%s21180_s8 + $0x244] ss:$16 sps:$4 sm:$0xff]  }
 0x3a2   :  { %11496 = vmatpush1.bf16.msra.mxu1 %v15698_v20  ;;  %10719 = vmatmul.mubr.bf16.vlgmr.msra.gmra.mrb[160].mxu0 %v21409_v35  ;;  %v15710_v20 = vld [vmem:[%s21180_s8 + $0x168] ss:$16 sps:$4 sm:$0xff]  }
 0x3a3   :  { %10728 = vmatprep.mubr.bf16.mxu0 %v21410_v26  ;;  %10800 = vmatpush1.bf16.msra.mxu0 %v15701_v24  ;;  %v15713_v24 = vld [vmem:[%s21180_s8 + $0x240] ss:$16 sps:$4 sm:$0xff]  }
 0x3a4   :  { %11497 = vmatprep.subr.bf16.mxu1 %v15706_v3  ;;  %10801 = vmatprep.subr.bf16.mxu0 %v15709_v41  ;;  %v15718_v3 = vld [vmem:[%s21180_s8 + $0x18c] ss:$16 sps:$4 sm:$0xff]   ;;  %v15721_v41 = vld [vmem:[%s21180_s8 + $0x264] ss:$16 sps:$4 sm:$0xff]  }
 0x3a5   :  { %7914 = vmatmul.mubr.bf16.gmra.mrb[132].mxu1 %v21407_v37  ;;  %v21411_v37 = vld [vmem:[#allocation6_spill] sm:$0xff] }
 0x3a6   :  { %11498 = vmatpush1.bf16.msra.mxu1 %v15704_v4  ;;  %7923 = vmatprep.mubr.bf16.mxu1 %v21401_v22  ;;  %v15716_v4 = vld [vmem:[%s21180_s8 + $0x188] ss:$16 sps:$4 sm:$0xff]  }
 0x3a7   :  { %10802 = vmatpush1.bf16.msra.mxu0 %v15707_v30  ;;  %11499 = vmatprep.subr.bf16.mxu1 %v15712_v15  ;;  %v15719_v15 = vld [vmem:[%s21180_s8 + $0x260] ss:$16 sps:$4 sm:$0xff]   ;;  %v21412_v30 = vld [vmem:[#allocation9_spill] sm:$0xff] }
 0x3a8   :  { %10803 = vmatprep.subr.bf16.mxu0 %v15715_v48  ;;  %v15727_v48 = vld [vmem:[%s21180_s8 + $0x284] ss:$16 sps:$4 sm:$0xff]  }
 0x3aa   :  { %11500 = vmatpush1.bf16.msra.mxu1 %v15710_v20  ;;  %10729 = vmatmul.mubr.bf16.gmra.mrb[164].mxu0 %v21411_v37  ;;  %v15722_v20 = vld [vmem:[%s21180_s8 + $0x1a8] ss:$16 sps:$4 sm:$0xff]  }
 0x3ab   :  { %10738 = vmatprep.mubr.bf16.mxu0 %v21412_v30  ;;  %10804 = vmatpush1.bf16.msra.mxu0 %v15713_v24  ;;  %v15725_v24 = vld [vmem:[%s21180_s8 + $0x280] ss:$16 sps:$4 sm:$0xff]  }
 0x3ac   :  { %11501 = vmatprep.subr.bf16.mxu1 %v15718_v3  ;;  %10805 = vmatprep.subr.bf16.mxu0 %v15721_v41  ;;  %v15730_v3 = vld [vmem:[%s21180_s8 + $0x1cc] ss:$16 sps:$4 sm:$0xff]   ;;  %v15733_v41 = vld [vmem:[%s21180_s8 + $0x2a4] ss:$16 sps:$4 sm:$0xff]  }
 0x3ad   :  { %7924 = vmatmul.mubr.bf16.gmra.mrb[136].mxu1 %v18739_v6  ;;  %v15736_v6 = vld [vmem:[%s21180_s8 + $0x1ec] ss:$16 sps:$4 sm:$0xff]  }
 0x3ae   :  { %11502 = vmatpush1.bf16.msra.mxu1 %v15716_v4  ;;  %7933 = vmatprep.mubr.bf16.mxu1 %v21401_v22  ;;  %v21413_v4 = vld [vmem:[#allocation8_spill] sm:$0xff] }
 0x3af   :  { %10806 = vmatpush1.bf16.msra.mxu0 %v15719_v15  ;;  %11503 = vmatprep.subr.bf16.mxu1 %v15724_v32  ;;  %v15728_v32 = vld [vmem:[%s21180_s8 + $0x1c8] ss:$16 sps:$4 sm:$0xff]  }
 0x3b0   :  { %10807 = vmatprep.subr.bf16.mxu0 %v15727_v48  ;;  %v21414_v15 = vld [vmem:[#allocation13_spill] sm:$0xff]  ;;  %v15731_v48 = vld [vmem:[%s21180_s8 + $0x2a0] ss:$16 sps:$4 sm:$0xff]  }
 0x3b2   :  { %11504 = vmatpush1.bf16.msra.mxu1 %v15722_v20  ;;  %10739 = vmatmul.mubr.bf16.gmra.mrb[168].mxu0 %v21413_v4  ;;  %v15739_v20 = vld [vmem:[%s21180_s8 + $0x2c4] ss:$16 sps:$4 sm:$0xff]  }
 0x3b3   :  { %10748 = vmatprep.mubr.bf16.mxu0 %v21414_v15  ;;  %10808 = vmatpush1.bf16.msra.mxu0 %v15725_v24  ;;  %v15734_v24 = vld [vmem:[%s21180_s8 + $0x1e8] ss:$16 sps:$4 sm:$0xff]  }
 0x3b4   :  { %11505 = vmatprep.subr.bf16.mxu1 %v15730_v3  ;;  %10809 = vmatprep.subr.bf16.mxu0 %v15733_v41  ;;  %v15737_v3 = vld [vmem:[%s21180_s8 + $0x2c0] ss:$16 sps:$4 sm:$0xff]   ;;  %v15742_v41 = vld [vmem:[%s21180_s8 + $0x20c] ss:$16 sps:$4 sm:$0xff]  }
 0x3b5   :  { %7934 = vmatmul.mubr.bf16.gmra.mrb[140].mxu1 %v18733_v7  ;;  %v15748_v7 = vld [vmem:[%s21180_s8 + $0x22c] ss:$16 sps:$4 sm:$0xff]  }
 0x3b6   :  { %11506 = vmatpush1.bf16.msra.mxu1 %v15728_v32  ;;  %11509 = vmatprep.mubr.bf16.mxu1 %v21408_v11  ;;  %v15745_v32 = vld [vmem:[%s21180_s8 + $0x2e4] ss:$16 sps:$4 sm:$0xff]  }
 0x3b7   :  { %10810 = vmatpush1.bf16.msra.mxu0 %v15731_v48  ;;  %11507 = vmatprep.subr.bf16.mxu1 %v15736_v6  ;;  %v21415_v11 = vld [vmem:[#allocation12_spill] sm:$0xff]  ;;  %v15740_v6 = vld [vmem:[%s21180_s8 + $0x208] ss:$16 sps:$4 sm:$0xff]  }
 0x3b8   :  { %10811 = vmatprep.subr.bf16.mxu0 %v15739_v20  ;;  %v21416_v48 = vld [vmem:[#allocation15_spill] sm:$0xff]  ;;  %v15743_v20 = vld [vmem:[%s21180_s8 + $0x2e0] ss:$16 sps:$4 sm:$0xff]  }
 0x3ba   :  { %11508 = vmatpush1.bf16.msra.mxu1 %v15734_v24  ;;  %10749 = vmatmul.mubr.bf16.gmra.mrb[172].mxu0 %v21415_v11  ;;  %v15751_v24 = vld [vmem:[%s21180_s8 + $0x304] ss:$16 sps:$4 sm:$0xff]  }
 0x3bb   :  { %10758 = vmatprep.mubr.bf16.mxu0 %v21416_v48  ;;  %10812 = vmatpush1.bf16.msra.mxu0 %v15737_v3  ;;  %v15746_v3 = vld [vmem:[%s21180_s8 + $0x228] ss:$16 sps:$4 sm:$0xff]  }
 0x3bc   :  { %11590 = vmatprep.subr.bf16.mxu1 %v15742_v41  ;;  %10813 = vmatprep.subr.bf16.mxu0 %v15745_v32  ;;  %v15749_v41 = vld [vmem:[%s21180_s8 + $0x300] ss:$16 sps:$4 sm:$0xff]   ;;  %v15754_v32 = vld [vmem:[%s21180_s8 + $0x24c] ss:$16 sps:$4 sm:$0xff]  }
 0x3bd   :  { %11510 = vmatmul.mubr.bf16.vlgmr.msra.gmra.mrb[144].mxu1 %v21409_v35  ;;  %v15757_v35 = vld [vmem:[%s21180_s8 + $0x324] ss:$16 sps:$4 sm:$0xff]  }
 0x3be   :  { %11519 = vmatprep.mubr.bf16.mxu1 %v21410_v26  ;;  %11591 = vmatpush1.bf16.msra.mxu1 %v15740_v6  ;;  %v21417_v26 = vld [vmem:[#allocation14_spill] sm:$0xff]  ;;  %v21418_v6 = vld [vmem:[#allocation19_spill] sm:$0xff] }
 0x3bf   :  { %10814 = vmatpush1.bf16.msra.mxu0 %v15743_v20  ;;  %11592 = vmatprep.subr.bf16.mxu1 %v15748_v7  ;;  %v15752_v7 = vld [vmem:[%s21180_s8 + $0x248] ss:$16 sps:$4 sm:$0xff]   ;;  %v15755_v20 = vld [vmem:[%s21180_s8 + $0x320] ss:$16 sps:$4 sm:$0xff]  }
 0x3c0   :  { %10815 = vmatprep.subr.bf16.mxu0 %v15751_v24  ;;  %v15760_v24 = vld [vmem:[%s21180_s8 + $0x26c] ss:$16 sps:$4 sm:$0xff]  }
 0x3c2   :  { %11593 = vmatpush1.bf16.msra.mxu1 %v15746_v3  ;;  %10759 = vmatmul.mubr.bf16.gmra.mrb[176].mxu0 %v21417_v26  ;;  %v15763_v3 = vld [vmem:[%s21180_s8 + $0x344] ss:$16 sps:$4 sm:$0xff]  }
 0x3c3   :  { %10768 = vmatprep.mubr.bf16.mxu0 %v21418_v6  ;;  %10816 = vmatpush1.bf16.msra.mxu0 %v15749_v41  ;;  %v15758_v41 = vld [vmem:[%s21180_s8 + $0x268] ss:$16 sps:$4 sm:$0xff]  }
 0x3c4   :  { %11594 = vmatprep.subr.bf16.mxu1 %v15754_v32  ;;  %10817 = vmatprep.subr.bf16.mxu0 %v15757_v35  ;;  %v15761_v32 = vld [vmem:[%s21180_s8 + $0x340] ss:$16 sps:$4 sm:$0xff]   ;;  %v15766_v35 = vld [vmem:[%s21180_s8 + $0x28c] ss:$16 sps:$4 sm:$0xff]  }
 0x3c5   :  { %11520 = vmatmul.mubr.bf16.gmra.mrb[148].mxu1 %v21411_v37  ;;  %v15769_v37 = vld [vmem:[%s21180_s8 + $0x364] ss:$16 sps:$4 sm:$0xff]  }
 0x3c6   :  { %11529 = vmatprep.mubr.bf16.mxu1 %v21412_v30  ;;  %11595 = vmatpush1.bf16.msra.mxu1 %v15752_v7  ;;  %v21419_v30 = vld [vmem:[#allocation18_spill] sm:$0xff]  ;;  %v15764_v7 = vld [vmem:[%s21180_s8 + $0x288] ss:$16 sps:$4 sm:$0xff]  }
 0x3c7   :  { %10818 = vmatpush1.bf16.msra.mxu0 %v15755_v20  ;;  %11596 = vmatprep.subr.bf16.mxu1 %v15760_v24  ;;  %v21420_v20 = vld [vmem:[#allocation23_spill] sm:$0xff]  ;;  %v15767_v24 = vld [vmem:[%s21180_s8 + $0x360] ss:$16 sps:$4 sm:$0xff]  }
 0x3c8   :  { %10819 = vmatprep.subr.bf16.mxu0 %v15763_v3  ;;  %v15772_v3 = vld [vmem:[%s21180_s8 + $0x2ac] ss:$16 sps:$4 sm:$0xff]  }
 0x3ca   :  { %11597 = vmatpush1.bf16.msra.mxu1 %v15758_v41  ;;  %10769 = vmatmul.mubr.bf16.gmra.mrb[180].mxu0 %v21419_v30  ;;  %v15775_v41 = vld [vmem:[%s21180_s8 + $0x384] ss:$16 sps:$4 sm:$0xff]  }
 0x3cb   :  { %10778 = vmatprep.mubr.bf16.mxu0 %v21420_v20  ;;  %10820 = vmatpush1.bf16.msra.mxu0 %v15761_v32  ;;  %v15770_v32 = vld [vmem:[%s21180_s8 + $0x2a8] ss:$16 sps:$4 sm:$0xff]  }
 0x3cc   :  { %11598 = vmatprep.subr.bf16.mxu1 %v15766_v35  ;;  %10821 = vmatprep.subr.bf16.mxu0 %v15769_v37  ;;  %v15773_v35 = vld [vmem:[%s21180_s8 + $0x380] ss:$16 sps:$4 sm:$0xff]   ;;  %v15778_v37 = vld [vmem:[%s21180_s8 + $0x2cc] ss:$16 sps:$4 sm:$0xff]  }
 0x3cd   :  { %11530 = vmatmul.mubr.bf16.gmra.mrb[152].mxu1 %v21413_v4  ;;  %v15781_v4 = vld [vmem:[%s21180_s8 + $0x3a4] ss:$16 sps:$4 sm:$0xff]  }
 0x3ce   :  { %11539 = vmatprep.mubr.bf16.mxu1 %v21414_v15  ;;  %11599 = vmatpush1.bf16.msra.mxu1 %v15764_v7  ;;  %v21421_v15 = vld [vmem:[#allocation22_spill] sm:$0xff]  ;;  %v15776_v7 = vld [vmem:[%s21180_s8 + $0x2c8] ss:$16 sps:$4 sm:$0xff]  }
 0x3cf   :  { %10822 = vmatpush1.bf16.msra.mxu0 %v15767_v24  ;;  %11600 = vmatprep.subr.bf16.mxu1 %v15772_v3  ;;  %v21422_v24 = vld [vmem:[#allocation27_spill] sm:$0xff]  ;;  %v15779_v3 = vld [vmem:[%s21180_s8 + $0x3a0] ss:$16 sps:$4 sm:$0xff]  }
 0x3d0   :  { %10823 = vmatprep.subr.bf16.mxu0 %v15775_v41  ;;  %v15784_v41 = vld [vmem:[%s21180_s8 + $0x2ec] ss:$16 sps:$4 sm:$0xff]  }
 0x3d2   :  { %11601 = vmatpush1.bf16.msra.mxu1 %v15770_v32  ;;  %10779 = vmatmul.mubr.bf16.gmra.mrb[184].mxu0 %v21421_v15  ;;  %v15787_v32 = vld [vmem:[%s21180_s8 + $0x3c4] ss:$16 sps:$4 sm:$0xff]  }
 0x3d3   :  { %10788 = vmatprep.mubr.bf16.mxu0 %v21422_v24  ;;  %10824 = vmatpush1.bf16.msra.mxu0 %v15773_v35  ;;  %v15782_v35 = vld [vmem:[%s21180_s8 + $0x2e8] ss:$16 sps:$4 sm:$0xff]  }
 0x3d4   :  { %11602 = vmatprep.subr.bf16.mxu1 %v15778_v37  ;;  %10825 = vmatprep.subr.bf16.mxu0 %v15781_v4  ;;  %v15785_v37 = vld [vmem:[%s21180_s8 + $0x3c0] ss:$16 sps:$4 sm:$0xff]   ;;  %v15790_v4 = vld [vmem:[%s21180_s8 + $0x30c] ss:$16 sps:$4 sm:$0xff]  }
 0x3d5   :  { %11540 = vmatmul.mubr.bf16.gmra.mrb[156].mxu1 %v21415_v11  ;;  %v15793_v11 = vld [vmem:[%s21180_s8 + $0x3e4] ss:$16 sps:$4 sm:$0xff]  }
 0x3d6   :  { %11549 = vmatprep.mubr.bf16.mxu1 %v21416_v48  ;;  %11603 = vmatpush1.bf16.msra.mxu1 %v15776_v7  ;;  %v21423_v48 = vld [vmem:[#allocation26_spill] sm:$0xff]  ;;  %v15788_v7 = vld [vmem:[%s21180_s8 + $0x308] ss:$16 sps:$4 sm:$0xff]  }
 0x3d7   :  { %10826 = vmatpush1.bf16.msra.mxu0 %v15779_v3  ;;  %11604 = vmatprep.subr.bf16.mxu1 %v15784_v41  ;;  %v21424_v3 = vld [vmem:[#allocation17_spill] sm:$0xff]  ;;  %v15791_v41 = vld [vmem:[%s21180_s8 + $0x3e0] ss:$16 sps:$4 sm:$0xff]  }
 0x3d8   :  { %10827 = vmatprep.subr.bf16.mxu0 %v15787_v32  ;;  %v15796_v32 = vld [vmem:[%s21180_s8 + $0x32c] ss:$16 sps:$4 sm:$0xff]  }
 0x3da   :  { %11605 = vmatpush1.bf16.msra.mxu1 %v15782_v35  ;;  %10789 = vmatmul.mubr.bf16.gmra.mrb[188].mxu0 %v21423_v48  ;;  %v15799_v35 = vld [vmem:[%s21180_s8 + $0x404] ss:$16 sps:$4 sm:$0xff]  }
 0x3db   :  { %10828 = vmatpush1.bf16.msra.mxu0 %v15785_v37  ;;  %10831 = vmatprep.mubr.bf16.mxu0 %v21424_v3  ;;  %v15794_v37 = vld [vmem:[%s21180_s8 + $0x328] ss:$16 sps:$4 sm:$0xff]  }
 0x3dc   :  { %11606 = vmatprep.subr.bf16.mxu1 %v15790_v4  ;;  %10829 = vmatprep.subr.bf16.mxu0 %v15793_v11  ;;  %v15797_v4 = vld [vmem:[%s21180_s8 + $0x400] ss:$16 sps:$4 sm:$0xff]   ;;  %v15802_v11 = vld [vmem:[%s21180_s8 + $0x34c] ss:$16 sps:$4 sm:$0xff]  }
 0x3dd   :  { %11550 = vmatmul.mubr.bf16.gmra.mrb[160].mxu1 %v21417_v26  ;;  %v15805_v26 = vld [vmem:[%s21180_s8 + $0x424] ss:$16 sps:$4 sm:$0xff]  }
 0x3de   :  { %11559 = vmatprep.mubr.bf16.mxu1 %v21418_v6  ;;  %11607 = vmatpush1.bf16.msra.mxu1 %v15788_v7  ;;  %v21425_v6 = vld [vmem:[#allocation16_spill] sm:$0xff]  ;;  %v15800_v7 = vld [vmem:[%s21180_s8 + $0x348] ss:$16 sps:$4 sm:$0xff]  }
 0x3df   :  { %10830 = vmatpush1.bf16.msra.mxu0 %v15791_v41  ;;  %11608 = vmatprep.subr.bf16.mxu1 %v15796_v32  ;;  %v21426_v41 = vld [vmem:[#allocation21_spill] sm:$0xff]  ;;  %v15803_v32 = vld [vmem:[%s21180_s8 + $0x420] ss:$16 sps:$4 sm:$0xff]  }
 0x3e0   :  { %10912 = vmatprep.subr.bf16.mxu0 %v15799_v35  ;;  %v15808_v35 = vld [vmem:[%s21180_s8 + $0x36c] ss:$16 sps:$4 sm:$0xff]  }
 0x3e2   :  { %11609 = vmatpush1.bf16.msra.mxu1 %v15794_v37  ;;  %10832 = vmatmul.mubr.bf16.vlgmr.msra.gmra.mrb[160].mxu0 %v21425_v6  ;;  %v15811_v37 = vld [vmem:[%s21180_s8 + $0x444] ss:$16 sps:$4 sm:$0xff]  }
 0x3e3   :  { %10841 = vmatprep.mubr.bf16.mxu0 %v21426_v41  ;;  %10913 = vmatpush1.bf16.msra.mxu0 %v15797_v4  ;;  %v15806_v4 = vld [vmem:[%s21180_s8 + $0x368] ss:$16 sps:$4 sm:$0xff]  }
 0x3e4   :  { %11610 = vmatprep.subr.bf16.mxu1 %v15802_v11  ;;  %10914 = vmatprep.subr.bf16.mxu0 %v15805_v26  ;;  %v15809_v11 = vld [vmem:[%s21180_s8 + $0x440] ss:$16 sps:$4 sm:$0xff]   ;;  %v15814_v26 = vld [vmem:[%s21180_s8 + $0x38c] ss:$16 sps:$4 sm:$0xff]  }
 0x3e5   :  { %11560 = vmatmul.mubr.bf16.gmra.mrb[164].mxu1 %v21419_v30  ;;  %v15817_v30 = vld [vmem:[%s21180_s8 + $0x464] ss:$16 sps:$4 sm:$0xff]  }
 0x3e6   :  { %11569 = vmatprep.mubr.bf16.mxu1 %v21420_v20  ;;  %11611 = vmatpush1.bf16.msra.mxu1 %v15800_v7  ;;  %v21427_v20 = vld [vmem:[#allocation20_spill] sm:$0xff]  ;;  %v15812_v7 = vld [vmem:[%s21180_s8 + $0x388] ss:$16 sps:$4 sm:$0xff]  }
 0x3e7   :  { %10915 = vmatpush1.bf16.msra.mxu0 %v15803_v32  ;;  %11612 = vmatprep.subr.bf16.mxu1 %v15808_v35  ;;  %v21428_v32 = vld [vmem:[#allocation25_spill] sm:$0xff]  ;;  %v15815_v35 = vld [vmem:[%s21180_s8 + $0x460] ss:$16 sps:$4 sm:$0xff]  }
 0x3e8   :  { %10916 = vmatprep.subr.bf16.mxu0 %v15811_v37  ;;  %v15820_v37 = vld [vmem:[%s21180_s8 + $0x3ac] ss:$16 sps:$4 sm:$0xff]  }
 0x3ea   :  { %11613 = vmatpush1.bf16.msra.mxu1 %v15806_v4  ;;  %10842 = vmatmul.mubr.bf16.gmra.mrb[164].mxu0 %v21427_v20  ;;  %v15823_v4 = vld [vmem:[%s21180_s8 + $0x484] ss:$16 sps:$4 sm:$0xff]  }
 0x3eb   :  { %10851 = vmatprep.mubr.bf16.mxu0 %v21428_v32  ;;  %10917 = vmatpush1.bf16.msra.mxu0 %v15809_v11  ;;  %v15818_v11 = vld [vmem:[%s21180_s8 + $0x3a8] ss:$16 sps:$4 sm:$0xff]  }
 0x3ec   :  { %11614 = vmatprep.subr.bf16.mxu1 %v15814_v26  ;;  %10918 = vmatprep.subr.bf16.mxu0 %v15817_v30  ;;  %v15821_v26 = vld [vmem:[%s21180_s8 + $0x480] ss:$16 sps:$4 sm:$0xff]   ;;  %v15826_v30 = vld [vmem:[%s21180_s8 + $0x3cc] ss:$16 sps:$4 sm:$0xff]  }
 0x3ed   :  { %11570 = vmatmul.mubr.bf16.gmra.mrb[168].mxu1 %v21421_v15  ;;  %v15829_v15 = vld [vmem:[%s21180_s8 + $0x4a4] ss:$16 sps:$4 sm:$0xff]  }
 0x3ee   :  { %11579 = vmatprep.mubr.bf16.mxu1 %v21422_v24  ;;  %11615 = vmatpush1.bf16.msra.mxu1 %v15812_v7  ;;  %v21429_v24 = vld [vmem:[#allocation24_spill] sm:$0xff]  ;;  %v15824_v7 = vld [vmem:[%s21180_s8 + $0x3c8] ss:$16 sps:$4 sm:$0xff]  }
 0x3ef   :  { %10919 = vmatpush1.bf16.msra.mxu0 %v15815_v35  ;;  %11616 = vmatprep.subr.bf16.mxu1 %v15820_v37  ;;  %v21430_v35 = vld [vmem:[#allocation29_spill] sm:$0xff]  ;;  %v15827_v37 = vld [vmem:[%s21180_s8 + $0x4a0] ss:$16 sps:$4 sm:$0xff]  }
 0x3f0   :  { %10920 = vmatprep.subr.bf16.mxu0 %v15823_v4  ;;  %v15832_v4 = vld [vmem:[%s21180_s8 + $0x3ec] ss:$16 sps:$4 sm:$0xff]  }
 0x3f2   :  { %11617 = vmatpush1.bf16.msra.mxu1 %v15818_v11  ;;  %10852 = vmatmul.mubr.bf16.gmra.mrb[168].mxu0 %v21429_v24  ;;  %v15835_v11 = vld [vmem:[%s21180_s8 + $0x4c4] ss:$16 sps:$4 sm:$0xff]  }
 0x3f3   :  { %10861 = vmatprep.mubr.bf16.mxu0 %v21430_v35  ;;  %10921 = vmatpush1.bf16.msra.mxu0 %v15821_v26  ;;  %v15830_v26 = vld [vmem:[%s21180_s8 + $0x3e8] ss:$16 sps:$4 sm:$0xff]  }
 0x3f4   :  { %11618 = vmatprep.subr.bf16.mxu1 %v15826_v30  ;;  %10922 = vmatprep.subr.bf16.mxu0 %v15829_v15  ;;  %v15833_v30 = vld [vmem:[%s21180_s8 + $0x4c0] ss:$16 sps:$4 sm:$0xff]   ;;  %v15838_v15 = vld [vmem:[%s21180_s8 + $0x40c] ss:$16 sps:$4 sm:$0xff]  }
 0x3f5   :  { %11580 = vmatmul.mubr.bf16.gmra.mrb[172].mxu1 %v21423_v48  ;;  %v15841_v48 = vld [vmem:[%s21180_s8 + $0x4e4] ss:$16 sps:$4 sm:$0xff]  }
 0x3f6   :  { %11619 = vmatpush1.bf16.msra.mxu1 %v15824_v7  ;;  %11622 = vmatprep.mubr.bf16.mxu1 %v21424_v3  ;;  %v21431_v3 = vld [vmem:[#allocation28_spill] sm:$0xff]  ;;  %v15836_v7 = vld [vmem:[%s21180_s8 + $0x408] ss:$16 sps:$4 sm:$0xff]  }
 0x3f7   :  { %10923 = vmatpush1.bf16.msra.mxu0 %v15827_v37  ;;  %11620 = vmatprep.subr.bf16.mxu1 %v15832_v4  ;;  %v21432_v37 = vld [vmem:[#allocation33_spill] sm:$0xff]  ;;  %v15839_v4 = vld [vmem:[%s21180_s8 + $0x4e0] ss:$16 sps:$4 sm:$0xff]  }
 0x3f8   :  { %10924 = vmatprep.subr.bf16.mxu0 %v15835_v11  ;;  %v15844_v11 = vld [vmem:[%s21180_s8 + $0x42c] ss:$16 sps:$4 sm:$0xff]  }
 0x3fa   :  { %11621 = vmatpush1.bf16.msra.mxu1 %v15830_v26  ;;  %10862 = vmatmul.mubr.bf16.gmra.mrb[172].mxu0 %v21431_v3  ;;  %v15847_v26 = vld [vmem:[%s21180_s8 + $0x504] ss:$16 sps:$4 sm:$0xff]  }
 0x3fb   :  { %10871 = vmatprep.mubr.bf16.mxu0 %v21432_v37  ;;  %10925 = vmatpush1.bf16.msra.mxu0 %v15833_v30  ;;  %v15842_v30 = vld [vmem:[%s21180_s8 + $0x428] ss:$16 sps:$4 sm:$0xff]  }
 0x3fc   :  { %11703 = vmatprep.subr.bf16.mxu1 %v15838_v15  ;;  %10926 = vmatprep.subr.bf16.mxu0 %v15841_v48  ;;  %v15845_v15 = vld [vmem:[%s21180_s8 + $0x500] ss:$16 sps:$4 sm:$0xff]   ;;  %v15850_v48 = vld [vmem:[%s21180_s8 + $0x44c] ss:$16 sps:$4 sm:$0xff]  }
 0x3fd   :  { %11623 = vmatmul.mubr.bf16.vlgmr.msra.gmra.mrb[144].mxu1 %v21425_v6  ;;  %v15853_v6 = vld [vmem:[%s21180_s8 + $0x524] ss:$16 sps:$4 sm:$0xff]  }
 0x3fe   :  { %11632 = vmatprep.mubr.bf16.mxu1 %v21426_v41  ;;  %11704 = vmatpush1.bf16.msra.mxu1 %v15836_v7  ;;  %v21433_v41 = vld [vmem:[#allocation32_spill] sm:$0xff]  ;;  %v15848_v7 = vld [vmem:[%s21180_s8 + $0x448] ss:$16 sps:$4 sm:$0xff]  }
 0x3ff   :  { %10927 = vmatpush1.bf16.msra.mxu0 %v15839_v4  ;;  %11705 = vmatprep.subr.bf16.mxu1 %v15844_v11  ;;  %v21434_v4 = vld [vmem:[#allocation37_spill] sm:$0xff]  ;;  %v15851_v11 = vld [vmem:[%s21180_s8 + $0x520] ss:$16 sps:$4 sm:$0xff]  }
 0x400   :  { %10928 = vmatprep.subr.bf16.mxu0 %v15847_v26  ;;  %v15856_v26 = vld [vmem:[%s21180_s8 + $0x46c] ss:$16 sps:$4 sm:$0xff]  }
 0x402   :  { %11706 = vmatpush1.bf16.msra.mxu1 %v15842_v30  ;;  %10872 = vmatmul.mubr.bf16.gmra.mrb[176].mxu0 %v21433_v41  ;;  %v15859_v30 = vld [vmem:[%s21180_s8 + $0x544] ss:$16 sps:$4 sm:$0xff]  }
 0x403   :  { %10881 = vmatprep.mubr.bf16.mxu0 %v21434_v4  ;;  %10929 = vmatpush1.bf16.msra.mxu0 %v15845_v15  ;;  %v15854_v15 = vld [vmem:[%s21180_s8 + $0x468] ss:$16 sps:$4 sm:$0xff]  }
 0x404   :  { %11707 = vmatprep.subr.bf16.mxu1 %v15850_v48  ;;  %10930 = vmatprep.subr.bf16.mxu0 %v15853_v6  ;;  %v15857_v48 = vld [vmem:[%s21180_s8 + $0x540] ss:$16 sps:$4 sm:$0xff]   ;;  %v15862_v6 = vld [vmem:[%s21180_s8 + $0x48c] ss:$16 sps:$4 sm:$0xff]  }
 0x405   :  { %11633 = vmatmul.mubr.bf16.gmra.mrb[148].mxu1 %v21427_v20  ;;  %v15865_v20 = vld [vmem:[%s21180_s8 + $0x564] ss:$16 sps:$4 sm:$0xff]  }
 0x406   :  { %11642 = vmatprep.mubr.bf16.mxu1 %v21428_v32  ;;  %11708 = vmatpush1.bf16.msra.mxu1 %v15848_v7  ;;  %v21435_v32 = vld [vmem:[#allocation36_spill] sm:$0xff]  ;;  %v15860_v7 = vld [vmem:[%s21180_s8 + $0x488] ss:$16 sps:$4 sm:$0xff]  }
 0x407   :  { %10931 = vmatpush1.bf16.msra.mxu0 %v15851_v11  ;;  %11709 = vmatprep.subr.bf16.mxu1 %v15856_v26  ;;  %v21436_v11 = vld [vmem:[#allocation41_spill] sm:$0xff]  ;;  %v15863_v26 = vld [vmem:[%s21180_s8 + $0x560] ss:$16 sps:$4 sm:$0xff]  }
 0x408   :  { %10932 = vmatprep.subr.bf16.mxu0 %v15859_v30  ;;  %v15868_v30 = vld [vmem:[%s21180_s8 + $0x4ac] ss:$16 sps:$4 sm:$0xff]  }
 0x40a   :  { %11710 = vmatpush1.bf16.msra.mxu1 %v15854_v15  ;;  %10882 = vmatmul.mubr.bf16.gmra.mrb[180].mxu0 %v21435_v32  ;;  %v15871_v15 = vld [vmem:[%s21180_s8 + $0x584] ss:$16 sps:$4 sm:$0xff]  }
 0x40b   :  { %10891 = vmatprep.mubr.bf16.mxu0 %v21436_v11  ;;  %10933 = vmatpush1.bf16.msra.mxu0 %v15857_v48  ;;  %v15866_v48 = vld [vmem:[%s21180_s8 + $0x4a8] ss:$16 sps:$4 sm:$0xff]  }
 0x40c   :  { %11711 = vmatprep.subr.bf16.mxu1 %v15862_v6  ;;  %10934 = vmatprep.subr.bf16.mxu0 %v15865_v20  ;;  %v15869_v6 = vld [vmem:[%s21180_s8 + $0x580] ss:$16 sps:$4 sm:$0xff]   ;;  %v15874_v20 = vld [vmem:[%s21180_s8 + $0x4cc] ss:$16 sps:$4 sm:$0xff]  }
 0x40d   :  { %11643 = vmatmul.mubr.bf16.gmra.mrb[152].mxu1 %v21429_v24  ;;  %v15877_v24 = vld [vmem:[%s21180_s8 + $0x5a4] ss:$16 sps:$4 sm:$0xff]  }
 0x40e   :  { %11652 = vmatprep.mubr.bf16.mxu1 %v21430_v35  ;;  %11712 = vmatpush1.bf16.msra.mxu1 %v15860_v7  ;;  %v21437_v35 = vld [vmem:[#allocation40_spill] sm:$0xff]  ;;  %v15872_v7 = vld [vmem:[%s21180_s8 + $0x4c8] ss:$16 sps:$4 sm:$0xff]  }
 0x40f   :  { %10935 = vmatpush1.bf16.msra.mxu0 %v15863_v26  ;;  %11713 = vmatprep.subr.bf16.mxu1 %v15868_v30  ;;  %v21438_v26 = vld [vmem:[#allocation45_spill] sm:$0xff]  ;;  %v15875_v30 = vld [vmem:[%s21180_s8 + $0x5a0] ss:$16 sps:$4 sm:$0xff]  }
 0x410   :  { %10936 = vmatprep.subr.bf16.mxu0 %v15871_v15  ;;  %v15880_v15 = vld [vmem:[%s21180_s8 + $0x4ec] ss:$16 sps:$4 sm:$0xff]  }
 0x412   :  { %11714 = vmatpush1.bf16.msra.mxu1 %v15866_v48  ;;  %10892 = vmatmul.mubr.bf16.gmra.mrb[184].mxu0 %v21437_v35  ;;  %v15883_v48 = vld [vmem:[%s21180_s8 + $0x5c4] ss:$16 sps:$4 sm:$0xff]  }
 0x413   :  { %10901 = vmatprep.mubr.bf16.mxu0 %v21438_v26  ;;  %10937 = vmatpush1.bf16.msra.mxu0 %v15869_v6  ;;  %v15878_v6 = vld [vmem:[%s21180_s8 + $0x4e8] ss:$16 sps:$4 sm:$0xff]  }
 0x414   :  { %11715 = vmatprep.subr.bf16.mxu1 %v15874_v20  ;;  %10938 = vmatprep.subr.bf16.mxu0 %v15877_v24  ;;  %v15881_v20 = vld [vmem:[%s21180_s8 + $0x5c0] ss:$16 sps:$4 sm:$0xff]   ;;  %v15886_v24 = vld [vmem:[%s21180_s8 + $0x50c] ss:$16 sps:$4 sm:$0xff]  }
 0x415   :  { %11653 = vmatmul.mubr.bf16.gmra.mrb[156].mxu1 %v21431_v3  ;;  %v15889_v3 = vld [vmem:[%s21180_s8 + $0x5e4] ss:$16 sps:$4 sm:$0xff]  }
 0x416   :  { %11662 = vmatprep.mubr.bf16.mxu1 %v21432_v37  ;;  %11716 = vmatpush1.bf16.msra.mxu1 %v15872_v7  ;;  %v21439_v37 = vld [vmem:[#allocation44_spill] sm:$0xff]  ;;  %v15884_v7 = vld [vmem:[%s21180_s8 + $0x508] ss:$16 sps:$4 sm:$0xff]  }
 0x417   :  { %10939 = vmatpush1.bf16.msra.mxu0 %v15875_v30  ;;  %11717 = vmatprep.subr.bf16.mxu1 %v15880_v15  ;;  %v21440_v30 = vld [vmem:[#allocation31_spill] sm:$0xff]  ;;  %v15887_v15 = vld [vmem:[%s21180_s8 + $0x5e0] ss:$16 sps:$4 sm:$0xff]  }
 0x418   :  { %10940 = vmatprep.subr.bf16.mxu0 %v15883_v48  ;;  %v15892_v48 = vld [vmem:[%s21180_s8 + $0x52c] ss:$16 sps:$4 sm:$0xff]  }
 0x41a   :  { %11718 = vmatpush1.bf16.msra.mxu1 %v15878_v6  ;;  %10902 = vmatmul.mubr.bf16.gmra.mrb[188].mxu0 %v21439_v37  ;;  %v15895_v6 = vld [vmem:[%s21180_s8 + $0x604] ss:$16 sps:$4 sm:$0xff]  }
 0x41b   :  { %10941 = vmatpush1.bf16.msra.mxu0 %v15881_v20  ;;  %10944 = vmatprep.mubr.bf16.mxu0 %v21440_v30  ;;  %v15890_v20 = vld [vmem:[%s21180_s8 + $0x528] ss:$16 sps:$4 sm:$0xff]  }
 0x41c   :  { %11719 = vmatprep.subr.bf16.mxu1 %v15886_v24  ;;  %10942 = vmatprep.subr.bf16.mxu0 %v15889_v3  ;;  %v15893_v24 = vld [vmem:[%s21180_s8 + $0x600] ss:$16 sps:$4 sm:$0xff]   ;;  %v15898_v3 = vld [vmem:[%s21180_s8 + $0x54c] ss:$16 sps:$4 sm:$0xff]  }
 0x41d   :  { %11663 = vmatmul.mubr.bf16.gmra.mrb[160].mxu1 %v21433_v41  ;;  %v15901_v41 = vld [vmem:[%s21180_s8 + $0x624] ss:$16 sps:$4 sm:$0xff]  }
 0x41e   :  { %11672 = vmatprep.mubr.bf16.mxu1 %v21434_v4  ;;  %11720 = vmatpush1.bf16.msra.mxu1 %v15884_v7  ;;  %v21441_v4 = vld [vmem:[#allocation30_spill] sm:$0xff]  ;;  %v15896_v7 = vld [vmem:[%s21180_s8 + $0x548] ss:$16 sps:$4 sm:$0xff]  }
 0x41f   :  { %10943 = vmatpush1.bf16.msra.mxu0 %v15887_v15  ;;  %11721 = vmatprep.subr.bf16.mxu1 %v15892_v48  ;;  %v21442_v15 = vld [vmem:[#allocation35_spill] sm:$0xff]  ;;  %v15899_v48 = vld [vmem:[%s21180_s8 + $0x620] ss:$16 sps:$4 sm:$0xff]  }
 0x420   :  { %11025 = vmatprep.subr.bf16.mxu0 %v15895_v6  ;;  %v15904_v6 = vld [vmem:[%s21180_s8 + $0x56c] ss:$16 sps:$4 sm:$0xff]  }
 0x422   :  { %11722 = vmatpush1.bf16.msra.mxu1 %v15890_v20  ;;  %10945 = vmatmul.mubr.bf16.vlgmr.msra.gmra.mrb[160].mxu0 %v21441_v4  ;;  %v15907_v20 = vld [vmem:[%s21180_s8 + $0x644] ss:$16 sps:$4 sm:$0xff]  }
 0x423   :  { %10954 = vmatprep.mubr.bf16.mxu0 %v21442_v15  ;;  %11026 = vmatpush1.bf16.msra.mxu0 %v15893_v24  ;;  %v15902_v24 = vld [vmem:[%s21180_s8 + $0x568] ss:$16 sps:$4 sm:$0xff]  }
 0x424   :  { %11723 = vmatprep.subr.bf16.mxu1 %v15898_v3  ;;  %11027 = vmatprep.subr.bf16.mxu0 %v15901_v41  ;;  %v15905_v3 = vld [vmem:[%s21180_s8 + $0x640] ss:$16 sps:$4 sm:$0xff]   ;;  %v15910_v41 = vld [vmem:[%s21180_s8 + $0x58c] ss:$16 sps:$4 sm:$0xff]  }
 0x425   :  { %11673 = vmatmul.mubr.bf16.gmra.mrb[164].mxu1 %v21435_v32  ;;  %v15913_v32 = vld [vmem:[%s21180_s8 + $0x664] ss:$16 sps:$4 sm:$0xff]  }
 0x426   :  { %11682 = vmatprep.mubr.bf16.mxu1 %v21436_v11  ;;  %11724 = vmatpush1.bf16.msra.mxu1 %v15896_v7  ;;  %v21443_v11 = vld [vmem:[#allocation34_spill] sm:$0xff]  ;;  %v15908_v7 = vld [vmem:[%s21180_s8 + $0x588] ss:$16 sps:$4 sm:$0xff]  }
 0x427   :  { %11028 = vmatpush1.bf16.msra.mxu0 %v15899_v48  ;;  %11725 = vmatprep.subr.bf16.mxu1 %v15904_v6  ;;  %v21444_v48 = vld [vmem:[#allocation39_spill] sm:$0xff]  ;;  %v15911_v6 = vld [vmem:[%s21180_s8 + $0x660] ss:$16 sps:$4 sm:$0xff]  }
 0x428   :  { %11029 = vmatprep.subr.bf16.mxu0 %v15907_v20  ;;  %v15916_v20 = vld [vmem:[%s21180_s8 + $0x5ac] ss:$16 sps:$4 sm:$0xff]  }
 0x42a   :  { %11726 = vmatpush1.bf16.msra.mxu1 %v15902_v24  ;;  %10955 = vmatmul.mubr.bf16.gmra.mrb[164].mxu0 %v21443_v11  ;;  %v15919_v24 = vld [vmem:[%s21180_s8 + $0x684] ss:$16 sps:$4 sm:$0xff]  }
 0x42b   :  { %10964 = vmatprep.mubr.bf16.mxu0 %v21444_v48  ;;  %11030 = vmatpush1.bf16.msra.mxu0 %v15905_v3  ;;  %v15914_v3 = vld [vmem:[%s21180_s8 + $0x5a8] ss:$16 sps:$4 sm:$0xff]  }
 0x42c   :  { %11727 = vmatprep.subr.bf16.mxu1 %v15910_v41  ;;  %11031 = vmatprep.subr.bf16.mxu0 %v15913_v32  ;;  %v15917_v41 = vld [vmem:[%s21180_s8 + $0x680] ss:$16 sps:$4 sm:$0xff]   ;;  %v15922_v32 = vld [vmem:[%s21180_s8 + $0x5cc] ss:$16 sps:$4 sm:$0xff]  }
 0x42d   :  { %11683 = vmatmul.mubr.bf16.gmra.mrb[168].mxu1 %v21437_v35  ;;  %v15925_v35 = vld [vmem:[%s21180_s8 + $0x6a4] ss:$16 sps:$4 sm:$0xff]  }
 0x42e   :  { %11692 = vmatprep.mubr.bf16.mxu1 %v21438_v26  ;;  %11728 = vmatpush1.bf16.msra.mxu1 %v15908_v7  ;;  %v21445_v26 = vld [vmem:[#allocation38_spill] sm:$0xff]  ;;  %v15920_v7 = vld [vmem:[%s21180_s8 + $0x5c8] ss:$16 sps:$4 sm:$0xff]  }
 0x42f   :  { %11032 = vmatpush1.bf16.msra.mxu0 %v15911_v6  ;;  %11729 = vmatprep.subr.bf16.mxu1 %v15916_v20  ;;  %v21446_v6 = vld [vmem:[#allocation43_spill] sm:$0xff]  ;;  %v15923_v20 = vld [vmem:[%s21180_s8 + $0x6a0] ss:$16 sps:$4 sm:$0xff]  }
 0x430   :  { %11033 = vmatprep.subr.bf16.mxu0 %v15919_v24  ;;  %v15928_v24 = vld [vmem:[%s21180_s8 + $0x5ec] ss:$16 sps:$4 sm:$0xff]  }
 0x432   :  { %11730 = vmatpush1.bf16.msra.mxu1 %v15914_v3  ;;  %10965 = vmatmul.mubr.bf16.gmra.mrb[168].mxu0 %v21445_v26  ;;  %v15931_v3 = vld [vmem:[%s21180_s8 + $0x6c4] ss:$16 sps:$4 sm:$0xff]  }
 0x433   :  { %10974 = vmatprep.mubr.bf16.mxu0 %v21446_v6  ;;  %11034 = vmatpush1.bf16.msra.mxu0 %v15917_v41 }
 0x434   :  { %11731 = vmatprep.subr.bf16.mxu1 %v15922_v32  ;;  %11035 = vmatprep.subr.bf16.mxu0 %v15925_v35  ;;  %v15929_v32 = vld [vmem:[%s21180_s8 + $0x6c0] ss:$16 sps:$4 sm:$0xff]  }
 0x435   :  { %11693 = vmatmul.mubr.bf16.gmra.mrb[172].mxu1 %v21439_v37  ;;  %v7074_v22 = vpop.f32.mrb[128].mxu0  ;;  %v15934_v37 = vld [vmem:[%s21180_s8 + $0x60c] ss:$16 sps:$4 sm:$0xff]  }
 0x436   :  { %11732 = vmatpush1.bf16.msra.mxu1 %v15920_v7  ;;  %11735 = vmatprep.mubr.bf16.mxu1 %v21440_v30  ;;  %v7076_v41 = vpop.f32.mrb[129].mxu0  ;;  %v15937_v30 = vld [vmem:[%s21180_s8 + $0x6e4] ss:$16 sps:$4 sm:$0xff]  }
 0x437   :  { %v13436_v8 = vpack.c.bf16 %v7076_v41, %v7074_v22  ;;  %v7078_v62 = vpop.f32.mrb[130].mxu0  ;;  %11036 = vmatpush1.bf16.msra.mxu0 %v15923_v20  ;;  %11733 = vmatprep.subr.bf16.mxu1 %v15928_v24  ;;  %v21447_v7 = vld [vmem:[#allocation42_spill] sm:$0xff]  ;;  %v15932_v20 = vld [vmem:[%s21180_s8 + $0x608] ss:$16 sps:$4 sm:$0xff]  }
 0x438   :  { %v7080_v35 = vpop.f32.mrb[131].mxu0  ;;  %11037 = vmatprep.subr.bf16.mxu0 %v15931_v3  ;;  %v21448_v24 = vld [vmem:[#allocation47_spill] sm:$0xff]  ;;  %v15935_v3 = vld [vmem:[%s21180_s8 + $0x6e0] ss:$16 sps:$4 sm:$0xff]  }
 0x439   :  { %8136 = vst [vmem:[%s21181_s10] sm:$0xff] %v13436_v8  ;;  %v13438_v22 = vpack.c.bf16 %v7080_v35, %v7078_v62  ;;  %v15940_v8 = vld [vmem:[%s21180_s8 + $0x62c] ss:$16 sps:$4 sm:$0xff]   ;;  %v15943_v62 = vld [vmem:[%s21180_s8 + $0x704] ss:$16 sps:$4 sm:$0xff]  }
 0x43a   :  { %11734 = vmatpush1.bf16.msra.mxu1 %v15926_v0  ;;  %10975 = vmatmul.mubr.bf16.gmra.mrb[172].mxu0 %v21447_v7 }
 0x43b   :  { %8138 = vst [vmem:[%s21181_s10 + $0x10] sm:$0xff] %v13438_v22  ;;  %10984 = vmatprep.mubr.bf16.mxu0 %v21448_v24  ;;  %11038 = vmatpush1.bf16.msra.mxu0 %v15929_v32  ;;  %v15938_v32 = vld [vmem:[%s21180_s8 + $0x628] ss:$16 sps:$4 sm:$0xff]  }
 0x43c   :  { %11816 = vmatprep.subr.bf16.mxu1 %v15934_v37  ;;  %11039 = vmatprep.subr.bf16.mxu0 %v15937_v30  ;;  %v15941_v37 = vld [vmem:[%s21180_s8 + $0x700] ss:$16 sps:$4 sm:$0xff]  }
 0x43d   :  { %11736 = vmatmul.mubr.bf16.vlgmr.msra.gmra.mrb[144].mxu1 %v21441_v4  ;;  %v7084_v0 = vpop.f32.mrb[132].mxu0  ;;  %v15946_v4 = vld [vmem:[%s21180_s8 + $0x64c] ss:$16 sps:$4 sm:$0xff]  }
 0x43e   :  { %11745 = vmatprep.mubr.bf16.mxu1 %v21442_v15  ;;  %11817 = vmatpush1.bf16.msra.mxu1 %v15932_v20  ;;  %v7086_v41 = vpop.f32.mrb[133].mxu0  ;;  %v15949_v15 = vld [vmem:[%s21180_s8 + $0x724] ss:$16 sps:$4 sm:$0xff]  }
 0x43f   :  { %v13440_v35 = vpack.c.bf16 %v7086_v41, %v7084_v0  ;;  %v7088_v22 = vpop.f32.mrb[134].mxu0  ;;  %11040 = vmatpush1.bf16.msra.mxu0 %v15935_v3  ;;  %11818 = vmatprep.subr.bf16.mxu1 %v15940_v8  ;;  %v21449_v3 = vld [vmem:[#allocation46_spill] sm:$0xff]  ;;  %v15944_v8 = vld [vmem:[%s21180_s8 + $0x648] ss:$16 sps:$4 sm:$0xff]   ;;  %v15952_v41 = vld [vmem:[%s21180_s8 + $0x66c] ss:$16 sps:$4 sm:$0xff]  }
 0x440   :  { %v7090_v30 = vpop.f32.mrb[135].mxu0  ;;  %11041 = vmatprep.subr.bf16.mxu0 %v15943_v62  ;;  %v21450_v62 = vld [vmem:[#allocation49_spill] sm:$0xff]  ;;  %v15947_v0 = vld [vmem:[%s21180_s8 + $0x720] ss:$16 sps:$4 sm:$0xff]  }
 0x441   :  { %8140 = vst [vmem:[%s21181_s10 + $0x20] sm:$0xff] %v13440_v35  ;;  %v13442_v20 = vpack.c.bf16 %v7090_v30, %v7088_v22 }
 0x442   :  { %11819 = vmatpush1.bf16.msra.mxu1 %v15938_v32  ;;  %10985 = vmatmul.mubr.bf16.gmra.mrb[176].mxu0 %v21449_v3  ;;  %v15955_v32 = vld [vmem:[%s21180_s8 + $0x744] ss:$16 sps:$4 sm:$0xff]  }
 0x443   :  { %8142 = vst [vmem:[%s21181_s10 + $0x30] sm:$0xff] %v13442_v20  ;;  %10994 = vmatprep.mubr.bf16.mxu0 %v21450_v62  ;;  %11042 = vmatpush1.bf16.msra.mxu0 %v15941_v37  ;;  %v15950_v37 = vld [vmem:[%s21180_s8 + $0x668] ss:$16 sps:$4 sm:$0xff]  }
 0x444   :  { %11820 = vmatprep.subr.bf16.mxu1 %v15946_v4  ;;  %11043 = vmatprep.subr.bf16.mxu0 %v15949_v15  ;;  %v15953_v4 = vld [vmem:[%s21180_s8 + $0x740] ss:$16 sps:$4 sm:$0xff]  }
 0x445   :  { %11746 = vmatmul.mubr.bf16.gmra.mrb[148].mxu1 %v21443_v11  ;;  %v7094_v35 = vpop.f32.mrb[136].mxu0  ;;  %v15958_v11 = vld [vmem:[%s21180_s8 + $0x68c] ss:$16 sps:$4 sm:$0xff]  }
 0x446   :  { %11755 = vmatprep.mubr.bf16.mxu1 %v21444_v48  ;;  %11821 = vmatpush1.bf16.msra.mxu1 %v15944_v8  ;;  %v7096_v22 = vpop.f32.mrb[137].mxu0  ;;  %v15961_v48 = vld [vmem:[%s21180_s8 + $0x764] ss:$16 sps:$4 sm:$0xff]  }
 0x447   :  { %v13444_v30 = vpack.c.bf16 %v7096_v22, %v7094_v35  ;;  %v7098_v20 = vpop.f32.mrb[138].mxu0  ;;  %11044 = vmatpush1.bf16.msra.mxu0 %v15947_v0  ;;  %11822 = vmatprep.subr.bf16.mxu1 %v15952_v41  ;;  %v21451_v0 = vld [vmem:[#allocation48_spill] sm:$0xff]  ;;  %v15956_v41 = vld [vmem:[%s21180_s8 + $0x688] ss:$16 sps:$4 sm:$0xff]   ;;  %v15964_v22 = vld [vmem:[%s21180_s8 + $0x6ac] ss:$16 sps:$4 sm:$0xff]  }
 0x448   :  { %v7100_v15 = vpop.f32.mrb[139].mxu0  ;;  %11045 = vmatprep.subr.bf16.mxu0 %v15955_v32  ;;  %v21452_v32 = vld [vmem:[#allocation50_spill] sm:$0xff] }
 0x449   :  { %8144 = vst [vmem:[%s21181_s10 + $0x40] sm:$0xff] %v13444_v30  ;;  %v13446_v8 = vpack.c.bf16 %v7100_v15, %v7098_v20  ;;  %v15959_v35 = vld [vmem:[%s21180_s8 + $0x760] ss:$16 sps:$4 sm:$0xff]  }
 0x44a   :  { %11823 = vmatpush1.bf16.msra.mxu1 %v15950_v37  ;;  %10995 = vmatmul.mubr.bf16.gmra.mrb[180].mxu0 %v21451_v0  ;;  %v15967_v37 = vld [vmem:[%s21180_s8 + $0x784] ss:$16 sps:$4 sm:$0xff]  }
 0x44b   :  { %8146 = vst [vmem:[%s21181_s10 + $0x50] sm:$0xff] %v13446_v8  ;;  %11004 = vmatprep.mubr.bf16.mxu0 %v21452_v32  ;;  %11046 = vmatpush1.bf16.msra.mxu0 %v15953_v4  ;;  %v15962_v4 = vld [vmem:[%s21180_s8 + $0x6a8] ss:$16 sps:$4 sm:$0xff]  }
 0x44c   :  { %11824 = vmatprep.subr.bf16.mxu1 %v15958_v11  ;;  %11047 = vmatprep.subr.bf16.mxu0 %v15961_v48  ;;  %v15965_v11 = vld [vmem:[%s21180_s8 + $0x780] ss:$16 sps:$4 sm:$0xff]  }
 0x44d   :  { %11756 = vmatmul.mubr.bf16.gmra.mrb[152].mxu1 %v21445_v26  ;;  %v7104_v30 = vpop.f32.mrb[140].mxu0  ;;  %v15970_v26 = vld [vmem:[%s21180_s8 + $0x6cc] ss:$16 sps:$4 sm:$0xff]  }
 0x44e   :  { %11765 = vmatprep.mubr.bf16.mxu1 %v21446_v6  ;;  %11825 = vmatpush1.bf16.msra.mxu1 %v15956_v41  ;;  %v7106_v20 = vpop.f32.mrb[141].mxu0  ;;  %v15973_v6 = vld [vmem:[%s21180_s8 + $0x7a4] ss:$16 sps:$4 sm:$0xff]  }
 0x44f   :  { %v13448_v15 = vpack.c.bf16 %v7106_v20, %v7104_v30  ;;  %v7108_v8 = vpop.f32.mrb[142].mxu0  ;;  %11048 = vmatpush1.bf16.msra.mxu0 %v15959_v35  ;;  %11826 = vmatprep.subr.bf16.mxu1 %v15964_v22 }
 0x450   :  { %v7865_v48 = vpop.f32.mrb[112].mxu1  ;;  %v7110_v50 = vpop.f32.mrb[143].mxu0  ;;  %11049 = vmatprep.subr.bf16.mxu0 %v15967_v37  ;;  %v15968_v37 = vld [vmem:[%s21180_s8 + $0x6c8] ss:$16 sps:$4 sm:$0xff]  }
 0x451   :  { %8148 = vst [vmem:[%s21181_s10 + $0x60] sm:$0xff] %v13448_v15  ;;  %v13450_v41 = vpack.c.bf16 %v7110_v50, %v7108_v8  ;;  %v7867_v35 = vpop.f32.mrb[113].mxu1  ;;  %v15971_v50 = vld [vmem:[%s21180_s8 + $0x7a0] ss:$16 sps:$4 sm:$0xff]   ;;  %v15979_v8 = vld [vmem:[%s21180_s8 + $0x7c4] ss:$16 sps:$4 sm:$0xff]  }
 0x452   :  { %v13437_v22 = vpack.c.bf16 %v7867_v35, %v7865_v48  ;;  %v7869_v30 = vpop.f32.mrb[114].mxu1  ;;  %11827 = vmatpush1.bf16.msra.mxu1 %v15962_v4  ;;  %11005 = vmatmul.mubr.bf16.gmra.mrb[184].mxu0 %v18135_v53  ;;  %v15976_v4 = vld [vmem:[%s21180_s8 + $0x6ec] ss:$16 sps:$4 sm:$0xff]  }
 0x453   :  { %8150 = vst [vmem:[%s21181_s10 + $0x70] sm:$0xff] %v13450_v41  ;;  %v7871_v20 = vpop.f32.mrb[115].mxu1  ;;  %11014 = vmatprep.mubr.bf16.mxu0 %v18198_v47  ;;  %11050 = vmatpush1.bf16.msra.mxu0 %v15965_v11 }
 0x454   :  { %8137 = vst [vmem:[%s21181_s10 + $0x8] sm:$0xff] %v13437_v22  ;;  %v13439_v15 = vpack.c.bf16 %v7871_v20, %v7869_v30  ;;  %11828 = vmatprep.subr.bf16.mxu1 %v15970_v26  ;;  %11051 = vmatprep.subr.bf16.mxu0 %v15973_v6  ;;  %v15974_v26 = vld [vmem:[%s21180_s8 + $0x6e8] ss:$16 sps:$4 sm:$0xff]   ;;  %v15985_v30 = vld [vmem:[%s21180_s8 + $0x7e4] ss:$16 sps:$4 sm:$0xff]  }
 0x455   :  { %11766 = vmatmul.mubr.bf16.gmra.mrb[156].mxu1 %v21447_v7  ;;  %v7114_v11 = vpop.f32.mrb[144].mxu0  ;;  %v15977_v7 = vld [vmem:[%s21180_s8 + $0x7c0] ss:$16 sps:$4 sm:$0xff]  }
 0x456   :  { %8139 = vst [vmem:[%s21181_s10 + $0x18] sm:$0xff] %v13439_v15  ;;  %11775 = vmatprep.mubr.bf16.mxu1 %v21448_v24  ;;  %11829 = vmatpush1.bf16.msra.mxu1 %v15968_v37  ;;  %v7116_v48 = vpop.f32.mrb[145].mxu0  ;;  %v15982_v24 = vld [vmem:[%s21180_s8 + $0x70c] ss:$16 sps:$4 sm:$0xff]   ;;  %v15980_v15 = vld [vmem:[%s21180_s8 + $0x708] ss:$16 sps:$4 sm:$0xff]  }
 0x457   :  { %v13452_v6 = vpack.c.bf16 %v7116_v48, %v7114_v11  ;;  %v7118_v41 = vpop.f32.mrb[146].mxu0  ;;  %11052 = vmatpush1.bf16.msra.mxu0 %v15971_v50  ;;  %11830 = vmatprep.subr.bf16.mxu1 %v15976_v4  ;;  %v15983_v11 = vld [vmem:[%s21180_s8 + $0x7e0] ss:$16 sps:$4 sm:$0xff]   ;;  %v15988_v48 = vld [vmem:[%s21180_s8 + $0x72c] ss:$16 sps:$4 sm:$0xff]  }
 0x458   :  { %v7875_v35 = vpop.f32.mrb[116].mxu1  ;;  %v7120_v22 = vpop.f32.mrb[147].mxu0  ;;  %11053 = vmatprep.subr.bf16.mxu0 %v15979_v8 }
 0x459   :  { %8152 = vst [vmem:[%s21181_s10 + $0x80] sm:$0xff] %v13452_v6  ;;  %v13454_v37 = vpack.c.bf16 %v7120_v22, %v7118_v41  ;;  %v7877_v20 = vpop.f32.mrb[117].mxu1  ;;  %v15991_v6 = vld [vmem:[%s21180_s8 + $0x804] ss:$16 sps:$4 sm:$0xff]  }
 0x45a   :  { %v13441_v50 = vpack.c.bf16 %v7877_v20, %v7875_v35  ;;  %v7879_v4 = vpop.f32.mrb[118].mxu1  ;;  %11831 = vmatpush1.bf16.msra.mxu1 %v15974_v26  ;;  %11015 = vmatmul.mubr.bf16.gmra.mrb[188].mxu0 %v18192_v29  ;;  %v15986_v35 = vld [vmem:[%s21180_s8 + $0x728] ss:$16 sps:$4 sm:$0xff]   ;;  %v15997_v20 = vld [vmem:[%s21180_s8 + $0x824] ss:$16 sps:$4 sm:$0xff]  }
 0x45b   :  { %8154 = vst [vmem:[%s21181_s10 + $0x90] sm:$0xff] %v13454_v37  ;;  %v7881_v8 = vpop.f32.mrb[119].mxu1  ;;  %11054 = vmatpush1.bf16.msra.mxu0 %v15977_v7  ;;  %11057 = vmatprep.mubr.bf16.mxu0 %v18083_v17 }
 0x45c   :  { %8141 = vst [vmem:[%s21181_s10 + $0x28] sm:$0xff] %v13441_v50  ;;  %v13443_v26 = vpack.c.bf16 %v7881_v8, %v7879_v4  ;;  %11832 = vmatprep.subr.bf16.mxu1 %v15982_v24  ;;  %11055 = vmatprep.subr.bf16.mxu0 %v15985_v30 }
 0x45d   :  { %11776 = vmatmul.mubr.bf16.gmra.mrb[160].mxu1 %v21449_v3  ;;  %v7124_v41 = vpop.f32.mrb[148].mxu0  ;;  %v15989_v3 = vld [vmem:[%s21180_s8 + $0x800] ss:$16 sps:$4 sm:$0xff]  }
 0x45e   :  { %8143 = vst [vmem:[%s21181_s10 + $0x38] sm:$0xff] %v13443_v26  ;;  %11785 = vmatprep.mubr.bf16.mxu1 %v21450_v62  ;;  %11833 = vmatpush1.bf16.msra.mxu1 %v15980_v15  ;;  %v7126_v7 = vpop.f32.mrb[149].mxu0  ;;  %v15994_v62 = vld [vmem:[%s21180_s8 + $0x74c] ss:$16 sps:$4 sm:$0xff]   ;;  %v15995_v26 = vld [vmem:[%s21180_s8 + $0x820] ss:$16 sps:$4 sm:$0xff]  }
 0x45f   :  { %v13456_v22 = vpack.c.bf16 %v7126_v7, %v7124_v41  ;;  %v7128_v24 = vpop.f32.mrb[150].mxu0  ;;  %11056 = vmatpush1.bf16.msra.mxu0 %v15983_v11  ;;  %11834 = vmatprep.subr.bf16.mxu1 %v15988_v48  ;;  %v15992_v11 = vld [vmem:[%s21180_s8 + $0x748] ss:$16 sps:$4 sm:$0xff]   ;;  %v16003_v7 = vld [vmem:[%s21180_s8 + $0x844] ss:$16 sps:$4 sm:$0xff]  }
 0x460   :  { %v7885_v30 = vpop.f32.mrb[120].mxu1  ;;  %v7130_v37 = vpop.f32.mrb[151].mxu0  ;;  %11138 = vmatprep.subr.bf16.mxu0 %v15991_v6  ;;  %v16000_v6 = vld [vmem:[%s21180_s8 + $0x76c] ss:$16 sps:$4 sm:$0xff]  }
 0x461   :  { %8156 = vst [vmem:[%s21181_s10 + $0xa0] sm:$0xff] %v13456_v22  ;;  %v13458_v50 = vpack.c.bf16 %v7130_v37, %v7128_v24  ;;  %v7887_v4 = vpop.f32.mrb[121].mxu1  ;;  %v15998_v24 = vld [vmem:[%s21180_s8 + $0x768] ss:$16 sps:$4 sm:$0xff]  }
 0x462   :  { %v13445_v15 = vpack.c.bf16 %v7887_v4, %v7885_v30  ;;  %v7889_v8 = vpop.f32.mrb[122].mxu1  ;;  %11835 = vmatpush1.bf16.msra.mxu1 %v15986_v35  ;;  %11058 = vmatmul.mubr.bf16.vlgmr.msra.gmra.mrb[160].mxu0 %v18077_v39 }
 0x463   :  { %8158 = vst [vmem:[%s21181_s10 + $0xb0] sm:$0xff] %v13458_v50  ;;  %v7891_v48 = vpop.f32.mrb[123].mxu1  ;;  %11067 = vmatprep.mubr.bf16.mxu0 %v18127_v18  ;;  %11139 = vmatpush1.bf16.msra.mxu0 %v15989_v3 }
 0x464   :  { %8145 = vst [vmem:[%s21181_s10 + $0x48] sm:$0xff] %v13445_v15  ;;  %v13447_v41 = vpack.c.bf16 %v7891_v48, %v7889_v8  ;;  %11836 = vmatprep.subr.bf16.mxu1 %v15994_v62  ;;  %11140 = vmatprep.subr.bf16.mxu0 %v15997_v20  ;;  %v16009_v20 = vld [vmem:[%s21180_s8 + $0x864] ss:$16 sps:$4 sm:$0xff]  }
 0x465   :  { %11786 = vmatmul.mubr.bf16.gmra.mrb[164].mxu1 %v21451_v0  ;;  %v7134_v35 = vpop.f32.mrb[152].mxu0  ;;  %v16001_v0 = vld [vmem:[%s21180_s8 + $0x840] ss:$16 sps:$4 sm:$0xff]  }
 0x466   :  { %8147 = vst [vmem:[%s21181_s10 + $0x58] sm:$0xff] %v13447_v41  ;;  %11795 = vmatprep.mubr.bf16.mxu1 %v21452_v32  ;;  %11837 = vmatpush1.bf16.msra.mxu1 %v15992_v11  ;;  %v7136_v22 = vpop.f32.mrb[153].mxu0  ;;  %v16006_v32 = vld [vmem:[%s21180_s8 + $0x78c] ss:$16 sps:$4 sm:$0xff]   ;;  %v16004_v11 = vld [vmem:[%s21180_s8 + $0x788] ss:$16 sps:$4 sm:$0xff]  }
 0x467   :  { %v13460_v3 = vpack.c.bf16 %v7136_v22, %v7134_v35  ;;  %v7138_v30 = vpop.f32.mrb[154].mxu0  ;;  %11141 = vmatpush1.bf16.msra.mxu0 %v15995_v26  ;;  %11838 = vmatprep.subr.bf16.mxu1 %v16000_v6  ;;  %v16007_v26 = vld [vmem:[%s21180_s8 + $0x860] ss:$16 sps:$4 sm:$0xff]   ;;  %v16012_v6 = vld [vmem:[%s21180_s8 + $0x7ac] ss:$16 sps:$4 sm:$0xff]  }
 0x468   :  { %v7895_v37 = vpop.f32.mrb[124].mxu1  ;;  %v7140_v62 = vpop.f32.mrb[155].mxu0  ;;  %11142 = vmatprep.subr.bf16.mxu0 %v16003_v7  ;;  %v16015_v7 = vld [vmem:[%s21180_s8 + $0x884] ss:$16 sps:$4 sm:$0xff]  }
 0x469   :  { %8160 = vst [vmem:[%s21181_s10 + $0xc0] sm:$0xff] %v13460_v3  ;;  %v13462_v50 = vpack.c.bf16 %v7140_v62, %v7138_v30  ;;  %v7897_v4 = vpop.f32.mrb[125].mxu1  ;;  %v16021_v62 = vld [vmem:[%s21180_s8 + $0x8a4] ss:$16 sps:$4 sm:$0xff]  }
 0x46a   :  { %v13449_v15 = vpack.c.bf16 %v7897_v4, %v7895_v37  ;;  %v7899_v8 = vpop.f32.mrb[126].mxu1  ;;  %11839 = vmatpush1.bf16.msra.mxu1 %v15998_v24  ;;  %11068 = vmatmul.mubr.bf16.gmra.mrb[164].mxu0 %v18121_v5  ;;  %v16010_v24 = vld [vmem:[%s21180_s8 + $0x7a8] ss:$16 sps:$4 sm:$0xff]  }
 0x46b   :  { %8162 = vst [vmem:[%s21181_s10 + $0xd0] sm:$0xff] %v13462_v50  ;;  %v7901_v48 = vpop.f32.mrb[127].mxu1  ;;  %11077 = vmatprep.mubr.bf16.mxu0 %v18176_v52  ;;  %11143 = vmatpush1.bf16.msra.mxu0 %v16001_v0 }
 0x46c   :  { %8149 = vst [vmem:[%s21181_s10 + $0x68] sm:$0xff] %v13449_v15  ;;  %v13451_v41 = vpack.c.bf16 %v7901_v48, %v7899_v8  ;;  %11840 = vmatprep.subr.bf16.mxu1 %v16006_v32  ;;  %11144 = vmatprep.subr.bf16.mxu0 %v16009_v20  ;;  %v16016_v15 = vld [vmem:[%s21180_s8 + $0x7c8] ss:$16 sps:$4 sm:$0xff]   ;;  %v16024_v48 = vld [vmem:[%s21180_s8 + $0x7ec] ss:$16 sps:$4 sm:$0xff]  }
 0x46d   :  { %11796 = vmatmul.mubr.bf16.gmra.mrb[168].mxu1 %v18135_v53  ;;  %v7144_v35 = vpop.f32.mrb[156].mxu0  ;;  %v16013_v53 = vld [vmem:[%s21180_s8 + $0x880] ss:$16 sps:$4 sm:$0xff]  }
 0x46e   :  { %8151 = vst [vmem:[%s21181_s10 + $0x78] sm:$0xff] %v13451_v41  ;;  %11805 = vmatprep.mubr.bf16.mxu1 %v18198_v47  ;;  %11841 = vmatpush1.bf16.msra.mxu1 %v16004_v11  ;;  %v7146_v22 = vpop.f32.mrb[157].mxu0  ;;  %v16018_v47 = vld [vmem:[%s21180_s8 + $0x7cc] ss:$16 sps:$4 sm:$0xff]   ;;  %v16019_v11 = vld [vmem:[%s21180_s8 + $0x8a0] ss:$16 sps:$4 sm:$0xff]  }
 0x46f   :  { %v13464_v3 = vpack.c.bf16 %v7146_v22, %v7144_v35  ;;  %v7148_v30 = vpop.f32.mrb[158].mxu0  ;;  %11145 = vmatpush1.bf16.msra.mxu0 %v16007_v26  ;;  %11842 = vmatprep.subr.bf16.mxu1 %v16012_v6  ;;  %v16027_v6 = vld [vmem:[%s21180_s8 + $0x8c4] ss:$16 sps:$4 sm:$0xff]   ;;  %v16022_v41 = vld [vmem:[%s21180_s8 + $0x7e8] ss:$16 sps:$4 sm:$0xff]  }
 0x470   :  { %v7905_v0 = vpop.f32.mrb[128].mxu1  ;;  %v7150_v37 = vpop.f32.mrb[159].mxu0  ;;  %11146 = vmatprep.subr.bf16.mxu0 %v16015_v7  ;;  %v16025_v7 = vld [vmem:[%s21180_s8 + $0x8c0] ss:$16 sps:$4 sm:$0xff]  }
 0x471   :  { %8164 = vst [vmem:[%s21181_s10 + $0xe0] sm:$0xff] %v13464_v3  ;;  %v13466_v32 = vpack.c.bf16 %v7150_v37, %v7148_v30  ;;  %v7907_v20 = vpop.f32.mrb[129].mxu1  ;;  %v16028_v30 = vld [vmem:[%s21180_s8 + $0x808] ss:$16 sps:$4 sm:$0xff]   ;;  %v16036_v37 = vld [vmem:[%s21180_s8 + $0x82c] ss:$16 sps:$4 sm:$0xff]  }
 0x472   :  { %v13453_v50 = vpack.c.bf16 %v7907_v20, %v7905_v0  ;;  %v7909_v4 = vpop.f32.mrb[130].mxu1  ;;  %11843 = vmatpush1.bf16.msra.mxu1 %v16010_v24  ;;  %11078 = vmatmul.mubr.bf16.gmra.mrb[168].mxu0 %v18170_v59  ;;  %v16031_v0 = vld [vmem:[%s21180_s8 + $0x8e0] ss:$16 sps:$4 sm:$0xff]  }
 0x473   :  { %8166 = vst [vmem:[%s21181_s10 + $0xf0] sm:$0xff] %v13466_v32  ;;  %v7911_v8 = vpop.f32.mrb[131].mxu1  ;;  %11087 = vmatprep.mubr.bf16.mxu0 %v18228_v36  ;;  %11147 = vmatpush1.bf16.msra.mxu0 %v16013_v53  ;;  %v16034_v32 = vld [vmem:[%s21180_s8 + $0x828] ss:$16 sps:$4 sm:$0xff]   ;;  %v16037_v20 = vld [vmem:[%s21180_s8 + $0x900] ss:$16 sps:$4 sm:$0xff]  }
 0x474   :  { %8153 = vst [vmem:[%s21181_s10 + $0x88] sm:$0xff] %v13453_v50  ;;  %v13455_v26 = vpack.c.bf16 %v7911_v8, %v7909_v4  ;;  %11844 = vmatprep.subr.bf16.mxu1 %v16018_v47  ;;  %11148 = vmatprep.subr.bf16.mxu0 %v16021_v62  ;;  %v16039_v62 = vld [vmem:[%s21180_s8 + $0x904] ss:$16 sps:$4 sm:$0xff]  }
 0x475   :  { %11806 = vmatmul.mubr.bf16.gmra.mrb[172].mxu1 %v18192_v29  ;;  %v16030_v29 = vld [vmem:[%s21180_s8 + $0x80c] ss:$16 sps:$4 sm:$0xff]  }
 0x476   :  { %8155 = vst [vmem:[%s21181_s10 + $0x98] sm:$0xff] %v13455_v26  ;;  %11845 = vmatpush1.bf16.msra.mxu1 %v16016_v15  ;;  %11848 = vmatprep.mubr.bf16.mxu1 %v18083_v17  ;;  %v16033_v17 = vld [vmem:[%s21180_s8 + $0x8e4] ss:$16 sps:$4 sm:$0xff]   ;;  %v16043_v26 = vld [vmem:[%s21180_s8 + $0x920] ss:$16 sps:$4 sm:$0xff]  }
 0x477   :  { %11149 = vmatpush1.bf16.msra.mxu0 %v16019_v11  ;;  %11846 = vmatprep.subr.bf16.mxu1 %v16024_v48  ;;  %v16040_v11 = vld [vmem:[%s21180_s8 + $0x848] ss:$16 sps:$4 sm:$0xff]  }
 0x478   :  { %v7915_v35 = vpop.f32.mrb[132].mxu1  ;;  %11150 = vmatprep.subr.bf16.mxu0 %v16027_v6  ;;  %v16048_v6 = vld [vmem:[%s21180_s8 + $0x86c] ss:$16 sps:$4 sm:$0xff]  }
 0x479   :  { %v7917_v22 = vpop.f32.mrb[133].mxu1 }
 0x47a   :  { %v13457_v24 = vpack.c.bf16 %v7917_v22, %v7915_v35  ;;  %v7919_v3 = vpop.f32.mrb[134].mxu1  ;;  %11847 = vmatpush1.bf16.msra.mxu1 %v16022_v41  ;;  %11088 = vmatmul.mubr.bf16.gmra.mrb[172].mxu0 %v18222_v46  ;;  %v16046_v35 = vld [vmem:[%s21180_s8 + $0x868] ss:$16 sps:$4 sm:$0xff]  }
 0x47b   :  { %v7921_v53 = vpop.f32.mrb[135].mxu1  ;;  %11097 = vmatprep.mubr.bf16.mxu0 %v18272_v12  ;;  %11151 = vmatpush1.bf16.msra.mxu0 %v16025_v7  ;;  %v16051_v7 = vld [vmem:[%s21180_s8 + $0x944] ss:$16 sps:$4 sm:$0xff]  }
 0x47c   :  { %8157 = vst [vmem:[%s21181_s10 + $0xa8] sm:$0xff] %v13457_v24  ;;  %v13459_v47 = vpack.c.bf16 %v7921_v53, %v7919_v3  ;;  %11929 = vmatprep.subr.bf16.mxu1 %v16030_v29  ;;  %11152 = vmatprep.subr.bf16.mxu0 %v16033_v17  ;;  %v16049_v29 = vld [vmem:[%s21180_s8 + $0x940] ss:$16 sps:$4 sm:$0xff]  }
 0x47d   :  { %11849 = vmatmul.mubr.bf16.vlgmr.msra.gmra.mrb[144].mxu1 %v18077_v39  ;;  %v16042_v39 = vld [vmem:[%s21180_s8 + $0x84c] ss:$16 sps:$4 sm:$0xff]  }
 0x47e   :  { %8159 = vst [vmem:[%s21181_s10 + $0xb8] sm:$0xff] %v13459_v47  ;;  %11858 = vmatprep.mubr.bf16.mxu1 %v18127_v18  ;;  %11930 = vmatpush1.bf16.msra.mxu1 %v16028_v30  ;;  %v16045_v18 = vld [vmem:[%s21180_s8 + $0x924] ss:$16 sps:$4 sm:$0xff]   ;;  %v16052_v30 = vld [vmem:[%s21180_s8 + $0x888] ss:$16 sps:$4 sm:$0xff]  }
 0x47f   :  { %11153 = vmatpush1.bf16.msra.mxu0 %v16031_v0  ;;  %11931 = vmatprep.subr.bf16.mxu1 %v16036_v37  ;;  %v16055_v0 = vld [vmem:[%s21180_s8 + $0x960] ss:$16 sps:$4 sm:$0xff]   ;;  %v16060_v37 = vld [vmem:[%s21180_s8 + $0x8ac] ss:$16 sps:$4 sm:$0xff]  }
 0x480   :  { %v7925_v50 = vpop.f32.mrb[136].mxu1  ;;  %11154 = vmatprep.subr.bf16.mxu0 %v16039_v62  ;;  %v16063_v62 = vld [vmem:[%s21180_s8 + $0x984] ss:$16 sps:$4 sm:$0xff]  }
 0x481   :  { %v7927_v4 = vpop.f32.mrb[137].mxu1 }
 0x482   :  { %v13461_v15 = vpack.c.bf16 %v7927_v4, %v7925_v50  ;;  %v7929_v8 = vpop.f32.mrb[138].mxu1  ;;  %11932 = vmatpush1.bf16.msra.mxu1 %v16034_v32  ;;  %11098 = vmatmul.mubr.bf16.gmra.mrb[176].mxu0 %v18266_v61  ;;  %v16058_v32 = vld [vmem:[%s21180_s8 + $0x8a8] ss:$16 sps:$4 sm:$0xff]   ;;  %v16075_v4 = vld [vmem:[%s21180_s8 + $0x9c4] ss:$16 sps:$4 sm:$0xff]  }
 0x483   :  { %v7931_v48 = vpop.f32.mrb[139].mxu1  ;;  %11107 = vmatprep.mubr.bf16.mxu0 %v18316_v56  ;;  %11155 = vmatpush1.bf16.msra.mxu0 %v16037_v20  ;;  %v16061_v20 = vld [vmem:[%s21180_s8 + $0x980] ss:$16 sps:$4 sm:$0xff]   ;;  %v16064_v50 = vld [vmem:[%s21180_s8 + $0x8c8] ss:$16 sps:$4 sm:$0xff]  }
 0x484   :  { %8161 = vst [vmem:[%s21181_s10 + $0xc8] sm:$0xff] %v13461_v15  ;;  %v13463_v41 = vpack.c.bf16 %v7931_v48, %v7929_v8  ;;  %11933 = vmatprep.subr.bf16.mxu1 %v16042_v39  ;;  %11156 = vmatprep.subr.bf16.mxu0 %v16045_v18  ;;  %v16067_v39 = vld [vmem:[%s21180_s8 + $0x9a0] ss:$16 sps:$4 sm:$0xff]   ;;  %v16072_v18 = vld [vmem:[%s21180_s8 + $0x8ec] ss:$16 sps:$4 sm:$0xff]  }
 0x485   :  { %11859 = vmatmul.mubr.bf16.gmra.mrb[148].mxu1 %v18121_v5  ;;  %v16054_v5 = vld [vmem:[%s21180_s8 + $0x88c] ss:$16 sps:$4 sm:$0xff]   ;;  %v16070_v15 = vld [vmem:[%s21180_s8 + $0x8e8] ss:$16 sps:$4 sm:$0xff]   ;;  %v16073_v8 = vld [vmem:[%s21180_s8 + $0x9c0] ss:$16 sps:$4 sm:$0xff]  }
 0x486   :  { %8163 = vst [vmem:[%s21181_s10 + $0xd8] sm:$0xff] %v13463_v41  ;;  %11868 = vmatprep.mubr.bf16.mxu1 %v18176_v52  ;;  %11934 = vmatpush1.bf16.msra.mxu1 %v16040_v11  ;;  %v16057_v52 = vld [vmem:[%s21180_s8 + $0x964] ss:$16 sps:$4 sm:$0xff]   ;;  %v16078_v11 = vld [vmem:[%s21180_s8 + $0x90c] ss:$16 sps:$4 sm:$0xff]  }
 0x487   :  { %11157 = vmatpush1.bf16.msra.mxu0 %v16043_v26  ;;  %11935 = vmatprep.subr.bf16.mxu1 %v16048_v6  ;;  %v16079_v48 = vld [vmem:[%s21180_s8 + $0x9e0] ss:$16 sps:$4 sm:$0xff]   ;;  %v16084_v26 = vld [vmem:[%s21180_s8 + $0x92c] ss:$16 sps:$4 sm:$0xff]   ;;  %v16087_v6 = vld [vmem:[%s21180_s8 + $0xa04] ss:$16 sps:$4 sm:$0xff]  }
 0x488   :  { %v7935_v17 = vpop.f32.mrb[140].mxu1  ;;  %11158 = vmatprep.subr.bf16.mxu0 %v16051_v7  ;;  %v16082_v41 = vld [vmem:[%s21180_s8 + $0x928] ss:$16 sps:$4 sm:$0xff]   ;;  %v16085_v7 = vld [vmem:[%s21180_s8 + $0xa00] ss:$16 sps:$4 sm:$0xff]  }
 0x489   :  { %v7937_v22 = vpop.f32.mrb[141].mxu1 }
 0x48a   :  { %v13465_v24 = vpack.c.bf16 %v7937_v22, %v7935_v17  ;;  %v7939_v3 = vpop.f32.mrb[142].mxu1  ;;  %11936 = vmatpush1.bf16.msra.mxu1 %v16046_v35  ;;  %11108 = vmatmul.mubr.bf16.gmra.mrb[180].mxu0 %v18310_v25  ;;  %v16090_v35 = vld [vmem:[%s21180_s8 + $0x94c] ss:$16 sps:$4 sm:$0xff]   ;;  %v16097_v22 = vld [vmem:[%s21180_s8 + $0xa40] ss:$16 sps:$4 sm:$0xff]  }
 0x48b   :  { %v7941_v53 = vpop.f32.mrb[143].mxu1  ;;  %11117 = vmatprep.mubr.bf16.mxu0 %v18360_v23  ;;  %11159 = vmatpush1.bf16.msra.mxu0 %v16049_v29  ;;  %v16091_v29 = vld [vmem:[%s21180_s8 + $0xa20] ss:$16 sps:$4 sm:$0xff]   ;;  %v16096_v17 = vld [vmem:[%s21180_s8 + $0x96c] ss:$16 sps:$4 sm:$0xff]  }
 0x48c   :  { %8165 = vst [vmem:[%s21181_s10 + $0xe8] sm:$0xff] %v13465_v24  ;;  %v13467_v47 = vpack.c.bf16 %v7941_v53, %v7939_v3  ;;  %11937 = vmatprep.subr.bf16.mxu1 %v16054_v5  ;;  %11160 = vmatprep.subr.bf16.mxu0 %v16057_v52  ;;  %v16099_v5 = vld [vmem:[%s21180_s8 + $0xa44] ss:$16 sps:$4 sm:$0xff]   ;;  %v16094_v52 = vld [vmem:[%s21180_s8 + $0x968] ss:$16 sps:$4 sm:$0xff]  }
 0x48d   :  { %11869 = vmatmul.mubr.bf16.gmra.mrb[152].mxu1 %v18170_v59  ;;  %v16066_v59 = vld [vmem:[%s21180_s8 + $0x8cc] ss:$16 sps:$4 sm:$0xff]   ;;  %v16103_v3 = vld [vmem:[%s21180_s8 + $0xa60] ss:$16 sps:$4 sm:$0xff]   ;;  %v16111_v53 = vld [vmem:[%s21180_s8 + $0xa84] ss:$16 sps:$4 sm:$0xff]  }
 0x48e   :  { %8167 = vst [vmem:[%s21181_s10 + $0xf8] sm:$0xff] %v13467_v47  ;;  %11878 = vmatprep.mubr.bf16.mxu1 %v18228_v36  ;;  %11938 = vmatpush1.bf16.msra.mxu1 %v16052_v30  ;;  %v16069_v36 = vld [vmem:[%s21180_s8 + $0x9a4] ss:$16 sps:$4 sm:$0xff]   ;;  %v16102_v24 = vld [vmem:[%s21180_s8 + $0x98c] ss:$16 sps:$4 sm:$0xff]  }
 0x48f   :  { %11161 = vmatpush1.bf16.msra.mxu0 %v16055_v0  ;;  %11939 = vmatprep.subr.bf16.mxu1 %v16060_v37  ;;  %v16108_v30 = vld [vmem:[%s21180_s8 + $0x9ac] ss:$16 sps:$4 sm:$0xff]   ;;  %v16106_v0 = vld [vmem:[%s21180_s8 + $0x9a8] ss:$16 sps:$4 sm:$0xff]   ;;  %v16109_v37 = vld [vmem:[%s21180_s8 + $0xa80] ss:$16 sps:$4 sm:$0xff]  }
 0x490   :  { %11162 = vmatprep.subr.bf16.mxu0 %v16063_v62  ;;  %v16114_v47 = vld [vmem:[%s21180_s8 + $0x9cc] ss:$16 sps:$4 sm:$0xff]   ;;  %v16115_v62 = vld [vmem:[%s21180_s8 + $0xaa0] ss:$16 sps:$4 sm:$0xff]  }
 0x492   :  { %11940 = vmatpush1.bf16.msra.mxu1 %v16058_v32  ;;  %11118 = vmatmul.mubr.bf16.gmra.mrb[184].mxu0 %v18354_v40  ;;  %v16120_v32 = vld [vmem:[%s21180_s8 + $0x9ec] ss:$16 sps:$4 sm:$0xff]  }
 0x493   :  { %11127 = vmatprep.mubr.bf16.mxu0 %v18412_v57  ;;  %11163 = vmatpush1.bf16.msra.mxu0 %v16061_v20  ;;  %v16123_v20 = vld [vmem:[%s21180_s8 + $0xac4] ss:$16 sps:$4 sm:$0xff]  }
 0x494   :  { %11941 = vmatprep.subr.bf16.mxu1 %v16066_v59  ;;  %11164 = vmatprep.subr.bf16.mxu0 %v16069_v36  ;;  %v16118_v59 = vld [vmem:[%s21180_s8 + $0x9e8] ss:$16 sps:$4 sm:$0xff]   ;;  %v16121_v36 = vld [vmem:[%s21180_s8 + $0xac0] ss:$16 sps:$4 sm:$0xff]  }
 0x495   :  { %11879 = vmatmul.mubr.bf16.gmra.mrb[156].mxu1 %v18222_v46  ;;  %v16081_v46 = vld [vmem:[%s21180_s8 + $0x9e4] ss:$16 sps:$4 sm:$0xff]  }
 0x496   :  { %11888 = vmatprep.mubr.bf16.mxu1 %v18272_v12  ;;  %11942 = vmatpush1.bf16.msra.mxu1 %v16064_v50  ;;  %v16076_v12 = vld [vmem:[%s21180_s8 + $0x908] ss:$16 sps:$4 sm:$0xff]   ;;  %v16126_v50 = vld [vmem:[%s21180_s8 + $0xa0c] ss:$16 sps:$4 sm:$0xff]  }
 0x497   :  { %11165 = vmatpush1.bf16.msra.mxu0 %v16067_v39  ;;  %11943 = vmatprep.subr.bf16.mxu1 %v16072_v18  ;;  %v16127_v39 = vld [vmem:[%s21180_s8 + $0xae0] ss:$16 sps:$4 sm:$0xff]   ;;  %v16132_v18 = vld [vmem:[%s21180_s8 + $0xa2c] ss:$16 sps:$4 sm:$0xff]  }
 0x498   :  { %11166 = vmatprep.subr.bf16.mxu0 %v16075_v4  ;;  %v16135_v4 = vld [vmem:[%s21180_s8 + $0xb04] ss:$16 sps:$4 sm:$0xff]  }
 0x49a   :  { %11944 = vmatpush1.bf16.msra.mxu1 %v16070_v15  ;;  %11128 = vmatmul.mubr.bf16.gmra.mrb[188].mxu0 %v18406_v58  ;;  %v16130_v15 = vld [vmem:[%s21180_s8 + $0xa28] ss:$16 sps:$4 sm:$0xff]  }
 0x49b   :  { %11167 = vmatpush1.bf16.msra.mxu0 %v16073_v8  ;;  %11170 = vmatprep.mubr.bf16.mxu0 %v18242_v43  ;;  %v16133_v8 = vld [vmem:[%s21180_s8 + $0xb00] ss:$16 sps:$4 sm:$0xff]  }
 0x49c   :  { %11945 = vmatprep.subr.bf16.mxu1 %v16078_v11  ;;  %11168 = vmatprep.subr.bf16.mxu0 %v16081_v46  ;;  %v16138_v11 = vld [vmem:[%s21180_s8 + $0xa4c] ss:$16 sps:$4 sm:$0xff]   ;;  %v16139_v46 = vld [vmem:[%s21180_s8 + $0xb20] ss:$16 sps:$4 sm:$0xff]  }
 0x49d   :  { %11889 = vmatmul.mubr.bf16.gmra.mrb[160].mxu1 %v18266_v61  ;;  %v16093_v61 = vld [vmem:[%s21180_s8 + $0xa24] ss:$16 sps:$4 sm:$0xff]  }
 0x49e   :  { %11898 = vmatprep.mubr.bf16.mxu1 %v18316_v56  ;;  %11946 = vmatpush1.bf16.msra.mxu1 %v16076_v12  ;;  %v16088_v56 = vld [vmem:[%s21180_s8 + $0x948] ss:$16 sps:$4 sm:$0xff]   ;;  %v16144_v12 = vld [vmem:[%s21180_s8 + $0xa6c] ss:$16 sps:$4 sm:$0xff]  }
 0x49f   :  { %11169 = vmatpush1.bf16.msra.mxu0 %v16079_v48  ;;  %11947 = vmatprep.subr.bf16.mxu1 %v16084_v26  ;;  %v16147_v48 = vld [vmem:[%s21180_s8 + $0xb44] ss:$16 sps:$4 sm:$0xff]   ;;  %v16142_v26 = vld [vmem:[%s21180_s8 + $0xa68] ss:$16 sps:$4 sm:$0xff]  }
 0x4a0   :  { %11251 = vmatprep.subr.bf16.mxu0 %v16087_v6  ;;  %v16145_v6 = vld [vmem:[%s21180_s8 + $0xb40] ss:$16 sps:$4 sm:$0xff]  }
 0x4a2   :  { %11948 = vmatpush1.bf16.msra.mxu1 %v16082_v41  ;;  %11171 = vmatmul.mubr.bf16.vlgmr.msra.gmra.mrb[160].mxu0 %v18236_v55  ;;  %v16150_v41 = vld [vmem:[%s21180_s8 + $0xa8c] ss:$16 sps:$4 sm:$0xff]  }
 0x4a3   :  { %11180 = vmatprep.mubr.bf16.mxu0 %v18286_v1  ;;  %11252 = vmatpush1.bf16.msra.mxu0 %v16085_v7  ;;  %v16151_v7 = vld [vmem:[%s21180_s8 + $0xb60] ss:$16 sps:$4 sm:$0xff]  }
 0x4a4   :  { %11949 = vmatprep.subr.bf16.mxu1 %v16090_v35  ;;  %11253 = vmatprep.subr.bf16.mxu0 %v16093_v61  ;;  %v16156_v35 = vld [vmem:[%s21180_s8 + $0xaac] ss:$16 sps:$4 sm:$0xff]   ;;  %v16159_v61 = vld [vmem:[%s21180_s8 + $0xb84] ss:$16 sps:$4 sm:$0xff]  }
 0x4a5   :  { %11899 = vmatmul.mubr.bf16.gmra.mrb[164].mxu1 %v18310_v25  ;;  %v16105_v25 = vld [vmem:[%s21180_s8 + $0xa64] ss:$16 sps:$4 sm:$0xff]  }
 0x4a6   :  { %11908 = vmatprep.mubr.bf16.mxu1 %v18360_v23  ;;  %11950 = vmatpush1.bf16.msra.mxu1 %v16088_v56  ;;  %v16100_v23 = vld [vmem:[%s21180_s8 + $0x988] ss:$16 sps:$4 sm:$0xff]  }
 0x4a7   :  { %11254 = vmatpush1.bf16.msra.mxu0 %v16091_v29  ;;  %11951 = vmatprep.subr.bf16.mxu1 %v16096_v17  ;;  %v16154_v56 = vld [vmem:[%s21180_s8 + $0xaa8] ss:$16 sps:$4 sm:$0xff]   ;;  %v16157_v29 = vld [vmem:[%s21180_s8 + $0xb80] ss:$16 sps:$4 sm:$0xff]   ;;  %v16162_v17 = vld [vmem:[%s21180_s8 + $0xacc] ss:$16 sps:$4 sm:$0xff]  }
 0x4a8   :  { %11255 = vmatprep.subr.bf16.mxu0 %v16099_v5  ;;  %v16163_v5 = vld [vmem:[%s21180_s8 + $0xba0] ss:$16 sps:$4 sm:$0xff]  }
 0x4aa   :  { %11952 = vmatpush1.bf16.msra.mxu1 %v16094_v52  ;;  %11181 = vmatmul.mubr.bf16.gmra.mrb[164].mxu0 %v21393_v51  ;;  %v16168_v52 = vld [vmem:[%s21180_s8 + $0xaec] ss:$16 sps:$4 sm:$0xff]  }
 0x4ab   :  { %11190 = vmatprep.mubr.bf16.mxu0 %v21394_v54  ;;  %11256 = vmatpush1.bf16.msra.mxu0 %v16097_v22  ;;  %v16171_v22 = vld [vmem:[%s21180_s8 + $0xbc4] ss:$16 sps:$4 sm:$0xff]  }
 0x4ac   :  { %11953 = vmatprep.subr.bf16.mxu1 %v16102_v24  ;;  %11257 = vmatprep.subr.bf16.mxu0 %v16105_v25  ;;  %v16166_v24 = vld [vmem:[%s21180_s8 + $0xae8] ss:$16 sps:$4 sm:$0xff]   ;;  %v16169_v25 = vld [vmem:[%s21180_s8 + $0xbc0] ss:$16 sps:$4 sm:$0xff]  }
 0x4ad   :  { %11909 = vmatmul.mubr.bf16.gmra.mrb[168].mxu1 %v18354_v40  ;;  %v16117_v40 = vld [vmem:[%s21180_s8 + $0xaa4] ss:$16 sps:$4 sm:$0xff]  }
 0x4ae   :  { %11918 = vmatprep.mubr.bf16.mxu1 %v18412_v57  ;;  %11954 = vmatpush1.bf16.msra.mxu1 %v16100_v23  ;;  %v16112_v57 = vld [vmem:[%s21180_s8 + $0x9c8] ss:$16 sps:$4 sm:$0xff]   ;;  %v16174_v23 = vld [vmem:[%s21180_s8 + $0xb0c] ss:$16 sps:$4 sm:$0xff]  }
 0x4af   :  { %11258 = vmatpush1.bf16.msra.mxu0 %v16103_v3  ;;  %11955 = vmatprep.subr.bf16.mxu1 %v16108_v30  ;;  %v16175_v3 = vld [vmem:[%s21180_s8 + $0xbe0] ss:$16 sps:$4 sm:$0xff]   ;;  %v16180_v30 = vld [vmem:[%s21180_s8 + $0xb2c] ss:$16 sps:$4 sm:$0xff]  }
 0x4b0   :  { %11259 = vmatprep.subr.bf16.mxu0 %v16111_v53  ;;  %v16201_v53 = vld [vmem:[%s21180_s8 + $0xc04] ss:$16 sps:$4 sm:$0xff]  }
 0x4b2   :  { %11956 = vmatpush1.bf16.msra.mxu1 %v16106_v0  ;;  %11191 = vmatmul.mubr.bf16.gmra.mrb[168].mxu0 %v21395_v33  ;;  %v16178_v0 = vld [vmem:[%s21180_s8 + $0xb28] ss:$16 sps:$4 sm:$0xff]  }
 0x4b3   :  { %11200 = vmatprep.mubr.bf16.mxu0 %v18374_v60  ;;  %11260 = vmatpush1.bf16.msra.mxu0 %v16109_v37  ;;  %v16183_v37 = vld [vmem:[%s21180_s8 + $0xb4c] ss:$16 sps:$4 sm:$0xff]  }
 0x4b4   :  { %11957 = vmatprep.subr.bf16.mxu1 %v16114_v47  ;;  %11261 = vmatprep.subr.bf16.mxu0 %v16117_v40  ;;  %v16199_v47 = vld [vmem:[%s21180_s8 + $0xc00] ss:$16 sps:$4 sm:$0xff]   ;;  %v16186_v40 = vld [vmem:[%s21180_s8 + $0xb6c] ss:$16 sps:$4 sm:$0xff]  }
 0x4b5   :  { %11919 = vmatmul.mubr.bf16.gmra.mrb[172].mxu1 %v18406_v58  ;;  %v16129_v58 = vld [vmem:[%s21180_s8 + $0xae4] ss:$16 sps:$4 sm:$0xff]  }
 0x4b6   :  { %11958 = vmatpush1.bf16.msra.mxu1 %v16112_v57  ;;  %11961 = vmatprep.mubr.bf16.mxu1 %v18242_v43  ;;  %v16124_v43 = vld [vmem:[%s21180_s8 + $0xa08] ss:$16 sps:$4 sm:$0xff]   ;;  %v16205_v57 = vld [vmem:[%s21180_s8 + $0xc20] ss:$16 sps:$4 sm:$0xff]  }
 0x4b7   :  { %11262 = vmatpush1.bf16.msra.mxu0 %v16115_v62  ;;  %11959 = vmatprep.subr.bf16.mxu1 %v16120_v32  ;;  %v16213_v62 = vld [vmem:[%s21180_s8 + $0xc44] ss:$16 sps:$4 sm:$0xff]   ;;  %v16184_v32 = vld [vmem:[%s21180_s8 + $0xb68] ss:$16 sps:$4 sm:$0xff]  }
 0x4b8   :  { %11263 = vmatprep.subr.bf16.mxu0 %v16123_v20  ;;  %v16189_v20 = vld [vmem:[%s21180_s8 + $0xb8c] ss:$16 sps:$4 sm:$0xff]  }
 0x4ba   :  { %11960 = vmatpush1.bf16.msra.mxu1 %v16118_v59  ;;  %11201 = vmatmul.mubr.bf16.gmra.mrb[172].mxu0 %v18368_v42  ;;  %v16187_v59 = vld [vmem:[%s21180_s8 + $0xb88] ss:$16 sps:$4 sm:$0xff]  }
 0x4bb   :  { %11210 = vmatprep.mubr.bf16.mxu0 %v21396_v34  ;;  %11264 = vmatpush1.bf16.msra.mxu0 %v16121_v36  ;;  %v16192_v36 = vld [vmem:[%s21180_s8 + $0xbac] ss:$16 sps:$4 sm:$0xff]  }
 0x4bc   :  { %12042 = vmatprep.subr.bf16.mxu1 %v16126_v50  ;;  %11265 = vmatprep.subr.bf16.mxu0 %v16129_v58  ;;  %v16217_v50 = vld [vmem:[%s21180_s8 + $0xc60] ss:$16 sps:$4 sm:$0xff]   ;;  %v16222_v58 = vld [vmem:[%s21180_s8 + $0xc84] ss:$16 sps:$4 sm:$0xff]  }
 0x4bd   :  { %11962 = vmatmul.mubr.bf16.vlgmr.msra.gmra.mrb[144].mxu1 %v18236_v55  ;;  %v16141_v55 = vld [vmem:[%s21180_s8 + $0xb24] ss:$16 sps:$4 sm:$0xff]  }
 0x4be   :  { %11971 = vmatprep.mubr.bf16.mxu1 %v18286_v1  ;;  %12043 = vmatpush1.bf16.msra.mxu1 %v16124_v43  ;;  %v16136_v1 = vld [vmem:[%s21180_s8 + $0xa48] ss:$16 sps:$4 sm:$0xff]  }
 0x4bf   :  { %11266 = vmatpush1.bf16.msra.mxu0 %v16127_v39  ;;  %12044 = vmatprep.subr.bf16.mxu1 %v16132_v18  ;;  %v16190_v43 = vld [vmem:[%s21180_s8 + $0xba8] ss:$16 sps:$4 sm:$0xff]   ;;  %v16195_v39 = vld [vmem:[%s21180_s8 + $0xbcc] ss:$16 sps:$4 sm:$0xff]  }
 0x4c0   :  { %11267 = vmatprep.subr.bf16.mxu0 %v16135_v4  ;;  %v16193_v18 = vld [vmem:[%s21180_s8 + $0xbc8] ss:$16 sps:$4 sm:$0xff]   ;;  %v16198_v4 = vld [vmem:[%s21180_s8 + $0xbec] ss:$16 sps:$4 sm:$0xff]  }
 0x4c2   :  { %12045 = vmatpush1.bf16.msra.mxu1 %v16130_v15  ;;  %11211 = vmatmul.mubr.bf16.gmra.mrb[176].mxu0 %v21397_v45  ;;  %v16226_v15 = vld [vmem:[%s21180_s8 + $0xca0] ss:$16 sps:$4 sm:$0xff]  }
 0x4c3   :  { %11220 = vmatprep.mubr.bf16.mxu0 %v18470_v14  ;;  %11268 = vmatpush1.bf16.msra.mxu0 %v16133_v8  ;;  %v16231_v8 = vld [vmem:[%s21180_s8 + $0xcc4] ss:$16 sps:$4 sm:$0xff]  }
 0x4c4   :  { %12046 = vmatprep.subr.bf16.mxu1 %v16138_v11  ;;  %11269 = vmatprep.subr.bf16.mxu0 %v16141_v55  ;;  %v16196_v11 = vld [vmem:[%s21180_s8 + $0xbe8] ss:$16 sps:$4 sm:$0xff]   ;;  %v16204_v55 = vld [vmem:[%s21180_s8 + $0xc0c] ss:$16 sps:$4 sm:$0xff]  }
 0x4c5   :  { %11972 = vmatmul.mubr.bf16.gmra.mrb[148].mxu1 %v21393_v51  ;;  %v16153_v51 = vld [vmem:[%s21180_s8 + $0xb64] ss:$16 sps:$4 sm:$0xff]  }
 0x4c6   :  { %11981 = vmatprep.mubr.bf16.mxu1 %v21394_v54  ;;  %12047 = vmatpush1.bf16.msra.mxu1 %v16136_v1  ;;  %v16148_v54 = vld [vmem:[%s21180_s8 + $0xa88] ss:$16 sps:$4 sm:$0xff]   ;;  %v16237_v1 = vld [vmem:[%s21180_s8 + $0xce4] ss:$16 sps:$4 sm:$0xff]  }
 0x4c7   :  { %11270 = vmatpush1.bf16.msra.mxu0 %v16139_v46  ;;  %12048 = vmatprep.subr.bf16.mxu1 %v16144_v12  ;;  %v16210_v46 = vld [vmem:[%s21180_s8 + $0xc2c] ss:$16 sps:$4 sm:$0xff]   ;;  %v16235_v12 = vld [vmem:[%s21180_s8 + $0xce0] ss:$16 sps:$4 sm:$0xff]  }
 0x4c8   :  { %11271 = vmatprep.subr.bf16.mxu0 %v16147_v48  ;;  %v16208_v48 = vld [vmem:[%s21180_s8 + $0xc28] ss:$16 sps:$4 sm:$0xff]  }
 0x4ca   :  { %12049 = vmatpush1.bf16.msra.mxu1 %v16142_v26  ;;  %11221 = vmatmul.mubr.bf16.gmra.mrb[180].mxu0 %v18464_v21  ;;  %v16216_v26 = vld [vmem:[%s21180_s8 + $0xc4c] ss:$16 sps:$4 sm:$0xff]  }
 0x4cb   :  { %11230 = vmatprep.mubr.bf16.mxu0 %v18514_v38  ;;  %11272 = vmatpush1.bf16.msra.mxu0 %v16145_v6  ;;  %v21453_v6 = vld [vmem:[#allocation61_spill] sm:$0xff] }
 0x4cc   :  { %12050 = vmatprep.subr.bf16.mxu1 %v16150_v41  ;;  %11273 = vmatprep.subr.bf16.mxu0 %v16153_v51  ;;  %v21454_v41 = vld [vmem:[#allocation65_spill] sm:$0xff] }
 0x4cd   :  { %11982 = vmatmul.mubr.bf16.gmra.mrb[152].mxu1 %v21395_v33  ;;  %v16160_v33 = vld [vmem:[%s21180_s8 + $0xac8] ss:$16 sps:$4 sm:$0xff]  }
 0x4ce   :  { %11991 = vmatprep.mubr.bf16.mxu1 %v18374_v60  ;;  %12051 = vmatpush1.bf16.msra.mxu1 %v16148_v54  ;;  %v16165_v60 = vld [vmem:[%s21180_s8 + $0xba4] ss:$16 sps:$4 sm:$0xff]   ;;  %v16223_v51 = vld [vmem:[%s21180_s8 + $0xc68] ss:$16 sps:$4 sm:$0xff]   ;;  %v16234_v54 = vld [vmem:[%s21180_s8 + $0xc8c] ss:$16 sps:$4 sm:$0xff]  }
 0x4cf   :  { %11274 = vmatpush1.bf16.msra.mxu0 %v16151_v7  ;;  %12052 = vmatprep.subr.bf16.mxu1 %v16156_v35  ;;  %v21455_v7 = vld [vmem:[#allocation64_spill] sm:$0xff]  ;;  %v16232_v35 = vld [vmem:[%s21180_s8 + $0xc88] ss:$16 sps:$4 sm:$0xff]  }
 0x4d0   :  { %11275 = vmatprep.subr.bf16.mxu0 %v16159_v61  ;;  %v16238_v61 = vld [vmem:[%s21180_s8 + $0xca8] ss:$16 sps:$4 sm:$0xff]  }
 0x4d2   :  { %12053 = vmatpush1.bf16.msra.mxu1 %v16154_v56  ;;  %11231 = vmatmul.mubr.bf16.gmra.mrb[184].mxu0 %v18508_v13  ;;  %v16243_v56 = vld [vmem:[%s21180_s8 + $0xccc] ss:$16 sps:$4 sm:$0xff]  }
 0x4d3   :  { %11240 = vmatprep.mubr.bf16.mxu0 %v18563_v2  ;;  %11276 = vmatpush1.bf16.msra.mxu0 %v16157_v29  ;;  %v21457_v29 = vld [vmem:[#allocation68_spill] sm:$0xff] }
 0x4d4   :  { %12054 = vmatprep.subr.bf16.mxu1 %v16162_v17  ;;  %11277 = vmatprep.subr.bf16.mxu0 %v16165_v60  ;;  %v16241_v17 = vld [vmem:[%s21180_s8 + $0xcc8] ss:$16 sps:$4 sm:$0xff]  }
 0x4d5   :  { %11992 = vmatmul.mubr.bf16.gmra.mrb[156].mxu1 %v18368_v42  ;;  %v16177_v42 = vld [vmem:[%s21180_s8 + $0xbe4] ss:$16 sps:$4 sm:$0xff]   ;;  %v16244_v60 = vld [vmem:[%s21180_s8 + $0xce8] ss:$16 sps:$4 sm:$0xff]  }
 0x4d6   :  { %12001 = vmatprep.mubr.bf16.mxu1 %v21396_v34  ;;  %12055 = vmatpush1.bf16.msra.mxu1 %v16160_v33  ;;  %v16172_v34 = vld [vmem:[%s21180_s8 + $0xb08] ss:$16 sps:$4 sm:$0xff]   ;;  %v21459_v33 = vld [vmem:[#allocation72_spill] sm:$0xff] }
 0x4d7   :  { %11278 = vmatpush1.bf16.msra.mxu0 %v16163_v5  ;;  %12056 = vmatprep.subr.bf16.mxu1 %v16168_v52  ;;  %v21460_v5 = vmov 0   ;;  %v21461_v52 = vld [vmem:[#allocation60_spill] sm:$0xff] }
 0x4d8   :  { %11279 = vmatprep.subr.bf16.mxu0 %v16171_v22  ;;  %v21464_v22 = vld [vmem:[#allocation62_spill] sm:$0xff] }
 0x4da   :  { %12057 = vmatpush1.bf16.msra.mxu1 %v16166_v24  ;;  %11241 = vmatmul.mubr.bf16.gmra.mrb[188].mxu0 %v18557_v28  ;;  %v21465_v24 = vld [vmem:[#allocation67_spill] sm:$0xff] }
 0x4db   :  { %11280 = vmatpush1.bf16.msra.mxu0 %v16169_v25  ;;  %11283 = vmatprep.mubr.bf16.mxu0 %v21398_v63  ;;  %v21466_v25 = vld [vmem:[#allocation66_spill] sm:$0xff] }
 0x4dc   :  { %12058 = vmatprep.subr.bf16.mxu1 %v16174_v23  ;;  %11281 = vmatprep.subr.bf16.mxu0 %v16177_v42  ;;  %v21467_v23 = vld [vmem:[#allocation71_spill] sm:$0xff]  ;;  %v21468_v42 = vld [vmem:[#allocation70_spill] sm:$0xff] }
 0x4dd   :  { %12002 = vmatmul.mubr.bf16.gmra.mrb[160].mxu1 %v21397_v45  ;;  %v16181_v45 = vld [vmem:[%s21180_s8 + $0xb48] ss:$16 sps:$4 sm:$0xff]  }
 0x4de   :  { %12011 = vmatprep.mubr.bf16.mxu1 %v18470_v14  ;;  %12059 = vmatpush1.bf16.msra.mxu1 %v16172_v34  ;;  %v16207_v14 = vld [vmem:[%s21180_s8 + $0xc24] ss:$16 sps:$4 sm:$0xff]   ;;  %v8584_v34 = vld [vmem:[%s21182_s9] sm:$0xf] }
 0x4df   :  { %11282 = vmatpush1.bf16.msra.mxu0 %v16175_v3  ;;  %12060 = vmatprep.subr.bf16.mxu1 %v16180_v30  ;;  %v21469_v3 = vld [vmem:[#allocation2_spill] sm:$0xff] }
 0x4e0   :  { %11364 = vmatprep.subr.bf16.mxu0 %v16201_v53  ;;  %v20905_v30 = vrot.slane %v8584_v34, %v21469_v3  ;;  %v21470_v53 = vld [vmem:[#allocation3_spill] sm:$0xff] }
 0x4e2   :  { %12061 = vmatpush1.bf16.msra.mxu1 %v16178_v0  ;;  %11284 = vmatmul.mubr.bf16.vlgmr.msra.gmra.mrb[160].mxu0 %v21399_v31  ;;  %v20908_v0 = vrot.slane %v8584_v34, %v21470_v53 }
 0x4e3   :  { %11293 = vmatprep.mubr.bf16.mxu0 %v18500_v9  ;;  %12062 = vmatprep.subr.bf16.mxu1 %v16183_v37 }
 0x4e4   :  { %11365 = vmatpush1.bf16.msra.mxu0 %v16199_v47 }
 0x4e5   :  { %12012 = vmatmul.mubr.bf16.gmra.mrb[164].mxu1 %v18464_v21  ;;  %11366 = vmatprep.subr.bf16.mxu0 %v16207_v14  ;;  %v16211_v21 = vld [vmem:[%s21180_s8 + $0xc40] ss:$16 sps:$4 sm:$0xff]  }
 0x4e6   :  { %12021 = vmatprep.mubr.bf16.mxu1 %v18514_v38  ;;  %12063 = vmatpush1.bf16.msra.mxu1 %v16181_v45  ;;  %v16219_v38 = vld [vmem:[%s21180_s8 + $0xc64] ss:$16 sps:$4 sm:$0xff]  }
 0x4e7   :  { %12064 = vmatprep.subr.bf16.mxu1 %v16186_v40 }
 0x4e8   :  { %11367 = vmatpush1.bf16.msra.mxu0 %v16205_v57 }
 0x4e9   :  { %11368 = vmatprep.subr.bf16.mxu0 %v16213_v62 }
 0x4ea   :  { %12065 = vmatpush1.bf16.msra.mxu1 %v16184_v32  ;;  %11294 = vmatmul.mubr.bf16.gmra.mrb[164].mxu0 %v18494_v27 }
 0x4eb   :  { %11303 = vmatprep.mubr.bf16.mxu0 %v18544_v10  ;;  %12066 = vmatprep.subr.bf16.mxu1 %v16189_v20 }
 0x4ec   :  { %11369 = vmatpush1.bf16.msra.mxu0 %v16211_v21 }
 0x4ed   :  { %12022 = vmatmul.mubr.bf16.gmra.mrb[168].mxu1 %v18508_v13  ;;  %11370 = vmatprep.subr.bf16.mxu0 %v16219_v38  ;;  %v16220_v13 = vld [vmem:[%s21180_s8 + $0xc80] ss:$16 sps:$4 sm:$0xff]  }
 0x4ee   :  { %12031 = vmatprep.mubr.bf16.mxu1 %v18563_v2  ;;  %12067 = vmatpush1.bf16.msra.mxu1 %v16187_v59  ;;  %v16228_v2 = vld [vmem:[%s21180_s8 + $0xca4] ss:$16 sps:$4 sm:$0xff]  }
 0x4ef   :  { %12068 = vmatprep.subr.bf16.mxu1 %v16192_v36 }
 0x4f0   :  { %11371 = vmatpush1.bf16.msra.mxu0 %v16217_v50 }
 0x4f1   :  { %11372 = vmatprep.subr.bf16.mxu0 %v16222_v58 }
 0x4f2   :  { %12069 = vmatpush1.bf16.msra.mxu1 %v16190_v43  ;;  %11304 = vmatmul.mubr.bf16.gmra.mrb[168].mxu0 %v21400_v49 }
 0x4f3   :  { %11313 = vmatprep.mubr.bf16.mxu0 %v18593_v44  ;;  %12070 = vmatprep.subr.bf16.mxu1 %v16195_v39 }
 0x4f4   :  { %11373 = vmatpush1.bf16.msra.mxu0 %v16220_v13 }
 0x4f5   :  { %12032 = vmatmul.mubr.bf16.gmra.mrb[172].mxu1 %v18557_v28  ;;  %11374 = vmatprep.subr.bf16.mxu0 %v16228_v2  ;;  %v16229_v28 = vld [vmem:[%s21180_s8 + $0xcc0] ss:$16 sps:$4 sm:$0xff]  }
 0x4f6   :  { %12071 = vmatpush1.bf16.msra.mxu1 %v16193_v18  ;;  %12074 = vmatprep.mubr.bf16.mxu1 %v21398_v63  ;;  %v16202_v63 = vld [vmem:[%s21180_s8 + $0xc08] ss:$16 sps:$4 sm:$0xff]  }
 0x4f7   :  { %12072 = vmatprep.subr.bf16.mxu1 %v16198_v4 }
 0x4f8   :  { %11375 = vmatpush1.bf16.msra.mxu0 %v16226_v15 }
 0x4f9   :  { %11376 = vmatprep.subr.bf16.mxu0 %v16231_v8 }
 0x4fa   :  { %12073 = vmatpush1.bf16.msra.mxu1 %v16196_v11  ;;  %11314 = vmatmul.mubr.bf16.gmra.mrb[172].mxu0 %v18587_v16 }
 0x4fb   :  { %11323 = vmatprep.mubr.bf16.mxu0 %v18637_v19  ;;  %12155 = vmatprep.subr.bf16.mxu1 %v16204_v55 }
 0x4fc   :  { %11377 = vmatpush1.bf16.msra.mxu0 %v16229_v28  ;;  %v21471_v28 = vld [vmem:[#allocation10_spill] sm:$0xff] }
 0x4fd   :  { %12075 = vmatmul.mubr.bf16.vlgmr.msra.gmra.mrb[144].mxu1 %v21399_v31  ;;  %11378 = vmatprep.subr.bf16.mxu0 %v16237_v1  ;;  %v16214_v31 = vld [vmem:[%s21180_s8 + $0xc48] ss:$16 sps:$4 sm:$0xff]   ;;  %v20959_v1 = vrot.slane %v8584_v34, %v21471_v28 }
 0x4fe   :  { %12084 = vmatprep.mubr.bf16.mxu1 %v18500_v9  ;;  %12156 = vmatpush1.bf16.msra.mxu1 %v16202_v63  ;;  %v16225_v9 = vld [vmem:[%s21180_s8 + $0xc6c] ss:$16 sps:$4 sm:$0xff]  }
 0x4ff   :  { %12157 = vmatprep.subr.bf16.mxu1 %v16210_v46 }
 0x500   :  { %11379 = vmatpush1.bf16.msra.mxu0 %v16235_v12  ;;  %v21472_v12 = vld [vmem:[#allocation11_spill] sm:$0xff] }
 0x502   :  { %11324 = vmatmul.mubr.bf16.gmra.mrb[176].mxu0 %v21453_v6  ;;  %12158 = vmatpush1.bf16.msra.mxu1 %v16208_v48  ;;  %v20963_v48 = vrot.slane %v8584_v34, %v21472_v12 }
 0x503   :  { %11333 = vmatprep.mubr.bf16.mxu0 %v21454_v41  ;;  %12159 = vmatprep.subr.bf16.mxu1 %v16216_v26 }
 0x505   :  { %12085 = vmatmul.mubr.bf16.gmra.mrb[148].mxu1 %v18494_v27  ;;  %v21456_v27 = vld [vmem:[#allocation69_spill] sm:$0xff] }
 0x506   :  { %12094 = vmatprep.mubr.bf16.mxu1 %v18544_v10  ;;  %12160 = vmatpush1.bf16.msra.mxu1 %v16214_v31  ;;  %v16240_v10 = vld [vmem:[%s21180_s8 + $0xcac] ss:$16 sps:$4 sm:$0xff]  }
 0x507   :  { %12161 = vmatprep.subr.bf16.mxu1 %v16225_v9 }
 0x50a   :  { %11334 = vmatmul.mubr.bf16.gmra.mrb[180].mxu0 %v21455_v7  ;;  %12162 = vmatpush1.bf16.msra.mxu1 %v16223_v51 }
 0x50b   :  { %11343 = vmatprep.mubr.bf16.mxu0 %v21456_v27  ;;  %12163 = vmatprep.subr.bf16.mxu1 %v16234_v54 }
 0x50d   :  { %12095 = vmatmul.mubr.bf16.gmra.mrb[152].mxu1 %v21400_v49  ;;  %v21458_v49 = vld [vmem:[#allocation73_spill] sm:$0xff] }
 0x50e   :  { %12104 = vmatprep.mubr.bf16.mxu1 %v18593_v44  ;;  %12164 = vmatpush1.bf16.msra.mxu1 %v16232_v35  ;;  %v16246_v44 = vld [vmem:[%s21180_s8 + $0xcec] ss:$16 sps:$4 sm:$0xff]  }
 0x50f   :  { %12165 = vmatprep.subr.bf16.mxu1 %v16240_v10 }
 0x512   :  { %11344 = vmatmul.mubr.bf16.gmra.mrb[184].mxu0 %v21457_v29  ;;  %12166 = vmatpush1.bf16.msra.mxu1 %v16238_v61 }
 0x513   :  { %11353 = vmatprep.mubr.bf16.mxu0 %v21458_v49  ;;  %12167 = vmatprep.subr.bf16.mxu1 %v16243_v56 }
 0x515   :  { %12105 = vmatmul.mubr.bf16.gmra.mrb[156].mxu1 %v18587_v16  ;;  %v21462_v16 = vld [vmem:[#allocation59_spill] sm:$0xff] }
 0x516   :  { %12114 = vmatprep.mubr.bf16.mxu1 %v18637_v19  ;;  %12168 = vmatpush1.bf16.msra.mxu1 %v16241_v17  ;;  %v21463_v19 = vld [vmem:[#allocation63_spill] sm:$0xff] }
 0x517   :  { %12169 = vmatprep.subr.bf16.mxu1 %v16246_v44 }
 0x51a   :  { %11354 = vmatmul.mubr.bf16.gmra.mrb[188].mxu0 %v21459_v33  ;;  %12170 = vmatpush1.bf16.msra.mxu1 %v16244_v60 }
 0x51b   :  { %11396 = vmatprep.mubr.bf16.mxu0 %v21460_v5 }
 0x51d   :  { %12115 = vmatmul.mubr.bf16.gmra.mrb[160].mxu1 %v21453_v6 }
 0x51e   :  { %12124 = vmatprep.mubr.bf16.mxu1 %v21454_v41 }
 0x522   :  { %11397 = vmatmul.mubr.bf16.vlgmr.msra.gmra.mrb[160].mxu0 %v21461_v52 }
 0x523   :  { %11406 = vmatprep.mubr.bf16.mxu0 %v21460_v5 }
 0x525   :  { %12125 = vmatmul.mubr.bf16.gmra.mrb[164].mxu1 %v21455_v7 }
 0x526   :  { %12134 = vmatprep.mubr.bf16.mxu1 %v21456_v27 }
 0x52a   :  { %11407 = vmatmul.mubr.bf16.gmra.mrb[164].mxu0 %v21462_v16 }
 0x52b   :  { %11416 = vmatprep.mubr.bf16.mxu0 %v21460_v5 }
 0x52d   :  { %12135 = vmatmul.mubr.bf16.gmra.mrb[168].mxu1 %v21457_v29 }
 0x52e   :  { %12144 = vmatprep.mubr.bf16.mxu1 %v21458_v49 }
 0x532   :  { %11417 = vmatmul.mubr.bf16.gmra.mrb[168].mxu0 %v21463_v19 }
 0x533   :  { %11426 = vmatprep.mubr.bf16.mxu0 %v21460_v5 }
 0x535   :  { %12145 = vmatmul.mubr.bf16.gmra.mrb[172].mxu1 %v21459_v33 }
 0x536   :  { %12187 = vmatprep.mubr.bf16.mxu1 %v21460_v5 }
 0x53a   :  { %11427 = vmatmul.mubr.bf16.gmra.mrb[172].mxu0 %v21464_v22 }
 0x53b   :  { %11436 = vmatprep.mubr.bf16.mxu0 %v21460_v5 }
 0x53d   :  { %12188 = vmatmul.mubr.bf16.vlgmr.msra.gmra.mrb[144].mxu1 %v21461_v52 }
 0x53e   :  { %12197 = vmatprep.mubr.bf16.mxu1 %v21460_v5 }
 0x542   :  { %11437 = vmatmul.mubr.bf16.gmra.mrb[176].mxu0 %v21465_v24 }
 0x543   :  { %11446 = vmatprep.mubr.bf16.mxu0 %v21460_v5 }
 0x545   :  { %12198 = vmatmul.mubr.bf16.gmra.mrb[148].mxu1 %v21462_v16 }
 0x546   :  { %12207 = vmatprep.mubr.bf16.mxu1 %v21460_v5 }
 0x54a   :  { %11447 = vmatmul.mubr.bf16.gmra.mrb[180].mxu0 %v21466_v25 }
 0x54b   :  { %11456 = vmatprep.mubr.bf16.mxu0 %v21460_v5 }
 0x54d   :  { %12208 = vmatmul.mubr.bf16.gmra.mrb[152].mxu1 %v21463_v19 }
 0x54e   :  { %12217 = vmatprep.mubr.bf16.mxu1 %v21460_v5 }
 0x552   :  { %11457 = vmatmul.mubr.bf16.gmra.mrb[184].mxu0 %v21467_v23 }
 0x553   :  { %11466 = vmatprep.mubr.bf16.mxu0 %v21460_v5 }
 0x555   :  { %12218 = vmatmul.mubr.bf16.gmra.mrb[156].mxu1 %v21464_v22 }
 0x556   :  { %12227 = vmatprep.mubr.bf16.mxu1 %v21460_v5 }
 0x55a   :  { %11467 = vmatmul.mubr.bf16.gmra.mrb[188].mxu0 %v21468_v42 }
 0x55d   :  { %12228 = vmatmul.mubr.bf16.gmra.mrb[160].mxu1 %v21465_v24 }
 0x55e   :  { %12237 = vmatprep.mubr.bf16.mxu1 %v21460_v5 }
 0x565   :  { %12238 = vmatmul.mubr.bf16.gmra.mrb[164].mxu1 %v21466_v25 }
 0x566   :  { %12247 = vmatprep.mubr.bf16.mxu1 %v21460_v5 }
 0x56d   :  { %12248 = vmatmul.mubr.bf16.gmra.mrb[168].mxu1 %v21467_v23 }
 0x56e   :  { %12257 = vmatprep.mubr.bf16.mxu1 %v21460_v5 }
 0x575   :  { %12258 = vmatmul.mubr.bf16.gmra.mrb[172].mxu1 %v21468_v42 }
 0x5f5   :  { %v11398_v37 = vpop.f32.mrb[160].mxu0 }
 0x5f6   :  { %v13644_v47 = vadd.f32 %v11398_v37, %v20905_v30  ;;  %v11400_v14 = vpop.f32.mrb[161].mxu0 }
 0x5f7   :  { %v13645_v45 = vadd.f32 %v11400_v14, %v20908_v0  ;;  %v11402_v40 = vpop.f32.mrb[162].mxu0 }
 0x5f8   :  { %12268 = vst [vmem:[%s21183_s11] sm:$0xff] %v13644_v47  ;;  %v13646_v57 = vadd.f32 %v11402_v40, %v20905_v30  ;;  %v11404_v62 = vpop.f32.mrb[163].mxu0 }
 0x5f9   :  { %12269 = vst [vmem:[%s21183_s11 + $0x8] sm:$0xff] %v13645_v45  ;;  %v13647_v32 = vadd.f32 %v11404_v62, %v20908_v0 }
 0x5fa   :  { %12272 = vst [vmem:[%s21183_s11 + $0x20] sm:$0xff] %v13646_v57 }
 0x5fb   :  { %12273 = vst [vmem:[%s21183_s11 + $0x28] sm:$0xff] %v13647_v32 }
 0x5fd   :  { %v11408_v20 = vpop.f32.mrb[164].mxu0 }
 0x5fe   :  { %v13648_v21 = vadd.f32 %v11408_v20, %v20905_v30  ;;  %v11410_v38 = vpop.f32.mrb[165].mxu0 }
 0x5ff   :  { %v13649_v59 = vadd.f32 %v11410_v38, %v20908_v0  ;;  %v11412_v36 = vpop.f32.mrb[166].mxu0 }
 0x600   :  { %12276 = vst [vmem:[%s21183_s11 + $0x40] sm:$0xff] %v13648_v21  ;;  %v13650_v50 = vadd.f32 %v11412_v36, %v20905_v30  ;;  %v11414_v58 = vpop.f32.mrb[167].mxu0 }
 0x601   :  { %12277 = vst [vmem:[%s21183_s11 + $0x48] sm:$0xff] %v13649_v59  ;;  %v13651_v43 = vadd.f32 %v11414_v58, %v20908_v0 }
 0x602   :  { %12280 = vst [vmem:[%s21183_s11 + $0x60] sm:$0xff] %v13650_v50 }
 0x603   :  { %12281 = vst [vmem:[%s21183_s11 + $0x68] sm:$0xff] %v13651_v43 }
 0x605   :  { %v11418_v39 = vpop.f32.mrb[168].mxu0 }
 0x606   :  { %v13652_v13 = vadd.f32 %v11418_v39, %v20905_v30  ;;  %v11420_v2 = vpop.f32.mrb[169].mxu0 }
 0x607   :  { %v13653_v18 = vadd.f32 %v11420_v2, %v20908_v0  ;;  %v11422_v4 = vpop.f32.mrb[170].mxu0 }
 0x608   :  { %12284 = vst [vmem:[%s21183_s11 + $0x80] sm:$0xff] %v13652_v13  ;;  %v13654_v15 = vadd.f32 %v11422_v4, %v20905_v30  ;;  %v11424_v8 = vpop.f32.mrb[171].mxu0 }
 0x609   :  { %12285 = vst [vmem:[%s21183_s11 + $0x88] sm:$0xff] %v13653_v18  ;;  %v13655_v11 = vadd.f32 %v11424_v8, %v20908_v0 }
 0x60a   :  { %12288 = vst [vmem:[%s21183_s11 + $0xa0] sm:$0xff] %v13654_v15 }
 0x60b   :  { %12289 = vst [vmem:[%s21183_s11 + $0xa8] sm:$0xff] %v13655_v11 }
 0x60d   :  { %v11428_v55 = vpop.f32.mrb[172].mxu0 }
 0x60e   :  { %v13656_v63 = vadd.f32 %v11428_v55, %v20905_v30  ;;  %v11430_v46 = vpop.f32.mrb[173].mxu0 }
 0x60f   :  { %v13657_v26 = vadd.f32 %v11430_v46, %v20908_v0  ;;  %v11432_v6 = vpop.f32.mrb[174].mxu0 }
 0x610   :  { %12292 = vst [vmem:[%s21183_s11 + $0xc0] sm:$0xff] %v13656_v63  ;;  %v13658_v31 = vadd.f32 %v11432_v6, %v20905_v30  ;;  %v12189_v41 = vpop.f32.mrb[144].mxu1  ;;  %v11434_v9 = vpop.f32.mrb[175].mxu0 }
 0x611   :  { %12293 = vst [vmem:[%s21183_s11 + $0xc8] sm:$0xff] %v13657_v26  ;;  %v13676_v51 = vadd.f32 %v12189_v41, %v20959_v1  ;;  %v13659_v54 = vadd.f32 %v11434_v9, %v20908_v0  ;;  %v12191_v7 = vpop.f32.mrb[145].mxu1 }
 0x612   :  { %12296 = vst [vmem:[%s21183_s11 + $0xe0] sm:$0xff] %v13658_v31  ;;  %v13677_v35 = vadd.f32 %v12191_v7, %v20963_v48  ;;  %v12193_v27 = vpop.f32.mrb[146].mxu1 }
 0x613   :  { %12270 = vst [vmem:[%s21183_s11 + $0x10] sm:$0xff] %v13676_v51  ;;  %12297 = vst [vmem:[%s21183_s11 + $0xe8] sm:$0xff] %v13659_v54  ;;  %v13678_v10 = vadd.f32 %v12193_v27, %v20959_v1  ;;  %v12195_v61 = vpop.f32.mrb[147].mxu1 }
 0x614   :  { %12271 = vst [vmem:[%s21183_s11 + $0x18] sm:$0xff] %v13677_v35  ;;  %v13679_v56 = vadd.f32 %v12195_v61, %v20963_v48 }
 0x615   :  { %12274 = vst [vmem:[%s21183_s11 + $0x30] sm:$0xff] %v13678_v10  ;;  %v11438_v29 = vpop.f32.mrb[176].mxu0 }
 0x616   :  { %12275 = vst [vmem:[%s21183_s11 + $0x38] sm:$0xff] %v13679_v56  ;;  %v13660_v17 = vadd.f32 %v11438_v29, %v20905_v30  ;;  %v11440_v49 = vpop.f32.mrb[177].mxu0 }
 0x617   :  { %v13661_v44 = vadd.f32 %v11440_v49, %v20908_v0  ;;  %v11442_v60 = vpop.f32.mrb[178].mxu0 }
 0x618   :  { %12300 = vst [vmem:[%s21183_s11 + $0x100] sm:$0xff] %v13660_v17  ;;  %v13662_v33 = vadd.f32 %v11442_v60, %v20905_v30  ;;  %v12199_v5 = vpop.f32.mrb[148].mxu1  ;;  %v11444_v52 = vpop.f32.mrb[179].mxu0 }
 0x619   :  { %12301 = vst [vmem:[%s21183_s11 + $0x108] sm:$0xff] %v13661_v44  ;;  %v13680_v16 = vadd.f32 %v12199_v5, %v20959_v1  ;;  %v13663_v19 = vadd.f32 %v11444_v52, %v20908_v0  ;;  %v12201_v22 = vpop.f32.mrb[149].mxu1 }
 0x61a   :  { %12304 = vst [vmem:[%s21183_s11 + $0x120] sm:$0xff] %v13662_v33  ;;  %v13681_v24 = vadd.f32 %v12201_v22, %v20963_v48  ;;  %v12203_v25 = vpop.f32.mrb[150].mxu1 }
 0x61b   :  { %12278 = vst [vmem:[%s21183_s11 + $0x50] sm:$0xff] %v13680_v16  ;;  %12305 = vst [vmem:[%s21183_s11 + $0x128] sm:$0xff] %v13663_v19  ;;  %v13682_v23 = vadd.f32 %v12203_v25, %v20959_v1  ;;  %v12205_v42 = vpop.f32.mrb[151].mxu1 }
 0x61c   :  { %12279 = vst [vmem:[%s21183_s11 + $0x58] sm:$0xff] %v13681_v24  ;;  %v13683_v34 = vadd.f32 %v12205_v42, %v20963_v48 }
 0x61d   :  { %12282 = vst [vmem:[%s21183_s11 + $0x70] sm:$0xff] %v13682_v23  ;;  %v11448_v3 = vpop.f32.mrb[180].mxu0 }
 0x61e   :  { %12283 = vst [vmem:[%s21183_s11 + $0x78] sm:$0xff] %v13683_v34  ;;  %v13664_v53 = vadd.f32 %v11448_v3, %v20905_v30  ;;  %v11450_v37 = vpop.f32.mrb[181].mxu0 }
 0x61f   :  { %v13665_v47 = vadd.f32 %v11450_v37, %v20908_v0  ;;  %v11452_v14 = vpop.f32.mrb[182].mxu0 }
 0x620   :  { %12308 = vst [vmem:[%s21183_s11 + $0x140] sm:$0xff] %v13664_v53  ;;  %v13666_v45 = vadd.f32 %v11452_v14, %v20905_v30  ;;  %v12209_v40 = vpop.f32.mrb[152].mxu1  ;;  %v11454_v57 = vpop.f32.mrb[183].mxu0 }
 0x621   :  { %12309 = vst [vmem:[%s21183_s11 + $0x148] sm:$0xff] %v13665_v47  ;;  %v13684_v62 = vadd.f32 %v12209_v40, %v20959_v1  ;;  %v13667_v32 = vadd.f32 %v11454_v57, %v20908_v0  ;;  %v12211_v20 = vpop.f32.mrb[153].mxu1 }
 0x622   :  { %12312 = vst [vmem:[%s21183_s11 + $0x160] sm:$0xff] %v13666_v45  ;;  %v13685_v21 = vadd.f32 %v12211_v20, %v20963_v48  ;;  %v12213_v38 = vpop.f32.mrb[154].mxu1 }
 0x623   :  { %12286 = vst [vmem:[%s21183_s11 + $0x90] sm:$0xff] %v13684_v62  ;;  %12313 = vst [vmem:[%s21183_s11 + $0x168] sm:$0xff] %v13667_v32  ;;  %v13686_v59 = vadd.f32 %v12213_v38, %v20959_v1  ;;  %v12215_v36 = vpop.f32.mrb[155].mxu1 }
 0x624   :  { %12287 = vst [vmem:[%s21183_s11 + $0x98] sm:$0xff] %v13685_v21  ;;  %v13687_v50 = vadd.f32 %v12215_v36, %v20963_v48 }
 0x625   :  { %12290 = vst [vmem:[%s21183_s11 + $0xb0] sm:$0xff] %v13686_v59  ;;  %v11458_v58 = vpop.f32.mrb[184].mxu0 }
 0x626   :  { %12291 = vst [vmem:[%s21183_s11 + $0xb8] sm:$0xff] %v13687_v50  ;;  %v13668_v43 = vadd.f32 %v11458_v58, %v20905_v30  ;;  %v11460_v39 = vpop.f32.mrb[185].mxu0 }
 0x627   :  { %v13669_v13 = vadd.f32 %v11460_v39, %v20908_v0  ;;  %v11462_v2 = vpop.f32.mrb[186].mxu0 }
 0x628   :  { %12316 = vst [vmem:[%s21183_s11 + $0x180] sm:$0xff] %v13668_v43  ;;  %v13670_v18 = vadd.f32 %v11462_v2, %v20905_v30  ;;  %v12219_v4 = vpop.f32.mrb[156].mxu1  ;;  %v11464_v15 = vpop.f32.mrb[187].mxu0 }
 0x629   :  { %12317 = vst [vmem:[%s21183_s11 + $0x188] sm:$0xff] %v13669_v13  ;;  %v13688_v8 = vadd.f32 %v12219_v4, %v20959_v1  ;;  %v13671_v11 = vadd.f32 %v11464_v15, %v20908_v0  ;;  %v12221_v55 = vpop.f32.mrb[157].mxu1 }
 0x62a   :  { %12320 = vst [vmem:[%s21183_s11 + $0x1a0] sm:$0xff] %v13670_v18  ;;  %v13689_v28 = vadd.f32 %v12221_v55, %v20963_v48  ;;  %v12223_v63 = vpop.f32.mrb[158].mxu1 }
 0x62b   :  { %12294 = vst [vmem:[%s21183_s11 + $0xd0] sm:$0xff] %v13688_v8  ;;  %12321 = vst [vmem:[%s21183_s11 + $0x1a8] sm:$0xff] %v13671_v11  ;;  %v13690_v46 = vadd.f32 %v12223_v63, %v20959_v1  ;;  %v12225_v12 = vpop.f32.mrb[159].mxu1 }
 0x62c   :  { %12295 = vst [vmem:[%s21183_s11 + $0xd8] sm:$0xff] %v13689_v28  ;;  %v13691_v26 = vadd.f32 %v12225_v12, %v20963_v48 }
 0x62d   :  { %12298 = vst [vmem:[%s21183_s11 + $0xf0] sm:$0xff] %v13690_v46  ;;  %v11468_v6 = vpop.f32.mrb[188].mxu0 }
 0x62e   :  { %12299 = vst [vmem:[%s21183_s11 + $0xf8] sm:$0xff] %v13691_v26  ;;  %v13672_v31 = vadd.f32 %v11468_v6, %v20905_v30  ;;  %v11470_v41 = vpop.f32.mrb[189].mxu0 }
 0x62f   :  { %v13673_v9 = vadd.f32 %v11470_v41, %v20908_v0  ;;  %v11472_v51 = vpop.f32.mrb[190].mxu0 }
 0x630   :  { %12324 = vst [vmem:[%s21183_s11 + $0x1c0] sm:$0xff] %v13672_v31  ;;  %v13674_v54 = vadd.f32 %v11472_v51, %v20905_v30  ;;  %v12229_v7 = vpop.f32.mrb[160].mxu1  ;;  %v11474_v35 = vpop.f32.mrb[191].mxu0 }
 0x631   :  { %12325 = vst [vmem:[%s21183_s11 + $0x1c8] sm:$0xff] %v13673_v9  ;;  %v13692_v27 = vadd.f32 %v12229_v7, %v20959_v1  ;;  %v13675_v10 = vadd.f32 %v11474_v35, %v20908_v0  ;;  %v12231_v61 = vpop.f32.mrb[161].mxu1 }
 0x632   :  { %12328 = vst [vmem:[%s21183_s11 + $0x1e0] sm:$0xff] %v13674_v54  ;;  %v13693_v56 = vadd.f32 %v12231_v61, %v20963_v48  ;;  %v12233_v29 = vpop.f32.mrb[162].mxu1 }
 0x633   :  { %12302 = vst [vmem:[%s21183_s11 + $0x110] sm:$0xff] %v13692_v27  ;;  %12329 = vst [vmem:[%s21183_s11 + $0x1e8] sm:$0xff] %v13675_v10  ;;  %v13694_v30 = vadd.f32 %v12233_v29, %v20959_v1  ;;  %v12235_v17 = vpop.f32.mrb[163].mxu1 }
 0x634   :  { %12303 = vst [vmem:[%s21183_s11 + $0x118] sm:$0xff] %v13693_v56  ;;  %v13695_v0 = vadd.f32 %v12235_v17, %v20963_v48 }
 0x635   :  { %12306 = vst [vmem:[%s21183_s11 + $0x130] sm:$0xff] %v13694_v30 }
 0x636   :  { %12307 = vst [vmem:[%s21183_s11 + $0x138] sm:$0xff] %v13695_v0 }
 0x638   :  { %v12239_v49 = vpop.f32.mrb[164].mxu1 }
 0x639   :  { %v13696_v44 = vadd.f32 %v12239_v49, %v20959_v1  ;;  %v12241_v60 = vpop.f32.mrb[165].mxu1 }
 0x63a   :  { %v13697_v33 = vadd.f32 %v12241_v60, %v20963_v48  ;;  %v12243_v5 = vpop.f32.mrb[166].mxu1 }
 0x63b   :  { %12310 = vst [vmem:[%s21183_s11 + $0x150] sm:$0xff] %v13696_v44  ;;  %v13698_v52 = vadd.f32 %v12243_v5, %v20959_v1  ;;  %v12245_v16 = vpop.f32.mrb[167].mxu1 }
 0x63c   :  { %12311 = vst [vmem:[%s21183_s11 + $0x158] sm:$0xff] %v13697_v33  ;;  %v13699_v19 = vadd.f32 %v12245_v16, %v20963_v48 }
 0x63d   :  { %12314 = vst [vmem:[%s21183_s11 + $0x170] sm:$0xff] %v13698_v52 }
 0x63e   :  { %12315 = vst [vmem:[%s21183_s11 + $0x178] sm:$0xff] %v13699_v19 }
 0x640   :  { %v12249_v22 = vpop.f32.mrb[168].mxu1 }
 0x641   :  { %v13700_v24 = vadd.f32 %v12249_v22, %v20959_v1  ;;  %v12251_v25 = vpop.f32.mrb[169].mxu1 }
 0x642   :  { %v13701_v23 = vadd.f32 %v12251_v25, %v20963_v48  ;;  %v12253_v42 = vpop.f32.mrb[170].mxu1 }
 0x643   :  { %12318 = vst [vmem:[%s21183_s11 + $0x190] sm:$0xff] %v13700_v24  ;;  %v13702_v34 = vadd.f32 %v12253_v42, %v20959_v1  ;;  %v12255_v3 = vpop.f32.mrb[171].mxu1 }
 0x644   :  { %12319 = vst [vmem:[%s21183_s11 + $0x198] sm:$0xff] %v13701_v23  ;;  %v13703_v53 = vadd.f32 %v12255_v3, %v20963_v48 }
 0x645   :  { %12322 = vst [vmem:[%s21183_s11 + $0x1b0] sm:$0xff] %v13702_v34 }
 0x646   :  { %12323 = vst [vmem:[%s21183_s11 + $0x1b8] sm:$0xff] %v13703_v53 }
 0x648   :  { %v12259_v37 = vpop.f32.mrb[172].mxu1 }
 0x649   :  { %v13704_v47 = vadd.f32 %v12259_v37, %v20959_v1  ;;  %v12261_v14 = vpop.f32.mrb[173].mxu1 }
 0x64a   :  { %v13705_v45 = vadd.f32 %v12261_v14, %v20963_v48  ;;  %v12263_v40 = vpop.f32.mrb[174].mxu1 }
 0x64b   :  { %12326 = vst [vmem:[%s21183_s11 + $0x1d0] sm:$0xff] %v13704_v47  ;;  %v13706_v57 = vadd.f32 %v12263_v40, %v20959_v1  ;;  %v12265_v62 = vpop.f32.mrb[175].mxu1 }
 0x64c   :  { %12327 = vst [vmem:[%s21183_s11 + $0x1d8] sm:$0xff] %v13705_v45  ;;  %v13707_v32 = vadd.f32 %v12265_v62, %v20963_v48 }
 0x64d   :  { %12330 = vst [vmem:[%s21183_s11 + $0x1f0] sm:$0xff] %v13706_v57 }
 0x64e   :  { %12331 = vst [vmem:[%s21183_s11 + $0x1f8] sm:$0xff] %v13707_v32 }

</bundles_post_ra>
